<compile_context>
chip_gen: v7x
topology: tpu7x:2x2x1
jax: 0.10.0
libtpu: 0.0.40
codegen_flags: <defaults>
</compile_context>

<pallas_src>
import math

import jax
import jax.numpy as jnp
from jax.experimental import pallas as pl
from jax.experimental.pallas import tpu as pltpu

# Small shapes consistent with the module defaults.
N_NODES = 16          # nodes per graph
IN_SIZE = 4           # raw node-feature dim (in_size)
D_MODEL = 32          # d_model
NUM_HEADS = 8         # num_heads (default)
HEAD_DIM = D_MODEL // NUM_HEADS
DIM_FF = 64           # dim_feedforward (default)
NUM_LAYERS = 4        # num_layers (default)
LN_EPS = 1e-5         # PyTorch LayerNorm default eps

NUM_GRAPHS = 8        # batch of graphs
GRAPHS_PER_BLOCK = 4  # graphs processed per grid step


def _layer_norm(x, gamma, beta):
    # One-pass stats: both reductions issue off the same operand,
    # var = E[x^2] - E[x]^2 (no dependent second reduction pass).
    mu = jnp.mean(x, axis=-1, keepdims=True)
    ex2 = jnp.mean(x * x, axis=-1, keepdims=True)
    var = ex2 - mu * mu
    return (x - mu) * jax.lax.rsqrt(var + LN_EPS) * gamma + beta


# ---------------------------------------------------------------------------
# Fused kernel: embedding + all encoder layers, GRAPHS_PER_BLOCK graphs/step.
# ---------------------------------------------------------------------------
def sat_kernel(x_ref, we_ref,
               wqkv_ref, bqkv_ref, wo_ref, bo_ref,
               w1_ref, b1_ref, w2_ref, b2_ref, ln_ref,
               head_mask_ref, seg_ones_ref,
               out_ref):
    G, N, D, H = GRAPHS_PER_BLOCK, N_NODES, D_MODEL, NUM_HEADS
    HN = H * N

    head_mask = head_mask_ref[...]   # [H*N, D], 1 iff column belongs to row-block's head
    seg_ones = seg_ones_ref[...]     # [H*N, H*N], block-diagonal ones (per-head segments)

    # --- node embedding: Linear(in_size, d_model, bias=False) ---
    x = x_ref[...].reshape(G * N, IN_SIZE)
    h = jnp.dot(x, we_ref[...], preferred_element_type=jnp.float32)     # [G*N, D]

    # --- num_layers post-norm encoder layers (dropout=0, batch_norm=False) ---
    for layer in range(NUM_LAYERS):
        wqkv, bqkv = wqkv_ref[layer], bqkv_ref[layer]
        wo, bo = wo_ref[layer], bo_ref[layer]
        w1, b1 = w1_ref[layer], b1_ref[layer]
        w2, b2 = w2_ref[layer], b2_ref[layer]
        ln = ln_ref[layer]                       # [4, D]: g1, be1, g2, be2
        g1, be1 = ln[0:1, :], ln[1:2, :]
        g2, be2 = ln[2:3, :], ln[3:4, :]

        # fused QKV projection (1/sqrt(head_dim) scale pre-folded into Wq, bq)
        qkv = jnp.dot(h, wqkv, preferred_element_type=jnp.float32) + bqkv
        q = qkv[:, 0:D].reshape(G, N, D)
        k = qkv[:, D:2 * D].reshape(G, N, D)
        v = qkv[:, 2 * D:3 * D].reshape(G, N, D)

        # Block-diagonal head replication along sublanes: row block hh of
        # k_bd/v_bd holds k/v with only head hh's channels nonzero.
        k_bd = jnp.concatenate([k] * H, axis=1) * head_mask              # [G, H*N, D]
        v_bd = jnp.concatenate([v] * H, axis=1) * head_mask              # [G, H*N, D]

        # Lane-dense scores: s[g, i, hh*N + j] = q_hh[i] . k_hh[j]  -> [G, N, H*N]
        s = jnp.einsum('gnd,gmd->gnm', q, k_bd,
                       preferred_element_type=jnp.float32)
        # Global per-row max is a valid stabilizer for every head segment.
        s = s - jnp.max(s, axis=-1, keepdims=True)
        p = jnp.exp(s)
        # Segmented row-sum via one MXU matmul with block-diagonal ones.
        denom = jnp.dot(p.reshape(G * N, HN), seg_ones,
                        preferred_element_type=jnp.float32).reshape(G, N, HN)
        p = p * pl.reciprocal(denom, approx=True)
        # ctx lands already merged across heads: column c reads head c//HEAD_DIM.
        ctx = jnp.einsum('gnm,gmd->gnd', p, v_bd,
                         preferred_element_type=jnp.float32).reshape(G * N, D)
        attn = jnp.dot(ctx, wo, preferred_element_type=jnp.float32) + bo

        # residual + norm1
        h = _layer_norm(h + attn, g1, be1)

        # feed-forward: linear1 -> ReLU -> linear2
        f = jnp.dot(h, w1, preferred_element_type=jnp.float32) + b1
        f = jnp.maximum(f, 0.0)
        f = jnp.dot(f, w2, preferred_element_type=jnp.float32) + b2

        # residual + norm2
        h = _layer_norm(h + f, g2, be2)

    out_ref[...] = h.reshape(G, N, D)


# ---------------------------------------------------------------------------
# Wrapper
# ---------------------------------------------------------------------------
def sat_forward(x, p):
    B = x.shape[0]
    G = GRAPHS_PER_BLOCK
    L = NUM_LAYERS
    assert B % G == 0

    const3 = lambda b: (0, 0, 0)   # weight blocks: DMA'd once, VMEM-resident
    const2 = lambda b: (0, 0)

    return pl.pallas_call(
        sat_kernel,
        out_shape=jax.ShapeDtypeStruct((B, N_NODES, D_MODEL), jnp.float32),
        grid=(B // G,),
        in_specs=[
            pl.BlockSpec((G, N_NODES, IN_SIZE), lambda b: (b, 0, 0)),
            pl.BlockSpec((IN_SIZE, D_MODEL), const2),
            pl.BlockSpec((L, D_MODEL, 3 * D_MODEL), const3),
            pl.BlockSpec((L, 1, 3 * D_MODEL), const3),
            pl.BlockSpec((L, D_MODEL, D_MODEL), const3),
            pl.BlockSpec((L, 1, D_MODEL), const3),
            pl.BlockSpec((L, D_MODEL, DIM_FF), const3),
            pl.BlockSpec((L, 1, DIM_FF), const3),
            pl.BlockSpec((L, DIM_FF, D_MODEL), const3),
            pl.BlockSpec((L, 1, D_MODEL), const3),
            pl.BlockSpec((L, 4, D_MODEL), const3),
            pl.BlockSpec((NUM_HEADS * N_NODES, D_MODEL), const2),
            pl.BlockSpec((NUM_HEADS * N_NODES, NUM_HEADS * N_NODES), const2),
        ],
        out_specs=pl.BlockSpec((G, N_NODES, D_MODEL), lambda b: (b, 0, 0)),
        compiler_params=pltpu.CompilerParams(
            dimension_semantics=("parallel",)),   # v7x: shard batch over 2 TCs
    )(x, p['embed_w'],
      p['wqkv'], p['bqkv'], p['wo'], p['bo'],
      p['w1'], p['b1'], p['w2'], p['b2'], p['ln'],
      p['head_mask'], p['seg_ones'])


# ---------------------------------------------------------------------------
# Deterministic parameter init (synthetic, no checkpoint)
# ---------------------------------------------------------------------------
def init_params(key):
    ks = jax.random.split(key, 8)

    def w(k, a, b):
        # stacked over layers, [L, a, b], pre-transposed to [in, out]
        return (jax.random.normal(k, (NUM_LAYERS, a, b), jnp.float32)
                * (1.0 / math.sqrt(a)))

    scale = 1.0 / math.sqrt(HEAD_DIM)
    wq = w(ks[1], D_MODEL, D_MODEL)
    wk = w(ks[2], D_MODEL, D_MODEL)
    wv = w(ks[3], D_MODEL, D_MODEL)
    bq = jnp.zeros((NUM_LAYERS, 1, D_MODEL), jnp.float32)
    bk = jnp.zeros((NUM_LAYERS, 1, D_MODEL), jnp.float32)
    bv = jnp.zeros((NUM_LAYERS, 1, D_MODEL), jnp.float32)

    ones_d = jnp.ones((NUM_LAYERS, 1, D_MODEL), jnp.float32)
    zeros_d = jnp.zeros((NUM_LAYERS, 1, D_MODEL), jnp.float32)

    # Precomputed masks (passed in, not rebuilt per call).
    rr = jnp.arange(NUM_HEADS * N_NODES)
    cc = jnp.arange(D_MODEL)
    head_mask = (rr[:, None] // N_NODES == cc[None, :] // HEAD_DIM).astype(jnp.float32)
    mm = jnp.arange(NUM_HEADS * N_NODES)
    seg_ones = (mm[:, None] // N_NODES == mm[None, :] // N_NODES).astype(jnp.float32)

    return {
        'embed_w': jax.random.normal(ks[0], (IN_SIZE, D_MODEL), jnp.float32)
                   * (1.0 / math.sqrt(IN_SIZE)),
        # fused QKV, with the attention scale folded into the Q projection
        'wqkv': jnp.concatenate([wq * scale, wk, wv], axis=-1),     # [L, D, 3D]
        'bqkv': jnp.concatenate([bq * scale, bk, bv], axis=-1),     # [L, 1, 3D]
        'wo': w(ks[4], D_MODEL, D_MODEL),
        'bo': jnp.zeros((NUM_LAYERS, 1, D_MODEL), jnp.float32),
        'w1': w(ks[5], D_MODEL, DIM_FF),
        'b1': jnp.zeros((NUM_LAYERS, 1, DIM_FF), jnp.float32),
        'w2': w(ks[6], DIM_FF, D_MODEL),
        'b2': jnp.zeros((NUM_LAYERS, 1, D_MODEL), jnp.float32),
        # packed LayerNorm params: rows = (gamma1, beta1, gamma2, beta2)
        'ln': jnp.concatenate([ones_d, zeros_d, ones_d, zeros_d], axis=1),  # [L, 4, D]
        'head_mask': head_mask,     # [H*N, D]
        'seg_ones': seg_ones,       # [H*N, H*N]
    }


if __name__ == "__main__":
    key = jax.random.PRNGKey(0)
    k_param, k_x = jax.random.split(key)

    # synthetic batch of graphs' node features (data.x per graph)
    x = jax.random.normal(k_x, (NUM_GRAPHS, N_NODES, IN_SIZE), jnp.float32)
    params = init_params(k_param)

    out = sat_forward(x, params)
    jax.block_until_ready(out)
    assert out.shape == (NUM_GRAPHS, N_NODES, D_MODEL)
    assert bool(jnp.isfinite(out).all())
    print("KERNEL_OK")
</pallas_src>

<mosaic_0001>
module attributes {stable_mosaic.version = 11 : i64} {
  func.func @sat_kernel(%arg0: i32, %arg1: memref<4x16x4xf32, #tpu.memory_space<vmem>>, %arg2: memref<4x32xf32, #tpu.memory_space<vmem>>, %arg3: memref<4x32x96xf32, #tpu.memory_space<vmem>>, %arg4: memref<4x1x96xf32, #tpu.memory_space<vmem>>, %arg5: memref<4x32x32xf32, #tpu.memory_space<vmem>>, %arg6: memref<4x1x32xf32, #tpu.memory_space<vmem>>, %arg7: memref<4x32x64xf32, #tpu.memory_space<vmem>>, %arg8: memref<4x1x64xf32, #tpu.memory_space<vmem>>, %arg9: memref<4x64x32xf32, #tpu.memory_space<vmem>>, %arg10: memref<4x1x32xf32, #tpu.memory_space<vmem>>, %arg11: memref<4x4x32xf32, #tpu.memory_space<vmem>>, %arg12: memref<128x32xf32, #tpu.memory_space<vmem>>, %arg13: memref<128x128xf32, #tpu.memory_space<vmem>>, %arg14: memref<4x16x32xf32, #tpu.memory_space<vmem>>) attributes {dimension_semantics = [#tpu.dimension_semantics<parallel>], iteration_bounds = array<i64: 2>, scalar_prefetch = 0 : i64, scratch_operands = 0 : i64, tpu.core_type = #tpu.core_type<tc>, window_params = [{transform_indices = @transform_0, window_bounds = array<i64: 4, 16, 4>}, {pipeline_mode = #tpu.pipeline_mode<synchronous>, transform_indices = @transform_1, window_bounds = array<i64: 4, 32>}, {pipeline_mode = #tpu.pipeline_mode<synchronous>, transform_indices = @transform_2, window_bounds = array<i64: 4, 32, 96>}, {pipeline_mode = #tpu.pipeline_mode<synchronous>, transform_indices = @transform_3, window_bounds = array<i64: 4, 1, 96>}, {pipeline_mode = #tpu.pipeline_mode<synchronous>, transform_indices = @transform_4, window_bounds = array<i64: 4, 32, 32>}, {pipeline_mode = #tpu.pipeline_mode<synchronous>, transform_indices = @transform_5, window_bounds = array<i64: 4, 1, 32>}, {pipeline_mode = #tpu.pipeline_mode<synchronous>, transform_indices = @transform_6, window_bounds = array<i64: 4, 32, 64>}, {pipeline_mode = #tpu.pipeline_mode<synchronous>, transform_indices = @transform_7, window_bounds = array<i64: 4, 1, 64>}, {pipeline_mode = #tpu.pipeline_mode<synchronous>, transform_indices = @transform_8, window_bounds = array<i64: 4, 64, 32>}, {pipeline_mode = #tpu.pipeline_mode<synchronous>, transform_indices = @transform_9, window_bounds = array<i64: 4, 1, 32>}, {pipeline_mode = #tpu.pipeline_mode<synchronous>, transform_indices = @transform_10, window_bounds = array<i64: 4, 4, 32>}, {pipeline_mode = #tpu.pipeline_mode<synchronous>, transform_indices = @transform_11, window_bounds = array<i64: 128, 32>}, {pipeline_mode = #tpu.pipeline_mode<synchronous>, transform_indices = @transform_12, window_bounds = array<i64: 128, 128>}, {transform_indices = @transform_13, window_bounds = array<i64: 4, 16, 32>}]} {
    %c0 = arith.constant 0 : index
    %c0_0 = arith.constant 0 : index
    %0 = vector.load %arg12[%c0, %c0_0] : memref<128x32xf32, #tpu.memory_space<vmem>>, vector<128x32xf32>
    %c0_1 = arith.constant 0 : index
    %c0_2 = arith.constant 0 : index
    %1 = vector.load %arg13[%c0_1, %c0_2] : memref<128x128xf32, #tpu.memory_space<vmem>>, vector<128x128xf32>
    %c0_3 = arith.constant 0 : index
    %c0_4 = arith.constant 0 : index
    %c0_5 = arith.constant 0 : index
    %2 = vector.load %arg1[%c0_3, %c0_4, %c0_5] : memref<4x16x4xf32, #tpu.memory_space<vmem>>, vector<4x16x4xf32>
    %3 = vector.shape_cast %2 : vector<4x16x4xf32> to vector<64x4xf32>
    %c0_6 = arith.constant 0 : index
    %c0_7 = arith.constant 0 : index
    %4 = vector.load %arg2[%c0_6, %c0_7] : memref<4x32xf32, #tpu.memory_space<vmem>>, vector<4x32xf32>
    %cst = arith.constant dense<0.000000e+00> : vector<64x32xf32>
    %5 = tpu.matmul %3, %4, %cst {dimension_numbers = #tpu.dot_dimension_numbers<[1], [0], [0], [1], [0, 0, 1, 1], [], []>} : vector<64x4xf32>, vector<4x32xf32>, vector<64x32xf32> -> vector<64x32xf32>
    %c0_8 = arith.constant 0 : index
    %c0_9 = arith.constant 0 : index
    %c0_10 = arith.constant 0 : index
    %6 = vector.load %arg3[%c0_8, %c0_9, %c0_10] : memref<4x32x96xf32, #tpu.memory_space<vmem>>, vector<1x32x96xf32>
    %7 = vector.shape_cast %6 : vector<1x32x96xf32> to vector<32x96xf32>
    %c0_11 = arith.constant 0 : index
    %c0_12 = arith.constant 0 : index
    %c0_13 = arith.constant 0 : index
    %8 = vector.load %arg4[%c0_11, %c0_12, %c0_13] : memref<4x1x96xf32, #tpu.memory_space<vmem>>, vector<1x1x96xf32>
    %9 = vector.shape_cast %8 : vector<1x1x96xf32> to vector<1x96xf32>
    %c0_14 = arith.constant 0 : index
    %c0_15 = arith.constant 0 : index
    %c0_16 = arith.constant 0 : index
    %10 = vector.load %arg5[%c0_14, %c0_15, %c0_16] : memref<4x32x32xf32, #tpu.memory_space<vmem>>, vector<1x32x32xf32>
    %11 = vector.shape_cast %10 : vector<1x32x32xf32> to vector<32x32xf32>
    %c0_17 = arith.constant 0 : index
    %c0_18 = arith.constant 0 : index
    %c0_19 = arith.constant 0 : index
    %12 = vector.load %arg6[%c0_17, %c0_18, %c0_19] : memref<4x1x32xf32, #tpu.memory_space<vmem>>, vector<1x1x32xf32>
    %13 = vector.shape_cast %12 : vector<1x1x32xf32> to vector<1x32xf32>
    %c0_20 = arith.constant 0 : index
    %c0_21 = arith.constant 0 : index
    %c0_22 = arith.constant 0 : index
    %14 = vector.load %arg7[%c0_20, %c0_21, %c0_22] : memref<4x32x64xf32, #tpu.memory_space<vmem>>, vector<1x32x64xf32>
    %15 = vector.shape_cast %14 : vector<1x32x64xf32> to vector<32x64xf32>
    %c0_23 = arith.constant 0 : index
    %c0_24 = arith.constant 0 : index
    %c0_25 = arith.constant 0 : index
    %16 = vector.load %arg8[%c0_23, %c0_24, %c0_25] : memref<4x1x64xf32, #tpu.memory_space<vmem>>, vector<1x1x64xf32>
    %17 = vector.shape_cast %16 : vector<1x1x64xf32> to vector<1x64xf32>
    %c0_26 = arith.constant 0 : index
    %c0_27 = arith.constant 0 : index
    %c0_28 = arith.constant 0 : index
    %18 = vector.load %arg9[%c0_26, %c0_27, %c0_28] : memref<4x64x32xf32, #tpu.memory_space<vmem>>, vector<1x64x32xf32>
    %19 = vector.shape_cast %18 : vector<1x64x32xf32> to vector<64x32xf32>
    %c0_29 = arith.constant 0 : index
    %c0_30 = arith.constant 0 : index
    %c0_31 = arith.constant 0 : index
    %20 = vector.load %arg10[%c0_29, %c0_30, %c0_31] : memref<4x1x32xf32, #tpu.memory_space<vmem>>, vector<1x1x32xf32>
    %21 = vector.shape_cast %20 : vector<1x1x32xf32> to vector<1x32xf32>
    %c0_32 = arith.constant 0 : index
    %c0_33 = arith.constant 0 : index
    %c0_34 = arith.constant 0 : index
    %22 = vector.load %arg11[%c0_32, %c0_33, %c0_34] : memref<4x4x32xf32, #tpu.memory_space<vmem>>, vector<1x4x32xf32>
    %23 = vector.shape_cast %22 : vector<1x4x32xf32> to vector<4x32xf32>
    %24 = vector.extract_strided_slice %23 {offsets = [0, 0], sizes = [1, 32], strides = [1, 1]} : vector<4x32xf32> to vector<1x32xf32>
    %25 = vector.extract_strided_slice %23 {offsets = [1, 0], sizes = [1, 32], strides = [1, 1]} : vector<4x32xf32> to vector<1x32xf32>
    %26 = vector.extract_strided_slice %23 {offsets = [2, 0], sizes = [1, 32], strides = [1, 1]} : vector<4x32xf32> to vector<1x32xf32>
    %27 = vector.extract_strided_slice %23 {offsets = [3, 0], sizes = [1, 32], strides = [1, 1]} : vector<4x32xf32> to vector<1x32xf32>
    %cst_35 = arith.constant dense<0.000000e+00> : vector<64x96xf32>
    %28 = tpu.matmul %5, %7, %cst_35 {dimension_numbers = #tpu.dot_dimension_numbers<[1], [0], [0], [1], [0, 0, 1, 1], [], []>} : vector<64x32xf32>, vector<32x96xf32>, vector<64x96xf32> -> vector<64x96xf32>
    %29 = vector.broadcast %9 : vector<1x96xf32> to vector<64x96xf32>
    %30 = arith.addf %28, %29 : vector<64x96xf32>
    %31 = vector.extract_strided_slice %30 {offsets = [0, 0], sizes = [64, 32], strides = [1, 1]} : vector<64x96xf32> to vector<64x32xf32>
    %32 = vector.shape_cast %31 : vector<64x32xf32> to vector<4x16x32xf32>
    %33 = vector.extract_strided_slice %30 {offsets = [0, 32], sizes = [64, 32], strides = [1, 1]} : vector<64x96xf32> to vector<64x32xf32>
    %34 = vector.shape_cast %33 : vector<64x32xf32> to vector<4x16x32xf32>
    %35 = vector.extract_strided_slice %30 {offsets = [0, 64], sizes = [64, 32], strides = [1, 1]} : vector<64x96xf32> to vector<64x32xf32>
    %36 = vector.shape_cast %35 : vector<64x32xf32> to vector<4x16x32xf32>
    %37 = tpu.concatenate %34, %34, %34, %34, %34, %34, %34, %34 in 1 : vector<4x16x32xf32>, vector<4x16x32xf32>, vector<4x16x32xf32>, vector<4x16x32xf32>, vector<4x16x32xf32>, vector<4x16x32xf32>, vector<4x16x32xf32>, vector<4x16x32xf32> -> vector<4x128x32xf32>
    %38 = vector.shape_cast %0 : vector<128x32xf32> to vector<1x128x32xf32>
    %39 = vector.broadcast %38 : vector<1x128x32xf32> to vector<4x128x32xf32>
    %40 = arith.mulf %37, %39 : vector<4x128x32xf32>
    %41 = tpu.concatenate %36, %36, %36, %36, %36, %36, %36, %36 in 1 : vector<4x16x32xf32>, vector<4x16x32xf32>, vector<4x16x32xf32>, vector<4x16x32xf32>, vector<4x16x32xf32>, vector<4x16x32xf32>, vector<4x16x32xf32>, vector<4x16x32xf32> -> vector<4x128x32xf32>
    %42 = vector.shape_cast %0 : vector<128x32xf32> to vector<1x128x32xf32>
    %43 = vector.broadcast %42 : vector<1x128x32xf32> to vector<4x128x32xf32>
    %44 = arith.mulf %41, %43 : vector<4x128x32xf32>
    "tpu.trace_start"() <{level = 10 : i32, message = "gnd,gmd->gnm"}> : () -> ()
    %cst_36 = arith.constant dense<0.000000e+00> : vector<4x16x128xf32>
    %45 = tpu.matmul %32, %40, %cst_36 {dimension_numbers = #tpu.dot_dimension_numbers<[2], [2], [1], [1], [0, 0, 0, 1, 1, 1], [0], [0]>} : vector<4x16x32xf32>, vector<4x128x32xf32>, vector<4x16x128xf32> -> vector<4x16x128xf32>
    "tpu.trace_stop"() : () -> ()
    %cst_37 = arith.constant dense<0xFF800000> : vector<4x16xf32>
    %46 = vector.multi_reduction <maximumf>, %45, %cst_37 [2] : vector<4x16x128xf32> to vector<4x16xf32>
    %47 = vector.shape_cast %46 : vector<4x16xf32> to vector<4x16x1xf32>
    %48 = vector.broadcast %47 : vector<4x16x1xf32> to vector<4x16x128xf32>
    %49 = arith.subf %45, %48 : vector<4x16x128xf32>
    %50 = math.exp %49 : vector<4x16x128xf32>
    %51 = vector.shape_cast %50 : vector<4x16x128xf32> to vector<64x128xf32>
    %cst_38 = arith.constant dense<0.000000e+00> : vector<64x128xf32>
    %52 = tpu.matmul %51, %1, %cst_38 {dimension_numbers = #tpu.dot_dimension_numbers<[1], [0], [0], [1], [0, 0, 1, 1], [], []>} : vector<64x128xf32>, vector<128x128xf32>, vector<64x128xf32> -> vector<64x128xf32>
    %53 = vector.shape_cast %52 : vector<64x128xf32> to vector<4x16x128xf32>
    %54 = tpu.reciprocal %53 {approx = true} : vector<4x16x128xf32> -> vector<4x16x128xf32>
    %55 = arith.mulf %50, %54 : vector<4x16x128xf32>
    "tpu.trace_start"() <{level = 10 : i32, message = "gnm,gmd->gnd"}> : () -> ()
    %cst_39 = arith.constant dense<0.000000e+00> : vector<4x16x32xf32>
    %56 = tpu.matmul %55, %44, %cst_39 {dimension_numbers = #tpu.dot_dimension_numbers<[2], [1], [1], [2], [0, 0, 0, 1, 1, 2], [0], [0]>} : vector<4x16x128xf32>, vector<4x128x32xf32>, vector<4x16x32xf32> -> vector<4x16x32xf32>
    "tpu.trace_stop"() : () -> ()
    %57 = vector.shape_cast %56 : vector<4x16x32xf32> to vector<64x32xf32>
    %cst_40 = arith.constant dense<0.000000e+00> : vector<64x32xf32>
    %58 = tpu.matmul %57, %11, %cst_40 {dimension_numbers = #tpu.dot_dimension_numbers<[1], [0], [0], [1], [0, 0, 1, 1], [], []>} : vector<64x32xf32>, vector<32x32xf32>, vector<64x32xf32> -> vector<64x32xf32>
    %59 = vector.broadcast %13 : vector<1x32xf32> to vector<64x32xf32>
    %60 = arith.addf %58, %59 : vector<64x32xf32>
    %61 = arith.addf %5, %60 : vector<64x32xf32>
    %cst_41 = arith.constant dense<0.000000e+00> : vector<64xf32>
    %62 = vector.multi_reduction <add>, %61, %cst_41 [1] : vector<64x32xf32> to vector<64xf32>
    %63 = vector.shape_cast %62 : vector<64xf32> to vector<64x1xf32>
    %cst_42 = arith.constant 3.200000e+01 : f32
    %64 = vector.broadcast %cst_42 : f32 to vector<64x1xf32>
    %65 = arith.divf %63, %64 : vector<64x1xf32>
    %66 = arith.mulf %61, %61 : vector<64x32xf32>
    %cst_43 = arith.constant dense<0.000000e+00> : vector<64xf32>
    %67 = vector.multi_reduction <add>, %66, %cst_43 [1] : vector<64x32xf32> to vector<64xf32>
    %68 = vector.shape_cast %67 : vector<64xf32> to vector<64x1xf32>
    %cst_44 = arith.constant 3.200000e+01 : f32
    %69 = vector.broadcast %cst_44 : f32 to vector<64x1xf32>
    %70 = arith.divf %68, %69 : vector<64x1xf32>
    %71 = arith.mulf %65, %65 : vector<64x1xf32>
    %72 = arith.subf %70, %71 : vector<64x1xf32>
    %73 = vector.broadcast %65 : vector<64x1xf32> to vector<64x32xf32>
    %74 = arith.subf %61, %73 : vector<64x32xf32>
    %cst_45 = arith.constant 9.99999974E-6 : f32
    %75 = vector.broadcast %cst_45 : f32 to vector<64x1xf32>
    %76 = arith.addf %72, %75 : vector<64x1xf32>
    %77 = math.rsqrt %76 : vector<64x1xf32>
    %78 = vector.broadcast %77 : vector<64x1xf32> to vector<64x32xf32>
    %79 = arith.mulf %74, %78 : vector<64x32xf32>
    %80 = vector.broadcast %24 : vector<1x32xf32> to vector<64x32xf32>
    %81 = arith.mulf %79, %80 : vector<64x32xf32>
    %82 = vector.broadcast %25 : vector<1x32xf32> to vector<64x32xf32>
    %83 = arith.addf %81, %82 : vector<64x32xf32>
    %cst_46 = arith.constant dense<0.000000e+00> : vector<64x64xf32>
    %84 = tpu.matmul %83, %15, %cst_46 {dimension_numbers = #tpu.dot_dimension_numbers<[1], [0], [0], [1], [0, 0, 1, 1], [], []>} : vector<64x32xf32>, vector<32x64xf32>, vector<64x64xf32> -> vector<64x64xf32>
    %85 = vector.broadcast %17 : vector<1x64xf32> to vector<64x64xf32>
    %86 = arith.addf %84, %85 : vector<64x64xf32>
    %cst_47 = arith.constant 0.000000e+00 : f32
    %87 = vector.broadcast %cst_47 : f32 to vector<64x64xf32>
    %88 = arith.maximumf %86, %87 : vector<64x64xf32>
    %cst_48 = arith.constant dense<0.000000e+00> : vector<64x32xf32>
    %89 = tpu.matmul %88, %19, %cst_48 {dimension_numbers = #tpu.dot_dimension_numbers<[1], [0], [0], [1], [0, 0, 1, 1], [], []>} : vector<64x64xf32>, vector<64x32xf32>, vector<64x32xf32> -> vector<64x32xf32>
    %90 = vector.broadcast %21 : vector<1x32xf32> to vector<64x32xf32>
    %91 = arith.addf %89, %90 : vector<64x32xf32>
    %92 = arith.addf %83, %91 : vector<64x32xf32>
    %cst_49 = arith.constant dense<0.000000e+00> : vector<64xf32>
    %93 = vector.multi_reduction <add>, %92, %cst_49 [1] : vector<64x32xf32> to vector<64xf32>
    %94 = vector.shape_cast %93 : vector<64xf32> to vector<64x1xf32>
    %cst_50 = arith.constant 3.200000e+01 : f32
    %95 = vector.broadcast %cst_50 : f32 to vector<64x1xf32>
    %96 = arith.divf %94, %95 : vector<64x1xf32>
    %97 = arith.mulf %92, %92 : vector<64x32xf32>
    %cst_51 = arith.constant dense<0.000000e+00> : vector<64xf32>
    %98 = vector.multi_reduction <add>, %97, %cst_51 [1] : vector<64x32xf32> to vector<64xf32>
    %99 = vector.shape_cast %98 : vector<64xf32> to vector<64x1xf32>
    %cst_52 = arith.constant 3.200000e+01 : f32
    %100 = vector.broadcast %cst_52 : f32 to vector<64x1xf32>
    %101 = arith.divf %99, %100 : vector<64x1xf32>
    %102 = arith.mulf %96, %96 : vector<64x1xf32>
    %103 = arith.subf %101, %102 : vector<64x1xf32>
    %104 = vector.broadcast %96 : vector<64x1xf32> to vector<64x32xf32>
    %105 = arith.subf %92, %104 : vector<64x32xf32>
    %cst_53 = arith.constant 9.99999974E-6 : f32
    %106 = vector.broadcast %cst_53 : f32 to vector<64x1xf32>
    %107 = arith.addf %103, %106 : vector<64x1xf32>
    %108 = math.rsqrt %107 : vector<64x1xf32>
    %109 = vector.broadcast %108 : vector<64x1xf32> to vector<64x32xf32>
    %110 = arith.mulf %105, %109 : vector<64x32xf32>
    %111 = vector.broadcast %26 : vector<1x32xf32> to vector<64x32xf32>
    %112 = arith.mulf %110, %111 : vector<64x32xf32>
    %113 = vector.broadcast %27 : vector<1x32xf32> to vector<64x32xf32>
    %114 = arith.addf %112, %113 : vector<64x32xf32>
    %c1 = arith.constant 1 : index
    %c0_54 = arith.constant 0 : index
    %c0_55 = arith.constant 0 : index
    %115 = vector.load %arg3[%c1, %c0_54, %c0_55] : memref<4x32x96xf32, #tpu.memory_space<vmem>>, vector<1x32x96xf32>
    %116 = vector.shape_cast %115 : vector<1x32x96xf32> to vector<32x96xf32>
    %c1_56 = arith.constant 1 : index
    %c0_57 = arith.constant 0 : index
    %c0_58 = arith.constant 0 : index
    %117 = vector.load %arg4[%c1_56, %c0_57, %c0_58] : memref<4x1x96xf32, #tpu.memory_space<vmem>>, vector<1x1x96xf32>
    %118 = vector.shape_cast %117 : vector<1x1x96xf32> to vector<1x96xf32>
    %c1_59 = arith.constant 1 : index
    %c0_60 = arith.constant 0 : index
    %c0_61 = arith.constant 0 : index
    %119 = vector.load %arg5[%c1_59, %c0_60, %c0_61] : memref<4x32x32xf32, #tpu.memory_space<vmem>>, vector<1x32x32xf32>
    %120 = vector.shape_cast %119 : vector<1x32x32xf32> to vector<32x32xf32>
    %c1_62 = arith.constant 1 : index
    %c0_63 = arith.constant 0 : index
    %c0_64 = arith.constant 0 : index
    %121 = vector.load %arg6[%c1_62, %c0_63, %c0_64] : memref<4x1x32xf32, #tpu.memory_space<vmem>>, vector<1x1x32xf32>
    %122 = vector.shape_cast %121 : vector<1x1x32xf32> to vector<1x32xf32>
    %c1_65 = arith.constant 1 : index
    %c0_66 = arith.constant 0 : index
    %c0_67 = arith.constant 0 : index
    %123 = vector.load %arg7[%c1_65, %c0_66, %c0_67] : memref<4x32x64xf32, #tpu.memory_space<vmem>>, vector<1x32x64xf32>
    %124 = vector.shape_cast %123 : vector<1x32x64xf32> to vector<32x64xf32>
    %c1_68 = arith.constant 1 : index
    %c0_69 = arith.constant 0 : index
    %c0_70 = arith.constant 0 : index
    %125 = vector.load %arg8[%c1_68, %c0_69, %c0_70] : memref<4x1x64xf32, #tpu.memory_space<vmem>>, vector<1x1x64xf32>
    %126 = vector.shape_cast %125 : vector<1x1x64xf32> to vector<1x64xf32>
    %c1_71 = arith.constant 1 : index
    %c0_72 = arith.constant 0 : index
    %c0_73 = arith.constant 0 : index
    %127 = vector.load %arg9[%c1_71, %c0_72, %c0_73] : memref<4x64x32xf32, #tpu.memory_space<vmem>>, vector<1x64x32xf32>
    %128 = vector.shape_cast %127 : vector<1x64x32xf32> to vector<64x32xf32>
    %c1_74 = arith.constant 1 : index
    %c0_75 = arith.constant 0 : index
    %c0_76 = arith.constant 0 : index
    %129 = vector.load %arg10[%c1_74, %c0_75, %c0_76] : memref<4x1x32xf32, #tpu.memory_space<vmem>>, vector<1x1x32xf32>
    %130 = vector.shape_cast %129 : vector<1x1x32xf32> to vector<1x32xf32>
    %c1_77 = arith.constant 1 : index
    %c0_78 = arith.constant 0 : index
    %c0_79 = arith.constant 0 : index
    %131 = vector.load %arg11[%c1_77, %c0_78, %c0_79] : memref<4x4x32xf32, #tpu.memory_space<vmem>>, vector<1x4x32xf32>
    %132 = vector.shape_cast %131 : vector<1x4x32xf32> to vector<4x32xf32>
    %133 = vector.extract_strided_slice %132 {offsets = [0, 0], sizes = [1, 32], strides = [1, 1]} : vector<4x32xf32> to vector<1x32xf32>
    %134 = vector.extract_strided_slice %132 {offsets = [1, 0], sizes = [1, 32], strides = [1, 1]} : vector<4x32xf32> to vector<1x32xf32>
    %135 = vector.extract_strided_slice %132 {offsets = [2, 0], sizes = [1, 32], strides = [1, 1]} : vector<4x32xf32> to vector<1x32xf32>
    %136 = vector.extract_strided_slice %132 {offsets = [3, 0], sizes = [1, 32], strides = [1, 1]} : vector<4x32xf32> to vector<1x32xf32>
    %cst_80 = arith.constant dense<0.000000e+00> : vector<64x96xf32>
    %137 = tpu.matmul %114, %116, %cst_80 {dimension_numbers = #tpu.dot_dimension_numbers<[1], [0], [0], [1], [0, 0, 1, 1], [], []>} : vector<64x32xf32>, vector<32x96xf32>, vector<64x96xf32> -> vector<64x96xf32>
    %138 = vector.broadcast %118 : vector<1x96xf32> to vector<64x96xf32>
    %139 = arith.addf %137, %138 : vector<64x96xf32>
    %140 = vector.extract_strided_slice %139 {offsets = [0, 0], sizes = [64, 32], strides = [1, 1]} : vector<64x96xf32> to vector<64x32xf32>
    %141 = vector.shape_cast %140 : vector<64x32xf32> to vector<4x16x32xf32>
    %142 = vector.extract_strided_slice %139 {offsets = [0, 32], sizes = [64, 32], strides = [1, 1]} : vector<64x96xf32> to vector<64x32xf32>
    %143 = vector.shape_cast %142 : vector<64x32xf32> to vector<4x16x32xf32>
    %144 = vector.extract_strided_slice %139 {offsets = [0, 64], sizes = [64, 32], strides = [1, 1]} : vector<64x96xf32> to vector<64x32xf32>
    %145 = vector.shape_cast %144 : vector<64x32xf32> to vector<4x16x32xf32>
    %146 = tpu.concatenate %143, %143, %143, %143, %143, %143, %143, %143 in 1 : vector<4x16x32xf32>, vector<4x16x32xf32>, vector<4x16x32xf32>, vector<4x16x32xf32>, vector<4x16x32xf32>, vector<4x16x32xf32>, vector<4x16x32xf32>, vector<4x16x32xf32> -> vector<4x128x32xf32>
    %147 = vector.shape_cast %0 : vector<128x32xf32> to vector<1x128x32xf32>
    %148 = vector.broadcast %147 : vector<1x128x32xf32> to vector<4x128x32xf32>
    %149 = arith.mulf %146, %148 : vector<4x128x32xf32>
    %150 = tpu.concatenate %145, %145, %145, %145, %145, %145, %145, %145 in 1 : vector<4x16x32xf32>, vector<4x16x32xf32>, vector<4x16x32xf32>, vector<4x16x32xf32>, vector<4x16x32xf32>, vector<4x16x32xf32>, vector<4x16x32xf32>, vector<4x16x32xf32> -> vector<4x128x32xf32>
    %151 = vector.shape_cast %0 : vector<128x32xf32> to vector<1x128x32xf32>
    %152 = vector.broadcast %151 : vector<1x128x32xf32> to vector<4x128x32xf32>
    %153 = arith.mulf %150, %152 : vector<4x128x32xf32>
    "tpu.trace_start"() <{level = 10 : i32, message = "gnd,gmd->gnm"}> : () -> ()
    %cst_81 = arith.constant dense<0.000000e+00> : vector<4x16x128xf32>
    %154 = tpu.matmul %141, %149, %cst_81 {dimension_numbers = #tpu.dot_dimension_numbers<[2], [2], [1], [1], [0, 0, 0, 1, 1, 1], [0], [0]>} : vector<4x16x32xf32>, vector<4x128x32xf32>, vector<4x16x128xf32> -> vector<4x16x128xf32>
    "tpu.trace_stop"() : () -> ()
    %cst_82 = arith.constant dense<0xFF800000> : vector<4x16xf32>
    %155 = vector.multi_reduction <maximumf>, %154, %cst_82 [2] : vector<4x16x128xf32> to vector<4x16xf32>
    %156 = vector.shape_cast %155 : vector<4x16xf32> to vector<4x16x1xf32>
    %157 = vector.broadcast %156 : vector<4x16x1xf32> to vector<4x16x128xf32>
    %158 = arith.subf %154, %157 : vector<4x16x128xf32>
    %159 = math.exp %158 : vector<4x16x128xf32>
    %160 = vector.shape_cast %159 : vector<4x16x128xf32> to vector<64x128xf32>
    %cst_83 = arith.constant dense<0.000000e+00> : vector<64x128xf32>
    %161 = tpu.matmul %160, %1, %cst_83 {dimension_numbers = #tpu.dot_dimension_numbers<[1], [0], [0], [1], [0, 0, 1, 1], [], []>} : vector<64x128xf32>, vector<128x128xf32>, vector<64x128xf32> -> vector<64x128xf32>
    %162 = vector.shape_cast %161 : vector<64x128xf32> to vector<4x16x128xf32>
    %163 = tpu.reciprocal %162 {approx = true} : vector<4x16x128xf32> -> vector<4x16x128xf32>
    %164 = arith.mulf %159, %163 : vector<4x16x128xf32>
    "tpu.trace_start"() <{level = 10 : i32, message = "gnm,gmd->gnd"}> : () -> ()
    %cst_84 = arith.constant dense<0.000000e+00> : vector<4x16x32xf32>
    %165 = tpu.matmul %164, %153, %cst_84 {dimension_numbers = #tpu.dot_dimension_numbers<[2], [1], [1], [2], [0, 0, 0, 1, 1, 2], [0], [0]>} : vector<4x16x128xf32>, vector<4x128x32xf32>, vector<4x16x32xf32> -> vector<4x16x32xf32>
    "tpu.trace_stop"() : () -> ()
    %166 = vector.shape_cast %165 : vector<4x16x32xf32> to vector<64x32xf32>
    %cst_85 = arith.constant dense<0.000000e+00> : vector<64x32xf32>
    %167 = tpu.matmul %166, %120, %cst_85 {dimension_numbers = #tpu.dot_dimension_numbers<[1], [0], [0], [1], [0, 0, 1, 1], [], []>} : vector<64x32xf32>, vector<32x32xf32>, vector<64x32xf32> -> vector<64x32xf32>
    %168 = vector.broadcast %122 : vector<1x32xf32> to vector<64x32xf32>
    %169 = arith.addf %167, %168 : vector<64x32xf32>
    %170 = arith.addf %114, %169 : vector<64x32xf32>
    %cst_86 = arith.constant dense<0.000000e+00> : vector<64xf32>
    %171 = vector.multi_reduction <add>, %170, %cst_86 [1] : vector<64x32xf32> to vector<64xf32>
    %172 = vector.shape_cast %171 : vector<64xf32> to vector<64x1xf32>
    %cst_87 = arith.constant 3.200000e+01 : f32
    %173 = vector.broadcast %cst_87 : f32 to vector<64x1xf32>
    %174 = arith.divf %172, %173 : vector<64x1xf32>
    %175 = arith.mulf %170, %170 : vector<64x32xf32>
    %cst_88 = arith.constant dense<0.000000e+00> : vector<64xf32>
    %176 = vector.multi_reduction <add>, %175, %cst_88 [1] : vector<64x32xf32> to vector<64xf32>
    %177 = vector.shape_cast %176 : vector<64xf32> to vector<64x1xf32>
    %cst_89 = arith.constant 3.200000e+01 : f32
    %178 = vector.broadcast %cst_89 : f32 to vector<64x1xf32>
    %179 = arith.divf %177, %178 : vector<64x1xf32>
    %180 = arith.mulf %174, %174 : vector<64x1xf32>
    %181 = arith.subf %179, %180 : vector<64x1xf32>
    %182 = vector.broadcast %174 : vector<64x1xf32> to vector<64x32xf32>
    %183 = arith.subf %170, %182 : vector<64x32xf32>
    %cst_90 = arith.constant 9.99999974E-6 : f32
    %184 = vector.broadcast %cst_90 : f32 to vector<64x1xf32>
    %185 = arith.addf %181, %184 : vector<64x1xf32>
    %186 = math.rsqrt %185 : vector<64x1xf32>
    %187 = vector.broadcast %186 : vector<64x1xf32> to vector<64x32xf32>
    %188 = arith.mulf %183, %187 : vector<64x32xf32>
    %189 = vector.broadcast %133 : vector<1x32xf32> to vector<64x32xf32>
    %190 = arith.mulf %188, %189 : vector<64x32xf32>
    %191 = vector.broadcast %134 : vector<1x32xf32> to vector<64x32xf32>
    %192 = arith.addf %190, %191 : vector<64x32xf32>
    %cst_91 = arith.constant dense<0.000000e+00> : vector<64x64xf32>
    %193 = tpu.matmul %192, %124, %cst_91 {dimension_numbers = #tpu.dot_dimension_numbers<[1], [0], [0], [1], [0, 0, 1, 1], [], []>} : vector<64x32xf32>, vector<32x64xf32>, vector<64x64xf32> -> vector<64x64xf32>
    %194 = vector.broadcast %126 : vector<1x64xf32> to vector<64x64xf32>
    %195 = arith.addf %193, %194 : vector<64x64xf32>
    %cst_92 = arith.constant 0.000000e+00 : f32
    %196 = vector.broadcast %cst_92 : f32 to vector<64x64xf32>
    %197 = arith.maximumf %195, %196 : vector<64x64xf32>
    %cst_93 = arith.constant dense<0.000000e+00> : vector<64x32xf32>
    %198 = tpu.matmul %197, %128, %cst_93 {dimension_numbers = #tpu.dot_dimension_numbers<[1], [0], [0], [1], [0, 0, 1, 1], [], []>} : vector<64x64xf32>, vector<64x32xf32>, vector<64x32xf32> -> vector<64x32xf32>
    %199 = vector.broadcast %130 : vector<1x32xf32> to vector<64x32xf32>
    %200 = arith.addf %198, %199 : vector<64x32xf32>
    %201 = arith.addf %192, %200 : vector<64x32xf32>
    %cst_94 = arith.constant dense<0.000000e+00> : vector<64xf32>
    %202 = vector.multi_reduction <add>, %201, %cst_94 [1] : vector<64x32xf32> to vector<64xf32>
    %203 = vector.shape_cast %202 : vector<64xf32> to vector<64x1xf32>
    %cst_95 = arith.constant 3.200000e+01 : f32
    %204 = vector.broadcast %cst_95 : f32 to vector<64x1xf32>
    %205 = arith.divf %203, %204 : vector<64x1xf32>
    %206 = arith.mulf %201, %201 : vector<64x32xf32>
    %cst_96 = arith.constant dense<0.000000e+00> : vector<64xf32>
    %207 = vector.multi_reduction <add>, %206, %cst_96 [1] : vector<64x32xf32> to vector<64xf32>
    %208 = vector.shape_cast %207 : vector<64xf32> to vector<64x1xf32>
    %cst_97 = arith.constant 3.200000e+01 : f32
    %209 = vector.broadcast %cst_97 : f32 to vector<64x1xf32>
    %210 = arith.divf %208, %209 : vector<64x1xf32>
    %211 = arith.mulf %205, %205 : vector<64x1xf32>
    %212 = arith.subf %210, %211 : vector<64x1xf32>
    %213 = vector.broadcast %205 : vector<64x1xf32> to vector<64x32xf32>
    %214 = arith.subf %201, %213 : vector<64x32xf32>
    %cst_98 = arith.constant 9.99999974E-6 : f32
    %215 = vector.broadcast %cst_98 : f32 to vector<64x1xf32>
    %216 = arith.addf %212, %215 : vector<64x1xf32>
    %217 = math.rsqrt %216 : vector<64x1xf32>
    %218 = vector.broadcast %217 : vector<64x1xf32> to vector<64x32xf32>
    %219 = arith.mulf %214, %218 : vector<64x32xf32>
    %220 = vector.broadcast %135 : vector<1x32xf32> to vector<64x32xf32>
    %221 = arith.mulf %219, %220 : vector<64x32xf32>
    %222 = vector.broadcast %136 : vector<1x32xf32> to vector<64x32xf32>
    %223 = arith.addf %221, %222 : vector<64x32xf32>
    %c2 = arith.constant 2 : index
    %c0_99 = arith.constant 0 : index
    %c0_100 = arith.constant 0 : index
    %224 = vector.load %arg3[%c2, %c0_99, %c0_100] : memref<4x32x96xf32, #tpu.memory_space<vmem>>, vector<1x32x96xf32>
    %225 = vector.shape_cast %224 : vector<1x32x96xf32> to vector<32x96xf32>
    %c2_101 = arith.constant 2 : index
    %c0_102 = arith.constant 0 : index
    %c0_103 = arith.constant 0 : index
    %226 = vector.load %arg4[%c2_101, %c0_102, %c0_103] : memref<4x1x96xf32, #tpu.memory_space<vmem>>, vector<1x1x96xf32>
    %227 = vector.shape_cast %226 : vector<1x1x96xf32> to vector<1x96xf32>
    %c2_104 = arith.constant 2 : index
    %c0_105 = arith.constant 0 : index
    %c0_106 = arith.constant 0 : index
    %228 = vector.load %arg5[%c2_104, %c0_105, %c0_106] : memref<4x32x32xf32, #tpu.memory_space<vmem>>, vector<1x32x32xf32>
    %229 = vector.shape_cast %228 : vector<1x32x32xf32> to vector<32x32xf32>
    %c2_107 = arith.constant 2 : index
    %c0_108 = arith.constant 0 : index
    %c0_109 = arith.constant 0 : index
    %230 = vector.load %arg6[%c2_107, %c0_108, %c0_109] : memref<4x1x32xf32, #tpu.memory_space<vmem>>, vector<1x1x32xf32>
    %231 = vector.shape_cast %230 : vector<1x1x32xf32> to vector<1x32xf32>
    %c2_110 = arith.constant 2 : index
    %c0_111 = arith.constant 0 : index
    %c0_112 = arith.constant 0 : index
    %232 = vector.load %arg7[%c2_110, %c0_111, %c0_112] : memref<4x32x64xf32, #tpu.memory_space<vmem>>, vector<1x32x64xf32>
    %233 = vector.shape_cast %232 : vector<1x32x64xf32> to vector<32x64xf32>
    %c2_113 = arith.constant 2 : index
    %c0_114 = arith.constant 0 : index
    %c0_115 = arith.constant 0 : index
    %234 = vector.load %arg8[%c2_113, %c0_114, %c0_115] : memref<4x1x64xf32, #tpu.memory_space<vmem>>, vector<1x1x64xf32>
    %235 = vector.shape_cast %234 : vector<1x1x64xf32> to vector<1x64xf32>
    %c2_116 = arith.constant 2 : index
    %c0_117 = arith.constant 0 : index
    %c0_118 = arith.constant 0 : index
    %236 = vector.load %arg9[%c2_116, %c0_117, %c0_118] : memref<4x64x32xf32, #tpu.memory_space<vmem>>, vector<1x64x32xf32>
    %237 = vector.shape_cast %236 : vector<1x64x32xf32> to vector<64x32xf32>
    %c2_119 = arith.constant 2 : index
    %c0_120 = arith.constant 0 : index
    %c0_121 = arith.constant 0 : index
    %238 = vector.load %arg10[%c2_119, %c0_120, %c0_121] : memref<4x1x32xf32, #tpu.memory_space<vmem>>, vector<1x1x32xf32>
    %239 = vector.shape_cast %238 : vector<1x1x32xf32> to vector<1x32xf32>
    %c2_122 = arith.constant 2 : index
    %c0_123 = arith.constant 0 : index
    %c0_124 = arith.constant 0 : index
    %240 = vector.load %arg11[%c2_122, %c0_123, %c0_124] : memref<4x4x32xf32, #tpu.memory_space<vmem>>, vector<1x4x32xf32>
    %241 = vector.shape_cast %240 : vector<1x4x32xf32> to vector<4x32xf32>
    %242 = vector.extract_strided_slice %241 {offsets = [0, 0], sizes = [1, 32], strides = [1, 1]} : vector<4x32xf32> to vector<1x32xf32>
    %243 = vector.extract_strided_slice %241 {offsets = [1, 0], sizes = [1, 32], strides = [1, 1]} : vector<4x32xf32> to vector<1x32xf32>
    %244 = vector.extract_strided_slice %241 {offsets = [2, 0], sizes = [1, 32], strides = [1, 1]} : vector<4x32xf32> to vector<1x32xf32>
    %245 = vector.extract_strided_slice %241 {offsets = [3, 0], sizes = [1, 32], strides = [1, 1]} : vector<4x32xf32> to vector<1x32xf32>
    %cst_125 = arith.constant dense<0.000000e+00> : vector<64x96xf32>
    %246 = tpu.matmul %223, %225, %cst_125 {dimension_numbers = #tpu.dot_dimension_numbers<[1], [0], [0], [1], [0, 0, 1, 1], [], []>} : vector<64x32xf32>, vector<32x96xf32>, vector<64x96xf32> -> vector<64x96xf32>
    %247 = vector.broadcast %227 : vector<1x96xf32> to vector<64x96xf32>
    %248 = arith.addf %246, %247 : vector<64x96xf32>
    %249 = vector.extract_strided_slice %248 {offsets = [0, 0], sizes = [64, 32], strides = [1, 1]} : vector<64x96xf32> to vector<64x32xf32>
    %250 = vector.shape_cast %249 : vector<64x32xf32> to vector<4x16x32xf32>
    %251 = vector.extract_strided_slice %248 {offsets = [0, 32], sizes = [64, 32], strides = [1, 1]} : vector<64x96xf32> to vector<64x32xf32>
    %252 = vector.shape_cast %251 : vector<64x32xf32> to vector<4x16x32xf32>
    %253 = vector.extract_strided_slice %248 {offsets = [0, 64], sizes = [64, 32], strides = [1, 1]} : vector<64x96xf32> to vector<64x32xf32>
    %254 = vector.shape_cast %253 : vector<64x32xf32> to vector<4x16x32xf32>
    %255 = tpu.concatenate %252, %252, %252, %252, %252, %252, %252, %252 in 1 : vector<4x16x32xf32>, vector<4x16x32xf32>, vector<4x16x32xf32>, vector<4x16x32xf32>, vector<4x16x32xf32>, vector<4x16x32xf32>, vector<4x16x32xf32>, vector<4x16x32xf32> -> vector<4x128x32xf32>
    %256 = vector.shape_cast %0 : vector<128x32xf32> to vector<1x128x32xf32>
    %257 = vector.broadcast %256 : vector<1x128x32xf32> to vector<4x128x32xf32>
    %258 = arith.mulf %255, %257 : vector<4x128x32xf32>
    %259 = tpu.concatenate %254, %254, %254, %254, %254, %254, %254, %254 in 1 : vector<4x16x32xf32>, vector<4x16x32xf32>, vector<4x16x32xf32>, vector<4x16x32xf32>, vector<4x16x32xf32>, vector<4x16x32xf32>, vector<4x16x32xf32>, vector<4x16x32xf32> -> vector<4x128x32xf32>
    %260 = vector.shape_cast %0 : vector<128x32xf32> to vector<1x128x32xf32>
    %261 = vector.broadcast %260 : vector<1x128x32xf32> to vector<4x128x32xf32>
    %262 = arith.mulf %259, %261 : vector<4x128x32xf32>
    "tpu.trace_start"() <{level = 10 : i32, message = "gnd,gmd->gnm"}> : () -> ()
    %cst_126 = arith.constant dense<0.000000e+00> : vector<4x16x128xf32>
    %263 = tpu.matmul %250, %258, %cst_126 {dimension_numbers = #tpu.dot_dimension_numbers<[2], [2], [1], [1], [0, 0, 0, 1, 1, 1], [0], [0]>} : vector<4x16x32xf32>, vector<4x128x32xf32>, vector<4x16x128xf32> -> vector<4x16x128xf32>
    "tpu.trace_stop"() : () -> ()
    %cst_127 = arith.constant dense<0xFF800000> : vector<4x16xf32>
    %264 = vector.multi_reduction <maximumf>, %263, %cst_127 [2] : vector<4x16x128xf32> to vector<4x16xf32>
    %265 = vector.shape_cast %264 : vector<4x16xf32> to vector<4x16x1xf32>
    %266 = vector.broadcast %265 : vector<4x16x1xf32> to vector<4x16x128xf32>
    %267 = arith.subf %263, %266 : vector<4x16x128xf32>
    %268 = math.exp %267 : vector<4x16x128xf32>
    %269 = vector.shape_cast %268 : vector<4x16x128xf32> to vector<64x128xf32>
    %cst_128 = arith.constant dense<0.000000e+00> : vector<64x128xf32>
    %270 = tpu.matmul %269, %1, %cst_128 {dimension_numbers = #tpu.dot_dimension_numbers<[1], [0], [0], [1], [0, 0, 1, 1], [], []>} : vector<64x128xf32>, vector<128x128xf32>, vector<64x128xf32> -> vector<64x128xf32>
    %271 = vector.shape_cast %270 : vector<64x128xf32> to vector<4x16x128xf32>
    %272 = tpu.reciprocal %271 {approx = true} : vector<4x16x128xf32> -> vector<4x16x128xf32>
    %273 = arith.mulf %268, %272 : vector<4x16x128xf32>
    "tpu.trace_start"() <{level = 10 : i32, message = "gnm,gmd->gnd"}> : () -> ()
    %cst_129 = arith.constant dense<0.000000e+00> : vector<4x16x32xf32>
    %274 = tpu.matmul %273, %262, %cst_129 {dimension_numbers = #tpu.dot_dimension_numbers<[2], [1], [1], [2], [0, 0, 0, 1, 1, 2], [0], [0]>} : vector<4x16x128xf32>, vector<4x128x32xf32>, vector<4x16x32xf32> -> vector<4x16x32xf32>
    "tpu.trace_stop"() : () -> ()
    %275 = vector.shape_cast %274 : vector<4x16x32xf32> to vector<64x32xf32>
    %cst_130 = arith.constant dense<0.000000e+00> : vector<64x32xf32>
    %276 = tpu.matmul %275, %229, %cst_130 {dimension_numbers = #tpu.dot_dimension_numbers<[1], [0], [0], [1], [0, 0, 1, 1], [], []>} : vector<64x32xf32>, vector<32x32xf32>, vector<64x32xf32> -> vector<64x32xf32>
    %277 = vector.broadcast %231 : vector<1x32xf32> to vector<64x32xf32>
    %278 = arith.addf %276, %277 : vector<64x32xf32>
    %279 = arith.addf %223, %278 : vector<64x32xf32>
    %cst_131 = arith.constant dense<0.000000e+00> : vector<64xf32>
    %280 = vector.multi_reduction <add>, %279, %cst_131 [1] : vector<64x32xf32> to vector<64xf32>
    %281 = vector.shape_cast %280 : vector<64xf32> to vector<64x1xf32>
    %cst_132 = arith.constant 3.200000e+01 : f32
    %282 = vector.broadcast %cst_132 : f32 to vector<64x1xf32>
    %283 = arith.divf %281, %282 : vector<64x1xf32>
    %284 = arith.mulf %279, %279 : vector<64x32xf32>
    %cst_133 = arith.constant dense<0.000000e+00> : vector<64xf32>
    %285 = vector.multi_reduction <add>, %284, %cst_133 [1] : vector<64x32xf32> to vector<64xf32>
    %286 = vector.shape_cast %285 : vector<64xf32> to vector<64x1xf32>
    %cst_134 = arith.constant 3.200000e+01 : f32
    %287 = vector.broadcast %cst_134 : f32 to vector<64x1xf32>
    %288 = arith.divf %286, %287 : vector<64x1xf32>
    %289 = arith.mulf %283, %283 : vector<64x1xf32>
    %290 = arith.subf %288, %289 : vector<64x1xf32>
    %291 = vector.broadcast %283 : vector<64x1xf32> to vector<64x32xf32>
    %292 = arith.subf %279, %291 : vector<64x32xf32>
    %cst_135 = arith.constant 9.99999974E-6 : f32
    %293 = vector.broadcast %cst_135 : f32 to vector<64x1xf32>
    %294 = arith.addf %290, %293 : vector<64x1xf32>
    %295 = math.rsqrt %294 : vector<64x1xf32>
    %296 = vector.broadcast %295 : vector<64x1xf32> to vector<64x32xf32>
    %297 = arith.mulf %292, %296 : vector<64x32xf32>
    %298 = vector.broadcast %242 : vector<1x32xf32> to vector<64x32xf32>
    %299 = arith.mulf %297, %298 : vector<64x32xf32>
    %300 = vector.broadcast %243 : vector<1x32xf32> to vector<64x32xf32>
    %301 = arith.addf %299, %300 : vector<64x32xf32>
    %cst_136 = arith.constant dense<0.000000e+00> : vector<64x64xf32>
    %302 = tpu.matmul %301, %233, %cst_136 {dimension_numbers = #tpu.dot_dimension_numbers<[1], [0], [0], [1], [0, 0, 1, 1], [], []>} : vector<64x32xf32>, vector<32x64xf32>, vector<64x64xf32> -> vector<64x64xf32>
    %303 = vector.broadcast %235 : vector<1x64xf32> to vector<64x64xf32>
    %304 = arith.addf %302, %303 : vector<64x64xf32>
    %cst_137 = arith.constant 0.000000e+00 : f32
    %305 = vector.broadcast %cst_137 : f32 to vector<64x64xf32>
    %306 = arith.maximumf %304, %305 : vector<64x64xf32>
    %cst_138 = arith.constant dense<0.000000e+00> : vector<64x32xf32>
    %307 = tpu.matmul %306, %237, %cst_138 {dimension_numbers = #tpu.dot_dimension_numbers<[1], [0], [0], [1], [0, 0, 1, 1], [], []>} : vector<64x64xf32>, vector<64x32xf32>, vector<64x32xf32> -> vector<64x32xf32>
    %308 = vector.broadcast %239 : vector<1x32xf32> to vector<64x32xf32>
    %309 = arith.addf %307, %308 : vector<64x32xf32>
    %310 = arith.addf %301, %309 : vector<64x32xf32>
    %cst_139 = arith.constant dense<0.000000e+00> : vector<64xf32>
    %311 = vector.multi_reduction <add>, %310, %cst_139 [1] : vector<64x32xf32> to vector<64xf32>
    %312 = vector.shape_cast %311 : vector<64xf32> to vector<64x1xf32>
    %cst_140 = arith.constant 3.200000e+01 : f32
    %313 = vector.broadcast %cst_140 : f32 to vector<64x1xf32>
    %314 = arith.divf %312, %313 : vector<64x1xf32>
    %315 = arith.mulf %310, %310 : vector<64x32xf32>
    %cst_141 = arith.constant dense<0.000000e+00> : vector<64xf32>
    %316 = vector.multi_reduction <add>, %315, %cst_141 [1] : vector<64x32xf32> to vector<64xf32>
    %317 = vector.shape_cast %316 : vector<64xf32> to vector<64x1xf32>
    %cst_142 = arith.constant 3.200000e+01 : f32
    %318 = vector.broadcast %cst_142 : f32 to vector<64x1xf32>
    %319 = arith.divf %317, %318 : vector<64x1xf32>
    %320 = arith.mulf %314, %314 : vector<64x1xf32>
    %321 = arith.subf %319, %320 : vector<64x1xf32>
    %322 = vector.broadcast %314 : vector<64x1xf32> to vector<64x32xf32>
    %323 = arith.subf %310, %322 : vector<64x32xf32>
    %cst_143 = arith.constant 9.99999974E-6 : f32
    %324 = vector.broadcast %cst_143 : f32 to vector<64x1xf32>
    %325 = arith.addf %321, %324 : vector<64x1xf32>
    %326 = math.rsqrt %325 : vector<64x1xf32>
    %327 = vector.broadcast %326 : vector<64x1xf32> to vector<64x32xf32>
    %328 = arith.mulf %323, %327 : vector<64x32xf32>
    %329 = vector.broadcast %244 : vector<1x32xf32> to vector<64x32xf32>
    %330 = arith.mulf %328, %329 : vector<64x32xf32>
    %331 = vector.broadcast %245 : vector<1x32xf32> to vector<64x32xf32>
    %332 = arith.addf %330, %331 : vector<64x32xf32>
    %c3 = arith.constant 3 : index
    %c0_144 = arith.constant 0 : index
    %c0_145 = arith.constant 0 : index
    %333 = vector.load %arg3[%c3, %c0_144, %c0_145] : memref<4x32x96xf32, #tpu.memory_space<vmem>>, vector<1x32x96xf32>
    %334 = vector.shape_cast %333 : vector<1x32x96xf32> to vector<32x96xf32>
    %c3_146 = arith.constant 3 : index
    %c0_147 = arith.constant 0 : index
    %c0_148 = arith.constant 0 : index
    %335 = vector.load %arg4[%c3_146, %c0_147, %c0_148] : memref<4x1x96xf32, #tpu.memory_space<vmem>>, vector<1x1x96xf32>
    %336 = vector.shape_cast %335 : vector<1x1x96xf32> to vector<1x96xf32>
    %c3_149 = arith.constant 3 : index
    %c0_150 = arith.constant 0 : index
    %c0_151 = arith.constant 0 : index
    %337 = vector.load %arg5[%c3_149, %c0_150, %c0_151] : memref<4x32x32xf32, #tpu.memory_space<vmem>>, vector<1x32x32xf32>
    %338 = vector.shape_cast %337 : vector<1x32x32xf32> to vector<32x32xf32>
    %c3_152 = arith.constant 3 : index
    %c0_153 = arith.constant 0 : index
    %c0_154 = arith.constant 0 : index
    %339 = vector.load %arg6[%c3_152, %c0_153, %c0_154] : memref<4x1x32xf32, #tpu.memory_space<vmem>>, vector<1x1x32xf32>
    %340 = vector.shape_cast %339 : vector<1x1x32xf32> to vector<1x32xf32>
    %c3_155 = arith.constant 3 : index
    %c0_156 = arith.constant 0 : index
    %c0_157 = arith.constant 0 : index
    %341 = vector.load %arg7[%c3_155, %c0_156, %c0_157] : memref<4x32x64xf32, #tpu.memory_space<vmem>>, vector<1x32x64xf32>
    %342 = vector.shape_cast %341 : vector<1x32x64xf32> to vector<32x64xf32>
    %c3_158 = arith.constant 3 : index
    %c0_159 = arith.constant 0 : index
    %c0_160 = arith.constant 0 : index
    %343 = vector.load %arg8[%c3_158, %c0_159, %c0_160] : memref<4x1x64xf32, #tpu.memory_space<vmem>>, vector<1x1x64xf32>
    %344 = vector.shape_cast %343 : vector<1x1x64xf32> to vector<1x64xf32>
    %c3_161 = arith.constant 3 : index
    %c0_162 = arith.constant 0 : index
    %c0_163 = arith.constant 0 : index
    %345 = vector.load %arg9[%c3_161, %c0_162, %c0_163] : memref<4x64x32xf32, #tpu.memory_space<vmem>>, vector<1x64x32xf32>
    %346 = vector.shape_cast %345 : vector<1x64x32xf32> to vector<64x32xf32>
    %c3_164 = arith.constant 3 : index
    %c0_165 = arith.constant 0 : index
    %c0_166 = arith.constant 0 : index
    %347 = vector.load %arg10[%c3_164, %c0_165, %c0_166] : memref<4x1x32xf32, #tpu.memory_space<vmem>>, vector<1x1x32xf32>
    %348 = vector.shape_cast %347 : vector<1x1x32xf32> to vector<1x32xf32>
    %c3_167 = arith.constant 3 : index
    %c0_168 = arith.constant 0 : index
    %c0_169 = arith.constant 0 : index
    %349 = vector.load %arg11[%c3_167, %c0_168, %c0_169] : memref<4x4x32xf32, #tpu.memory_space<vmem>>, vector<1x4x32xf32>
    %350 = vector.shape_cast %349 : vector<1x4x32xf32> to vector<4x32xf32>
    %351 = vector.extract_strided_slice %350 {offsets = [0, 0], sizes = [1, 32], strides = [1, 1]} : vector<4x32xf32> to vector<1x32xf32>
    %352 = vector.extract_strided_slice %350 {offsets = [1, 0], sizes = [1, 32], strides = [1, 1]} : vector<4x32xf32> to vector<1x32xf32>
    %353 = vector.extract_strided_slice %350 {offsets = [2, 0], sizes = [1, 32], strides = [1, 1]} : vector<4x32xf32> to vector<1x32xf32>
    %354 = vector.extract_strided_slice %350 {offsets = [3, 0], sizes = [1, 32], strides = [1, 1]} : vector<4x32xf32> to vector<1x32xf32>
    %cst_170 = arith.constant dense<0.000000e+00> : vector<64x96xf32>
    %355 = tpu.matmul %332, %334, %cst_170 {dimension_numbers = #tpu.dot_dimension_numbers<[1], [0], [0], [1], [0, 0, 1, 1], [], []>} : vector<64x32xf32>, vector<32x96xf32>, vector<64x96xf32> -> vector<64x96xf32>
    %356 = vector.broadcast %336 : vector<1x96xf32> to vector<64x96xf32>
    %357 = arith.addf %355, %356 : vector<64x96xf32>
    %358 = vector.extract_strided_slice %357 {offsets = [0, 0], sizes = [64, 32], strides = [1, 1]} : vector<64x96xf32> to vector<64x32xf32>
    %359 = vector.shape_cast %358 : vector<64x32xf32> to vector<4x16x32xf32>
    %360 = vector.extract_strided_slice %357 {offsets = [0, 32], sizes = [64, 32], strides = [1, 1]} : vector<64x96xf32> to vector<64x32xf32>
    %361 = vector.shape_cast %360 : vector<64x32xf32> to vector<4x16x32xf32>
    %362 = vector.extract_strided_slice %357 {offsets = [0, 64], sizes = [64, 32], strides = [1, 1]} : vector<64x96xf32> to vector<64x32xf32>
    %363 = vector.shape_cast %362 : vector<64x32xf32> to vector<4x16x32xf32>
    %364 = tpu.concatenate %361, %361, %361, %361, %361, %361, %361, %361 in 1 : vector<4x16x32xf32>, vector<4x16x32xf32>, vector<4x16x32xf32>, vector<4x16x32xf32>, vector<4x16x32xf32>, vector<4x16x32xf32>, vector<4x16x32xf32>, vector<4x16x32xf32> -> vector<4x128x32xf32>
    %365 = vector.shape_cast %0 : vector<128x32xf32> to vector<1x128x32xf32>
    %366 = vector.broadcast %365 : vector<1x128x32xf32> to vector<4x128x32xf32>
    %367 = arith.mulf %364, %366 : vector<4x128x32xf32>
    %368 = tpu.concatenate %363, %363, %363, %363, %363, %363, %363, %363 in 1 : vector<4x16x32xf32>, vector<4x16x32xf32>, vector<4x16x32xf32>, vector<4x16x32xf32>, vector<4x16x32xf32>, vector<4x16x32xf32>, vector<4x16x32xf32>, vector<4x16x32xf32> -> vector<4x128x32xf32>
    %369 = vector.shape_cast %0 : vector<128x32xf32> to vector<1x128x32xf32>
    %370 = vector.broadcast %369 : vector<1x128x32xf32> to vector<4x128x32xf32>
    %371 = arith.mulf %368, %370 : vector<4x128x32xf32>
    "tpu.trace_start"() <{level = 10 : i32, message = "gnd,gmd->gnm"}> : () -> ()
    %cst_171 = arith.constant dense<0.000000e+00> : vector<4x16x128xf32>
    %372 = tpu.matmul %359, %367, %cst_171 {dimension_numbers = #tpu.dot_dimension_numbers<[2], [2], [1], [1], [0, 0, 0, 1, 1, 1], [0], [0]>} : vector<4x16x32xf32>, vector<4x128x32xf32>, vector<4x16x128xf32> -> vector<4x16x128xf32>
    "tpu.trace_stop"() : () -> ()
    %cst_172 = arith.constant dense<0xFF800000> : vector<4x16xf32>
    %373 = vector.multi_reduction <maximumf>, %372, %cst_172 [2] : vector<4x16x128xf32> to vector<4x16xf32>
    %374 = vector.shape_cast %373 : vector<4x16xf32> to vector<4x16x1xf32>
    %375 = vector.broadcast %374 : vector<4x16x1xf32> to vector<4x16x128xf32>
    %376 = arith.subf %372, %375 : vector<4x16x128xf32>
    %377 = math.exp %376 : vector<4x16x128xf32>
    %378 = vector.shape_cast %377 : vector<4x16x128xf32> to vector<64x128xf32>
    %cst_173 = arith.constant dense<0.000000e+00> : vector<64x128xf32>
    %379 = tpu.matmul %378, %1, %cst_173 {dimension_numbers = #tpu.dot_dimension_numbers<[1], [0], [0], [1], [0, 0, 1, 1], [], []>} : vector<64x128xf32>, vector<128x128xf32>, vector<64x128xf32> -> vector<64x128xf32>
    %380 = vector.shape_cast %379 : vector<64x128xf32> to vector<4x16x128xf32>
    %381 = tpu.reciprocal %380 {approx = true} : vector<4x16x128xf32> -> vector<4x16x128xf32>
    %382 = arith.mulf %377, %381 : vector<4x16x128xf32>
    "tpu.trace_start"() <{level = 10 : i32, message = "gnm,gmd->gnd"}> : () -> ()
    %cst_174 = arith.constant dense<0.000000e+00> : vector<4x16x32xf32>
    %383 = tpu.matmul %382, %371, %cst_174 {dimension_numbers = #tpu.dot_dimension_numbers<[2], [1], [1], [2], [0, 0, 0, 1, 1, 2], [0], [0]>} : vector<4x16x128xf32>, vector<4x128x32xf32>, vector<4x16x32xf32> -> vector<4x16x32xf32>
    "tpu.trace_stop"() : () -> ()
    %384 = vector.shape_cast %383 : vector<4x16x32xf32> to vector<64x32xf32>
    %cst_175 = arith.constant dense<0.000000e+00> : vector<64x32xf32>
    %385 = tpu.matmul %384, %338, %cst_175 {dimension_numbers = #tpu.dot_dimension_numbers<[1], [0], [0], [1], [0, 0, 1, 1], [], []>} : vector<64x32xf32>, vector<32x32xf32>, vector<64x32xf32> -> vector<64x32xf32>
    %386 = vector.broadcast %340 : vector<1x32xf32> to vector<64x32xf32>
    %387 = arith.addf %385, %386 : vector<64x32xf32>
    %388 = arith.addf %332, %387 : vector<64x32xf32>
    %cst_176 = arith.constant dense<0.000000e+00> : vector<64xf32>
    %389 = vector.multi_reduction <add>, %388, %cst_176 [1] : vector<64x32xf32> to vector<64xf32>
    %390 = vector.shape_cast %389 : vector<64xf32> to vector<64x1xf32>
    %cst_177 = arith.constant 3.200000e+01 : f32
    %391 = vector.broadcast %cst_177 : f32 to vector<64x1xf32>
    %392 = arith.divf %390, %391 : vector<64x1xf32>
    %393 = arith.mulf %388, %388 : vector<64x32xf32>
    %cst_178 = arith.constant dense<0.000000e+00> : vector<64xf32>
    %394 = vector.multi_reduction <add>, %393, %cst_178 [1] : vector<64x32xf32> to vector<64xf32>
    %395 = vector.shape_cast %394 : vector<64xf32> to vector<64x1xf32>
    %cst_179 = arith.constant 3.200000e+01 : f32
    %396 = vector.broadcast %cst_179 : f32 to vector<64x1xf32>
    %397 = arith.divf %395, %396 : vector<64x1xf32>
    %398 = arith.mulf %392, %392 : vector<64x1xf32>
    %399 = arith.subf %397, %398 : vector<64x1xf32>
    %400 = vector.broadcast %392 : vector<64x1xf32> to vector<64x32xf32>
    %401 = arith.subf %388, %400 : vector<64x32xf32>
    %cst_180 = arith.constant 9.99999974E-6 : f32
    %402 = vector.broadcast %cst_180 : f32 to vector<64x1xf32>
    %403 = arith.addf %399, %402 : vector<64x1xf32>
    %404 = math.rsqrt %403 : vector<64x1xf32>
    %405 = vector.broadcast %404 : vector<64x1xf32> to vector<64x32xf32>
    %406 = arith.mulf %401, %405 : vector<64x32xf32>
    %407 = vector.broadcast %351 : vector<1x32xf32> to vector<64x32xf32>
    %408 = arith.mulf %406, %407 : vector<64x32xf32>
    %409 = vector.broadcast %352 : vector<1x32xf32> to vector<64x32xf32>
    %410 = arith.addf %408, %409 : vector<64x32xf32>
    %cst_181 = arith.constant dense<0.000000e+00> : vector<64x64xf32>
    %411 = tpu.matmul %410, %342, %cst_181 {dimension_numbers = #tpu.dot_dimension_numbers<[1], [0], [0], [1], [0, 0, 1, 1], [], []>} : vector<64x32xf32>, vector<32x64xf32>, vector<64x64xf32> -> vector<64x64xf32>
    %412 = vector.broadcast %344 : vector<1x64xf32> to vector<64x64xf32>
    %413 = arith.addf %411, %412 : vector<64x64xf32>
    %cst_182 = arith.constant 0.000000e+00 : f32
    %414 = vector.broadcast %cst_182 : f32 to vector<64x64xf32>
    %415 = arith.maximumf %413, %414 : vector<64x64xf32>
    %cst_183 = arith.constant dense<0.000000e+00> : vector<64x32xf32>
    %416 = tpu.matmul %415, %346, %cst_183 {dimension_numbers = #tpu.dot_dimension_numbers<[1], [0], [0], [1], [0, 0, 1, 1], [], []>} : vector<64x64xf32>, vector<64x32xf32>, vector<64x32xf32> -> vector<64x32xf32>
    %417 = vector.broadcast %348 : vector<1x32xf32> to vector<64x32xf32>
    %418 = arith.addf %416, %417 : vector<64x32xf32>
    %419 = arith.addf %410, %418 : vector<64x32xf32>
    %cst_184 = arith.constant dense<0.000000e+00> : vector<64xf32>
    %420 = vector.multi_reduction <add>, %419, %cst_184 [1] : vector<64x32xf32> to vector<64xf32>
    %421 = vector.shape_cast %420 : vector<64xf32> to vector<64x1xf32>
    %cst_185 = arith.constant 3.200000e+01 : f32
    %422 = vector.broadcast %cst_185 : f32 to vector<64x1xf32>
    %423 = arith.divf %421, %422 : vector<64x1xf32>
    %424 = arith.mulf %419, %419 : vector<64x32xf32>
    %cst_186 = arith.constant dense<0.000000e+00> : vector<64xf32>
    %425 = vector.multi_reduction <add>, %424, %cst_186 [1] : vector<64x32xf32> to vector<64xf32>
    %426 = vector.shape_cast %425 : vector<64xf32> to vector<64x1xf32>
    %cst_187 = arith.constant 3.200000e+01 : f32
    %427 = vector.broadcast %cst_187 : f32 to vector<64x1xf32>
    %428 = arith.divf %426, %427 : vector<64x1xf32>
    %429 = arith.mulf %423, %423 : vector<64x1xf32>
    %430 = arith.subf %428, %429 : vector<64x1xf32>
    %431 = vector.broadcast %423 : vector<64x1xf32> to vector<64x32xf32>
    %432 = arith.subf %419, %431 : vector<64x32xf32>
    %cst_188 = arith.constant 9.99999974E-6 : f32
    %433 = vector.broadcast %cst_188 : f32 to vector<64x1xf32>
    %434 = arith.addf %430, %433 : vector<64x1xf32>
    %435 = math.rsqrt %434 : vector<64x1xf32>
    %436 = vector.broadcast %435 : vector<64x1xf32> to vector<64x32xf32>
    %437 = arith.mulf %432, %436 : vector<64x32xf32>
    %438 = vector.broadcast %353 : vector<1x32xf32> to vector<64x32xf32>
    %439 = arith.mulf %437, %438 : vector<64x32xf32>
    %440 = vector.broadcast %354 : vector<1x32xf32> to vector<64x32xf32>
    %441 = arith.addf %439, %440 : vector<64x32xf32>
    %442 = vector.shape_cast %441 : vector<64x32xf32> to vector<4x16x32xf32>
    %c0_189 = arith.constant 0 : index
    %c0_190 = arith.constant 0 : index
    %c0_191 = arith.constant 0 : index
    %443 = vector.load %arg14[%c0_189, %c0_190, %c0_191] : memref<4x16x32xf32, #tpu.memory_space<vmem>>, vector<4x16x32xf32>
    tpu.vector_store %arg14[%c0_189, %c0_190, %c0_191], %442 {strides = array<i32>} : memref<4x16x32xf32, #tpu.memory_space<vmem>>, vector<4x16x32xf32>,
    return
  }
  func.func @transform_0(%arg0: i32) -> (i32, i32, i32) {
    %c0_i32 = arith.constant 0 : i32
    %c0_i32_0 = arith.constant 0 : i32
    %c0_i32_1 = arith.constant 0 : i32
    return %arg0, %c0_i32, %c0_i32_0 : i32, i32, i32
  }
  func.func @transform_1(%arg0: i32) -> (i32, i32) {
    %c0_i32 = arith.constant 0 : i32
    %c0_i32_0 = arith.constant 0 : i32
    %c0_i32_1 = arith.constant 0 : i32
    return %c0_i32, %c0_i32_0 : i32, i32
  }
  func.func @transform_2(%arg0: i32) -> (i32, i32, i32) {
    %c0_i32 = arith.constant 0 : i32
    %c0_i32_0 = arith.constant 0 : i32
    %c0_i32_1 = arith.constant 0 : i32
    %c0_i32_2 = arith.constant 0 : i32
    return %c0_i32, %c0_i32_0, %c0_i32_1 : i32, i32, i32
  }
  func.func @transform_3(%arg0: i32) -> (i32, i32, i32) {
    %c0_i32 = arith.constant 0 : i32
    %c0_i32_0 = arith.constant 0 : i32
    %c0_i32_1 = arith.constant 0 : i32
    %c0_i32_2 = arith.constant 0 : i32
    return %c0_i32, %c0_i32_0, %c0_i32_1 : i32, i32, i32
  }
  func.func @transform_4(%arg0: i32) -> (i32, i32, i32) {
    %c0_i32 = arith.constant 0 : i32
    %c0_i32_0 = arith.constant 0 : i32
    %c0_i32_1 = arith.constant 0 : i32
    %c0_i32_2 = arith.constant 0 : i32
    return %c0_i32, %c0_i32_0, %c0_i32_1 : i32, i32, i32
  }
  func.func @transform_5(%arg0: i32) -> (i32, i32, i32) {
    %c0_i32 = arith.constant 0 : i32
    %c0_i32_0 = arith.constant 0 : i32
    %c0_i32_1 = arith.constant 0 : i32
    %c0_i32_2 = arith.constant 0 : i32
    return %c0_i32, %c0_i32_0, %c0_i32_1 : i32, i32, i32
  }
  func.func @transform_6(%arg0: i32) -> (i32, i32, i32) {
    %c0_i32 = arith.constant 0 : i32
    %c0_i32_0 = arith.constant 0 : i32
    %c0_i32_1 = arith.constant 0 : i32
    %c0_i32_2 = arith.constant 0 : i32
    return %c0_i32, %c0_i32_0, %c0_i32_1 : i32, i32, i32
  }
  func.func @transform_7(%arg0: i32) -> (i32, i32, i32) {
    %c0_i32 = arith.constant 0 : i32
    %c0_i32_0 = arith.constant 0 : i32
    %c0_i32_1 = arith.constant 0 : i32
    %c0_i32_2 = arith.constant 0 : i32
    return %c0_i32, %c0_i32_0, %c0_i32_1 : i32, i32, i32
  }
  func.func @transform_8(%arg0: i32) -> (i32, i32, i32) {
    %c0_i32 = arith.constant 0 : i32
    %c0_i32_0 = arith.constant 0 : i32
    %c0_i32_1 = arith.constant 0 : i32
    %c0_i32_2 = arith.constant 0 : i32
    return %c0_i32, %c0_i32_0, %c0_i32_1 : i32, i32, i32
  }
  func.func @transform_9(%arg0: i32) -> (i32, i32, i32) {
    %c0_i32 = arith.constant 0 : i32
    %c0_i32_0 = arith.constant 0 : i32
    %c0_i32_1 = arith.constant 0 : i32
    %c0_i32_2 = arith.constant 0 : i32
    return %c0_i32, %c0_i32_0, %c0_i32_1 : i32, i32, i32
  }
  func.func @transform_10(%arg0: i32) -> (i32, i32, i32) {
    %c0_i32 = arith.constant 0 : i32
    %c0_i32_0 = arith.constant 0 : i32
    %c0_i32_1 = arith.constant 0 : i32
    %c0_i32_2 = arith.constant 0 : i32
    return %c0_i32, %c0_i32_0, %c0_i32_1 : i32, i32, i32
  }
  func.func @transform_11(%arg0: i32) -> (i32, i32) {
    %c0_i32 = arith.constant 0 : i32
    %c0_i32_0 = arith.constant 0 : i32
    %c0_i32_1 = arith.constant 0 : i32
    return %c0_i32, %c0_i32_0 : i32, i32
  }
  func.func @transform_12(%arg0: i32) -> (i32, i32) {
    %c0_i32 = arith.constant 0 : i32
    %c0_i32_0 = arith.constant 0 : i32
    %c0_i32_1 = arith.constant 0 : i32
    return %c0_i32, %c0_i32_0 : i32, i32
  }
  func.func @transform_13(%arg0: i32) -> (i32, i32, i32) {
    %c0_i32 = arith.constant 0 : i32
    %c0_i32_0 = arith.constant 0 : i32
    %c0_i32_1 = arith.constant 0 : i32
    return %arg0, %c0_i32, %c0_i32_0 : i32, i32, i32
  }
}

</mosaic_0001>

<bundles_post_ra>
// kernel: tpu_custom_call.1
= control target key start
LH: loop header
LB: loop body
LE: loop exit
PB: predicated region body
PF: predicated region fallthrough
CT: control target
= control target key end

     0   :  { %18 = vsyncpa [#allocation3], 0  ;;  %s20747_s0 = inlined_call_operand.vmem [shape: f32[8,16,4], index: 0, kind: input, shape index: {}]   ;;  %s20748_s1 = inlined_call_operand.vmem [shape: f32[4,32], index: 1, kind: input, shape index: {}]   ;;  %s20749_s2 = inlined_call_operand.vmem [shape: f32[4,32,96], index: 2, kind: input, shape index: {}]   ;;  %s20750_s3 = inlined_call_operand.vmem [shape: f32[4,1,96], index: 3, kind: input, shape index: {}]   ;;  %s20751_s4 = inlined_call_operand.vmem [shape: f32[4,32,32], index: 4, kind: input, shape index: {}]   ;;  %s20752_s5 = inlined_call_operand.vmem [shape: f32[4,1,32], index: 5, kind: input, shape index: {}]   ;;  %s20753_s6 = inlined_call_operand.vmem [shape: f32[4,32,64], index: 6, kind: input, shape index: {}]   ;;  %s20754_s7 = inlined_call_operand.vmem [shape: f32[4,1,64], index: 7, kind: input, shape index: {}]   ;;  %s20755_s8 = inlined_call_operand.vmem [shape: f32[4,64,32], index: 8, kind: input, shape index: {}]   ;;  %s20756_s9 = inlined_call_operand.vmem [shape: f32[4,1,32], index: 9, kind: input, shape index: {}]   ;;  %s20757_s10 = inlined_call_operand.vmem [shape: f32[4,4,32], index: 10, kind: input, shape index: {}]   ;;  %s20758_s11 = inlined_call_operand.vmem [shape: f32[128,32], index: 11, kind: input, shape index: {}]   ;;  %s20759_s12 = inlined_call_operand.vmem [shape: f32[128,128], index: 12, kind: input, shape index: {}]   ;;  %s20760_s13 = inlined_call_operand.hbm [shape: f32[8,16,32], index: 13, kind: output, shape index: {}]  }
   0x1   :  { %20 = vsyncpa [#allocation3 + $0x1], 0  ;;  %s16683_s25 = smov 0   ;;  %s16685_s26 = smov 0  }
   0x2   :  { %s16687_s27 = smov 0   ;;  %s16689_s28 = smov 0  }
   0x3 LB: > { %20841 = sst [smem:[#allocation5_spill]] %s16601_s27  ;;  %s16704_s29 = sadd.s32 4294967295, %s16605_s28   ;;  %s16605_s28 = sphi %s16689_s28, %s20930_s28   ;;  %s16601_s27 = sphi %s16687_s27, %s20927_s27   ;;  %s16597_s26 = sphi %s16685_s26, %s20929_s26   ;;  %s16593_s25 = sphi %s16683_s25, %s20928_s25  }
   0x4   : > { %s10311_s30 = sadd.s32 4294967294, %s16605_s28   ;;  %s16708_s14 = sadd.s32 1, %s16605_s28  }
   0x5   : > { %s311_s15 = sadd.s32 1, %s16601_s27  ;;  %s308_s16 = ssub.s32 %s16605_s28, %s16708_s14 }
   0x6   : > { %p321_p0 = scmp.ne.s32.totalorder %s16601_s27, %s16597_s26  ;;  %p309_p1 = scmp.eq.s32.totalorder %s308_s16, 0 }
   0x7   : > { %p322_p2 = scmp.eq.s32.totalorder %s16704_s29, 1  ;;  %p327_p3 = scmp.ne.s32.totalorder %s16597_s26, %s16593_s25 }
   0x8   : > { %p328_p4 = scmp.eq.s32.totalorder %s10311_s30, 1  ;;  %p10314_p7 = scmp.ge.s32.totalorder %s16605_s28, 1 }
   0x9   : > { %s16719_s17 = scalar_select %p309_p1, %s16601_s27, %s311_s15  }
   0xa   : > { %p16721_p5 = por %p322_p2, %p321_p0  ;;  %p16725_p6 = por %p328_p4, %p327_p3 }
   0xb   : > { %20842 = sst [smem:[#allocation6_spill]] %s16719_s17  ;;  %p392_p8 = scmp.lt.s32.totalorder %s16605_s28, 3 }
   0xd   : > { %p393_p9 = pnand %p10314_p7, %p392_p8 }
   0xf   : > { %396 = sbr.rel (%p393_p9) target bundleno = 9174 (0x23d6), region = 72 }
  0x16   : > { %v485_v0 = vld [vmem:[%s20748_s1] sm:$0xf]  ;;  %vm511_vm0 = vcmask 1043456   ;;  %s10316_s22 = sshll.u32 %s16704_s29, 2  ;;  %v621_v2 = vld [vmem:[%s20749_s2 + $0x8] sm:$0xff]  ;;  %v622_v3 = vld [vmem:[%s20749_s2 + $0x10] sm:$0xff] }
  0x17   : > { %v620_v1 = vld [vmem:[%s20749_s2] sm:$0xff]  ;;  %11733 = vmatprep.subr.msk.mxu0 %vm511_vm0, %v485_v0  ;;  %p438_p10 = scmp.lt.s32.totalorder %s10316_s22, 7  ;;  %v623_v4 = vld [vmem:[%s20749_s2 + $0x18] sm:$0xff]  ;;  %vm486_vm1 = vcmask 31744   ;;  %v16761_v15 = vld [vmem:[%s20758_s11 + $0x10] sm:$0xff]  ;;  %s16607_s16 = smov 32  }
  0x18   : > { %11734 = vmatpush3.msk.msra.mxu0 %vm511_vm0, %v485_v0  ;;  %v13395_v5 = vpack.c.bf16 %v621_v2, %v620_v1  ;;  %v13399_v6 = vpack.c.bf16 %v623_v4, %v622_v3  ;;  %v16766_v16 = vld [vmem:[%s20758_s11] sm:$0xff]  ;;  %801 = vrot.lane.b32.xlu1 %v16761_v15, %s16607_s16  ;;  %v16773_v17 = vld [vmem:[%s20758_s11 + $0x18] sm:$0xff]  ;;  %v16778_v18 = vld [vmem:[%s20758_s11 + $0x8] sm:$0xff]  ;;  %vm651_vm2 = vcmask 261120   ;;  %s16608_s23 = smov 96   ;;  %s16609_s15 = smov 64  }
  0x19   : > { %s20932_s22 = smov (!%p438_p10, %s10316_s22), 7  ;;  %797 = vrot.lane.b32.xlu0 %v16766_v16, %s16607_s16  ;;  %v16785_v19 = vld [vmem:[%s20758_s11 + $0x28] sm:$0xff]  ;;  %v16790_v20 = vld [vmem:[%s20758_s11 + $0x20] sm:$0xff]  ;;  %v16797_v21 = vld [vmem:[%s20758_s11 + $0x38] sm:$0xff]  ;;  %vm2819_vm4 = vcmask 523264   ;;  %s16610_s27 = smov [#allocation2]  }
  0x1a   : > { %13396 = vmatprep.subr.bf16.mxu1 %v13395_v5  ;;  %s10841_s21 = sshll.u32 %s20932_s22, 4  ;;  %v16802_v22 = vld [vmem:[%s20758_s11 + $0x30] sm:$0xff]  ;;  %v16809_v23 = vld [vmem:[%s20758_s11 + $0x48] sm:$0xff]  ;;  %v16814_v24 = vld [vmem:[%s20758_s11 + $0x40] sm:$0xff]  ;;  %s10843_s22 = sshll.u32 %s16704_s29, 10 }
  0x1b   : > { %13398 = vmatpush3.bf16.msra.mxu1 %v13395_v5  ;;  %s442_s30 = scalar_lea.vmem %s20747_s0, %s10841_s21  ;;  %v16821_v25 = vld [vmem:[%s20758_s11 + $0x58] sm:$0xff]  ;;  %v16826_v26 = vld [vmem:[%s20758_s11 + $0x50] sm:$0xff]  ;;  %v16833_v27 = vld [vmem:[%s20758_s11 + $0x68] sm:$0xff]  ;;  %s20695_s24 = scalar_lea.hbm %s20760_s13, %s10843_s22 }
  0x1c   : > { %13400 = vmatprep.subr.bf16.mxu1 %v13399_v6  ;;  %v477_v7 = vld [vmem:[%s442_s30] sm:$0xff]  ;;  %v478_v8 = vld [vmem:[%s442_s30 + $0x8] sm:$0xff]  ;;  %v479_v9 = vld [vmem:[%s442_s30 + $0x10] sm:$0xff]  ;;  %803 = vrot.lane.b32.xlu1 %v16773_v17, %s16607_s16 }
  0x1d   : > { %11735 = vmatprep.mubr.msk.f32.mxu0 %vm486_vm1, %v477_v7  ;;  %v480_v10 = vld [vmem:[%s442_s30 + $0x18] sm:$0xff]  ;;  %v481_v11 = vld [vmem:[%s442_s30 + $0x20] sm:$0xff]  ;;  %v482_v12 = vld [vmem:[%s442_s30 + $0x28] sm:$0xff]  ;;  %799 = vrot.lane.b32.xlu0 %v16778_v18, %s16607_s16 }
  0x1e   : > { %11736 = vmatmul.mubr.msk.f32.vlgmr.msra.gmra.mrb[0].mxu0 %vm486_vm1, %v478_v8  ;;  %v483_v13 = vld [vmem:[%s442_s30 + $0x30] sm:$0xff]  ;;  %v484_v14 = vld [vmem:[%s442_s30 + $0x38] sm:$0xff]  ;;  %v16838_v28 = vld [vmem:[%s20758_s11 + $0x60] sm:$0xff] }
  0x1f   : > { %13402 = vmatpush3.bf16.msra.mxu1 %v13399_v6  ;;  %11738 = vmatprep.mubr.msk.f32.mxu0 %vm486_vm1, %v479_v9  ;;  %v16845_v29 = vld [vmem:[%s20758_s11 + $0x78] sm:$0xff]  ;;  %v16850_v30 = vld [vmem:[%s20758_s11 + $0x70] sm:$0xff]  ;;  %v16901_v45 = vld [vmem:[%s20750_s3] ss:$0 sm:$0xff] }
  0x20   : > { %807 = vrot.lane.b32.xlu1 %v16785_v19, %s16607_s16  ;;  %vm17113_vm3 = vmpackc.low %vm651_vm2, %vm651_vm2 }
  0x21   : > { %805 = vrot.lane.b32.xlu0 %v16790_v20, %s16607_s16 }
  0x22   : > { %11739 = vmatmul.mubr.msk.f32.gmra.mrb[2].mxu0 %vm486_vm1, %v480_v10 }
  0x23   : > { %11741 = vmatprep.mubr.msk.f32.mxu0 %vm486_vm1, %v481_v11 }
  0x24   : > { %811 = vrot.lane.b32.xlu1 %v16797_v21, %s16607_s16 }
  0x25   : > { %809 = vrot.lane.b32.xlu0 %v16802_v22, %s16607_s16 }
  0x26   : > { %11742 = vmatmul.mubr.msk.f32.gmra.mrb[4].mxu0 %vm486_vm1, %v482_v12 }
  0x27   : > { %11744 = vmatprep.mubr.msk.f32.mxu0 %vm486_vm1, %v483_v13 }
  0x28   : > { %815 = vrot.lane.b32.xlu1 %v16809_v23, %s16607_s16 }
  0x29   : > { %813 = vrot.lane.b32.xlu0 %v16814_v24, %s16607_s16 }
  0x2a   : > { %11745 = vmatmul.mubr.msk.f32.gmra.mrb[6].mxu0 %vm486_vm1, %v484_v14 }
  0x2c   : > { %819 = vrot.lane.b32.xlu1 %v16821_v25, %s16607_s16 }
  0x2d   : > { %817 = vrot.lane.b32.xlu0 %v16826_v26, %s16607_s16 }
  0x30   : > { %823 = vrot.lane.b32.xlu1 %v16833_v27, %s16607_s16 }
  0x31   : > { %821 = vrot.lane.b32.xlu0 %v16838_v28, %s16607_s16 }
  0x34   : > { %827 = vrot.lane.b32.xlu1 %v16845_v29, %s16607_s16 }
  0x35   : > { %825 = vrot.lane.b32.xlu0 %v16850_v30, %s16607_s16 }
  0x8a   : > { %v16886_v39 = vpop.permute.xlu1 %801 }
  0x8b   : > { %v16888_v40 = vpop.permute.xlu0 %797 }
  0x8e   : > { %v16890_v41 = vpop.permute.xlu1 %803 }
  0x8f   : > { %v16892_v42 = vpop.permute.xlu0 %799 }
  0x92   : > { %v16894_v43 = vpop.permute.xlu1 %807 }
  0x93   : > { %v16896_v44 = vpop.permute.xlu0 %805 }
  0x96   : > { %v16903_v47 = vpop.permute.xlu1 %811 }
  0x97   : > { %v16908_v50 = vpop.permute.xlu0 %809 }
  0x9a   : > { %v16929_v61 = vpop.permute.xlu1 %815 }
  0x9b   : > { %20845 = vst [vmem:[#allocation7_spill] sm:$0xff] %v16929_v61  ;;  %v16933_v63 = vpop.permute.xlu0 %813 }
  0x9c   : > { %20846 = vst [vmem:[#allocation8_spill] sm:$0xff] %v16933_v63 }
  0x9e   : > { %v16954_v13 = vpop.permute.xlu1 %819 }
  0x9f   : > { %20847 = vst [vmem:[#allocation9_spill] sm:$0xff] %v16954_v13  ;;  %v16956_v14 = vpop.permute.xlu0 %817 }
  0xa0   : > { %20848 = vst [vmem:[#allocation10_spill] sm:$0xff] %v16956_v14 }
  0xf1   : > { %v16854_v31 = vpop.f32.mrb[0].mxu0 }
  0xf2   : > { %v16856_v32 = vpop.f32.mrb[1].mxu0 }
  0xf3   : > { %11755 = vmatprep.mubr.msk.f32.mxu1 %vm651_vm2, %v16856_v32 }
  0xf4   : > { %11756 = vmatmul.mubr.msk.f32.vlgmr.msra.gmra.mrb[0].mxu1 %vm651_vm2, %v16854_v31 }
  0xf5   : > { %v16862_v33 = vpop.f32.mrb[2].mxu0 }
  0xf6   : > { %v16864_v34 = vpop.f32.mrb[3].mxu0 }
  0xf7   : > { %11758 = vmatprep.mubr.msk.f32.mxu1 %vm651_vm2, %v16864_v34 }
  0xf8   : > { %11759 = vmatmul.mubr.msk.f32.gmra.mrb[2].mxu1 %vm651_vm2, %v16862_v33 }
  0xf9   : > { %v16870_v35 = vpop.f32.mrb[4].mxu0 }
  0xfa   : > { %v16872_v36 = vpop.f32.mrb[5].mxu0 }
  0xfb   : > { %11761 = vmatprep.mubr.msk.f32.mxu1 %vm651_vm2, %v16872_v36 }
  0xfc   : > { %11762 = vmatmul.mubr.msk.f32.gmra.mrb[4].mxu1 %vm651_vm2, %v16870_v35 }
  0xfd   : > { %v16878_v37 = vpop.f32.mrb[6].mxu0 }
  0xfe   : > { %v16880_v38 = vpop.f32.mrb[7].mxu0 }
  0xff   : > { %11764 = vmatprep.mubr.msk.f32.mxu1 %vm651_vm2, %v16880_v38 }
 0x100   : > { %11765 = vmatmul.mubr.msk.f32.gmra.mrb[6].mxu1 %vm651_vm2, %v16878_v37 }
 0x1c7   : > { %v11757_v46 = vpop.f32.mrb[0].mxu1 }
 0x1c8   : > { %v16906_v48 = vadd.f32 %v11757_v46, %v16901_v45  ;;  %v742_v49 = vpop.f32.mrb[1].mxu1 }
 0x1c9   : > { %v16911_v51 = vadd.f32 %v16901_v45, %v742_v49 }
 0x1ca   : > { %v846_v52 = vmul.f32 %v16892_v42, %v16906_v48  ;;  %v848_v60 = vmul.f32 %v16890_v41, %v16906_v48  ;;  %v850_v4 = vmul.f32 %v16894_v43, %v16906_v48  ;;  %v852_v12 = vmul.f32 %v16903_v47, %v16906_v48 }
 0x1cb   : > { %v11760_v53 = vpop.f32.mrb[2].mxu1  ;;  %11799 = vmatprep.mubr.msk.f32.mxu0 %vm651_vm2, %v16911_v51  ;;  %v845_v54 = vmul.f32 %v16888_v40, %v16911_v51  ;;  %v847_v59 = vmul.f32 %v16886_v39, %v16911_v51  ;;  %v849_v3 = vmul.f32 %v16896_v44, %v16911_v51  ;;  %v851_v11 = vmul.f32 %v16908_v50, %v16911_v51 }
 0x1cc   : > { %v16920_v55 = vadd.f32 %v11760_v53, %v16901_v45  ;;  %v752_v56 = vpop.f32.mrb[3].mxu1 }
 0x1cd   : > { %v16923_v57 = vadd.f32 %v16901_v45, %v752_v56  ;;  %v15007_v58 = vpack.i.bf16 %v846_v52, %v845_v54  ;;  %v15017_v5 = vpack.i.bf16 %v848_v60, %v847_v59  ;;  %v15027_v46 = vpack.i.bf16 %v850_v4, %v849_v3  ;;  %v16974_v3 = vpop.permute.xlu0 %821 }
 0x1ce   : > { %v862_v62 = vmul.f32 %v16892_v42, %v16920_v55  ;;  %v864_v8 = vmul.f32 %v16890_v41, %v16920_v55  ;;  %v866_v53 = vmul.f32 %v16894_v43, %v16920_v55  ;;  %v853_v54 = vmul.f32 %v16933_v63, %v16911_v51  ;;  %20850 = vst [vmem:[#allocation12_spill] sm:$0xff] %v16974_v3 }
 0x1cf   : > { %15008 = vrot.lane.b32.xlu0 %v15007_v58, %s16608_s23  ;;  %v11763_v0 = vpop.f32.mrb[4].mxu1  ;;  %v861_v1 = vmul.f32 %v16888_v40, %v16923_v57  ;;  %11834 = vmatprep.mubr.msk.f32.mxu1 %vm651_vm2, %v16923_v57  ;;  %v863_v7 = vmul.f32 %v16886_v39, %v16923_v57  ;;  %v865_v52 = vmul.f32 %v16896_v44, %v16923_v57 }
 0x1d0   : > { %v762_v2 = vpop.f32.mrb[5].mxu1  ;;  %v854_v56 = vmul.f32 %v16929_v61, %v16906_v48  ;;  %v15037_v58 = vpack.i.bf16 %v852_v12, %v851_v11  ;;  %v867_v60 = vmul.f32 %v16908_v50, %v16923_v57  ;;  %v870_v11 = vmul.f32 %v16929_v61, %v16920_v55 }
 0x1d1   : > { %v15012_v6 = vpack.i.bf16 %v862_v62, %v861_v1  ;;  %v15022_v49 = vpack.i.bf16 %v864_v8, %v863_v7  ;;  %v15032_v59 = vpack.i.bf16 %v866_v53, %v865_v52  ;;  %v868_v62 = vmul.f32 %v16903_v47, %v16920_v55  ;;  %v16972_v1 = vpop.permute.xlu1 %823  ;;  %v16994_v52 = vpop.permute.xlu0 %825 }
 0x1d2   : > { %20849 = vst [vmem:[#allocation11_spill] sm:$0xff] %v16972_v1  ;;  %v15047_v4 = vpack.i.bf16 %v854_v56, %v853_v54  ;;  %v856_v7 = vmul.f32 %v16954_v13, %v16906_v48  ;;  %v869_v8 = vmul.f32 %v16933_v63, %v16923_v57  ;;  %v857_v12 = vmul.f32 %v16974_v3, %v16911_v51 }
 0x1d3   : > { %15018 = vrot.lane.b32.xlu0 %v15017_v5, %s16608_s23  ;;  %15013 = vrot.lane.b32.xlu1 %v15012_v6, %s16608_s23  ;;  %v11766_v9 = vpop.f32.mrb[6].mxu1  ;;  %v855_v5 = vmul.f32 %v16956_v14, %v16911_v51  ;;  %v15042_v6 = vpack.i.bf16 %v868_v62, %v867_v60  ;;  %20852 = vst [vmem:[#allocation14_spill] sm:$0xff] %v16994_v52 }
 0x1d4   : > { %v772_v10 = vpop.f32.mrb[7].mxu1  ;;  %v15052_v54 = vpack.i.bf16 %v870_v11, %v869_v8  ;;  %v871_v56 = vmul.f32 %v16956_v14, %v16923_v57  ;;  %v17006_v60 = vadd.f32 %v16901_v45, %v762_v2  ;;  %v859_v62 = vmul.f32 %v16994_v52, %v16911_v51 }
 0x1d5   : > { %v15057_v53 = vpack.i.bf16 %v856_v7, %v855_v5  ;;  %v873_v7 = vmul.f32 %v16974_v3, %v16923_v57  ;;  %v874_v8 = vmul.f32 %v16972_v1, %v16920_v55  ;;  %v17022_v2 = vadd.f32 %v16901_v45, %v772_v10 }
 0x1d7   : > { %15028 = vrot.lane.b32.xlu0 %v15027_v46, %s16608_s23  ;;  %15023 = vrot.lane.b32.xlu1 %v15022_v49, %s16608_s23  ;;  %v858_v46 = vmul.f32 %v16972_v1, %v16906_v48  ;;  %v16992_v49 = vpop.permute.xlu1 %827 }
 0x1d8   : > { %20851 = vst [vmem:[#allocation13_spill] sm:$0xff] %v16992_v49 }
 0x1d9   : > { %v15067_v5 = vpack.i.bf16 %v858_v46, %v857_v12  ;;  %v875_v12 = vmul.f32 %v16994_v52, %v16923_v57  ;;  %v15072_v46 = vpack.i.bf16 %v874_v8, %v873_v7 }
 0x1db   : > { %15038 = vrot.lane.b32.xlu0 %v15037_v58, %s16608_s23  ;;  %15033 = vrot.lane.b32.xlu1 %v15032_v59, %s16608_s23  ;;  %v872_v58 = vmul.f32 %v16954_v13, %v16920_v55  ;;  %v17003_v59 = vadd.f32 %v11763_v0, %v16901_v45  ;;  %v17019_v0 = vadd.f32 %v11766_v9, %v16901_v45 }
 0x1dc   : > { %v879_v45 = vmul.f32 %v16886_v39, %v17006_v60 }
 0x1dd   : > { %v880_v9 = vmul.f32 %v16890_v41, %v17003_v59 }
 0x1df   : > { %15048 = vrot.lane.b32.xlu0 %v15047_v4, %s16608_s23  ;;  %15043 = vrot.lane.b32.xlu1 %v15042_v6, %s16608_s23  ;;  %v860_v4 = vmul.f32 %v16992_v49, %v16906_v48  ;;  %v15062_v6 = vpack.i.bf16 %v872_v58, %v871_v56  ;;  %v878_v56 = vmul.f32 %v16892_v42, %v17003_v59 }
 0x1e0   : > { %v15097_v7 = vpack.i.bf16 %v880_v9, %v879_v45  ;;  %v897_v45 = vmul.f32 %v16896_v44, %v17022_v2  ;;  %v898_v9 = vmul.f32 %v16894_v43, %v17019_v0 }
 0x1e1   : > { %v15077_v11 = vpack.i.bf16 %v860_v4, %v859_v62  ;;  %v893_v62 = vmul.f32 %v16888_v40, %v17022_v2  ;;  %v894_v4 = vmul.f32 %v16892_v42, %v17019_v0 }
 0x1e3   : > { %15058 = vrot.lane.b32.xlu0 %v15057_v53, %s16608_s23  ;;  %15053 = vrot.lane.b32.xlu1 %v15052_v54, %s16608_s23  ;;  %v876_v53 = vmul.f32 %v16992_v49, %v16920_v55  ;;  %v877_v54 = vmul.f32 %v16888_v40, %v17006_v60  ;;  %v15092_v8 = vpack.i.bf16 %v894_v4, %v893_v62 }
 0x1e4   : > { %v15112_v4 = vpack.i.bf16 %v898_v9, %v897_v45 }
 0x1e5   : > { %v15082_v10 = vpack.i.bf16 %v876_v53, %v875_v12  ;;  %v15087_v58 = vpack.i.bf16 %v878_v56, %v877_v54  ;;  %v896_v12 = vmul.f32 %v16890_v41, %v17019_v0  ;;  %v883_v53 = vmul.f32 %v16908_v50, %v17006_v60 }
 0x1e6   : > { %v884_v56 = vmul.f32 %v16903_v47, %v17003_v59 }
 0x1e7   : > { %15068 = vrot.lane.b32.xlu0 %v15067_v5, %s16608_s23  ;;  %15063 = vrot.lane.b32.xlu1 %v15062_v6, %s16608_s23  ;;  %v881_v5 = vmul.f32 %v16896_v44, %v17006_v60  ;;  %v882_v6 = vmul.f32 %v16894_v43, %v17003_v59 }
 0x1e8   : > { %v15117_v62 = vpack.i.bf16 %v884_v56, %v883_v53  ;;  %v902_v53 = vmul.f32 %v16929_v61, %v17019_v0  ;;  %v890_v56 = vmul.f32 %v16972_v1, %v17003_v59 }
 0x1eb   : > { %15078 = vrot.lane.b32.xlu0 %v15077_v11, %s16608_s23  ;;  %15073 = vrot.lane.b32.xlu1 %v15072_v46, %s16608_s23  ;;  %v895_v11 = vmul.f32 %v16886_v39, %v17022_v2  ;;  %v15107_v46 = vpack.i.bf16 %v882_v6, %v881_v5  ;;  %v899_v5 = vmul.f32 %v16908_v50, %v17022_v2 }
 0x1ec   : > { %v900_v6 = vmul.f32 %v16903_v47, %v17019_v0 }
 0x1ed   : > { %v15102_v54 = vpack.i.bf16 %v896_v12, %v895_v11  ;;  %v888_v12 = vmul.f32 %v16954_v13, %v17003_v59 }
 0x1ee   : > { %v15122_v11 = vpack.i.bf16 %v900_v6, %v899_v5  ;;  %v892_v6 = vmul.f32 %v16992_v49, %v17003_v59 }
 0x1ef   : > { %15083 = vrot.lane.b32.xlu1 %v15082_v10, %s16608_s23  ;;  %15088 = vrot.lane.b32.xlu0 %v15087_v58, %s16608_s23  ;;  %v885_v10 = vmul.f32 %v16933_v63, %v17006_v60  ;;  %v886_v58 = vmul.f32 %v16929_v61, %v17003_v59 }
 0x1f3   : > { %15098 = vrot.lane.b32.xlu0 %v15097_v7, %s16608_s23  ;;  %15093 = vrot.lane.b32.xlu1 %v15092_v8, %s16608_s23  ;;  %v15127_v7 = vpack.i.bf16 %v886_v58, %v885_v10  ;;  %v887_v8 = vmul.f32 %v16956_v14, %v17006_v60  ;;  %v903_v10 = vmul.f32 %v16956_v14, %v17022_v2 }
 0x1f4   : > { %v904_v58 = vmul.f32 %v16954_v13, %v17019_v0 }
 0x1f5   : > { %v15137_v45 = vpack.i.bf16 %v888_v12, %v887_v8  ;;  %v906_v8 = vmul.f32 %v16972_v1, %v17019_v0 }
 0x1f6   : > { %v15142_v5 = vpack.i.bf16 %v904_v58, %v903_v10  ;;  %v20853_v10 = vmov 0 }
 0x1f7   : > { %15108 = vrot.lane.b32.xlu0 %v15107_v46, %s16608_s23  ;;  %15103 = vrot.lane.b32.xlu1 %v15102_v54, %s16608_s23  ;;  %v901_v46 = vmul.f32 %v16933_v63, %v17022_v2  ;;  %v889_v54 = vmul.f32 %v16974_v3, %v17006_v60  ;;  %v20854_v10 = vsel %vm17113_vm3, 4294967295, %v20853_v10 }
 0x1f8   : > { %20855 = vst [vmem:[#allocation15_spill] sm:$0xff] %v20854_v10 }
 0x1f9   : > { %v15132_v9 = vpack.i.bf16 %v902_v53, %v901_v46  ;;  %v907_v46 = vmul.f32 %v16994_v52, %v17022_v2  ;;  %v908_v53 = vmul.f32 %v16992_v49, %v17019_v0 }
 0x1fb   : > { %15118 = vrot.lane.b32.xlu0 %v15117_v62, %s16608_s23  ;;  %15113 = vrot.lane.b32.xlu1 %v15112_v4, %s16608_s23  ;;  %v15147_v62 = vpack.i.bf16 %v890_v56, %v889_v54  ;;  %v891_v4 = vmul.f32 %v16994_v52, %v17006_v60  ;;  %v15162_v54 = vpack.i.bf16 %v908_v53, %v907_v46 }
 0x1ff   : > { %15128 = vrot.lane.b32.xlu0 %v15127_v7, %s16608_s23  ;;  %15123 = vrot.lane.b32.xlu1 %v15122_v11, %s16608_s23  ;;  %v905_v7 = vmul.f32 %v16974_v3, %v17022_v2  ;;  %v15157_v11 = vpack.i.bf16 %v892_v6, %v891_v4 }
 0x201   : > { %v15152_v12 = vpack.i.bf16 %v906_v8, %v905_v7 }
 0x203   : > { %15138 = vrot.lane.b32.xlu0 %v15137_v45, %s16608_s23  ;;  %15133 = vrot.lane.b32.xlu1 %v15132_v9, %s16608_s23 }
 0x207   : > { %15148 = vrot.lane.b32.xlu0 %v15147_v62, %s16608_s23  ;;  %15143 = vrot.lane.b32.xlu1 %v15142_v5, %s16608_s23 }
 0x20b   : > { %15158 = vrot.lane.b32.xlu0 %v15157_v11, %s16608_s23  ;;  %15153 = vrot.lane.b32.xlu1 %v15152_v12, %s16608_s23 }
 0x20f   : > { %15163 = vrot.lane.b32.xlu1 %v15162_v54, %s16608_s23 }
 0x241   : > { %v15009_v56 = vpop.permute.xlu0 %15008 }
 0x242   : > { %v15011_v45 = vunpack.i.h.bf16 %v15009_v56  ;;  %v15010_v9 = vunpack.i.l.bf16 %v15009_v56 }
 0x244   : > { %v13403_v58 = vpack.c.bf16 %v15011_v45, %v15010_v9 }
 0x245   : > { %v15019_v62 = vpop.permute.xlu0 %15018  ;;  %v15014_v4 = vpop.permute.xlu1 %15013 }
 0x246   : > { %v15021_v5 = vunpack.i.h.bf16 %v15019_v62  ;;  %v15020_v6 = vunpack.i.l.bf16 %v15019_v62  ;;  %v15016_v7 = vunpack.i.h.bf16 %v15014_v4  ;;  %v15015_v8 = vunpack.i.l.bf16 %v15014_v4  ;;  %13405 = vmatprep.subr.msk.bf16.mxu0 %vm17113_vm3, %v13403_v58 }
 0x247   : > { %13408 = vmatpush3.bf16.xpose.msk.msra.mxu0 %vm17113_vm3, %v13403_v58 }
 0x248   : > { %v13409_v11 = vpack.c.bf16 %v15021_v5, %v15020_v6  ;;  %v13451_v12 = vpack.c.bf16 %v15016_v7, %v15015_v8 }
 0x249   : > { %v15029_v46 = vpop.permute.xlu0 %15028  ;;  %v15024_v53 = vpop.permute.xlu1 %15023 }
 0x24a   : > { %v15031_v54 = vunpack.i.h.bf16 %v15029_v46  ;;  %v15030_v56 = vunpack.i.l.bf16 %v15029_v46  ;;  %v15026_v49 = vunpack.i.h.bf16 %v15024_v53  ;;  %v15025_v45 = vunpack.i.l.bf16 %v15024_v53  ;;  %13411 = vmatprep.subr.msk.bf16.mxu0 %vm17113_vm3, %v13409_v11  ;;  %13453 = vmatprep.subr.msk.bf16.mxu1 %vm17113_vm3, %v13451_v12 }
 0x24b   : > { %13456 = vmatpush3.bf16.xpose.msk.msra.mxu1 %vm17113_vm3, %v13451_v12 }
 0x24c   : > { %v13457_v9 = vpack.c.bf16 %v15026_v49, %v15025_v45  ;;  %v13415_v58 = vpack.c.bf16 %v15031_v54, %v15030_v56 }
 0x24d   : > { %v15034_v62 = vpop.permute.xlu1 %15033  ;;  %v15039_v6 = vpop.permute.xlu0 %15038 }
 0x24e   : > { %v15036_v4 = vunpack.i.h.bf16 %v15034_v62  ;;  %v15035_v5 = vunpack.i.l.bf16 %v15034_v62  ;;  %13459 = vmatprep.subr.msk.bf16.mxu1 %vm17113_vm3, %v13457_v9  ;;  %v15041_v7 = vunpack.i.h.bf16 %v15039_v6  ;;  %v15040_v8 = vunpack.i.l.bf16 %v15039_v6 }
 0x24f   : > { %13414 = vmatpush3.bf16.xpose.msk.msra.mxu0 %vm17113_vm3, %v13409_v11 }
 0x250   : > { %13417 = vmatprep.subr.msk.bf16.mxu0 %vm17113_vm3, %v13415_v58  ;;  %v13463_v46 = vpack.c.bf16 %v15036_v4, %v15035_v5  ;;  %v13421_v49 = vpack.c.bf16 %v15041_v7, %v15040_v8 }
 0x251   : > { %v15044_v53 = vpop.permute.xlu1 %15043  ;;  %v15049_v56 = vpop.permute.xlu0 %15048 }
 0x252   : > { %v15046_v12 = vunpack.i.h.bf16 %v15044_v53  ;;  %v15045_v54 = vunpack.i.l.bf16 %v15044_v53  ;;  %v15051_v11 = vunpack.i.h.bf16 %v15049_v56  ;;  %v15050_v45 = vunpack.i.l.bf16 %v15049_v56 }
 0x253   : > { %13462 = vmatpush3.bf16.xpose.msk.msra.mxu1 %vm17113_vm3, %v13457_v9 }
 0x254   : > { %13465 = vmatprep.subr.msk.bf16.mxu1 %vm17113_vm3, %v13463_v46  ;;  %v13469_v62 = vpack.c.bf16 %v15046_v12, %v15045_v54  ;;  %v13427_v9 = vpack.c.bf16 %v15051_v11, %v15050_v45 }
 0x255   : > { %v15054_v4 = vpop.permute.xlu1 %15053  ;;  %v15059_v7 = vpop.permute.xlu0 %15058 }
 0x256   : > { %v15056_v5 = vunpack.i.h.bf16 %v15054_v4  ;;  %v15055_v6 = vunpack.i.l.bf16 %v15054_v4  ;;  %v15060_v8 = vunpack.i.l.bf16 %v15059_v7 }
 0x257   : > { %13420 = vmatpush3.bf16.xpose.msk.msra.mxu0 %vm17113_vm3, %v13415_v58  ;;  %v15061_v58 = vunpack.i.h.bf16 %v15059_v7 }
 0x258   : > { %13423 = vmatprep.subr.msk.bf16.mxu0 %vm17113_vm3, %v13421_v49  ;;  %v13475_v53 = vpack.c.bf16 %v15056_v5, %v15055_v6 }
 0x259   : > { %v15064_v12 = vpop.permute.xlu1 %15063  ;;  %v15069_v11 = vpop.permute.xlu0 %15068 }
 0x25a   : > { %v15066_v54 = vunpack.i.h.bf16 %v15064_v12  ;;  %v15065_v56 = vunpack.i.l.bf16 %v15064_v12  ;;  %v15070_v45 = vunpack.i.l.bf16 %v15069_v11 }
 0x25b   : > { %13468 = vmatpush3.bf16.xpose.msk.msra.mxu1 %vm17113_vm3, %v13463_v46  ;;  %v13433_v46 = vpack.c.bf16 %v15061_v58, %v15060_v8 }
 0x25c   : > { %13471 = vmatprep.subr.msk.bf16.mxu1 %vm17113_vm3, %v13469_v62  ;;  %v13481_v4 = vpack.c.bf16 %v15066_v54, %v15065_v56 }
 0x25d   : > { %v15074_v5 = vpop.permute.xlu1 %15073  ;;  %v15079_v58 = vpop.permute.xlu0 %15078 }
 0x25e   : > { %v15076_v6 = vunpack.i.h.bf16 %v15074_v5  ;;  %v15075_v7 = vunpack.i.l.bf16 %v15074_v5  ;;  %v15080_v8 = vunpack.i.l.bf16 %v15079_v58 }
 0x25f   : > { %13426 = vmatpush3.bf16.xpose.msk.msra.mxu0 %vm17113_vm3, %v13421_v49  ;;  %v15071_v49 = vunpack.i.h.bf16 %v15069_v11 }
 0x260   : > { %13429 = vmatprep.subr.msk.bf16.mxu0 %vm17113_vm3, %v13427_v9  ;;  %v13487_v12 = vpack.c.bf16 %v15076_v6, %v15075_v7 }
 0x261   : > { %v15084_v54 = vpop.permute.xlu1 %15083 }
 0x262   : > { %v15086_v56 = vunpack.i.h.bf16 %v15084_v54  ;;  %v15085_v11 = vunpack.i.l.bf16 %v15084_v54 }
 0x263   : > { %13474 = vmatpush3.bf16.xpose.msk.msra.mxu1 %vm17113_vm3, %v13469_v62  ;;  %v13439_v62 = vpack.c.bf16 %v15071_v49, %v15070_v45  ;;  %v15089_v49 = vpop.permute.xlu0 %15088 }
 0x264   : > { %13477 = vmatprep.subr.msk.bf16.mxu1 %vm17113_vm3, %v13475_v53  ;;  %v15091_v45 = vunpack.i.h.bf16 %v15089_v49  ;;  %v15090_v5 = vunpack.i.l.bf16 %v15089_v49 }
 0x265   : > { %v15094_v6 = vpop.permute.xlu1 %15093 }
 0x266   : > { %v15096_v7 = vunpack.i.h.bf16 %v15094_v6 }
 0x267   : > { %13432 = vmatpush3.bf16.xpose.msk.msra.mxu0 %vm17113_vm3, %v13427_v9  ;;  %v15081_v9 = vunpack.i.h.bf16 %v15079_v58  ;;  %v15095_v58 = vunpack.i.l.bf16 %v15094_v6 }
 0x268   : > { %13435 = vmatprep.subr.msk.bf16.mxu0 %vm17113_vm3, %v13433_v46 }
 0x269   : > { %v13547_v54 = vpack.c.bf16 %v15096_v7, %v15095_v58 }
 0x26b   : > { %13480 = vmatpush3.bf16.xpose.msk.msra.mxu1 %vm17113_vm3, %v13475_v53  ;;  %v13445_v53 = vpack.c.bf16 %v15081_v9, %v15080_v8  ;;  %v15099_v9 = vpop.permute.xlu0 %15098 }
 0x26c   : > { %13483 = vmatprep.subr.msk.bf16.mxu1 %vm17113_vm3, %v13481_v4  ;;  %v15100_v8 = vunpack.i.l.bf16 %v15099_v9 }
 0x26f   : > { %13438 = vmatpush3.bf16.xpose.msk.msra.mxu0 %vm17113_vm3, %v13433_v46  ;;  %v13493_v46 = vpack.c.bf16 %v15086_v56, %v15085_v11  ;;  %v15104_v56 = vpop.permute.xlu1 %15103 }
 0x270   : > { %13441 = vmatprep.subr.msk.bf16.mxu0 %vm17113_vm3, %v13439_v62  ;;  %v15106_v11 = vunpack.i.h.bf16 %v15104_v56  ;;  %v15105_v49 = vunpack.i.l.bf16 %v15104_v56 }
 0x273   : > { %13486 = vmatpush3.bf16.xpose.msk.msra.mxu1 %vm17113_vm3, %v13481_v4  ;;  %v13499_v4 = vpack.c.bf16 %v15091_v45, %v15090_v5  ;;  %v13553_v5 = vpack.c.bf16 %v15106_v11, %v15105_v49  ;;  %v15114_v6 = vpop.permute.xlu1 %15113 }
 0x274   : > { %13489 = vmatprep.subr.msk.bf16.mxu1 %vm17113_vm3, %v13487_v12  ;;  %v15116_v7 = vunpack.i.h.bf16 %v15114_v6  ;;  %v15115_v58 = vunpack.i.l.bf16 %v15114_v6 }
 0x276   : > { %v13559_v56 = vpack.c.bf16 %v15116_v7, %v15115_v58 }
 0x277   : > { %13444 = vmatpush3.bf16.xpose.msk.msra.mxu0 %vm17113_vm3, %v13439_v62  ;;  %v15101_v62 = vunpack.i.h.bf16 %v15099_v9 }
 0x278   : > { %13447 = vmatprep.subr.msk.bf16.mxu0 %vm17113_vm3, %v13445_v53 }
 0x27b   : > { %13492 = vmatpush3.bf16.xpose.msk.msra.mxu1 %vm17113_vm3, %v13487_v12  ;;  %v13505_v12 = vpack.c.bf16 %v15101_v62, %v15100_v8 }
 0x27c   : > { %13495 = vmatprep.subr.msk.bf16.mxu1 %vm17113_vm3, %v13493_v46 }
 0x27f   : > { %13450 = vmatpush3.bf16.xpose.msk.msra.mxu0 %vm17113_vm3, %v13445_v53  ;;  %v15109_v53 = vpop.permute.xlu0 %15108 }
 0x280   : > { %13501 = vmatprep.subr.msk.bf16.mxu0 %vm17113_vm3, %v13499_v4  ;;  %v15110_v45 = vunpack.i.l.bf16 %v15109_v53 }
 0x283   : > { %13498 = vmatpush3.bf16.xpose.msk.msra.mxu1 %vm17113_vm3, %v13493_v46  ;;  %v15111_v46 = vunpack.i.h.bf16 %v15109_v53  ;;  %v15119_v9 = vpop.permute.xlu0 %15118 }
 0x284   : > { %13549 = vmatprep.subr.msk.bf16.mxu1 %vm17113_vm3, %v13547_v54  ;;  %v15121_v62 = vunpack.i.h.bf16 %v15119_v9  ;;  %v15120_v8 = vunpack.i.l.bf16 %v15119_v9 }
 0x286   : > { %11800 = vmatmul.mubr.msk.f32.vlgmr.msra.gmra.mrb[8].mxu0 %vm651_vm2, %v16906_v48  ;;  %v13517_v11 = vpack.c.bf16 %v15121_v62, %v15120_v8 }
 0x287   : > { %13504 = vmatpush3.bf16.xpose.msk.msra.mxu0 %vm17113_vm3, %v13499_v4  ;;  %11869 = vmatprep.mubr.msk.f32.mxu0 %vm651_vm2, %v17006_v60  ;;  %v13511_v4 = vpack.c.bf16 %v15111_v46, %v15110_v45  ;;  %v15129_v46 = vpop.permute.xlu0 %15128 }
 0x288   : > { %13507 = vmatprep.subr.msk.bf16.mxu0 %vm17113_vm3, %v13505_v12  ;;  %v15130_v45 = vunpack.i.l.bf16 %v15129_v46 }
 0x28a   : > { %11835 = vmatmul.mubr.msk.f32.vlgmr.msra.gmra.mrb[8].mxu1 %vm651_vm2, %v16920_v55 }
 0x28b   : > { %13552 = vmatpush3.bf16.xpose.msk.msra.mxu1 %vm17113_vm3, %v13547_v54  ;;  %11904 = vmatprep.mubr.msk.f32.mxu1 %vm651_vm2, %v17022_v2  ;;  %v15124_v54 = vpop.permute.xlu1 %15123  ;;  %v15139_v62 = vpop.permute.xlu0 %15138 }
 0x28c   : > { %13555 = vmatprep.subr.msk.bf16.mxu1 %vm17113_vm3, %v13553_v5  ;;  %v15126_v49 = vunpack.i.h.bf16 %v15124_v54  ;;  %v15125_v53 = vunpack.i.l.bf16 %v15124_v54  ;;  %v15140_v8 = vunpack.i.l.bf16 %v15139_v62 }
 0x28e   : > { %v13565_v6 = vpack.c.bf16 %v15126_v49, %v15125_v53 }
 0x28f   : > { %13510 = vmatpush3.bf16.xpose.msk.msra.mxu0 %vm17113_vm3, %v13505_v12  ;;  %v15131_v12 = vunpack.i.h.bf16 %v15129_v46  ;;  %v15134_v7 = vpop.permute.xlu1 %15133 }
 0x290   : > { %13513 = vmatprep.subr.msk.bf16.mxu0 %vm17113_vm3, %v13511_v4  ;;  %v15136_v58 = vunpack.i.h.bf16 %v15134_v7  ;;  %v15135_v9 = vunpack.i.l.bf16 %v15134_v7 }
 0x292   : > { %v13571_v54 = vpack.c.bf16 %v15136_v58, %v15135_v9 }
 0x293   : > { %13558 = vmatpush3.bf16.xpose.msk.msra.mxu1 %vm17113_vm3, %v13553_v5  ;;  %v13523_v5 = vpack.c.bf16 %v15131_v12, %v15130_v45  ;;  %v15144_v49 = vpop.permute.xlu1 %15143  ;;  %v15149_v12 = vpop.permute.xlu0 %15148 }
 0x294   : > { %13561 = vmatprep.subr.msk.bf16.mxu1 %vm17113_vm3, %v13559_v56  ;;  %v15146_v53 = vunpack.i.h.bf16 %v15144_v49  ;;  %v15145_v46 = vunpack.i.l.bf16 %v15144_v49  ;;  %v15150_v45 = vunpack.i.l.bf16 %v15149_v12 }
 0x296   : > { %v13577_v7 = vpack.c.bf16 %v15146_v53, %v15145_v46 }
 0x297   : > { %13516 = vmatpush3.bf16.xpose.msk.msra.mxu0 %vm17113_vm3, %v13511_v4  ;;  %v15141_v4 = vunpack.i.h.bf16 %v15139_v62  ;;  %v15154_v58 = vpop.permute.xlu1 %15153 }
 0x298   : > { %13519 = vmatprep.subr.msk.bf16.mxu0 %vm17113_vm3, %v13517_v11  ;;  %v15156_v9 = vunpack.i.h.bf16 %v15154_v58  ;;  %v15155_v62 = vunpack.i.l.bf16 %v15154_v58 }
 0x29a   : > { %v13583_v49 = vpack.c.bf16 %v15156_v9, %v15155_v62  ;;  %v465_v62 = vld [vmem:[%s20759_s12 + $0x20] sm:$0xff] }
 0x29b   : > { %13564 = vmatpush3.bf16.xpose.msk.msra.mxu1 %vm17113_vm3, %v13559_v56  ;;  %v13529_v56 = vpack.c.bf16 %v15141_v4, %v15140_v8  ;;  %v15159_v4 = vpop.permute.xlu0 %15158  ;;  %v15164_v53 = vpop.permute.xlu1 %15163 }
 0x29c   : > { %13567 = vmatprep.subr.msk.bf16.mxu1 %vm17113_vm3, %v13565_v6  ;;  %v15160_v8 = vunpack.i.l.bf16 %v15159_v4  ;;  %v15166_v46 = vunpack.i.h.bf16 %v15164_v53 }
 0x29f   : > { %13522 = vmatpush3.bf16.xpose.msk.msra.mxu0 %vm17113_vm3, %v13517_v11  ;;  %v15151_v11 = vunpack.i.h.bf16 %v15149_v12  ;;  %v15165_v12 = vunpack.i.l.bf16 %v15164_v53 }
 0x2a0   : > { %13525 = vmatprep.subr.msk.bf16.mxu0 %vm17113_vm3, %v13523_v5 }
 0x2a3   : > { %13570 = vmatpush3.bf16.xpose.msk.msra.mxu1 %vm17113_vm3, %v13565_v6  ;;  %v13535_v6 = vpack.c.bf16 %v15151_v11, %v15150_v45  ;;  %v461_v11 = vld [vmem:[%s20759_s12] sm:$0xff]  ;;  %v462_v45 = vld [vmem:[%s20759_s12 + $0x8] sm:$0xff] }
 0x2a4   : > { %13573 = vmatprep.subr.msk.bf16.mxu1 %vm17113_vm3, %v13571_v54  ;;  %v17266_v58 = vpack.c.bf16 %v462_v45, %v461_v11  ;;  %v469_v11 = vld [vmem:[%s20759_s12 + $0x40] sm:$0xff]  ;;  %v470_v45 = vld [vmem:[%s20759_s12 + $0x48] sm:$0xff] }
 0x2a6   : > { %20856 = vst [vmem:[#allocation16_spill] sm:$0xff] %v17266_v58 }
 0x2a7   : > { %13528 = vmatpush3.bf16.xpose.msk.msra.mxu0 %vm17113_vm3, %v13523_v5  ;;  %v15161_v5 = vunpack.i.h.bf16 %v15159_v4  ;;  %v466_v4 = vld [vmem:[%s20759_s12 + $0x28] sm:$0xff] }
 0x2a8   : > { %13531 = vmatprep.subr.msk.bf16.mxu0 %vm17113_vm3, %v13529_v56 }
 0x2ab   : > { %13576 = vmatpush3.bf16.xpose.msk.msra.mxu1 %vm17113_vm3, %v13571_v54  ;;  %v13541_v54 = vpack.c.bf16 %v15161_v5, %v15160_v8  ;;  %v17282_v5 = vpack.c.bf16 %v466_v4, %v465_v62  ;;  %v467_v8 = vld [vmem:[%s20759_s12 + $0x30] sm:$0xff]  ;;  %v472_v62 = vld [vmem:[%s20759_s12 + $0x58] sm:$0xff] }
 0x2ac   : > { %13579 = vmatprep.subr.msk.bf16.mxu1 %vm17113_vm3, %v13577_v7 }
 0x2ad   : > { %20858 = vst [vmem:[#allocation18_spill] sm:$0xff] %v17282_v5 }
 0x2af   : > { %13534 = vmatpush3.bf16.xpose.msk.msra.mxu0 %vm17113_vm3, %v13529_v56  ;;  %v13589_v56 = vpack.c.bf16 %v15166_v46, %v15165_v12 }
 0x2b0   : > { %13537 = vmatprep.subr.msk.bf16.mxu0 %vm17113_vm3, %v13535_v6 }
 0x2b3   : > { %13582 = vmatpush3.bf16.xpose.msk.msra.mxu1 %vm17113_vm3, %v13577_v7  ;;  %v463_v7 = vld [vmem:[%s20759_s12 + $0x10] sm:$0xff] }
 0x2b4   : > { %13585 = vmatprep.subr.msk.bf16.mxu1 %vm17113_vm3, %v13583_v49 }
 0x2b7   : > { %13540 = vmatpush3.bf16.xpose.msk.msra.mxu0 %vm17113_vm3, %v13535_v6  ;;  %v464_v6 = vld [vmem:[%s20759_s12 + $0x18] sm:$0xff] }
 0x2b8   : > { %13543 = vmatprep.subr.msk.bf16.mxu0 %vm17113_vm3, %v13541_v54  ;;  %v17271_v9 = vpack.c.bf16 %v464_v6, %v463_v7  ;;  %v17306_v7 = vpack.c.bf16 %v470_v45, %v469_v11  ;;  %v471_v6 = vld [vmem:[%s20759_s12 + $0x50] sm:$0xff] }
 0x2b9   : > { %v17316_v4 = vpack.c.bf16 %v472_v62, %v471_v6  ;;  %v475_v11 = vld [vmem:[%s20759_s12 + $0x70] sm:$0xff]  ;;  %v476_v6 = vld [vmem:[%s20759_s12 + $0x78] sm:$0xff] }
 0x2ba   : > { %20857 = vst [vmem:[#allocation17_spill] sm:$0xff] %v17271_v9  ;;  %20860 = vst [vmem:[#allocation20_spill] sm:$0xff] %v17306_v7  ;;  %v17334_v62 = vpack.c.bf16 %v476_v6, %v475_v11 }
 0x2bb   : > { %13588 = vmatpush3.bf16.xpose.msk.msra.mxu1 %vm17113_vm3, %v13583_v49  ;;  %v468_v49 = vld [vmem:[%s20759_s12 + $0x38] sm:$0xff]  ;;  %20861 = vst [vmem:[#allocation21_spill] sm:$0xff] %v17316_v4 }
 0x2bc   : > { %13591 = vmatprep.subr.msk.bf16.mxu1 %vm17113_vm3, %v13589_v56  ;;  %v17292_v53 = vpack.c.bf16 %v468_v49, %v467_v8  ;;  %v473_v8 = vld [vmem:[%s20759_s12 + $0x60] sm:$0xff]  ;;  %v474_v49 = vld [vmem:[%s20759_s12 + $0x68] sm:$0xff]  ;;  %20863 = vst [vmem:[#allocation23_spill] sm:$0xff] %v17334_v62 }
 0x2bd   : > { %v17329_v45 = vpack.c.bf16 %v474_v49, %v473_v8 }
 0x2be   : > { %20859 = vst [vmem:[#allocation19_spill] sm:$0xff] %v17292_v53 }
 0x2bf   : > { %13546 = vmatpush3.bf16.xpose.msk.msra.mxu0 %vm17113_vm3, %v13541_v54  ;;  %20862 = vst [vmem:[#allocation22_spill] sm:$0xff] %v17329_v45 }
 0x2c0   : > { %13596 = vmatprep.subr.bf16.mxu0 %v17266_v58 }
 0x2c3   : > { %13594 = vmatpush3.bf16.xpose.msk.msra.mxu1 %vm17113_vm3, %v13589_v56 }
 0x2c6   : > { %11870 = vmatmul.mubr.msk.f32.vlgmr.msra.gmra.mrb[10].mxu0 %vm651_vm2, %v17003_v59 }
 0x2c7   : > { %13598 = vmatpush3.bf16.msra.mxu0 %v17266_v58 }
 0x2c8   : > { %13600 = vmatprep.subr.bf16.mxu0 %v17271_v9 }
 0x2ca   : > { %11905 = vmatmul.mubr.msk.f32.vlgmr.msra.gmra.mrb[10].mxu1 %vm651_vm2, %v17019_v0 }
 0x2cb   : > { %13602 = vmatpush3.bf16.msra.mxu0 %v17271_v9 }
 0x2cc   : > { %13604 = vmatprep.subr.bf16.mxu0 %v17282_v5 }
 0x2cf   : > { %13606 = vmatpush3.bf16.msra.mxu0 %v17282_v5 }
 0x2d0   : > { %13608 = vmatprep.subr.bf16.mxu0 %v17292_v53 }
 0x2d3   : > { %13610 = vmatpush3.bf16.msra.mxu0 %v17292_v53 }
 0x2d4   : > { %13612 = vmatprep.subr.bf16.mxu0 %v17306_v7 }
 0x2d7   : > { %13614 = vmatpush3.bf16.msra.mxu0 %v17306_v7 }
 0x2d8   : > { %13616 = vmatprep.subr.bf16.mxu0 %v17316_v4 }
 0x2db   : > { %13618 = vmatpush3.bf16.msra.mxu0 %v17316_v4 }
 0x2dc   : > { %13620 = vmatprep.subr.bf16.mxu0 %v17329_v45 }
 0x2df   : > { %13622 = vmatpush3.bf16.msra.mxu0 %v17329_v45 }
 0x2e0   : > { %13624 = vmatprep.subr.bf16.mxu0 %v17334_v62 }
 0x2e3   : > { %13626 = vmatpush3.bf16.msra.mxu0 %v17334_v62 }
 0x359   : > { %v11801_v54 = vpop.f32.mrb[8].mxu0 }
 0x35a   : > { %v1173_v46 = vpop.f32.mrb[9].mxu0  ;;  %1667 = vmax.xlane.f32.xlu1 %v11801_v54 }
 0x35b   : > { %1665 = vmax.xlane.f32.xlu0 %v1173_v46 }
 0x35d   : > { %v17297_v12 = vpop.f32.mrb[8].mxu1 }
 0x35e   : > { %v1334_v56 = vpop.f32.mrb[9].mxu1 }
 0x35f   : > { %1669 = vmax.xlane.f32.xlu0 %v1334_v56 }
 0x363   : > { %1671 = vmax.xlane.f32.xlu0 %v17297_v12 }
 0x399   : > { %v11871_v4 = vpop.f32.mrb[10].mxu0 }
 0x39a   : > { %v1495_v7 = vpop.f32.mrb[11].mxu0  ;;  %1675 = vmax.xlane.f32.xlu0 %v11871_v4 }
 0x39b   : > { %1673 = vmax.xlane.f32.xlu1 %v1495_v7 }
 0x39d   : > { %v11906_v8 = vpop.f32.mrb[10].mxu1 }
 0x39e   : > { %1679 = vmax.xlane.f32.xlu0 %v11906_v8  ;;  %v1656_v49 = vpop.f32.mrb[11].mxu1 }
 0x39f   : > { %1677 = vmax.xlane.f32.xlu1 %v1656_v49 }
 0x3b0   : > { %909 = vrot.lane.b32.xlu1 %v16766_v16, %s16609_s15 }
 0x3b4   : > { %911 = vrot.lane.b32.xlu0 %v16778_v18, %s16609_s15  ;;  %913 = vrot.lane.b32.xlu1 %v16761_v15, %s16609_s15 }
 0x3b8   : > { %917 = vrot.lane.b32.xlu0 %v16790_v20, %s16609_s15  ;;  %915 = vrot.lane.b32.xlu1 %v16773_v17, %s16609_s15 }
 0x3bc   : > { %921 = vrot.lane.b32.xlu0 %v16802_v22, %s16609_s15  ;;  %919 = vrot.lane.b32.xlu1 %v16785_v19, %s16609_s15 }
 0x3c0   : > { %925 = vrot.lane.b32.xlu0 %v16814_v24, %s16609_s15  ;;  %923 = vrot.lane.b32.xlu1 %v16797_v21, %s16609_s15 }
 0x3c4   : > { %929 = vrot.lane.b32.xlu0 %v16826_v26, %s16609_s15  ;;  %927 = vrot.lane.b32.xlu1 %v16809_v23, %s16609_s15 }
 0x3c8   : > { %933 = vrot.lane.b32.xlu0 %v16838_v28, %s16609_s15  ;;  %931 = vrot.lane.b32.xlu1 %v16821_v25, %s16609_s15 }
 0x3cc   : > { %937 = vrot.lane.b32.xlu0 %v16850_v30, %s16609_s15  ;;  %935 = vrot.lane.b32.xlu1 %v16833_v27, %s16609_s15 }
 0x3d0   : > { %939 = vrot.lane.b32.xlu1 %v16845_v29, %s16609_s15 }
 0x3e7   : > { %v1668_v15 = vpop.xlane.xlu1 %1667 }
 0x3e8   : > { %v1682_v16 = vsub.f32 %v11801_v54, %v1668_v15  ;;  %v1666_v17 = vpop.xlane.xlu0 %1665 }
 0x3e9   : > { %v1681_v18 = vsub.f32 %v1173_v46, %v1666_v17 }
 0x3ea   : > { %v1691_v19 = vmul.f32 1.442695, %v1682_v16 }
 0x3eb   : > { %v1689_v20 = vmul.f32 1.442695, %v1681_v18 }
 0x3ec   : > { %v1670_v21 = vpop.xlane.xlu0 %1669 }
 0x3ed   : > { %16287 = vpow2.f32 %v1689_v20  ;;  %v1683_v22 = vsub.f32 %v1334_v56, %v1670_v21 }
 0x3ee   : > { %16289 = vpow2.f32 %v1691_v19 }
 0x3ef   : > { %v1693_v23 = vmul.f32 1.442695, %v1683_v22 }
 0x3f0   : > { %v1672_v24 = vpop.xlane.xlu0 %1671 }
 0x3f1   : > { %16291 = vpow2.f32 %v1693_v23  ;;  %v1684_v25 = vsub.f32 %v17297_v12, %v1672_v24 }
 0x3f3   : > { %v1695_v26 = vmul.f32 1.442695, %v1684_v25 }
 0x3f5   : > { %16293 = vpow2.f32 %v1695_v26 }
 0x3f7   : > { %v17373_v27 = vpop.eup %16287 }
 0x3f8   : > { %v17375_v28 = vpop.eup %16289  ;;  %11939 = vmatprep.mubr.f32.mxu0 %v17373_v27 }
 0x3f9   : > { %11940 = vmatmul.mubr.f32.vlgmr.msra.gmra.mrb[12].mxu0 %v17375_v28 }
 0x3fb   : > { %v17379_v29 = vpop.eup %16291 }
 0x3fc   : > { %11942 = vmatprep.mubr.f32.mxu0 %v17379_v29 }
 0x3ff   : > { %v17382_v30 = vpop.eup %16293 }
 0x400   : > { %11943 = vmatmul.mubr.f32.gmra.mrb[14].mxu0 %v17382_v30 }
 0x427   : > { %v1676_v54 = vpop.xlane.xlu0 %1675 }
 0x428   : > { %v1686_v46 = vsub.f32 %v11871_v4, %v1676_v54  ;;  %v1674_v12 = vpop.xlane.xlu1 %1673 }
 0x429   : > { %v1685_v56 = vsub.f32 %v1495_v7, %v1674_v12 }
 0x42a   : > { %v1699_v11 = vmul.f32 1.442695, %v1686_v46 }
 0x42b   : > { %v1697_v6 = vmul.f32 1.442695, %v1685_v56  ;;  %v1680_v15 = vpop.xlane.xlu0 %1679 }
 0x42c   : > { %v1688_v16 = vsub.f32 %v11906_v8, %v1680_v15  ;;  %v1678_v17 = vpop.xlane.xlu1 %1677 }
 0x42d   : > { %16295 = vpow2.f32 %v1697_v6  ;;  %v1687_v18 = vsub.f32 %v1656_v49, %v1678_v17 }
 0x42e   : > { %16297 = vpow2.f32 %v1699_v11  ;;  %v1703_v19 = vmul.f32 1.442695, %v1688_v16 }
 0x42f   : > { %v1701_v20 = vmul.f32 1.442695, %v1687_v18  ;;  %v17385_v21 = vpop.permute.xlu0 %911 }
 0x430   : > { %v17387_v22 = vpop.permute.xlu1 %909  ;;  %v958_v23 = vmul.f32 %v17385_v21, %v16906_v48  ;;  %v974_v24 = vmul.f32 %v17385_v21, %v16920_v55 }
 0x431   : > { %16299 = vpow2.f32 %v1701_v20  ;;  %v957_v7 = vmul.f32 %v17387_v22, %v16911_v51  ;;  %v973_v49 = vmul.f32 %v17387_v22, %v16923_v57 }
 0x432   : > { %16301 = vpow2.f32 %v1703_v19 }
 0x433   : > { %v17393_v4 = vpop.permute.xlu0 %917  ;;  %v15167_v8 = vpack.i.bf16 %v958_v23, %v957_v7  ;;  %v15177_v46 = vpack.i.bf16 %v974_v24, %v973_v49 }
 0x434   : > { %v17399_v25 = vpop.permute.xlu1 %913  ;;  %v961_v24 = vmul.f32 %v17393_v4, %v16911_v51 }
 0x435   : > { %15168 = vrot.lane.b32.xlu0 %v15167_v8, %s16609_s15  ;;  %v975_v11 = vmul.f32 %v17399_v25, %v16923_v57  ;;  %v959_v15 = vmul.f32 %v17399_v25, %v16911_v51  ;;  %v977_v8 = vmul.f32 %v17393_v4, %v16923_v57 }
 0x437   : > { %v17402_v26 = vpop.eup %16295  ;;  %v17404_v54 = vpop.permute.xlu0 %921 }
 0x438   : > { %v17406_v12 = vpop.eup %16297  ;;  %11945 = vmatprep.mubr.f32.mxu0 %v17402_v26  ;;  %v17409_v56 = vpop.permute.xlu1 %915  ;;  %v963_v62 = vmul.f32 %v17404_v54, %v16911_v51 }
 0x439   : > { %11946 = vmatmul.mubr.f32.gmra.mrb[16].mxu0 %v17406_v12  ;;  %15178 = vrot.lane.b32.xlu0 %v15177_v46, %s16609_s15  ;;  %v976_v6 = vmul.f32 %v17409_v56, %v16920_v55  ;;  %v960_v16 = vmul.f32 %v17409_v56, %v16906_v48 }
 0x43b   : > { %v17421_v17 = vpop.eup %16299  ;;  %v15187_v18 = vpack.i.bf16 %v976_v6, %v975_v11  ;;  %v15172_v19 = vpack.i.bf16 %v960_v16, %v959_v15  ;;  %v17425_v23 = vpop.permute.xlu0 %925  ;;  %v979_v16 = vmul.f32 %v17404_v54, %v16923_v57 }
 0x43c   : > { %v17423_v20 = vpop.eup %16301  ;;  %11948 = vmatprep.mubr.f32.mxu0 %v17421_v17  ;;  %v17428_v7 = vpop.permute.xlu1 %919 }
 0x43d   : > { %11949 = vmatmul.mubr.f32.gmra.mrb[18].mxu0 %v17423_v20  ;;  %15188 = vrot.lane.b32.xlu0 %v15187_v18, %s16609_s15  ;;  %v978_v49 = vmul.f32 %v17428_v7, %v16920_v55  ;;  %v962_v46 = vmul.f32 %v17428_v7, %v16906_v48 }
 0x43e   : > { %15173 = vrot.lane.b32.xlu1 %v15172_v19, %s16609_s15 }
 0x43f   : > { %v15197_v11 = vpack.i.bf16 %v978_v49, %v977_v8  ;;  %v15182_v6 = vpack.i.bf16 %v962_v46, %v961_v24  ;;  %v17452_v53 = vpop.permute.xlu0 %929  ;;  %v981_v24 = vmul.f32 %v17425_v23, %v16923_v57 }
 0x440   : > { %v17441_v15 = vpop.permute.xlu1 %923  ;;  %v967_v9 = vmul.f32 %v17452_v53, %v16911_v51 }
 0x441   : > { %15198 = vrot.lane.b32.xlu0 %v15197_v11, %s16609_s15  ;;  %v980_v18 = vmul.f32 %v17441_v15, %v16920_v55  ;;  %v964_v45 = vmul.f32 %v17441_v15, %v16906_v48  ;;  %v965_v11 = vmul.f32 %v17425_v23, %v16911_v51 }
 0x442   : > { %15183 = vrot.lane.b32.xlu1 %v15182_v6, %s16609_s15 }
 0x443   : > { %v15207_v19 = vpack.i.bf16 %v980_v18, %v979_v16  ;;  %v15192_v8 = vpack.i.bf16 %v964_v45, %v963_v62  ;;  %v17467_v62 = vpop.permute.xlu0 %933  ;;  %v983_v18 = vmul.f32 %v17452_v53, %v16923_v57 }
 0x444   : > { %v17455_v49 = vpop.permute.xlu1 %927  ;;  %20864 = vst [vmem:[#allocation24_spill] sm:$0xff] %v17467_v62  ;;  %v969_v58 = vmul.f32 %v17467_v62, %v16911_v51 }
 0x445   : > { %15208 = vrot.lane.b32.xlu0 %v15207_v19, %s16609_s15  ;;  %v982_v46 = vmul.f32 %v17455_v49, %v16920_v55  ;;  %v966_v5 = vmul.f32 %v17455_v49, %v16906_v48 }
 0x446   : > { %15193 = vrot.lane.b32.xlu1 %v15192_v8, %s16609_s15 }
 0x447   : > { %v15217_v6 = vpack.i.bf16 %v982_v46, %v981_v24  ;;  %v15202_v45 = vpack.i.bf16 %v966_v5, %v965_v11  ;;  %v985_v11 = vmul.f32 %v17467_v62, %v16923_v57  ;;  %v17492_v52 = vpop.permute.xlu0 %937 }
 0x448   : > { %v17469_v16 = vpop.permute.xlu1 %931  ;;  %20867 = vst [vmem:[#allocation27_spill] sm:$0xff] %v17492_v52 }
 0x449   : > { %20865 = vst [vmem:[#allocation25_spill] sm:$0xff] %v17469_v16  ;;  %15218 = vrot.lane.b32.xlu0 %v15217_v6, %s16609_s15  ;;  %v984_v19 = vmul.f32 %v17469_v16, %v16920_v55  ;;  %v968_v8 = vmul.f32 %v17469_v16, %v16906_v48 }
 0x44a   : > { %15203 = vrot.lane.b32.xlu1 %v15202_v45, %s16609_s15 }
 0x44b   : > { %v15227_v5 = vpack.i.bf16 %v984_v19, %v983_v18  ;;  %v15212_v24 = vpack.i.bf16 %v968_v8, %v967_v9  ;;  %v989_v18 = vmul.f32 %v17387_v22, %v17006_v60  ;;  %v990_v19 = vmul.f32 %v17385_v21, %v17003_v59 }
 0x44c   : > { %v17481_v46 = vpop.permute.xlu1 %935 }
 0x44d   : > { %20866 = vst [vmem:[#allocation26_spill] sm:$0xff] %v17481_v46  ;;  %15228 = vrot.lane.b32.xlu0 %v15227_v5, %s16609_s15  ;;  %v986_v6 = vmul.f32 %v17481_v46, %v16920_v55  ;;  %v970_v10 = vmul.f32 %v17481_v46, %v16906_v48  ;;  %v971_v5 = vmul.f32 %v17492_v52, %v16911_v51 }
 0x44e   : > { %15213 = vrot.lane.b32.xlu1 %v15212_v24, %s16609_s15  ;;  %v15247_v24 = vpack.i.bf16 %v990_v19, %v989_v18  ;;  %v991_v18 = vmul.f32 %v17399_v25, %v17006_v60 }
 0x44f   : > { %v15237_v9 = vpack.i.bf16 %v986_v6, %v985_v11  ;;  %v15222_v45 = vpack.i.bf16 %v970_v10, %v969_v58  ;;  %v1005_v58 = vmul.f32 %v17387_v22, %v17022_v2  ;;  %v1006_v11 = vmul.f32 %v17385_v21, %v17019_v0 }
 0x450   : > { %v17499_v8 = vpop.permute.xlu1 %939 }
 0x451   : > { %20868 = vst [vmem:[#allocation28_spill] sm:$0xff] %v17499_v8  ;;  %15238 = vrot.lane.b32.xlu0 %v15237_v9, %s16609_s15  ;;  %v972_v1 = vmul.f32 %v17499_v8, %v16906_v48  ;;  %v988_v6 = vmul.f32 %v17499_v8, %v16920_v55  ;;  %v987_v48 = vmul.f32 %v17492_v52, %v16923_v57 }
 0x452   : > { %15223 = vrot.lane.b32.xlu1 %v15222_v45, %s16609_s15  ;;  %v15257_v51 = vpack.i.bf16 %v1006_v11, %v1005_v58  ;;  %v992_v45 = vmul.f32 %v17409_v56, %v17003_v59  ;;  %v1007_v55 = vmul.f32 %v17399_v25, %v17022_v2  ;;  %v1010_v57 = vmul.f32 %v17428_v7, %v17019_v0 }
 0x453   : > { %v15232_v10 = vpack.i.bf16 %v972_v1, %v971_v5  ;;  %v1008_v1 = vmul.f32 %v17409_v56, %v17019_v0  ;;  %v15242_v9 = vpack.i.bf16 %v988_v6, %v987_v48  ;;  %v993_v58 = vmul.f32 %v17393_v4, %v17006_v60 }
 0x454   : > { %v15252_v5 = vpack.i.bf16 %v992_v45, %v991_v18  ;;  %v1012_v6 = vmul.f32 %v17441_v15, %v17019_v0 }
 0x455   : > { %15248 = vrot.lane.b32.xlu0 %v15247_v24, %s16609_s15  ;;  %v15267_v19 = vpack.i.bf16 %v1008_v1, %v1007_v55  ;;  %v994_v24 = vmul.f32 %v17428_v7, %v17003_v59  ;;  %v1011_v1 = vmul.f32 %v17404_v54, %v17022_v2  ;;  %v1014_v55 = vmul.f32 %v17455_v49, %v17019_v0 }
 0x456   : > { %15233 = vrot.lane.b32.xlu1 %v15232_v10, %s16609_s15  ;;  %v1009_v10 = vmul.f32 %v17393_v4, %v17022_v2 }
 0x457   : > { %v15262_v48 = vpack.i.bf16 %v994_v24, %v993_v58  ;;  %v15287_v45 = vpack.i.bf16 %v1012_v6, %v1011_v1  ;;  %v1015_v6 = vmul.f32 %v17452_v53, %v17022_v2  ;;  %v1018_v1 = vmul.f32 %v17481_v46, %v17019_v0 }
 0x458   : > { %v15277_v11 = vpack.i.bf16 %v1010_v57, %v1009_v10  ;;  %v1013_v57 = vmul.f32 %v17425_v23, %v17022_v2  ;;  %v1016_v10 = vmul.f32 %v17469_v16, %v17019_v0 }
 0x459   : > { %15258 = vrot.lane.b32.xlu0 %v15257_v51, %s16609_s15  ;;  %v996_v51 = vmul.f32 %v17441_v15, %v17003_v59 }
 0x45a   : > { %15243 = vrot.lane.b32.xlu1 %v15242_v9, %s16609_s15  ;;  %v995_v9 = vmul.f32 %v17404_v54, %v17006_v60  ;;  %v15297_v24 = vpack.i.bf16 %v1014_v55, %v1013_v57  ;;  %v1017_v55 = vmul.f32 %v17467_v62, %v17022_v2 }
 0x45c   : > { %v15272_v18 = vpack.i.bf16 %v996_v51, %v995_v9  ;;  %v15307_v51 = vpack.i.bf16 %v1016_v10, %v1015_v6 }
 0x45d   : > { %15268 = vrot.lane.b32.xlu0 %v15267_v19, %s16609_s15  ;;  %v998_v19 = vmul.f32 %v17455_v49, %v17003_v59 }
 0x45e   : > { %15253 = vrot.lane.b32.xlu1 %v15252_v5, %s16609_s15  ;;  %v997_v5 = vmul.f32 %v17425_v23, %v17006_v60 }
 0x460   : > { %v15282_v58 = vpack.i.bf16 %v998_v19, %v997_v5  ;;  %v15317_v19 = vpack.i.bf16 %v1018_v1, %v1017_v55  ;;  %v1004_v5 = vmul.f32 %v17499_v8, %v17003_v59 }
 0x461   : > { %15278 = vrot.lane.b32.xlu0 %v15277_v11, %s16609_s15  ;;  %v1000_v11 = vmul.f32 %v17469_v16, %v17003_v59 }
 0x462   : > { %15263 = vrot.lane.b32.xlu1 %v15262_v48, %s16609_s15  ;;  %v999_v48 = vmul.f32 %v17452_v53, %v17006_v60 }
 0x464   : > { %v15292_v9 = vpack.i.bf16 %v1000_v11, %v999_v48  ;;  %v1019_v11 = vmul.f32 %v17492_v52, %v17022_v2 }
 0x465   : > { %15288 = vrot.lane.b32.xlu0 %v15287_v45, %s16609_s15  ;;  %v1002_v45 = vmul.f32 %v17481_v46, %v17003_v59 }
 0x466   : > { %15273 = vrot.lane.b32.xlu1 %v15272_v18, %s16609_s15  ;;  %v1001_v18 = vmul.f32 %v17467_v62, %v17006_v60 }
 0x468   : > { %v15302_v57 = vpack.i.bf16 %v1002_v45, %v1001_v18 }
 0x469   : > { %15298 = vrot.lane.b32.xlu0 %v15297_v24, %s16609_s15  ;;  %v1003_v24 = vmul.f32 %v17492_v52, %v17006_v60 }
 0x46a   : > { %15283 = vrot.lane.b32.xlu1 %v15282_v58, %s16609_s15  ;;  %v1020_v58 = vmul.f32 %v17499_v8, %v17019_v0 }
 0x46b   : > { %v15312_v10 = vpack.i.bf16 %v1004_v5, %v1003_v24 }
 0x46c   : > { %v15322_v6 = vpack.i.bf16 %v1020_v58, %v1019_v11 }
 0x46d   : > { %15308 = vrot.lane.b32.xlu0 %v15307_v51, %s16609_s15 }
 0x46e   : > { %15293 = vrot.lane.b32.xlu1 %v15292_v9, %s16609_s15 }
 0x471   : > { %15318 = vrot.lane.b32.xlu0 %v15317_v19, %s16609_s15 }
 0x472   : > { %15303 = vrot.lane.b32.xlu1 %v15302_v57, %s16609_s15 }
 0x476   : > { %15313 = vrot.lane.b32.xlu1 %v15312_v10, %s16609_s15 }
 0x47a   : > { %15323 = vrot.lane.b32.xlu1 %v15322_v6, %s16609_s15 }
 0x4a7   : > { %v15169_v59 = vpop.permute.xlu0 %15168 }
 0x4a8   : > { %v15171_v48 = vunpack.i.h.bf16 %v15169_v59  ;;  %v15170_v51 = vunpack.i.l.bf16 %v15169_v59 }
 0x4aa   : > { %v13627_v1 = vpack.c.bf16 %v15171_v48, %v15170_v51 }
 0x4ab   : > { %v15179_v9 = vpop.permute.xlu0 %15178 }
 0x4ac   : > { %v15181_v45 = vunpack.i.h.bf16 %v15179_v9  ;;  %v15180_v55 = vunpack.i.l.bf16 %v15179_v9  ;;  %13628 = vmatprep.subr.bf16.mxu1 %v13627_v1 }
 0x4ad   : > { %13630 = vmatpush3.bf16.msra.mxu1 %v13627_v1 }
 0x4ae   : > { %v13659_v60 = vpack.c.bf16 %v15181_v45, %v15180_v55 }
 0x4af   : > { %v15189_v18 = vpop.permute.xlu0 %15188 }
 0x4b0   : > { %v15191_v0 = vunpack.i.h.bf16 %v15189_v18  ;;  %v15190_v19 = vunpack.i.l.bf16 %v15189_v18  ;;  %v15174_v57 = vpop.permute.xlu1 %15173  ;;  %13660 = vmatprep.subr.bf16.mxu0 %v13659_v60 }
 0x4b1   : > { %v15176_v5 = vunpack.i.h.bf16 %v15174_v57  ;;  %v15175_v2 = vunpack.i.l.bf16 %v15174_v57  ;;  %13662 = vmatpush3.bf16.msra.mxu0 %v13659_v60 }
 0x4b2   : > { %v13663_v24 = vpack.c.bf16 %v15191_v0, %v15190_v19 }
 0x4b3   : > { %v15199_v10 = vpop.permute.xlu0 %15198  ;;  %v13631_v58 = vpack.c.bf16 %v15176_v5, %v15175_v2 }
 0x4b4   : > { %v15201_v11 = vunpack.i.h.bf16 %v15199_v10  ;;  %v15200_v6 = vunpack.i.l.bf16 %v15199_v10  ;;  %v15184_v59 = vpop.permute.xlu1 %15183  ;;  %13664 = vmatprep.subr.bf16.mxu0 %v13663_v24 }
 0x4b5   : > { %v15186_v48 = vunpack.i.h.bf16 %v15184_v59  ;;  %v15185_v51 = vunpack.i.l.bf16 %v15184_v59  ;;  %13632 = vmatprep.subr.bf16.mxu1 %v13631_v58  ;;  %13666 = vmatpush3.bf16.msra.mxu0 %v13663_v24 }
 0x4b6   : > { %13634 = vmatpush3.bf16.msra.mxu1 %v13631_v58  ;;  %v13667_v1 = vpack.c.bf16 %v15201_v11, %v15200_v6 }
 0x4b7   : > { %v15209_v9 = vpop.permute.xlu0 %15208  ;;  %v13635_v45 = vpack.c.bf16 %v15186_v48, %v15185_v51 }
 0x4b8   : > { %v15211_v55 = vunpack.i.h.bf16 %v15209_v9  ;;  %v15210_v18 = vunpack.i.l.bf16 %v15209_v9  ;;  %v15194_v8 = vpop.permute.xlu1 %15193  ;;  %13668 = vmatprep.subr.bf16.mxu0 %v13667_v1 }
 0x4b9   : > { %v15196_v60 = vunpack.i.h.bf16 %v15194_v8  ;;  %v15195_v0 = vunpack.i.l.bf16 %v15194_v8  ;;  %13636 = vmatprep.subr.bf16.mxu1 %v13635_v45  ;;  %13670 = vmatpush3.bf16.msra.mxu0 %v13667_v1 }
 0x4ba   : > { %13638 = vmatpush3.bf16.msra.mxu1 %v13635_v45  ;;  %v13671_v19 = vpack.c.bf16 %v15211_v55, %v15210_v18 }
 0x4bb   : > { %v15219_v57 = vpop.permute.xlu0 %15218  ;;  %v13639_v5 = vpack.c.bf16 %v15196_v60, %v15195_v0 }
 0x4bc   : > { %v15221_v2 = vunpack.i.h.bf16 %v15219_v57  ;;  %v15220_v10 = vunpack.i.l.bf16 %v15219_v57  ;;  %v15204_v59 = vpop.permute.xlu1 %15203  ;;  %13672 = vmatprep.subr.bf16.mxu0 %v13671_v19 }
 0x4bd   : > { %v15206_v24 = vunpack.i.h.bf16 %v15204_v59  ;;  %v15205_v58 = vunpack.i.l.bf16 %v15204_v59  ;;  %13640 = vmatprep.subr.bf16.mxu1 %v13639_v5  ;;  %13674 = vmatpush3.bf16.msra.mxu0 %v13671_v19 }
 0x4be   : > { %13642 = vmatpush3.bf16.msra.mxu1 %v13639_v5  ;;  %v13675_v11 = vpack.c.bf16 %v15221_v2, %v15220_v10 }
 0x4bf   : > { %v15229_v6 = vpop.permute.xlu0 %15228  ;;  %v13643_v48 = vpack.c.bf16 %v15206_v24, %v15205_v58 }
 0x4c0   : > { %v15231_v51 = vunpack.i.h.bf16 %v15229_v6  ;;  %v15230_v8 = vunpack.i.l.bf16 %v15229_v6  ;;  %v15214_v9 = vpop.permute.xlu1 %15213  ;;  %13676 = vmatprep.subr.bf16.mxu0 %v13675_v11 }
 0x4c1   : > { %v15216_v1 = vunpack.i.h.bf16 %v15214_v9  ;;  %v15215_v45 = vunpack.i.l.bf16 %v15214_v9  ;;  %13644 = vmatprep.subr.bf16.mxu1 %v13643_v48  ;;  %13678 = vmatpush3.bf16.msra.mxu0 %v13675_v11 }
 0x4c2   : > { %13646 = vmatpush3.bf16.msra.mxu1 %v13643_v48  ;;  %v13679_v55 = vpack.c.bf16 %v15231_v51, %v15230_v8 }
 0x4c3   : > { %v15239_v18 = vpop.permute.xlu0 %15238  ;;  %v13647_v60 = vpack.c.bf16 %v15216_v1, %v15215_v45 }
 0x4c4   : > { %v15241_v0 = vunpack.i.h.bf16 %v15239_v18  ;;  %v15240_v57 = vunpack.i.l.bf16 %v15239_v18  ;;  %v15224_v59 = vpop.permute.xlu1 %15223  ;;  %13680 = vmatprep.subr.bf16.mxu0 %v13679_v55 }
 0x4c5   : > { %v15226_v19 = vunpack.i.h.bf16 %v15224_v59  ;;  %v15225_v5 = vunpack.i.l.bf16 %v15224_v59  ;;  %13648 = vmatprep.subr.bf16.mxu1 %v13647_v60  ;;  %13682 = vmatpush3.bf16.msra.mxu0 %v13679_v55 }
 0x4c6   : > { %13650 = vmatpush3.bf16.msra.mxu1 %v13647_v60  ;;  %v13683_v2 = vpack.c.bf16 %v15241_v0, %v15240_v57 }
 0x4c7   : > { %v15249_v10 = vpop.permute.xlu0 %15248  ;;  %v13651_v24 = vpack.c.bf16 %v15226_v19, %v15225_v5 }
 0x4c8   : > { %v15251_v58 = vunpack.i.h.bf16 %v15249_v10  ;;  %v15250_v6 = vunpack.i.l.bf16 %v15249_v10  ;;  %v15234_v9 = vpop.permute.xlu1 %15233  ;;  %13684 = vmatprep.subr.bf16.mxu0 %v13683_v2 }
 0x4c9   : > { %v15236_v11 = vunpack.i.h.bf16 %v15234_v9  ;;  %v15235_v48 = vunpack.i.l.bf16 %v15234_v9  ;;  %13652 = vmatprep.subr.bf16.mxu1 %v13651_v24  ;;  %13686 = vmatpush3.bf16.msra.mxu0 %v13683_v2 }
 0x4ca   : > { %13654 = vmatpush3.bf16.msra.mxu1 %v13651_v24  ;;  %v13691_v59 = vpack.c.bf16 %v15251_v58, %v15250_v6 }
 0x4cb   : > { %v15259_v51 = vpop.permute.xlu0 %15258  ;;  %v13655_v8 = vpack.c.bf16 %v15236_v11, %v15235_v48 }
 0x4cc   : > { %v15261_v1 = vunpack.i.h.bf16 %v15259_v51  ;;  %v15244_v45 = vpop.permute.xlu1 %15243  ;;  %v11941_v18 = vpop.f32.mrb[12].mxu0  ;;  %v15260_v55 = vunpack.i.l.bf16 %v15259_v51 }
 0x4cd   : > { %v15246_v60 = vunpack.i.h.bf16 %v15244_v45  ;;  %v15245_v0 = vunpack.i.l.bf16 %v15244_v45  ;;  %16303 = vrcp.f32 %v11941_v18  ;;  %13656 = vmatprep.subr.bf16.mxu1 %v13655_v8  ;;  %v1771_v57 = vpop.f32.mrb[13].mxu0 }
 0x4ce   : > { %16305 = vrcp.f32 %v1771_v57  ;;  %13658 = vmatpush3.bf16.msra.mxu1 %v13655_v8  ;;  %v13723_v2 = vpack.c.bf16 %v15261_v1, %v15260_v55 }
 0x4cf   : > { %13692 = vmatprep.subr.bf16.mxu1 %v13691_v59  ;;  %v13687_v19 = vpack.c.bf16 %v15246_v60, %v15245_v0  ;;  %v15269_v10 = vpop.permute.xlu0 %15268 }
 0x4d0   : > { %v15254_v5 = vpop.permute.xlu1 %15253  ;;  %v15271_v52 = vunpack.i.h.bf16 %v15269_v10  ;;  %v15270_v46 = vunpack.i.l.bf16 %v15269_v10 }
 0x4d1   : > { %13688 = vmatprep.subr.bf16.mxu0 %v13687_v19  ;;  %v15256_v48 = vunpack.i.h.bf16 %v15254_v5  ;;  %v15255_v51 = vunpack.i.l.bf16 %v15254_v5 }
 0x4d2   : > { %13690 = vmatpush3.bf16.msra.mxu0 %v13687_v19 }
 0x4d3   : > { %13724 = vmatprep.subr.bf16.mxu0 %v13723_v2  ;;  %v11944_v24 = vpop.f32.mrb[14].mxu0  ;;  %v15279_v45 = vpop.permute.xlu0 %15278  ;;  %v13695_v57 = vpack.c.bf16 %v15256_v48, %v15255_v51 }
 0x4d4   : > { %16307 = vrcp.f32 %v11944_v24  ;;  %v15264_v9 = vpop.permute.xlu1 %15263  ;;  %v1781_v58 = vpop.f32.mrb[15].mxu0 }
 0x4d5   : > { %16309 = vrcp.f32 %v1781_v58  ;;  %v15266_v1 = vunpack.i.h.bf16 %v15264_v9  ;;  %v15265_v55 = vunpack.i.l.bf16 %v15264_v9  ;;  %v15281_v9 = vunpack.i.h.bf16 %v15279_v45 }
 0x4d7   : > { %v16304_v6 = vpop.eup %16303  ;;  %v15289_v24 = vpop.permute.xlu0 %15288  ;;  %v13699_v16 = vpack.c.bf16 %v15266_v1, %v15265_v55 }
 0x4d8   : > { %v16306_v11 = vpop.eup %16305  ;;  %v15274_v18 = vpop.permute.xlu1 %15273  ;;  %v1819_v60 = vmul.f32 %v16304_v6, %v17375_v28 }
 0x4d9   : > { %v1818_v8 = vmul.f32 %v16306_v11, %v17373_v27  ;;  %v15276_v5 = vunpack.i.h.bf16 %v15274_v18  ;;  %v15275_v62 = vunpack.i.l.bf16 %v15274_v18  ;;  %v15280_v11 = vunpack.i.l.bf16 %v15279_v45 }
 0x4da   : > { %v15291_v18 = vunpack.i.h.bf16 %v15289_v24 }
 0x4db   : > { %11983 = vmatprep.mubr.f32.mxu1 %v1818_v8  ;;  %v15299_v48 = vpop.permute.xlu0 %15298  ;;  %v13703_v10 = vpack.c.bf16 %v15276_v5, %v15275_v62 }
 0x4dc   : > { %v15284_v0 = vpop.permute.xlu1 %15283  ;;  %11984 = vmatmul.mubr.f32.vlgmr.msra.gmra.mrb[12].mxu1 %v1819_v60 }
 0x4dd   : > { %13694 = vmatpush3.bf16.msra.mxu1 %v13691_v59  ;;  %v13727_v59 = vpack.c.bf16 %v15271_v52, %v15270_v46  ;;  %v15286_v51 = vunpack.i.h.bf16 %v15284_v0  ;;  %v15285_v8 = vunpack.i.l.bf16 %v15284_v0  ;;  %v15301_v52 = vunpack.i.h.bf16 %v15299_v48 }
 0x4de   : > { %v16308_v19 = vpop.eup %16307  ;;  %13696 = vmatprep.subr.bf16.mxu1 %v13695_v57  ;;  %v15300_v46 = vunpack.i.l.bf16 %v15299_v48 }
 0x4df   : > { %v16310_v58 = vpop.eup %16309  ;;  %v1821_v28 = vmul.f32 %v16308_v19, %v17382_v30  ;;  %v13731_v30 = vpack.c.bf16 %v15281_v9, %v15280_v11  ;;  %v15309_v45 = vpop.permute.xlu0 %15308 }
 0x4e0   : > { %v1820_v27 = vmul.f32 %v16310_v58, %v17379_v29  ;;  %v15294_v6 = vpop.permute.xlu1 %15293  ;;  %v15290_v29 = vunpack.i.l.bf16 %v15289_v24  ;;  %v15311_v24 = vunpack.i.h.bf16 %v15309_v45  ;;  %v15310_v58 = vunpack.i.l.bf16 %v15309_v45 }
 0x4e1   : > { %13698 = vmatpush3.bf16.msra.mxu1 %v13695_v57  ;;  %v15296_v1 = vunpack.i.h.bf16 %v15294_v6  ;;  %v15295_v55 = vunpack.i.l.bf16 %v15294_v6  ;;  %v13707_v57 = vpack.c.bf16 %v15286_v51, %v15285_v8  ;;  %v13739_v5 = vpack.c.bf16 %v15301_v52, %v15300_v46 }
 0x4e2   : > { %13700 = vmatprep.subr.bf16.mxu1 %v13699_v16  ;;  %12018 = vmatprep.mubr.f32.mxu0 %v1820_v27  ;;  %v13735_v0 = vpack.c.bf16 %v15291_v18, %v15290_v29  ;;  %v13743_v48 = vpack.c.bf16 %v15311_v24, %v15310_v58  ;;  %v627_v24 = vld [vmem:[%s20751_s4 + $0x10] sm:$0xff]  ;;  %v628_v58 = vld [vmem:[%s20751_s4 + $0x18] sm:$0xff] }
 0x4e3   : > { %12019 = vmatmul.mubr.f32.vlgmr.msra.gmra.mrb[20].mxu0 %v1821_v28  ;;  %v15319_v27 = vpop.permute.xlu0 %15318 }
 0x4e4   : > { %13726 = vmatpush3.bf16.msra.mxu0 %v13723_v2  ;;  %v15304_v60 = vpop.permute.xlu1 %15303  ;;  %v15321_v11 = vunpack.i.h.bf16 %v15319_v27 }
 0x4e5   : > { %13702 = vmatpush3.bf16.msra.mxu1 %v13699_v16  ;;  %13728 = vmatprep.subr.bf16.mxu0 %v13727_v59  ;;  %v15306_v2 = vunpack.i.h.bf16 %v15304_v60  ;;  %v15305_v62 = vunpack.i.l.bf16 %v15304_v60  ;;  %v13711_v16 = vpack.c.bf16 %v15296_v1, %v15295_v55  ;;  %v625_v60 = vld [vmem:[%s20751_s4] sm:$0xff] }
 0x4e6   : > { %13704 = vmatprep.subr.bf16.mxu1 %v13703_v10 }
 0x4e7   : > { %v13715_v9 = vpack.c.bf16 %v15306_v2, %v15305_v62 }
 0x4e8   : > { %13730 = vmatpush3.bf16.msra.mxu0 %v13727_v59  ;;  %v15314_v19 = vpop.permute.xlu1 %15313  ;;  %v15320_v59 = vunpack.i.l.bf16 %v15319_v27 }
 0x4e9   : > { %13706 = vmatpush3.bf16.msra.mxu1 %v13703_v10  ;;  %13732 = vmatprep.subr.bf16.mxu0 %v13731_v30  ;;  %v15316_v28 = vunpack.i.h.bf16 %v15314_v19  ;;  %v15315_v6 = vunpack.i.l.bf16 %v15314_v19 }
 0x4ea   : > { %13708 = vmatprep.subr.bf16.mxu1 %v13707_v57  ;;  %v13747_v29 = vpack.c.bf16 %v15321_v11, %v15320_v59 }
 0x4eb   : > { %v13719_v8 = vpack.c.bf16 %v15316_v28, %v15315_v6  ;;  %v13759_v6 = vpack.c.bf16 %v628_v58, %v627_v24 }
 0x4ec   : > { %13734 = vmatpush3.bf16.msra.mxu0 %v13731_v30  ;;  %v15324_v51 = vpop.permute.xlu1 %15323  ;;  %v626_v30 = vld [vmem:[%s20751_s4 + $0x8] sm:$0xff] }
 0x4ed   : > { %13710 = vmatpush3.bf16.msra.mxu1 %v13707_v57  ;;  %13736 = vmatprep.subr.bf16.mxu0 %v13735_v0  ;;  %v15326_v10 = vunpack.i.h.bf16 %v15324_v51  ;;  %v15325_v18 = vunpack.i.l.bf16 %v15324_v51  ;;  %v13755_v55 = vpack.c.bf16 %v626_v30, %v625_v60  ;;  %v10409_v51 = vld [vmem:[%s20752_s5] ss:$0 sm:$0xff] }
 0x4ee   : > { %13712 = vmatprep.subr.bf16.mxu1 %v13711_v16 }
 0x4ef   : > { %v13751_v1 = vpack.c.bf16 %v15326_v10, %v15325_v18 }
 0x4f0   : > { %13738 = vmatpush3.bf16.msra.mxu0 %v13735_v0 }
 0x4f1   : > { %13714 = vmatpush3.bf16.msra.mxu1 %v13711_v16  ;;  %13740 = vmatprep.subr.bf16.mxu0 %v13739_v5 }
 0x4f2   : > { %13716 = vmatprep.subr.bf16.mxu1 %v13715_v9 }
 0x4f4   : > { %13742 = vmatpush3.bf16.msra.mxu0 %v13739_v5 }
 0x4f5   : > { %13718 = vmatpush3.bf16.msra.mxu1 %v13715_v9  ;;  %13744 = vmatprep.subr.bf16.mxu0 %v13743_v48 }
 0x4f6   : > { %13720 = vmatprep.subr.bf16.mxu1 %v13719_v8 }
 0x4f8   : > { %13746 = vmatpush3.bf16.msra.mxu0 %v13743_v48 }
 0x4f9   : > { %13722 = vmatpush3.bf16.msra.mxu1 %v13719_v8  ;;  %13748 = vmatprep.subr.bf16.mxu0 %v13747_v29 }
 0x4fc   : > { %13750 = vmatpush3.bf16.msra.mxu0 %v13747_v29 }
 0x4fd   : > { %13752 = vmatprep.subr.bf16.mxu0 %v13751_v1 }
 0x500   : > { %13754 = vmatpush3.bf16.msra.mxu0 %v13751_v1 }
 0x501   : > { %13756 = vmatprep.subr.bf16.mxu0 %v13755_v55 }
 0x50c   : > { %v11947_v57 = vpop.f32.mrb[16].mxu0 }
 0x50d   : > { %16311 = vrcp.f32 %v11947_v57  ;;  %v1791_v45 = vpop.f32.mrb[17].mxu0 }
 0x50e   : > { %16313 = vrcp.f32 %v1791_v45 }
 0x510   : > { %v11950_v52 = vpop.f32.mrb[18].mxu0 }
 0x511   : > { %16315 = vrcp.f32 %v11950_v52  ;;  %v1801_v46 = vpop.f32.mrb[19].mxu0 }
 0x512   : > { %16317 = vrcp.f32 %v1801_v46 }
 0x517   : > { %v16312_v0 = vpop.eup %16311 }
 0x518   : > { %v16314_v2 = vpop.eup %16313  ;;  %v1823_v16 = vmul.f32 %v16312_v0, %v17406_v12 }
 0x519   : > { %v1822_v62 = vmul.f32 %v16314_v2, %v17402_v26 }
 0x51b   : > { %v16316_v19 = vpop.eup %16315  ;;  %12053 = vmatprep.mubr.f32.mxu1 %v1822_v62 }
 0x51c   : > { %v16318_v5 = vpop.eup %16317  ;;  %12054 = vmatmul.mubr.f32.vlgmr.msra.gmra.mrb[14].mxu1 %v1823_v16  ;;  %v1825_v28 = vmul.f32 %v16316_v19, %v17423_v20 }
 0x51d   : > { %v1824_v27 = vmul.f32 %v16318_v5, %v17421_v17 }
 0x51f   : > { %12088 = vmatprep.mubr.f32.mxu0 %v1824_v27  ;;  %v630_v27 = vld [vmem:[%s20753_s6] sm:$0xff] }
 0x520   : > { %12089 = vmatmul.mubr.f32.vlgmr.msra.gmra.mrb[22].mxu0 %v1825_v28  ;;  %v631_v28 = vld [vmem:[%s20753_s6 + $0x8] sm:$0xff] }
 0x521   : > { %13758 = vmatpush3.bf16.msra.mxu0 %v13755_v55 }
 0x522   : > { %13760 = vmatprep.subr.bf16.mxu0 %v13759_v6 }
 0x525   : > { %13762 = vmatpush3.bf16.msra.mxu0 %v13759_v6  ;;  %v632_v6 = vld [vmem:[%s20753_s6 + $0x10] sm:$0xff] }
 0x5af   : > { %v11985_v26 = vpop.f32.mrb[12].mxu1 }
 0x5b0   : > { %v1956_v12 = vpop.f32.mrb[13].mxu1 }
 0x5b1   : > { %12099 = vmatprep.mubr.msk.f32.mxu0 %vm651_vm2, %v1956_v12  ;;  %v633_v12 = vld [vmem:[%s20753_s6 + $0x18] sm:$0xff] }
 0x5b2   : > { %12100 = vmatmul.mubr.msk.f32.vlgmr.msra.gmra.mrb[24].mxu0 %vm651_vm2, %v11985_v26  ;;  %v13763_v26 = vpack.c.bf16 %v631_v28, %v630_v27 }
 0x5b4   : > { %13764 = vmatprep.subr.bf16.mxu1 %v13763_v26 }
 0x5b5   : > { %13766 = vmatpush3.bf16.msra.mxu1 %v13763_v26 }
 0x5b6   : > { %v12020_v9 = vpop.f32.mrb[20].mxu0 }
 0x5b7   : > { %v2095_v11 = vpop.f32.mrb[21].mxu0 }
 0x5b8   : > { %12102 = vmatprep.mubr.msk.f32.mxu0 %vm651_vm2, %v2095_v11 }
 0x5b9   : > { %12103 = vmatmul.mubr.msk.f32.gmra.mrb[26].mxu0 %vm651_vm2, %v12020_v9  ;;  %v13767_v9 = vpack.c.bf16 %v633_v12, %v632_v6 }
 0x5bb   : > { %13768 = vmatprep.subr.bf16.mxu1 %v13767_v9 }
 0x5bc   : > { %13770 = vmatpush3.bf16.msra.mxu1 %v13767_v9 }
 0x5ef   : > { %v12055_v17 = vpop.f32.mrb[14].mxu1 }
 0x5f0   : > { %v2234_v20 = vpop.f32.mrb[15].mxu1 }
 0x5f1   : > { %12105 = vmatprep.mubr.msk.f32.mxu0 %vm651_vm2, %v2234_v20 }
 0x5f2   : > { %12106 = vmatmul.mubr.msk.f32.gmra.mrb[28].mxu0 %vm651_vm2, %v12055_v17 }
 0x5f3   : > { %v12090_v59 = vpop.f32.mrb[22].mxu0 }
 0x5f4   : > { %v2373_v48 = vpop.f32.mrb[23].mxu0 }
 0x5f5   : > { %12108 = vmatprep.mubr.msk.f32.mxu0 %vm651_vm2, %v2373_v48 }
 0x5f6   : > { %12109 = vmatmul.mubr.msk.f32.gmra.mrb[30].mxu0 %vm651_vm2, %v12090_v59 }
 0x685   : > { %v12101_v8 = vpop.f32.mrb[24].mxu0 }
 0x686   : > { %v2484_v10 = vadd.f32 %v12101_v8, %v10409_v51  ;;  %v2478_v18 = vpop.f32.mrb[25].mxu0 }
 0x687   : > { %v2479_v29 = vadd.f32 %v10409_v51, %v2478_v18 }
 0x688   : > { %v17621_v60 = vadd.f32 %v16854_v31, %v2484_v10 }
 0x689   : > { %v17624_v30 = vadd.f32 %v2479_v29, %v16856_v32 }
 0x68a   : > { %v2528_v1 = vsel %vm651_vm2, %v17621_v60, 0.0  ;;  %v2559_v57 = vmul.f32 %v17621_v60, %v17621_v60 }
 0x68b   : > { %2529 = vadd.xlane.f32.xlu1 %v2528_v1  ;;  %v2525_v55 = vsel %vm651_vm2, %v17624_v30, 0.0  ;;  %v2558_v2 = vmul.f32 %v17624_v30, %v17624_v30 }
 0x68c   : > { %v12104_v45 = vpop.f32.mrb[26].mxu0  ;;  %2526 = vadd.xlane.f32.xlu0 %v2525_v55  ;;  %v2569_v32 = vsel %vm651_vm2, %v2559_v57, 0.0 }
 0x68d   : > { %v2494_v52 = vadd.f32 %v12104_v45, %v10409_v51  ;;  %v2488_v46 = vpop.f32.mrb[27].mxu0  ;;  %v2566_v24 = vsel %vm651_vm2, %v2558_v2, 0.0 }
 0x68e   : > { %v2489_v0 = vadd.f32 %v10409_v51, %v2488_v46 }
 0x68f   : > { %v17633_v31 = vadd.f32 %v16862_v33, %v2494_v52 }
 0x690   : > { %v17639_v62 = vadd.f32 %v2489_v0, %v16864_v34  ;;  %2570 = vadd.xlane.f32.xlu0 %v2569_v32 }
 0x691   : > { %v2534_v58 = vsel %vm651_vm2, %v17633_v31, 0.0  ;;  %v2561_v34 = vmul.f32 %v17633_v31, %v17633_v31 }
 0x692   : > { %v2531_v16 = vsel %vm651_vm2, %v17639_v62, 0.0  ;;  %v2560_v19 = vmul.f32 %v17639_v62, %v17639_v62 }
 0x693   : > { %2532 = vadd.xlane.f32.xlu1 %v2531_v16  ;;  %v2575_v5 = vsel %vm651_vm2, %v2561_v34, 0.0 }
 0x694   : > { %2567 = vadd.xlane.f32.xlu0 %v2566_v24  ;;  %v2572_v33 = vsel %vm651_vm2, %v2560_v19, 0.0  ;;  %v635_v19 = vld [vmem:[%s20755_s8] sm:$0xff]  ;;  %v636_v24 = vld [vmem:[%s20755_s8 + $0x8] sm:$0xff] }
 0x697   : > { %2573 = vadd.xlane.f32.xlu1 %v2572_v33  ;;  %v17702_v33 = vpack.c.bf16 %v636_v24, %v635_v19  ;;  %v17713_v24 = vld [vmem:[%s20757_s10] sm:$0xf] }
 0x698   : > { %2535 = vadd.xlane.f32.xlu0 %v2534_v58 }
 0x699   : > { %13772 = vmatprep.subr.bf16.mxu1 %v17702_v33 }
 0x69c   : > { %2576 = vadd.xlane.f32.xlu0 %v2575_v5 }
 0x6c5   : > { %v12107_v11 = vpop.f32.mrb[28].mxu0 }
 0x6c6   : > { %v2504_v17 = vadd.f32 %v12107_v11, %v10409_v51  ;;  %v2498_v20 = vpop.f32.mrb[29].mxu0 }
 0x6c7   : > { %v2499_v59 = vadd.f32 %v10409_v51, %v2498_v20 }
 0x6c8   : > { %v17665_v48 = vadd.f32 %v16870_v35, %v2504_v17 }
 0x6c9   : > { %v17668_v8 = vadd.f32 %v2499_v59, %v16872_v36  ;;  %v12110_v10 = vpop.f32.mrb[30].mxu0 }
 0x6ca   : > { %v2514_v18 = vadd.f32 %v12110_v10, %v10409_v51  ;;  %v2508_v29 = vpop.f32.mrb[31].mxu0  ;;  %v2540_v1 = vsel %vm651_vm2, %v17665_v48, 0.0  ;;  %v2563_v55 = vmul.f32 %v17665_v48, %v17665_v48 }
 0x6cb   : > { %v2509_v57 = vadd.f32 %v10409_v51, %v2508_v29  ;;  %2541 = vadd.xlane.f32.xlu0 %v2540_v1  ;;  %v2537_v45 = vsel %vm651_vm2, %v17668_v8, 0.0  ;;  %v2562_v35 = vmul.f32 %v17668_v8, %v17668_v8  ;;  %v2646_v1 = vlaneseq }
 0x6cc   : > { %v17679_v36 = vadd.f32 %v16878_v37, %v2514_v18  ;;  %2538 = vadd.xlane.f32.xlu1 %v2537_v45  ;;  %v2581_v46 = vsel %vm651_vm2, %v2563_v55, 0.0 }
 0x6cd   : > { %v17682_v52 = vadd.f32 %v2509_v57, %v16880_v38  ;;  %v2578_v0 = vsel %vm651_vm2, %v2562_v35, 0.0 }
 0x6ce   : > { %v2546_v51 = vsel %vm651_vm2, %v17679_v36, 0.0  ;;  %v2565_v32 = vmul.f32 %v17679_v36, %v17679_v36 }
 0x6cf   : > { %2582 = vadd.xlane.f32.xlu0 %v2581_v46  ;;  %v2543_v37 = vsel %vm651_vm2, %v17682_v52, 0.0  ;;  %v2564_v38 = vmul.f32 %v17682_v52, %v17682_v52 }
 0x6d0   : > { %2579 = vadd.xlane.f32.xlu1 %v2578_v0  ;;  %v2587_v2 = vsel %vm651_vm2, %v2565_v32, 0.0 }
 0x6d1   : > { %v2584_v16 = vsel %vm651_vm2, %v2564_v38, 0.0 }
 0x6d3   : > { %2547 = vadd.xlane.f32.xlu0 %v2546_v51  ;;  %v17705_v51 = vshrl.u32 %v2646_v1, 7 }
 0x6d4   : > { %2544 = vadd.xlane.f32.xlu1 %v2543_v37 }
 0x6d5   : > { %v17708_v19 = vsub.s32 0, %v17705_v51 }
 0x6d7   : > { %2588 = vadd.xlane.f32.xlu0 %v2587_v2 }
 0x6d8   : > { %2585 = vadd.xlane.f32.xlu1 %v2584_v16 }
 0x718   : > { %v2530_v58 = vpop.xlane.xlu1 %2529 }
 0x719   : > { %v2527_v34 = vpop.xlane.xlu0 %2526  ;;  %v2551_v5 = vmul.f32 0.03125, %v2530_v58 }
 0x71a   : > { %v2550_v6 = vmul.f32 0.03125, %v2527_v34 }
 0x71b   : > { %v2599_v28 = vmul.f32 %v2551_v5, %v2551_v5  ;;  %v2615_v34 = vsub.f32 %v17621_v60, %v2551_v5 }
 0x71c   : > { %v2598_v20 = vmul.f32 %v2550_v6, %v2550_v6 }
 0x71d   : > { %v2571_v27 = vpop.xlane.xlu0 %2570 }
 0x71e   : > { %v2591_v26 = vmul.f32 0.03125, %v2571_v27 }
 0x720   : > { %v2607_v12 = vsub.f32 %v2591_v26, %v2599_v28  ;;  %v2533_v9 = vpop.xlane.xlu1 %2532  ;;  %v17718_v26 = vrot.slane %v17713_v24, %v17708_v19 }
 0x721   : > { %v2552_v11 = vmul.f32 0.03125, %v2533_v9  ;;  %v2568_v17 = vpop.xlane.xlu0 %2567  ;;  %v2614_v9 = vsub.f32 %v17624_v30, %v2550_v6  ;;  %v638_v30 = vld [vmem:[%s20755_s8 + $0x18] sm:$0xff] }
 0x722   : > { %v2623_v59 = vadd.f32 1e-05, %v2607_v12  ;;  %v2590_v10 = vmul.f32 0.03125, %v2568_v17  ;;  %v17721_v12 = vsub.s32 1, %v17705_v51 }
 0x723   : > { %v2600_v55 = vmul.f32 %v2552_v11, %v2552_v11 }
 0x724   : > { %16319 = vrsqrt.f32 %v2623_v59  ;;  %v2606_v18 = vsub.f32 %v2590_v10, %v2598_v20  ;;  %v2574_v29 = vpop.xlane.xlu1 %2573  ;;  %v2616_v59 = vsub.f32 %v17639_v62, %v2552_v11  ;;  %v17727_v10 = vrot.slane %v17713_v24, %v17721_v12 }
 0x725   : > { %v2592_v57 = vmul.f32 0.03125, %v2574_v29  ;;  %v2536_v45 = vpop.xlane.xlu0 %2535  ;;  %v637_v29 = vld [vmem:[%s20755_s8 + $0x10] sm:$0xff] }
 0x726   : > { %v2622_v35 = vadd.f32 1e-05, %v2606_v18  ;;  %v2553_v46 = vmul.f32 0.03125, %v2536_v45  ;;  %v639_v45 = vld [vmem:[%s20755_s8 + $0x20] sm:$0xff] }
 0x727   : > { %v2608_v0 = vsub.f32 %v2592_v57, %v2600_v55  ;;  %v13775_v55 = vpack.c.bf16 %v638_v30, %v637_v29 }
 0x728   : > { %16321 = vrsqrt.f32 %v2622_v35  ;;  %v2601_v38 = vmul.f32 %v2553_v46, %v2553_v46  ;;  %v2617_v57 = vsub.f32 %v17633_v31, %v2553_v46  ;;  %v640_v35 = vld [vmem:[%s20755_s8 + $0x28] sm:$0xff] }
 0x729   : > { %v2624_v32 = vadd.f32 1e-05, %v2608_v0  ;;  %v2577_v37 = vpop.xlane.xlu0 %2576  ;;  %v13779_v31 = vpack.c.bf16 %v640_v35, %v639_v45 }
 0x72a   : > { %v2593_v2 = vmul.f32 0.03125, %v2577_v37 }
 0x72b   : > { %16323 = vrsqrt.f32 %v2624_v32 }
 0x72c   : > { %v2609_v16 = vsub.f32 %v2593_v2, %v2601_v38 }
 0x72e   : > { %v16320_v58 = vpop.eup %16319  ;;  %v2625_v27 = vadd.f32 1e-05, %v2609_v16 }
 0x72f   : > { %v2639_v28 = vmul.f32 %v16320_v58, %v2615_v34 }
 0x730   : > { %16325 = vrsqrt.f32 %v2625_v27 }
 0x731   : > { %v2651_v60 = vmul.f32 %v17718_v26, %v2639_v28 }
 0x732   : > { %v16322_v17 = vpop.eup %16321 }
 0x733   : > { %v2638_v20 = vmul.f32 %v16322_v17, %v2614_v9  ;;  %v17741_v11 = vadd.f32 %v17727_v10, %v2651_v60 }
 0x735   : > { %v16324_v5 = vpop.eup %16323  ;;  %v2650_v18 = vmul.f32 %v17718_v26, %v2638_v20 }
 0x736   : > { %v2640_v6 = vmul.f32 %v16324_v5, %v2616_v59 }
 0x737   : > { %v17738_v62 = vadd.f32 %v17727_v10, %v2650_v18 }
 0x738   : > { %v2652_v1 = vmul.f32 %v17718_v26, %v2640_v6 }
 0x739   : > { %12119 = vmatprep.mubr.msk.f32.mxu1 %vm651_vm2, %v17738_v62 }
 0x73a   : > { %v16326_v0 = vpop.eup %16325  ;;  %12120 = vmatmul.mubr.msk.f32.vlgmr.msra.gmra.mrb[16].mxu1 %vm651_vm2, %v17741_v11  ;;  %v17756_v32 = vadd.f32 %v17727_v10, %v2652_v1 }
 0x73b   : > { %v2641_v37 = vmul.f32 %v16326_v0, %v2617_v57  ;;  %13774 = vmatpush3.bf16.msra.mxu1 %v17702_v33 }
 0x73c   : > { %12122 = vmatprep.mubr.msk.f32.mxu1 %vm651_vm2, %v17756_v32  ;;  %13776 = vmatprep.subr.bf16.mxu1 %v13775_v55 }
 0x73d   : > { %v2653_v46 = vmul.f32 %v17718_v26, %v2641_v37 }
 0x73f   : > { %v17763_v38 = vadd.f32 %v17727_v10, %v2653_v46  ;;  %13778 = vmatpush3.bf16.msra.mxu1 %v13775_v55 }
 0x740   : > { %13780 = vmatprep.subr.bf16.mxu1 %v13779_v31 }
 0x741   : > { %12123 = vmatmul.mubr.msk.f32.gmra.mrb[18].mxu1 %vm651_vm2, %v17763_v38 }
 0x743   : > { %13782 = vmatpush3.bf16.msra.mxu1 %v13779_v31 }
 0x758   : > { %v2542_v2 = vpop.xlane.xlu0 %2541 }
 0x759   : > { %v2555_v16 = vmul.f32 0.03125, %v2542_v2  ;;  %v2539_v58 = vpop.xlane.xlu1 %2538 }
 0x75a   : > { %v2554_v33 = vmul.f32 0.03125, %v2539_v58 }
 0x75b   : > { %v2603_v27 = vmul.f32 %v2555_v16, %v2555_v16 }
 0x75c   : > { %v2583_v34 = vpop.xlane.xlu0 %2582  ;;  %v2602_v17 = vmul.f32 %v2554_v33, %v2554_v33 }
 0x75d   : > { %v2595_v28 = vmul.f32 0.03125, %v2583_v34  ;;  %v2580_v9 = vpop.xlane.xlu1 %2579  ;;  %v2619_v34 = vsub.f32 %v17665_v48, %v2555_v16 }
 0x75e   : > { %v2594_v20 = vmul.f32 0.03125, %v2580_v9 }
 0x75f   : > { %v2611_v59 = vsub.f32 %v2595_v28, %v2603_v27  ;;  %v2618_v28 = vsub.f32 %v17668_v8, %v2554_v33 }
 0x760   : > { %v2610_v60 = vsub.f32 %v2594_v20, %v2602_v17  ;;  %v2548_v5 = vpop.xlane.xlu0 %2547 }
 0x761   : > { %v2627_v18 = vadd.f32 1e-05, %v2611_v59  ;;  %v2557_v29 = vmul.f32 0.03125, %v2548_v5  ;;  %v2545_v30 = vpop.xlane.xlu1 %2544 }
 0x762   : > { %v2626_v6 = vadd.f32 1e-05, %v2610_v60  ;;  %v2556_v1 = vmul.f32 0.03125, %v2545_v30 }
 0x763   : > { %16327 = vrsqrt.f32 %v2627_v18  ;;  %v2605_v57 = vmul.f32 %v2557_v29, %v2557_v29  ;;  %v2621_v18 = vsub.f32 %v17679_v36, %v2557_v29 }
 0x764   : > { %16329 = vrsqrt.f32 %v2626_v6  ;;  %v2589_v55 = vpop.xlane.xlu0 %2588  ;;  %v2604_v0 = vmul.f32 %v2556_v1, %v2556_v1  ;;  %v2620_v16 = vsub.f32 %v17682_v52, %v2556_v1  ;;  %v641_v52 = vld [vmem:[%s20755_s8 + $0x30] sm:$0xff] }
 0x765   : > { %v2597_v45 = vmul.f32 0.03125, %v2589_v55  ;;  %v2586_v35 = vpop.xlane.xlu1 %2585 }
 0x766   : > { %v2596_v37 = vmul.f32 0.03125, %v2586_v35 }
 0x767   : > { %v2613_v31 = vsub.f32 %v2597_v45, %v2605_v57 }
 0x768   : > { %v2612_v46 = vsub.f32 %v2596_v37, %v2604_v0 }
 0x769   : > { %v2629_v2 = vadd.f32 1e-05, %v2613_v31 }
 0x76a   : > { %v2628_v58 = vadd.f32 1e-05, %v2612_v46 }
 0x76b   : > { %16331 = vrsqrt.f32 %v2629_v2 }
 0x76c   : > { %16333 = vrsqrt.f32 %v2628_v58 }
 0x76d   : > { %v16328_v27 = vpop.eup %16327 }
 0x76e   : > { %v16330_v9 = vpop.eup %16329  ;;  %v2643_v17 = vmul.f32 %v16328_v27, %v2619_v34 }
 0x76f   : > { %v2642_v20 = vmul.f32 %v16330_v9, %v2618_v28 }
 0x770   : > { %v2655_v59 = vmul.f32 %v17718_v26, %v2643_v17 }
 0x771   : > { %v2654_v60 = vmul.f32 %v17718_v26, %v2642_v20 }
 0x772   : > { %v17776_v30 = vadd.f32 %v17727_v10, %v2655_v59 }
 0x773   : > { %v17772_v5 = vadd.f32 %v17727_v10, %v2654_v60 }
 0x775   : > { %v16332_v48 = vpop.eup %16331  ;;  %12125 = vmatprep.mubr.msk.f32.mxu1 %vm651_vm2, %v17772_v5 }
 0x776   : > { %v16334_v8 = vpop.eup %16333  ;;  %12126 = vmatmul.mubr.msk.f32.gmra.mrb[20].mxu1 %vm651_vm2, %v17776_v30  ;;  %v2645_v33 = vmul.f32 %v16332_v48, %v2621_v18 }
 0x777   : > { %v2644_v6 = vmul.f32 %v16334_v8, %v2620_v16 }
 0x778   : > { %v2657_v55 = vmul.f32 %v17718_v26, %v2645_v33 }
 0x779   : > { %v2656_v57 = vmul.f32 %v17718_v26, %v2644_v6  ;;  %v642_v26 = vld [vmem:[%s20755_s8 + $0x38] sm:$0xff] }
 0x77a   : > { %v17789_v29 = vadd.f32 %v17727_v10, %v2657_v55  ;;  %v13783_v1 = vpack.c.bf16 %v642_v26, %v641_v52  ;;  %v10427_v52 = vld [vmem:[%s20756_s9] ss:$0 sm:$0xff] }
 0x77b   : > { %v17786_v36 = vadd.f32 %v17727_v10, %v2656_v57  ;;  %v10418_v10 = vld [vmem:[%s20754_s7] ss:$0 sm:$0xff] }
 0x77c   : > { %13784 = vmatprep.subr.bf16.mxu1 %v13783_v1 }
 0x77d   : > { %12128 = vmatprep.mubr.msk.f32.mxu1 %vm651_vm2, %v17786_v36  ;;  %13786 = vmatpush3.bf16.msra.mxu1 %v13783_v1 }
 0x77e   : > { %12129 = vmatmul.mubr.msk.f32.gmra.mrb[22].mxu1 %vm651_vm2, %v17789_v29 }
 0x80d   : > { %v12121_v45 = vpop.f32.mrb[16].mxu1 }
 0x80e   : > { %v2772_v35 = vadd.f32 %v12121_v45, %v10418_v10  ;;  %v2766_v0 = vpop.f32.mrb[17].mxu1 }
 0x80f   : > { %v2767_v37 = vadd.f32 %v10418_v10, %v2766_v0 }
 0x810   : > { %v2806_v46 = vmax.f32 %v2772_v35, 0.0 }
 0x811   : > { %v2805_v31 = vmax.f32 %v2767_v37, 0.0 }
 0x813   : > { %12147 = vmatprep.mubr.msk.f32.mxu1 %vm2819_vm4, %v2805_v31 }
 0x814   : > { %v12124_v2 = vpop.f32.mrb[18].mxu1  ;;  %12148 = vmatmul.mubr.msk.f32.vlgmr.msra.gmra.mrb[24].mxu1 %vm2819_vm4, %v2806_v46 }
 0x815   : > { %v2782_v58 = vadd.f32 %v12124_v2, %v10418_v10  ;;  %v2776_v34 = vpop.f32.mrb[19].mxu1 }
 0x816   : > { %v2777_v27 = vadd.f32 %v10418_v10, %v2776_v34 }
 0x817   : > { %v2808_v9 = vmax.f32 %v2782_v58, 0.0 }
 0x818   : > { %v2807_v28 = vmax.f32 %v2777_v27, 0.0 }
 0x81a   : > { %12150 = vmatprep.mubr.msk.f32.mxu1 %vm2819_vm4, %v2807_v28 }
 0x81b   : > { %12151 = vmatmul.mubr.msk.f32.gmra.mrb[26].mxu1 %vm2819_vm4, %v2808_v9 }
 0x849   : > { %v12127_v17 = vpop.f32.mrb[20].mxu1 }
 0x84a   : > { %v2792_v20 = vadd.f32 %v12127_v17, %v10418_v10  ;;  %v2786_v59 = vpop.f32.mrb[21].mxu1 }
 0x84b   : > { %v2787_v60 = vadd.f32 %v10418_v10, %v2786_v59 }
 0x84c   : > { %v2810_v48 = vmax.f32 %v2792_v20, 0.0 }
 0x84d   : > { %v2809_v18 = vmax.f32 %v2787_v60, 0.0 }
 0x84f   : > { %12153 = vmatprep.mubr.msk.f32.mxu1 %vm2819_vm4, %v2809_v18 }
 0x850   : > { %12154 = vmatmul.mubr.msk.f32.gmra.mrb[28].mxu1 %vm2819_vm4, %v2810_v48  ;;  %v10436_v48 = vld [vmem:[%s20749_s2 + $0x20] sm:$0xff] }
 0x851   : > { %v12130_v16 = vpop.f32.mrb[22].mxu1 }
 0x852   : > { %v2802_v8 = vadd.f32 %v12130_v16, %v10418_v10  ;;  %v2796_v33 = vpop.f32.mrb[23].mxu1  ;;  %v10437_v16 = vld [vmem:[%s20749_s2 + $0x28] sm:$0xff] }
 0x853   : > { %v2797_v6 = vadd.f32 %v10418_v10, %v2796_v33  ;;  %v13787_v33 = vpack.c.bf16 %v10437_v16, %v10436_v48 }
 0x854   : > { %v2812_v57 = vmax.f32 %v2802_v8, 0.0  ;;  %v10438_v8 = vld [vmem:[%s20749_s2 + $0x30] sm:$0xff] }
 0x855   : > { %v2811_v55 = vmax.f32 %v2797_v6, 0.0  ;;  %v10439_v6 = vld [vmem:[%s20749_s2 + $0x38] sm:$0xff]  ;;  %13788 = vmatprep.subr.bf16.mxu0 %v13787_v33 }
 0x856   : > { %13790 = vmatpush3.bf16.msra.mxu0 %v13787_v33 }
 0x857   : > { %12156 = vmatprep.mubr.msk.f32.mxu1 %vm2819_vm4, %v2811_v55  ;;  %v13791_v55 = vpack.c.bf16 %v10439_v6, %v10438_v8 }
 0x858   : > { %12157 = vmatmul.mubr.msk.f32.gmra.mrb[30].mxu1 %vm2819_vm4, %v2812_v57 }
 0x859   : > { %13792 = vmatprep.subr.bf16.mxu0 %v13791_v55 }
 0x85a   : > { %13794 = vmatpush3.bf16.msra.mxu0 %v13791_v55 }
 0x8e7   : > { %v12149_v26 = vpop.f32.mrb[24].mxu1 }
 0x8e8   : > { %v2916_v1 = vadd.f32 %v12149_v26, %v10427_v52  ;;  %v2910_v45 = vpop.f32.mrb[25].mxu1 }
 0x8e9   : > { %v2911_v35 = vadd.f32 %v10427_v52, %v2910_v45 }
 0x8ea   : > { %v17816_v0 = vadd.f32 %v2916_v1, %v17741_v11 }
 0x8eb   : > { %v17819_v37 = vadd.f32 %v2911_v35, %v17738_v62 }
 0x8ec   : > { %v2960_v10 = vsel %vm651_vm2, %v17816_v0, 0.0  ;;  %v2990_v31 = vmul.f32 %v17816_v0, %v17816_v0 }
 0x8ed   : > { %2961 = vadd.xlane.f32.xlu0 %v2960_v10  ;;  %v2957_v46 = vsel %vm651_vm2, %v17819_v37, 0.0  ;;  %v2989_v2 = vmul.f32 %v17819_v37, %v17819_v37 }
 0x8ee   : > { %v12152_v58 = vpop.f32.mrb[26].mxu1  ;;  %2958 = vadd.xlane.f32.xlu1 %v2957_v46  ;;  %v3000_v62 = vsel %vm651_vm2, %v2990_v31, 0.0 }
 0x8ef   : > { %v2926_v11 = vadd.f32 %v12152_v58, %v10427_v52  ;;  %v2920_v34 = vpop.f32.mrb[27].mxu1  ;;  %v2997_v9 = vsel %vm651_vm2, %v2989_v2, 0.0 }
 0x8f0   : > { %v2921_v27 = vadd.f32 %v10427_v52, %v2920_v34 }
 0x8f1   : > { %v17831_v28 = vadd.f32 %v2926_v11, %v17763_v38  ;;  %3001 = vadd.xlane.f32.xlu0 %v3000_v62 }
 0x8f2   : > { %v17835_v17 = vadd.f32 %v2921_v27, %v17756_v32  ;;  %2998 = vadd.xlane.f32.xlu1 %v2997_v9 }
 0x8f3   : > { %v2966_v20 = vsel %vm651_vm2, %v17831_v28, 0.0  ;;  %v2992_v60 = vmul.f32 %v17831_v28, %v17831_v28 }
 0x8f4   : > { %v2963_v59 = vsel %vm651_vm2, %v17835_v17, 0.0  ;;  %v2991_v38 = vmul.f32 %v17835_v17, %v17835_v17 }
 0x8f5   : > { %2967 = vadd.xlane.f32.xlu0 %v2966_v20  ;;  %v3006_v18 = vsel %vm651_vm2, %v2992_v60, 0.0 }
 0x8f6   : > { %2964 = vadd.xlane.f32.xlu1 %v2963_v59  ;;  %v3003_v32 = vsel %vm651_vm2, %v2991_v38, 0.0 }
 0x8f9   : > { %3007 = vadd.xlane.f32.xlu0 %v3006_v18 }
 0x8fa   : > { %3004 = vadd.xlane.f32.xlu1 %v3003_v32 }
 0x923   : > { %v12155_v57 = vpop.f32.mrb[28].mxu1 }
 0x924   : > { %v2936_v26 = vadd.f32 %v12155_v57, %v10427_v52  ;;  %v2930_v1 = vpop.f32.mrb[29].mxu1 }
 0x925   : > { %v2931_v45 = vadd.f32 %v10427_v52, %v2930_v1 }
 0x926   : > { %v17860_v35 = vadd.f32 %v2936_v26, %v17776_v30 }
 0x927   : > { %v17863_v10 = vadd.f32 %v2931_v45, %v17772_v5 }
 0x928   : > { %v2972_v31 = vsel %vm651_vm2, %v17860_v35, 0.0  ;;  %v2994_v46 = vmul.f32 %v17860_v35, %v17860_v35 }
 0x929   : > { %2973 = vadd.xlane.f32.xlu0 %v2972_v31  ;;  %v2969_v2 = vsel %vm651_vm2, %v17863_v10, 0.0  ;;  %v2993_v58 = vmul.f32 %v17863_v10, %v17863_v10 }
 0x92a   : > { %2970 = vadd.xlane.f32.xlu1 %v2969_v2  ;;  %v3012_v5 = vsel %vm651_vm2, %v2994_v46, 0.0 }
 0x92b   : > { %v12158_v11 = vpop.f32.mrb[30].mxu1  ;;  %v3009_v62 = vsel %vm651_vm2, %v2993_v58, 0.0 }
 0x92c   : > { %v2946_v30 = vadd.f32 %v12158_v11, %v10427_v52  ;;  %v2940_v34 = vpop.f32.mrb[31].mxu1 }
 0x92d   : > { %v2941_v27 = vadd.f32 %v10427_v52, %v2940_v34  ;;  %3013 = vadd.xlane.f32.xlu0 %v3012_v5 }
 0x92e   : > { %v17876_v9 = vadd.f32 %v2946_v30, %v17789_v29  ;;  %3010 = vadd.xlane.f32.xlu1 %v3009_v62 }
 0x92f   : > { %v17879_v20 = vadd.f32 %v2941_v27, %v17786_v36 }
 0x930   : > { %v2978_v59 = vsel %vm651_vm2, %v17876_v9, 0.0  ;;  %v2996_v60 = vmul.f32 %v17876_v9, %v17876_v9 }
 0x931   : > { %2979 = vadd.xlane.f32.xlu0 %v2978_v59  ;;  %v2975_v52 = vsel %vm651_vm2, %v17879_v20, 0.0  ;;  %v2995_v38 = vmul.f32 %v17879_v20, %v17879_v20 }
 0x932   : > { %2976 = vadd.xlane.f32.xlu1 %v2975_v52  ;;  %v3018_v29 = vsel %vm651_vm2, %v2996_v60, 0.0 }
 0x933   : > { %v3015_v36 = vsel %vm651_vm2, %v2995_v38, 0.0  ;;  %v17892_v38 = vsub.s32 2, %v17705_v51 }
 0x935   : > { %3019 = vadd.xlane.f32.xlu0 %v3018_v29 }
 0x936   : > { %3016 = vadd.xlane.f32.xlu1 %v3015_v36 }
 0x97a   : > { %v2962_v18 = vpop.xlane.xlu0 %2961 }
 0x97b   : > { %v2982_v32 = vmul.f32 0.03125, %v2962_v18  ;;  %v2959_v48 = vpop.xlane.xlu1 %2958 }
 0x97c   : > { %v2981_v16 = vmul.f32 0.03125, %v2959_v48  ;;  %v17895_v48 = vsub.s32 3, %v17705_v51 }
 0x97d   : > { %v3030_v33 = vmul.f32 %v2982_v32, %v2982_v32 }
 0x97e   : > { %v3002_v8 = vpop.xlane.xlu0 %3001  ;;  %v3029_v57 = vmul.f32 %v2981_v16, %v2981_v16 }
 0x97f   : > { %v3022_v6 = vmul.f32 0.03125, %v3002_v8  ;;  %v2999_v55 = vpop.xlane.xlu1 %2998  ;;  %v3046_v8 = vsub.f32 %v17816_v0, %v2982_v32 }
 0x980   : > { %v3021_v26 = vmul.f32 0.03125, %v2999_v55  ;;  %v3045_v55 = vsub.f32 %v17819_v37, %v2981_v16 }
 0x981   : > { %v3038_v1 = vsub.f32 %v3022_v6, %v3030_v33  ;;  %v17900_v33 = vrot.slane %v17713_v24, %v17892_v38 }
 0x982   : > { %v3037_v45 = vsub.f32 %v3021_v26, %v3029_v57  ;;  %v2968_v31 = vpop.xlane.xlu0 %2967 }
 0x983   : > { %v3054_v46 = vadd.f32 1e-05, %v3038_v1  ;;  %v2984_v2 = vmul.f32 0.03125, %v2968_v31  ;;  %v2965_v58 = vpop.xlane.xlu1 %2964 }
 0x984   : > { %v3053_v11 = vadd.f32 1e-05, %v3037_v45  ;;  %v2983_v30 = vmul.f32 0.03125, %v2965_v58  ;;  %v17905_v45 = vrot.slane %v17713_v24, %v17895_v48 }
 0x985   : > { %16335 = vrsqrt.f32 %v3054_v46  ;;  %v3032_v5 = vmul.f32 %v2984_v2, %v2984_v2  ;;  %v3048_v32 = vsub.f32 %v17831_v28, %v2984_v2 }
 0x986   : > { %16337 = vrsqrt.f32 %v3053_v11  ;;  %v3008_v34 = vpop.xlane.xlu0 %3007  ;;  %v3031_v59 = vmul.f32 %v2983_v30, %v2983_v30  ;;  %v3047_v16 = vsub.f32 %v17835_v17, %v2983_v30 }
 0x987   : > { %v3024_v27 = vmul.f32 0.03125, %v3008_v34  ;;  %v3005_v62 = vpop.xlane.xlu1 %3004 }
 0x988   : > { %v3023_v60 = vmul.f32 0.03125, %v3005_v62 }
 0x989   : > { %v3040_v52 = vsub.f32 %v3024_v27, %v3032_v5 }
 0x98a   : > { %v3039_v29 = vsub.f32 %v3023_v60, %v3031_v59 }
 0x98b   : > { %v3056_v36 = vadd.f32 1e-05, %v3040_v52 }
 0x98c   : > { %v3055_v18 = vadd.f32 1e-05, %v3039_v29 }
 0x98d   : > { %16339 = vrsqrt.f32 %v3056_v36 }
 0x98e   : > { %16341 = vrsqrt.f32 %v3055_v18 }
 0x98f   : > { %v16336_v6 = vpop.eup %16335 }
 0x990   : > { %v16338_v57 = vpop.eup %16337  ;;  %v3070_v26 = vmul.f32 %v16336_v6, %v3046_v8 }
 0x991   : > { %v3069_v1 = vmul.f32 %v16338_v57, %v3045_v55 }
 0x992   : > { %v3082_v51 = vmul.f32 %v17900_v33, %v3070_v26 }
 0x993   : > { %v3081_v31 = vmul.f32 %v17900_v33, %v3069_v1 }
 0x994   : > { %v17914_v46 = vadd.f32 %v17905_v45, %v3082_v51 }
 0x995   : > { %v17910_v0 = vadd.f32 %v17905_v45, %v3081_v31 }
 0x997   : > { %v16340_v37 = vpop.eup %16339  ;;  %12167 = vmatprep.mubr.msk.f32.mxu0 %vm651_vm2, %v17910_v0 }
 0x998   : > { %v16342_v24 = vpop.eup %16341  ;;  %12168 = vmatmul.mubr.msk.f32.vlgmr.msra.gmra.mrb[32].mxu0 %vm651_vm2, %v17914_v46  ;;  %v3072_v58 = vmul.f32 %v16340_v37, %v3048_v32 }
 0x999   : > { %v3071_v11 = vmul.f32 %v16342_v24, %v3047_v16 }
 0x99a   : > { %v3084_v34 = vmul.f32 %v17900_v33, %v3072_v58 }
 0x99b   : > { %v3083_v5 = vmul.f32 %v17900_v33, %v3071_v11 }
 0x99c   : > { %v17927_v2 = vadd.f32 %v17905_v45, %v3084_v34 }
 0x99d   : > { %v17924_v28 = vadd.f32 %v17905_v45, %v3083_v5 }
 0x99f   : > { %12170 = vmatprep.mubr.msk.f32.mxu0 %vm651_vm2, %v17924_v28 }
 0x9a0   : > { %12171 = vmatmul.mubr.msk.f32.gmra.mrb[34].mxu0 %vm651_vm2, %v17927_v2 }
 0x9b6   : > { %v2974_v17 = vpop.xlane.xlu0 %2973 }
 0x9b7   : > { %v2986_v30 = vmul.f32 0.03125, %v2974_v17  ;;  %v2971_v27 = vpop.xlane.xlu1 %2970 }
 0x9b8   : > { %v2985_v62 = vmul.f32 0.03125, %v2971_v27 }
 0x9b9   : > { %v3034_v60 = vmul.f32 %v2986_v30, %v2986_v30 }
 0x9ba   : > { %v3014_v59 = vpop.xlane.xlu0 %3013  ;;  %v3033_v36 = vmul.f32 %v2985_v62, %v2985_v62 }
 0x9bb   : > { %v3026_v52 = vmul.f32 0.03125, %v3014_v59  ;;  %v3011_v29 = vpop.xlane.xlu1 %3010  ;;  %v3050_v59 = vsub.f32 %v17860_v35, %v2986_v30 }
 0x9bc   : > { %v3025_v18 = vmul.f32 0.03125, %v3011_v29 }
 0x9bd   : > { %v3042_v8 = vsub.f32 %v3026_v52, %v3034_v60  ;;  %v3049_v52 = vsub.f32 %v17863_v10, %v2985_v62 }
 0x9be   : > { %v3041_v6 = vsub.f32 %v3025_v18, %v3033_v36  ;;  %v2980_v55 = vpop.xlane.xlu0 %2979 }
 0x9bf   : > { %v3058_v57 = vadd.f32 1e-05, %v3042_v8  ;;  %v2988_v26 = vmul.f32 0.03125, %v2980_v55  ;;  %v2977_v1 = vpop.xlane.xlu1 %2976 }
 0x9c0   : > { %v3057_v51 = vadd.f32 1e-05, %v3041_v6  ;;  %v2987_v31 = vmul.f32 0.03125, %v2977_v1 }
 0x9c1   : > { %16343 = vrsqrt.f32 %v3058_v57  ;;  %v3036_v37 = vmul.f32 %v2988_v26, %v2988_v26  ;;  %v3052_v57 = vsub.f32 %v17876_v9, %v2988_v26 }
 0x9c2   : > { %16345 = vrsqrt.f32 %v3057_v51  ;;  %v3020_v32 = vpop.xlane.xlu0 %3019  ;;  %v3035_v58 = vmul.f32 %v2987_v31, %v2987_v31  ;;  %v3051_v30 = vsub.f32 %v17879_v20, %v2987_v31  ;;  %v17964_v20 = vld [vmem:[%s20750_s3 + $0x1] ss:$0 sm:$0xff] }
 0x9c3   : > { %v3028_v16 = vmul.f32 0.03125, %v3020_v32  ;;  %v3017_v24 = vpop.xlane.xlu1 %3016 }
 0x9c4   : > { %v3027_v11 = vmul.f32 0.03125, %v3017_v24 }
 0x9c5   : > { %v3044_v34 = vsub.f32 %v3028_v16, %v3036_v37 }
 0x9c6   : > { %v3043_v5 = vsub.f32 %v3027_v11, %v3035_v58 }
 0x9c7   : > { %v3060_v17 = vadd.f32 1e-05, %v3044_v34 }
 0x9c8   : > { %v3059_v27 = vadd.f32 1e-05, %v3043_v5 }
 0x9c9   : > { %16347 = vrsqrt.f32 %v3060_v17 }
 0x9ca   : > { %16349 = vrsqrt.f32 %v3059_v27 }
 0x9cb   : > { %v16344_v60 = vpop.eup %16343 }
 0x9cc   : > { %v16346_v29 = vpop.eup %16345  ;;  %v3074_v36 = vmul.f32 %v16344_v60, %v3050_v59 }
 0x9cd   : > { %v3073_v18 = vmul.f32 %v16346_v29, %v3049_v52 }
 0x9ce   : > { %v3086_v8 = vmul.f32 %v17900_v33, %v3074_v36 }
 0x9cf   : > { %v3085_v6 = vmul.f32 %v17900_v33, %v3073_v18 }
 0x9d0   : > { %v17942_v1 = vadd.f32 %v17905_v45, %v3086_v8 }
 0x9d1   : > { %v17938_v55 = vadd.f32 %v17905_v45, %v3085_v6 }
 0x9d3   : > { %v16348_v35 = vpop.eup %16347  ;;  %12173 = vmatprep.mubr.msk.f32.mxu0 %vm651_vm2, %v17938_v55 }
 0x9d4   : > { %v16350_v10 = vpop.eup %16349  ;;  %12174 = vmatmul.mubr.msk.f32.gmra.mrb[36].mxu0 %vm651_vm2, %v17942_v1  ;;  %v3076_v62 = vmul.f32 %v16348_v35, %v3052_v57 }
 0x9d5   : > { %v3075_v51 = vmul.f32 %v16350_v10, %v3051_v30 }
 0x9d6   : > { %v3088_v32 = vmul.f32 %v17900_v33, %v3076_v62 }
 0x9d7   : > { %v3087_v37 = vmul.f32 %v17900_v33, %v3075_v51 }
 0x9d8   : > { %v17955_v26 = vadd.f32 %v17905_v45, %v3088_v32 }
 0x9d9   : > { %v17952_v9 = vadd.f32 %v17905_v45, %v3087_v37 }
 0x9db   : > { %12176 = vmatprep.mubr.msk.f32.mxu0 %vm651_vm2, %v17952_v9 }
 0x9dc   : > { %12177 = vmatmul.mubr.msk.f32.gmra.mrb[38].mxu0 %vm651_vm2, %v17955_v26 }
 0xa6b   : > { %v12169_v31 = vpop.f32.mrb[32].mxu0 }
 0xa6c   : > { %v17967_v33 = vadd.f32 %v12169_v31, %v17964_v20  ;;  %v3231_v16 = vpop.f32.mrb[33].mxu0 }
 0xa6d   : > { %v17970_v24 = vadd.f32 %v17964_v20, %v3231_v16 }
 0xa6e   : > { %v3271_v45 = vmul.f32 %v17967_v33, %v16892_v42  ;;  %v3273_v5 = vmul.f32 %v17967_v33, %v16890_v41  ;;  %v3275_v57 = vmul.f32 %v17967_v33, %v16894_v43  ;;  %v3277_v32 = vmul.f32 %v17967_v33, %v16903_v47 }
 0xa6f   : > { %12211 = vmatprep.mubr.msk.f32.mxu0 %vm651_vm2, %v17970_v24  ;;  %v3270_v58 = vmul.f32 %v17970_v24, %v16888_v40  ;;  %v3272_v34 = vmul.f32 %v17970_v24, %v16886_v39  ;;  %v3274_v6 = vmul.f32 %v17970_v24, %v16896_v44  ;;  %v3276_v51 = vmul.f32 %v17970_v24, %v16908_v50 }
 0xa71   : > { %v15327_v11 = vpack.i.bf16 %v3271_v45, %v3270_v58  ;;  %v15337_v52 = vpack.i.bf16 %v3273_v5, %v3272_v34  ;;  %v15347_v37 = vpack.i.bf16 %v3275_v57, %v3274_v6  ;;  %v3278_v58 = vmul.f32 %v17970_v24, %v16933_v63 }
 0xa72   : > { %v15357_v34 = vpack.i.bf16 %v3277_v32, %v3276_v51 }
 0xa73   : > { %v12172_v17 = vpop.f32.mrb[34].mxu0  ;;  %15328 = vrot.lane.b32.xlu1 %v15327_v11, %s16608_s23  ;;  %v3279_v11 = vmul.f32 %v17967_v33, %v16929_v61 }
 0xa74   : > { %v17984_v27 = vadd.f32 %v12172_v17, %v17964_v20  ;;  %v3241_v59 = vpop.f32.mrb[35].mxu0 }
 0xa75   : > { %v17987_v60 = vadd.f32 %v17964_v20, %v3241_v59 }
 0xa76   : > { %v3287_v29 = vmul.f32 %v17984_v27, %v16892_v42  ;;  %v3289_v36 = vmul.f32 %v17984_v27, %v16890_v41  ;;  %v3291_v62 = vmul.f32 %v17984_v27, %v16894_v43  ;;  %v3293_v45 = vmul.f32 %v17984_v27, %v16903_v47 }
 0xa77   : > { %12246 = vmatprep.mubr.msk.f32.mxu1 %vm651_vm2, %v17987_v60  ;;  %15338 = vrot.lane.b32.xlu1 %v15337_v52, %s16608_s23  ;;  %v3286_v18 = vmul.f32 %v17987_v60, %v16888_v40  ;;  %v3288_v8 = vmul.f32 %v17987_v60, %v16886_v39  ;;  %v3290_v10 = vmul.f32 %v17987_v60, %v16896_v44 }
 0xa78   : > { %v3292_v16 = vmul.f32 %v17987_v60, %v16908_v50  ;;  %v3294_v17 = vmul.f32 %v17987_v60, %v16933_v63  ;;  %v3295_v59 = vmul.f32 %v17984_v27, %v16929_v61  ;;  %v3280_v52 = vmul.f32 %v17970_v24, %v16956_v14 }
 0xa79   : > { %v15332_v35 = vpack.i.bf16 %v3287_v29, %v3286_v18  ;;  %v15342_v30 = vpack.i.bf16 %v3289_v36, %v3288_v8  ;;  %v15352_v31 = vpack.i.bf16 %v3291_v62, %v3290_v10  ;;  %v3281_v29 = vmul.f32 %v17967_v33, %v16954_v13  ;;  %v20869_v10 = vld [vmem:[#allocation11_spill] sm:$0xff] }
 0xa7a   : > { %v15362_v5 = vpack.i.bf16 %v3293_v45, %v3292_v16  ;;  %v15367_v36 = vpack.i.bf16 %v3279_v11, %v3278_v58  ;;  %v15372_v18 = vpack.i.bf16 %v3295_v59, %v3294_v17  ;;  %v3296_v8 = vmul.f32 %v17987_v60, %v16956_v14  ;;  %v20871_v16 = vld [vmem:[#allocation13_spill] sm:$0xff] }
 0xa7b   : > { %15333 = vrot.lane.b32.xlu0 %v15332_v35, %s16608_s23  ;;  %15343 = vrot.lane.b32.xlu1 %v15342_v30, %s16608_s23  ;;  %v3297_v6 = vmul.f32 %v17984_v27, %v16954_v13  ;;  %v15377_v57 = vpack.i.bf16 %v3281_v29, %v3280_v52  ;;  %v3282_v35 = vmul.f32 %v17970_v24, %v16974_v3 }
 0xa7c   : > { %v3283_v62 = vmul.f32 %v17967_v33, %v20869_v10  ;;  %v3298_v51 = vmul.f32 %v17987_v60, %v16974_v3  ;;  %v3299_v32 = vmul.f32 %v17984_v27, %v20869_v10  ;;  %v3285_v45 = vmul.f32 %v17967_v33, %v20871_v16 }
 0xa7d   : > { %v15382_v30 = vpack.i.bf16 %v3297_v6, %v3296_v8 }
 0xa7e   : > { %v15387_v58 = vpack.i.bf16 %v3283_v62, %v3282_v35  ;;  %v15392_v11 = vpack.i.bf16 %v3299_v32, %v3298_v51 }
 0xa7f   : > { %15348 = vrot.lane.b32.xlu0 %v15347_v37, %s16608_s23  ;;  %15353 = vrot.lane.b32.xlu1 %v15352_v31, %s16608_s23  ;;  %v20870_v37 = vld [vmem:[#allocation14_spill] sm:$0xff] }
 0xa80   : > { %v3284_v31 = vmul.f32 %v17970_v24, %v20870_v37 }
 0xa82   : > { %v15397_v17 = vpack.i.bf16 %v3285_v45, %v3284_v31 }
 0xa83   : > { %15358 = vrot.lane.b32.xlu0 %v15357_v34, %s16608_s23  ;;  %15363 = vrot.lane.b32.xlu1 %v15362_v5, %s16608_s23  ;;  %v3300_v34 = vmul.f32 %v17987_v60, %v20870_v37  ;;  %v3301_v5 = vmul.f32 %v17984_v27, %v20871_v16 }
 0xa85   : > { %v15402_v59 = vpack.i.bf16 %v3301_v5, %v3300_v34 }
 0xa87   : > { %15368 = vrot.lane.b32.xlu0 %v15367_v36, %s16608_s23  ;;  %15373 = vrot.lane.b32.xlu1 %v15372_v18, %s16608_s23 }
 0xa8b   : > { %15378 = vrot.lane.b32.xlu0 %v15377_v57, %s16608_s23  ;;  %15383 = vrot.lane.b32.xlu1 %v15382_v30, %s16608_s23 }
 0xa8f   : > { %15388 = vrot.lane.b32.xlu0 %v15387_v58, %s16608_s23  ;;  %15393 = vrot.lane.b32.xlu1 %v15392_v11, %s16608_s23 }
 0xa93   : > { %15398 = vrot.lane.b32.xlu0 %v15397_v17, %s16608_s23  ;;  %15403 = vrot.lane.b32.xlu1 %v15402_v59, %s16608_s23 }
 0xaa7   : > { %v12175_v52 = vpop.f32.mrb[36].mxu0 }
 0xaa8   : > { %v18063_v29 = vadd.f32 %v12175_v52, %v17964_v20  ;;  %v3251_v36 = vpop.f32.mrb[37].mxu0 }
 0xaa9   : > { %v18066_v18 = vadd.f32 %v17964_v20, %v3251_v36 }
 0xaaa   : > { %v3303_v8 = vmul.f32 %v18063_v29, %v16892_v42  ;;  %v3305_v30 = vmul.f32 %v18063_v29, %v16890_v41  ;;  %v3307_v11 = vmul.f32 %v18063_v29, %v16894_v43 }
 0xaab   : > { %v3302_v6 = vmul.f32 %v18066_v18, %v16888_v40  ;;  %v3304_v35 = vmul.f32 %v18066_v18, %v16886_v39  ;;  %v3306_v58 = vmul.f32 %v18066_v18, %v16896_v44  ;;  %v3308_v17 = vmul.f32 %v18066_v18, %v16908_v50 }
 0xaad   : > { %v15407_v57 = vpack.i.bf16 %v3303_v8, %v3302_v6  ;;  %v15417_v45 = vpack.i.bf16 %v3305_v30, %v3304_v35  ;;  %v15427_v59 = vpack.i.bf16 %v3307_v11, %v3306_v58  ;;  %v3310_v6 = vmul.f32 %v18066_v18, %v16933_v63 }
 0xaae   : > { %v3313_v58 = vmul.f32 %v18063_v29, %v16954_v13 }
 0xaaf   : > { %15408 = vrot.lane.b32.xlu0 %v15407_v57, %s16608_s23  ;;  %v12178_v62 = vpop.f32.mrb[38].mxu0  ;;  %v3311_v57 = vmul.f32 %v18063_v29, %v16929_v61 }
 0xab0   : > { %v18078_v51 = vadd.f32 %v12178_v62, %v17964_v20  ;;  %v3261_v32 = vpop.f32.mrb[39].mxu0 }
 0xab1   : > { %v18081_v31 = vadd.f32 %v17964_v20, %v3261_v32  ;;  %v3309_v20 = vmul.f32 %v18063_v29, %v16903_v47  ;;  %v15447_v11 = vpack.i.bf16 %v3311_v57, %v3310_v6  ;;  %v3316_v57 = vmul.f32 %v18066_v18, %v20870_v37 }
 0xab2   : > { %v3319_v34 = vmul.f32 %v18078_v51, %v16892_v42  ;;  %v3321_v8 = vmul.f32 %v18078_v51, %v16890_v41  ;;  %v3323_v32 = vmul.f32 %v18078_v51, %v16894_v43  ;;  %v3327_v6 = vmul.f32 %v18078_v51, %v16929_v61 }
 0xab3   : > { %15418 = vrot.lane.b32.xlu0 %v15417_v45, %s16608_s23  ;;  %v3318_v5 = vmul.f32 %v18081_v31, %v16888_v40  ;;  %v3320_v36 = vmul.f32 %v18081_v31, %v16886_v39  ;;  %v15437_v35 = vpack.i.bf16 %v3309_v20, %v3308_v17  ;;  %v3322_v62 = vmul.f32 %v18081_v31, %v16896_v44 }
 0xab4   : > { %v3312_v45 = vmul.f32 %v18066_v18, %v16956_v14  ;;  %v3325_v17 = vmul.f32 %v18078_v51, %v16903_v47 }
 0xab5   : > { %v15412_v52 = vpack.i.bf16 %v3319_v34, %v3318_v5  ;;  %v15422_v30 = vpack.i.bf16 %v3321_v8, %v3320_v36  ;;  %v15432_v34 = vpack.i.bf16 %v3323_v32, %v3322_v62  ;;  %v3324_v5 = vmul.f32 %v18081_v31, %v16908_v50 }
 0xab6   : > { %v15457_v20 = vpack.i.bf16 %v3313_v58, %v3312_v45  ;;  %v3315_v36 = vmul.f32 %v18063_v29, %v20869_v10  ;;  %v3326_v8 = vmul.f32 %v18081_v31, %v16933_v63  ;;  %v3328_v32 = vmul.f32 %v18081_v31, %v16956_v14 }
 0xab7   : > { %15428 = vrot.lane.b32.xlu0 %v15427_v59, %s16608_s23  ;;  %15413 = vrot.lane.b32.xlu1 %v15412_v52, %s16608_s23  ;;  %v3314_v59 = vmul.f32 %v18066_v18, %v16974_v3  ;;  %v15442_v52 = vpack.i.bf16 %v3325_v17, %v3324_v5  ;;  %v3329_v45 = vmul.f32 %v18078_v51, %v16954_v13 }
 0xab8   : > { %v15452_v62 = vpack.i.bf16 %v3327_v6, %v3326_v8  ;;  %v3331_v5 = vmul.f32 %v18078_v51, %v20869_v10  ;;  %v3353_v10 = vmul.f32 %v17984_v27, %v17409_v56  ;;  %v3357_v13 = vmul.f32 %v17984_v27, %v17441_v15 }
 0xabb   : > { %15438 = vrot.lane.b32.xlu0 %v15437_v35, %s16608_s23  ;;  %15423 = vrot.lane.b32.xlu1 %v15422_v30, %s16608_s23  ;;  %v3317_v35 = vmul.f32 %v18063_v29, %v20871_v16  ;;  %v15467_v30 = vpack.i.bf16 %v3315_v36, %v3314_v59  ;;  %v3333_v59 = vmul.f32 %v18078_v51, %v20871_v16 }
 0xabd   : > { %v15477_v58 = vpack.i.bf16 %v3317_v35, %v3316_v57 }
 0xabf   : > { %15448 = vrot.lane.b32.xlu0 %v15447_v11, %s16608_s23  ;;  %15433 = vrot.lane.b32.xlu1 %v15432_v34, %s16608_s23  ;;  %v15462_v11 = vpack.i.bf16 %v3329_v45, %v3328_v32  ;;  %v3330_v34 = vmul.f32 %v18081_v31, %v16974_v3  ;;  %v3338_v32 = vmul.f32 %v17970_v24, %v17393_v4 }
 0xac1   : > { %v15472_v17 = vpack.i.bf16 %v3331_v5, %v3330_v34 }
 0xac3   : > { %15458 = vrot.lane.b32.xlu0 %v15457_v20, %s16608_s23  ;;  %15443 = vrot.lane.b32.xlu1 %v15442_v52, %s16608_s23  ;;  %v3332_v20 = vmul.f32 %v18081_v31, %v20870_v37  ;;  %v3352_v37 = vmul.f32 %v17987_v60, %v17399_v25 }
 0xac5   : > { %v15482_v52 = vpack.i.bf16 %v3333_v59, %v3332_v20 }
 0xac7   : > { %15468 = vrot.lane.b32.xlu0 %v15467_v30, %s16608_s23  ;;  %15453 = vrot.lane.b32.xlu1 %v15452_v62, %s16608_s23 }
 0xacb   : > { %15478 = vrot.lane.b32.xlu0 %v15477_v58, %s16608_s23  ;;  %15463 = vrot.lane.b32.xlu1 %v15462_v11, %s16608_s23 }
 0xacf   : > { %15473 = vrot.lane.b32.xlu1 %v15472_v17, %s16608_s23 }
 0xad3   : > { %15483 = vrot.lane.b32.xlu1 %v15482_v52, %s16608_s23 }
 0xae5   : > { %v15329_v36 = vpop.permute.xlu1 %15328 }
 0xae6   : > { %v15331_v8 = vunpack.i.h.bf16 %v15329_v36  ;;  %v15330_v6 = vunpack.i.l.bf16 %v15329_v36 }
 0xae8   : > { %v13795_v57 = vpack.c.bf16 %v15331_v8, %v15330_v6 }
 0xae9   : > { %v15339_v35 = vpop.permute.xlu1 %15338 }
 0xaea   : > { %v15341_v30 = vunpack.i.h.bf16 %v15339_v35  ;;  %v15340_v62 = vunpack.i.l.bf16 %v15339_v35  ;;  %13797 = vmatprep.subr.msk.bf16.mxu0 %vm17113_vm3, %v13795_v57 }
 0xaeb   : > { %13800 = vmatpush3.bf16.xpose.msk.msra.mxu0 %vm17113_vm3, %v13795_v57 }
 0xaec   : > { %v13801_v45 = vpack.c.bf16 %v15341_v30, %v15340_v62 }
 0xaed   : > { %v15334_v58 = vpop.permute.xlu0 %15333  ;;  %v15344_v11 = vpop.permute.xlu1 %15343 }
 0xaee   : > { %v15336_v34 = vunpack.i.h.bf16 %v15334_v58  ;;  %v15335_v5 = vunpack.i.l.bf16 %v15334_v58  ;;  %v15346_v17 = vunpack.i.h.bf16 %v15344_v11  ;;  %v15345_v20 = vunpack.i.l.bf16 %v15344_v11  ;;  %13803 = vmatprep.subr.msk.bf16.mxu0 %vm17113_vm3, %v13801_v45 }
 0xaf0   : > { %v13843_v59 = vpack.c.bf16 %v15336_v34, %v15335_v5  ;;  %v13849_v36 = vpack.c.bf16 %v15346_v17, %v15345_v20 }
 0xaf1   : > { %v15349_v52 = vpop.permute.xlu0 %15348  ;;  %v15354_v35 = vpop.permute.xlu1 %15353 }
 0xaf2   : > { %v15351_v8 = vunpack.i.h.bf16 %v15349_v52  ;;  %v15350_v6 = vunpack.i.l.bf16 %v15349_v52  ;;  %13845 = vmatprep.subr.msk.bf16.mxu1 %vm17113_vm3, %v13843_v59  ;;  %v15356_v62 = vunpack.i.h.bf16 %v15354_v35  ;;  %v15355_v58 = vunpack.i.l.bf16 %v15354_v35 }
 0xaf3   : > { %13806 = vmatpush3.bf16.xpose.msk.msra.mxu0 %vm17113_vm3, %v13801_v45  ;;  %13848 = vmatpush3.bf16.xpose.msk.msra.mxu1 %vm17113_vm3, %v13843_v59 }
 0xaf4   : > { %v13807_v57 = vpack.c.bf16 %v15351_v8, %v15350_v6  ;;  %13851 = vmatprep.subr.msk.bf16.mxu1 %vm17113_vm3, %v13849_v36  ;;  %v13855_v5 = vpack.c.bf16 %v15356_v62, %v15355_v58 }
 0xaf5   : > { %v15359_v30 = vpop.permute.xlu0 %15358  ;;  %v15364_v20 = vpop.permute.xlu1 %15363 }
 0xaf6   : > { %v15361_v11 = vunpack.i.h.bf16 %v15359_v30  ;;  %v15360_v34 = vunpack.i.l.bf16 %v15359_v30  ;;  %13809 = vmatprep.subr.msk.bf16.mxu0 %vm17113_vm3, %v13807_v57  ;;  %v15366_v45 = vunpack.i.h.bf16 %v15364_v20  ;;  %v15365_v59 = vunpack.i.l.bf16 %v15364_v20 }
 0xaf8   : > { %v13813_v17 = vpack.c.bf16 %v15361_v11, %v15360_v34  ;;  %v13861_v35 = vpack.c.bf16 %v15366_v45, %v15365_v59 }
 0xaf9   : > { %v15369_v52 = vpop.permute.xlu0 %15368  ;;  %v15374_v62 = vpop.permute.xlu1 %15373 }
 0xafa   : > { %v15371_v8 = vunpack.i.h.bf16 %v15369_v52  ;;  %v15370_v6 = vunpack.i.l.bf16 %v15369_v52 }
 0xafb   : > { %13812 = vmatpush3.bf16.xpose.msk.msra.mxu0 %vm17113_vm3, %v13807_v57  ;;  %13854 = vmatpush3.bf16.xpose.msk.msra.mxu1 %vm17113_vm3, %v13849_v36  ;;  %v15376_v36 = vunpack.i.h.bf16 %v15374_v62  ;;  %v15375_v57 = vunpack.i.l.bf16 %v15374_v62 }
 0xafc   : > { %13815 = vmatprep.subr.msk.bf16.mxu0 %vm17113_vm3, %v13813_v17  ;;  %13857 = vmatprep.subr.msk.bf16.mxu1 %vm17113_vm3, %v13855_v5  ;;  %v13819_v30 = vpack.c.bf16 %v15371_v8, %v15370_v6 }
 0xafd   : > { %v15379_v58 = vpop.permute.xlu0 %15378  ;;  %v13867_v20 = vpack.c.bf16 %v15376_v36, %v15375_v57  ;;  %v15384_v45 = vpop.permute.xlu1 %15383 }
 0xafe   : > { %v15381_v11 = vunpack.i.h.bf16 %v15379_v58  ;;  %v15380_v34 = vunpack.i.l.bf16 %v15379_v58 }
 0xb00   : > { %v13825_v52 = vpack.c.bf16 %v15381_v11, %v15380_v34 }
 0xb01   : > { %v15389_v59 = vpop.permute.xlu0 %15388  ;;  %v15394_v36 = vpop.permute.xlu1 %15393 }
 0xb02   : > { %v15391_v8 = vunpack.i.h.bf16 %v15389_v59  ;;  %v15390_v6 = vunpack.i.l.bf16 %v15389_v59 }
 0xb03   : > { %13818 = vmatpush3.bf16.xpose.msk.msra.mxu0 %vm17113_vm3, %v13813_v17  ;;  %13860 = vmatpush3.bf16.xpose.msk.msra.mxu1 %vm17113_vm3, %v13855_v5  ;;  %v15386_v5 = vunpack.i.h.bf16 %v15384_v45  ;;  %v15385_v17 = vunpack.i.l.bf16 %v15384_v45 }
 0xb04   : > { %13821 = vmatprep.subr.msk.bf16.mxu0 %vm17113_vm3, %v13819_v30  ;;  %13863 = vmatprep.subr.msk.bf16.mxu1 %vm17113_vm3, %v13861_v35  ;;  %v13831_v58 = vpack.c.bf16 %v15391_v8, %v15390_v6 }
 0xb05   : > { %v13873_v62 = vpack.c.bf16 %v15386_v5, %v15385_v17  ;;  %v15399_v57 = vpop.permute.xlu0 %15398  ;;  %v15404_v5 = vpop.permute.xlu1 %15403 }
 0xb06   : > { %v15401_v11 = vunpack.i.h.bf16 %v15399_v57  ;;  %v15400_v34 = vunpack.i.l.bf16 %v15399_v57 }
 0xb08   : > { %v13837_v59 = vpack.c.bf16 %v15401_v11, %v15400_v34 }
 0xb0b   : > { %13824 = vmatpush3.bf16.xpose.msk.msra.mxu0 %vm17113_vm3, %v13819_v30  ;;  %13866 = vmatpush3.bf16.xpose.msk.msra.mxu1 %vm17113_vm3, %v13861_v35  ;;  %v15396_v35 = vunpack.i.h.bf16 %v15394_v36  ;;  %v15395_v30 = vunpack.i.l.bf16 %v15394_v36 }
 0xb0c   : > { %13827 = vmatprep.subr.msk.bf16.mxu0 %vm17113_vm3, %v13825_v52  ;;  %13869 = vmatprep.subr.msk.bf16.mxu1 %vm17113_vm3, %v13867_v20 }
 0xb0d   : > { %v13879_v45 = vpack.c.bf16 %v15396_v35, %v15395_v30 }
 0xb13   : > { %13830 = vmatpush3.bf16.xpose.msk.msra.mxu0 %vm17113_vm3, %v13825_v52  ;;  %13872 = vmatpush3.bf16.xpose.msk.msra.mxu1 %vm17113_vm3, %v13867_v20  ;;  %v15406_v20 = vunpack.i.h.bf16 %v15404_v5  ;;  %v15405_v52 = vunpack.i.l.bf16 %v15404_v5 }
 0xb14   : > { %13833 = vmatprep.subr.msk.bf16.mxu0 %vm17113_vm3, %v13831_v58  ;;  %13875 = vmatprep.subr.msk.bf16.mxu1 %vm17113_vm3, %v13873_v62 }
 0xb15   : > { %v13885_v8 = vpack.c.bf16 %v15406_v20, %v15405_v52 }
 0xb1b   : > { %13836 = vmatpush3.bf16.xpose.msk.msra.mxu0 %vm17113_vm3, %v13831_v58  ;;  %13878 = vmatpush3.bf16.xpose.msk.msra.mxu1 %vm17113_vm3, %v13873_v62 }
 0xb1c   : > { %13839 = vmatprep.subr.msk.bf16.mxu0 %vm17113_vm3, %v13837_v59  ;;  %13881 = vmatprep.subr.msk.bf16.mxu1 %vm17113_vm3, %v13879_v45 }
 0xb21   : > { %v15409_v17 = vpop.permute.xlu0 %15408 }
 0xb22   : > { %v15411_v6 = vunpack.i.h.bf16 %v15409_v17  ;;  %v15410_v36 = vunpack.i.l.bf16 %v15409_v17 }
 0xb23   : > { %13842 = vmatpush3.bf16.xpose.msk.msra.mxu0 %vm17113_vm3, %v13837_v59  ;;  %13884 = vmatpush3.bf16.xpose.msk.msra.mxu1 %vm17113_vm3, %v13879_v45 }
 0xb24   : > { %v13891_v58 = vpack.c.bf16 %v15411_v6, %v15410_v36  ;;  %13887 = vmatprep.subr.msk.bf16.mxu1 %vm17113_vm3, %v13885_v8 }
 0xb25   : > { %v15419_v62 = vpop.permute.xlu0 %15418 }
 0xb26   : > { %v15421_v57 = vunpack.i.h.bf16 %v15419_v62  ;;  %v15420_v35 = vunpack.i.l.bf16 %v15419_v62  ;;  %13893 = vmatprep.subr.msk.bf16.mxu0 %vm17113_vm3, %v13891_v58 }
 0xb28   : > { %v13897_v11 = vpack.c.bf16 %v15421_v57, %v15420_v35 }
 0xb29   : > { %v15414_v30 = vpop.permute.xlu1 %15413  ;;  %v15429_v59 = vpop.permute.xlu0 %15428 }
 0xb2a   : > { %v15416_v34 = vunpack.i.h.bf16 %v15414_v30  ;;  %v15415_v5 = vunpack.i.l.bf16 %v15414_v30  ;;  %12212 = vmatmul.mubr.msk.f32.vlgmr.msra.gmra.mrb[40].mxu0 %vm651_vm2, %v17967_v33  ;;  %v15431_v52 = vunpack.i.h.bf16 %v15429_v59  ;;  %v15430_v17 = vunpack.i.l.bf16 %v15429_v59 }
 0xb2b   : > { %13890 = vmatpush3.bf16.xpose.msk.msra.mxu1 %vm17113_vm3, %v13885_v8  ;;  %13896 = vmatpush3.bf16.xpose.msk.msra.mxu0 %vm17113_vm3, %v13891_v58 }
 0xb2c   : > { %v13939_v45 = vpack.c.bf16 %v15416_v34, %v15415_v5  ;;  %12281 = vmatprep.mubr.msk.f32.mxu0 %vm651_vm2, %v18066_v18  ;;  %13899 = vmatprep.subr.msk.bf16.mxu0 %vm17113_vm3, %v13897_v11  ;;  %v13903_v62 = vpack.c.bf16 %v15431_v52, %v15430_v17 }
 0xb2d   : > { %v15424_v20 = vpop.permute.xlu1 %15423  ;;  %v15439_v8 = vpop.permute.xlu0 %15438 }
 0xb2e   : > { %13941 = vmatprep.subr.msk.bf16.mxu1 %vm17113_vm3, %v13939_v45  ;;  %v15426_v6 = vunpack.i.h.bf16 %v15424_v20  ;;  %v15425_v36 = vunpack.i.l.bf16 %v15424_v20  ;;  %v15441_v35 = vunpack.i.h.bf16 %v15439_v8  ;;  %v15440_v30 = vunpack.i.l.bf16 %v15439_v8 }
 0xb30   : > { %v13945_v58 = vpack.c.bf16 %v15426_v6, %v15425_v36  ;;  %v13909_v59 = vpack.c.bf16 %v15441_v35, %v15440_v30 }
 0xb31   : > { %v15434_v57 = vpop.permute.xlu1 %15433  ;;  %v15449_v52 = vpop.permute.xlu0 %15448 }
 0xb32   : > { %12247 = vmatmul.mubr.msk.f32.vlgmr.msra.gmra.mrb[32].mxu1 %vm651_vm2, %v17984_v27  ;;  %v15436_v34 = vunpack.i.h.bf16 %v15434_v57  ;;  %v15435_v5 = vunpack.i.l.bf16 %v15434_v57  ;;  %v15450_v17 = vunpack.i.l.bf16 %v15449_v52 }
 0xb33   : > { %13902 = vmatpush3.bf16.xpose.msk.msra.mxu0 %vm17113_vm3, %v13897_v11  ;;  %13944 = vmatpush3.bf16.xpose.msk.msra.mxu1 %vm17113_vm3, %v13939_v45  ;;  %v15451_v45 = vunpack.i.h.bf16 %v15449_v52 }
 0xb34   : > { %12316 = vmatprep.mubr.msk.f32.mxu1 %vm651_vm2, %v18081_v31  ;;  %13905 = vmatprep.subr.msk.bf16.mxu0 %vm17113_vm3, %v13903_v62  ;;  %v13951_v20 = vpack.c.bf16 %v15436_v34, %v15435_v5 }
 0xb35   : > { %13947 = vmatprep.subr.msk.bf16.mxu1 %vm17113_vm3, %v13945_v58  ;;  %v15444_v11 = vpop.permute.xlu1 %15443  ;;  %v13915_v8 = vpack.c.bf16 %v15451_v45, %v15450_v17  ;;  %v15459_v35 = vpop.permute.xlu0 %15458 }
 0xb36   : > { %v15446_v6 = vunpack.i.h.bf16 %v15444_v11  ;;  %v15445_v36 = vunpack.i.l.bf16 %v15444_v11 }
 0xb38   : > { %v13957_v57 = vpack.c.bf16 %v15446_v6, %v15445_v36 }
 0xb39   : > { %v15454_v30 = vpop.permute.xlu1 %15453  ;;  %v15469_v45 = vpop.permute.xlu0 %15468 }
 0xb3a   : > { %v15456_v34 = vunpack.i.h.bf16 %v15454_v30  ;;  %v15455_v5 = vunpack.i.l.bf16 %v15454_v30 }
 0xb3b   : > { %13908 = vmatpush3.bf16.xpose.msk.msra.mxu0 %vm17113_vm3, %v13903_v62  ;;  %13950 = vmatpush3.bf16.xpose.msk.msra.mxu1 %vm17113_vm3, %v13945_v58  ;;  %v15461_v62 = vunpack.i.h.bf16 %v15459_v35  ;;  %v15460_v58 = vunpack.i.l.bf16 %v15459_v35 }
 0xb3c   : > { %13911 = vmatprep.subr.msk.bf16.mxu0 %vm17113_vm3, %v13909_v59  ;;  %13953 = vmatprep.subr.msk.bf16.mxu1 %vm17113_vm3, %v13951_v20  ;;  %v13963_v11 = vpack.c.bf16 %v15456_v34, %v15455_v5 }
 0xb3d   : > { %v13921_v52 = vpack.c.bf16 %v15461_v62, %v15460_v58  ;;  %v15464_v17 = vpop.permute.xlu1 %15463  ;;  %v15479_v62 = vpop.permute.xlu0 %15478 }
 0xb3e   : > { %v15466_v6 = vunpack.i.h.bf16 %v15464_v17  ;;  %v15465_v36 = vunpack.i.l.bf16 %v15464_v17 }
 0xb40   : > { %v13969_v30 = vpack.c.bf16 %v15466_v6, %v15465_v36  ;;  %v20873_v6 = vld [vmem:[#allocation16_spill] sm:$0xff]  ;;  %v20874_v36 = vld [vmem:[#allocation17_spill] sm:$0xff] }
 0xb41   : > { %v15474_v58 = vpop.permute.xlu1 %15473 }
 0xb42   : > { %v15476_v34 = vunpack.i.h.bf16 %v15474_v58  ;;  %v15475_v5 = vunpack.i.l.bf16 %v15474_v58  ;;  %v20878_v58 = vld [vmem:[#allocation21_spill] sm:$0xff] }
 0xb43   : > { %13914 = vmatpush3.bf16.xpose.msk.msra.mxu0 %vm17113_vm3, %v13909_v59  ;;  %13956 = vmatpush3.bf16.xpose.msk.msra.mxu1 %vm17113_vm3, %v13951_v20  ;;  %v15471_v59 = vunpack.i.h.bf16 %v15469_v45  ;;  %v15470_v20 = vunpack.i.l.bf16 %v15469_v45 }
 0xb44   : > { %13917 = vmatprep.subr.msk.bf16.mxu0 %vm17113_vm3, %v13915_v8  ;;  %13959 = vmatprep.subr.msk.bf16.mxu1 %vm17113_vm3, %v13957_v57  ;;  %v13975_v17 = vpack.c.bf16 %v15476_v34, %v15475_v5 }
 0xb45   : > { %v13927_v35 = vpack.c.bf16 %v15471_v59, %v15470_v20  ;;  %v15484_v59 = vpop.permute.xlu1 %15483 }
 0xb4b   : > { %13920 = vmatpush3.bf16.xpose.msk.msra.mxu0 %vm17113_vm3, %v13915_v8  ;;  %13962 = vmatpush3.bf16.xpose.msk.msra.mxu1 %vm17113_vm3, %v13957_v57  ;;  %v15481_v8 = vunpack.i.h.bf16 %v15479_v62  ;;  %v15480_v57 = vunpack.i.l.bf16 %v15479_v62  ;;  %v20877_v62 = vld [vmem:[#allocation20_spill] sm:$0xff] }
 0xb4c   : > { %13923 = vmatprep.subr.msk.bf16.mxu0 %vm17113_vm3, %v13921_v52  ;;  %13965 = vmatprep.subr.msk.bf16.mxu1 %vm17113_vm3, %v13963_v11 }
 0xb4d   : > { %v13933_v45 = vpack.c.bf16 %v15481_v8, %v15480_v57  ;;  %v20879_v8 = vld [vmem:[#allocation22_spill] sm:$0xff]  ;;  %v20880_v57 = vld [vmem:[#allocation23_spill] sm:$0xff] }
 0xb53   : > { %13926 = vmatpush3.bf16.xpose.msk.msra.mxu0 %vm17113_vm3, %v13921_v52  ;;  %13968 = vmatpush3.bf16.xpose.msk.msra.mxu1 %vm17113_vm3, %v13963_v11  ;;  %v15486_v52 = vunpack.i.h.bf16 %v15484_v59  ;;  %v15485_v11 = vunpack.i.l.bf16 %v15484_v59 }
 0xb54   : > { %13929 = vmatprep.subr.msk.bf16.mxu0 %vm17113_vm3, %v13927_v35  ;;  %13971 = vmatprep.subr.msk.bf16.mxu1 %vm17113_vm3, %v13969_v30 }
 0xb55   : > { %v13981_v20 = vpack.c.bf16 %v15486_v52, %v15485_v11 }
 0xb5b   : > { %13932 = vmatpush3.bf16.xpose.msk.msra.mxu0 %vm17113_vm3, %v13927_v35  ;;  %13974 = vmatpush3.bf16.xpose.msk.msra.mxu1 %vm17113_vm3, %v13969_v30  ;;  %v20875_v35 = vld [vmem:[#allocation18_spill] sm:$0xff]  ;;  %v20876_v30 = vld [vmem:[#allocation19_spill] sm:$0xff] }
 0xb5c   : > { %13935 = vmatprep.subr.msk.bf16.mxu0 %vm17113_vm3, %v13933_v45  ;;  %13977 = vmatprep.subr.msk.bf16.mxu1 %vm17113_vm3, %v13975_v17 }
 0xb63   : > { %13938 = vmatpush3.bf16.xpose.msk.msra.mxu0 %vm17113_vm3, %v13933_v45  ;;  %13980 = vmatpush3.bf16.xpose.msk.msra.mxu1 %vm17113_vm3, %v13975_v17 }
 0xb64   : > { %13983 = vmatprep.subr.msk.bf16.mxu1 %vm17113_vm3, %v13981_v20  ;;  %13988 = vmatprep.subr.bf16.mxu0 %v20873_v6 }
 0xb6a   : > { %12282 = vmatmul.mubr.msk.f32.vlgmr.msra.gmra.mrb[42].mxu0 %vm651_vm2, %v18063_v29 }
 0xb6b   : > { %13986 = vmatpush3.bf16.xpose.msk.msra.mxu1 %vm17113_vm3, %v13981_v20  ;;  %13990 = vmatpush3.bf16.msra.mxu0 %v20873_v6 }
 0xb6c   : > { %13992 = vmatprep.subr.bf16.mxu0 %v20874_v36 }
 0xb6f   : > { %13994 = vmatpush3.bf16.msra.mxu0 %v20874_v36  ;;  %v3351_v36 = vmul.f32 %v17984_v27, %v17385_v21 }
 0xb70   : > { %13996 = vmatprep.subr.bf16.mxu0 %v20875_v35 }
 0xb72   : > { %12317 = vmatmul.mubr.msk.f32.vlgmr.msra.gmra.mrb[34].mxu1 %vm651_vm2, %v18078_v51 }
 0xb73   : > { %13998 = vmatpush3.bf16.msra.mxu0 %v20875_v35  ;;  %v3350_v35 = vmul.f32 %v17987_v60, %v17387_v22 }
 0xb74   : > { %14000 = vmatprep.subr.bf16.mxu0 %v20876_v30 }
 0xb75   : > { %v15497_v16 = vpack.i.bf16 %v3351_v36, %v3350_v35  ;;  %v15507_v36 = vpack.i.bf16 %v3353_v10, %v3352_v37  ;;  %v3342_v10 = vmul.f32 %v17970_v24, %v17425_v23  ;;  %v3343_v37 = vmul.f32 %v17967_v33, %v17455_v49 }
 0xb77   : > { %14002 = vmatpush3.bf16.msra.mxu0 %v20876_v30 }
 0xb78   : > { %14004 = vmatprep.subr.bf16.mxu0 %v20877_v62 }
 0xb7b   : > { %14006 = vmatpush3.bf16.msra.mxu0 %v20877_v62  ;;  %v3337_v62 = vmul.f32 %v17967_v33, %v17409_v56 }
 0xb7c   : > { %14008 = vmatprep.subr.bf16.mxu0 %v20878_v58 }
 0xb7f   : > { %14010 = vmatpush3.bf16.msra.mxu0 %v20878_v58  ;;  %v3336_v58 = vmul.f32 %v17970_v24, %v17399_v25 }
 0xb80   : > { %14012 = vmatprep.subr.bf16.mxu0 %v20879_v8 }
 0xb81   : > { %v15492_v6 = vpack.i.bf16 %v3337_v62, %v3336_v58  ;;  %v3355_v62 = vmul.f32 %v17984_v27, %v17428_v7  ;;  %v3340_v58 = vmul.f32 %v17970_v24, %v17404_v54 }
 0xb83   : > { %14014 = vmatpush3.bf16.msra.mxu0 %v20879_v8  ;;  %v3335_v8 = vmul.f32 %v17967_v33, %v17385_v21 }
 0xb84   : > { %14016 = vmatprep.subr.bf16.mxu0 %v20880_v57 }
 0xb87   : > { %14018 = vmatpush3.bf16.msra.mxu0 %v20880_v57  ;;  %v3334_v57 = vmul.f32 %v17970_v24, %v17387_v22 }
 0xb89   : > { %v15487_v30 = vpack.i.bf16 %v3335_v8, %v3334_v57  ;;  %v3339_v8 = vmul.f32 %v17967_v33, %v17428_v7  ;;  %v3341_v57 = vmul.f32 %v17967_v33, %v17441_v15 }
 0xb8b   : > { %v15502_v35 = vpack.i.bf16 %v3339_v8, %v3338_v32  ;;  %v15512_v3 = vpack.i.bf16 %v3341_v57, %v3340_v58  ;;  %v3358_v32 = vmul.f32 %v17987_v60, %v17425_v23  ;;  %v3359_v8 = vmul.f32 %v17984_v27, %v17455_v49 }
 0xbfd   : > { %v18310_v34 = vpop.f32.mrb[40].mxu0 }
 0xbfe   : > { %4044 = vmax.xlane.f32.xlu1 %v18310_v34  ;;  %v18313_v5 = vpop.f32.mrb[41].mxu0 }
 0xbff   : > { %4042 = vmax.xlane.f32.xlu0 %v18313_v5 }
 0xc05   : > { %v18316_v45 = vpop.f32.mrb[32].mxu1 }
 0xc06   : > { %v18318_v17 = vpop.f32.mrb[33].mxu1 }
 0xc07   : > { %4046 = vmax.xlane.f32.xlu0 %v18318_v17 }
 0xc0b   : > { %4048 = vmax.xlane.f32.xlu0 %v18316_v45 }
 0xc3d   : > { %v18322_v59 = vpop.f32.mrb[42].mxu0 }
 0xc3e   : > { %4052 = vmax.xlane.f32.xlu0 %v18322_v59  ;;  %v18325_v52 = vpop.f32.mrb[43].mxu0 }
 0xc3f   : > { %4050 = vmax.xlane.f32.xlu1 %v18325_v52 }
 0xc45   : > { %v18328_v11 = vpop.f32.mrb[34].mxu1 }
 0xc46   : > { %v18330_v20 = vpop.f32.mrb[35].mxu1  ;;  %4056 = vmax.xlane.f32.xlu0 %v18328_v11 }
 0xc47   : > { %4054 = vmax.xlane.f32.xlu1 %v18330_v20 }
 0xc58   : > { %15488 = vrot.lane.b32.xlu1 %v15487_v30, %s16609_s15  ;;  %v3354_v30 = vmul.f32 %v17987_v60, %v17393_v4 }
 0xc5c   : > { %15493 = vrot.lane.b32.xlu0 %v15492_v6, %s16609_s15  ;;  %15498 = vrot.lane.b32.xlu1 %v15497_v16, %s16609_s15  ;;  %v15517_v6 = vpack.i.bf16 %v3355_v62, %v3354_v30  ;;  %v3356_v16 = vmul.f32 %v17987_v60, %v17404_v54  ;;  %v15522_v62 = vpack.i.bf16 %v3343_v37, %v3342_v10  ;;  %v20883_v10 = vld [vmem:[#allocation26_spill] sm:$0xff] }
 0xc5d   : > { %v3347_v37 = vmul.f32 %v17967_v33, %v20883_v10  ;;  %v3363_v63 = vmul.f32 %v17984_v27, %v20883_v10 }
 0xc5e   : > { %v15527_v30 = vpack.i.bf16 %v3357_v13, %v3356_v16  ;;  %v20882_v13 = vld [vmem:[#allocation24_spill] sm:$0xff] }
 0xc5f   : > { %v3346_v16 = vmul.f32 %v17970_v24, %v20882_v13 }
 0xc60   : > { %15508 = vrot.lane.b32.xlu0 %v15507_v36, %s16609_s15  ;;  %15503 = vrot.lane.b32.xlu1 %v15502_v35, %s16609_s15  ;;  %v3344_v36 = vmul.f32 %v17970_v24, %v17452_v53  ;;  %v20881_v35 = vld [vmem:[#allocation25_spill] sm:$0xff] }
 0xc61   : > { %v3345_v58 = vmul.f32 %v17967_v33, %v20881_v35  ;;  %v3361_v57 = vmul.f32 %v17984_v27, %v20881_v35  ;;  %v15542_v61 = vpack.i.bf16 %v3347_v37, %v3346_v16  ;;  %v3366_v16 = vmul.f32 %v18066_v18, %v17387_v22 }
 0xc62   : > { %v3383_v37 = vmul.f32 %v18078_v51, %v17385_v21 }
 0xc63   : > { %v15532_v14 = vpack.i.bf16 %v3345_v58, %v3344_v36  ;;  %v20885_v36 = vld [vmem:[#allocation28_spill] sm:$0xff] }
 0xc64   : > { %15518 = vrot.lane.b32.xlu0 %v15517_v6, %s16609_s15  ;;  %15513 = vrot.lane.b32.xlu1 %v15512_v3, %s16609_s15  ;;  %v3360_v3 = vmul.f32 %v17987_v60, %v17452_v53  ;;  %v15537_v6 = vpack.i.bf16 %v3359_v8, %v3358_v32  ;;  %v20884_v32 = vld [vmem:[#allocation27_spill] sm:$0xff]  ;;  %v3349_v58 = vmul.f32 %v17967_v33, %v20885_v36 }
 0xc65   : > { %v3348_v8 = vmul.f32 %v17970_v24, %v20884_v32  ;;  %v3367_v24 = vmul.f32 %v18063_v29, %v17385_v21  ;;  %v3369_v33 = vmul.f32 %v18063_v29, %v17409_v56 }
 0xc68   : > { %15528 = vrot.lane.b32.xlu0 %v15527_v30, %s16609_s15  ;;  %15523 = vrot.lane.b32.xlu1 %v15522_v62, %s16609_s15  ;;  %v15547_v30 = vpack.i.bf16 %v3361_v57, %v3360_v3  ;;  %v3362_v62 = vmul.f32 %v17987_v60, %v20882_v13  ;;  %v3365_v3 = vmul.f32 %v17984_v27, %v20885_v36 }
 0xc6a   : > { %v15557_v57 = vpack.i.bf16 %v3363_v63, %v3362_v62  ;;  %v3382_v63 = vmul.f32 %v18081_v31, %v17387_v22  ;;  %v3370_v62 = vmul.f32 %v18066_v18, %v17393_v4 }
 0xc6c   : > { %15538 = vrot.lane.b32.xlu0 %v15537_v6, %s16609_s15  ;;  %15533 = vrot.lane.b32.xlu1 %v15532_v14, %s16609_s15  ;;  %v3364_v14 = vmul.f32 %v17987_v60, %v20884_v32  ;;  %v15552_v6 = vpack.i.bf16 %v3349_v58, %v3348_v8  ;;  %v15567_v60 = vpack.i.bf16 %v3367_v24, %v3366_v16 }
 0xc6d   : > { %v15577_v8 = vpack.i.bf16 %v3383_v37, %v3382_v63  ;;  %v3384_v58 = vmul.f32 %v18081_v31, %v17399_v25  ;;  %v3389_v37 = vmul.f32 %v18078_v51, %v17441_v15 }
 0xc6e   : > { %v15562_v27 = vpack.i.bf16 %v3365_v3, %v3364_v14  ;;  %v3385_v14 = vmul.f32 %v18078_v51, %v17409_v56  ;;  %v3371_v3 = vmul.f32 %v18063_v29, %v17428_v7 }
 0xc70   : > { %15548 = vrot.lane.b32.xlu0 %v15547_v30, %s16609_s15  ;;  %15543 = vrot.lane.b32.xlu1 %v15542_v61, %s16609_s15  ;;  %v3368_v61 = vmul.f32 %v18066_v18, %v17399_v25  ;;  %v15587_v16 = vpack.i.bf16 %v3385_v14, %v3384_v58  ;;  %v15582_v24 = vpack.i.bf16 %v3371_v3, %v3370_v62 }
 0xc71   : > { %v3375_v62 = vmul.f32 %v18063_v29, %v17455_v49  ;;  %v3391_v58 = vmul.f32 %v18078_v51, %v17455_v49 }
 0xc72   : > { %v15572_v30 = vpack.i.bf16 %v3369_v33, %v3368_v61  ;;  %v3372_v61 = vmul.f32 %v18066_v18, %v17404_v54  ;;  %v3373_v33 = vmul.f32 %v18063_v29, %v17441_v15 }
 0xc74   : > { %15558 = vrot.lane.b32.xlu0 %v15557_v57, %s16609_s15  ;;  %15553 = vrot.lane.b32.xlu1 %v15552_v6, %s16609_s15  ;;  %v3386_v57 = vmul.f32 %v18081_v31, %v17393_v4  ;;  %v3387_v6 = vmul.f32 %v18078_v51, %v17428_v7  ;;  %v15592_v63 = vpack.i.bf16 %v3373_v33, %v3372_v61 }
 0xc78   : > { %15568 = vrot.lane.b32.xlu0 %v15567_v60, %s16609_s15  ;;  %15563 = vrot.lane.b32.xlu1 %v15562_v27, %s16609_s15  ;;  %v15597_v60 = vpack.i.bf16 %v3387_v6, %v3386_v57  ;;  %v3388_v27 = vmul.f32 %v18081_v31, %v17404_v54  ;;  %v3376_v57 = vmul.f32 %v18066_v18, %v17452_v53 }
 0xc79   : > { %v3377_v6 = vmul.f32 %v18063_v29, %v20881_v35 }
 0xc7a   : > { %v15607_v14 = vpack.i.bf16 %v3389_v37, %v3388_v27  ;;  %v3379_v27 = vmul.f32 %v18063_v29, %v20883_v10 }
 0xc7b   : > { %v15612_v33 = vpack.i.bf16 %v3377_v6, %v3376_v57  ;;  %v3380_v6 = vmul.f32 %v18066_v18, %v20884_v32 }
 0xc7c   : > { %15578 = vrot.lane.b32.xlu0 %v15577_v8, %s16609_s15  ;;  %15573 = vrot.lane.b32.xlu1 %v15572_v30, %s16609_s15  ;;  %v3374_v30 = vmul.f32 %v18066_v18, %v17425_v23  ;;  %v3390_v8 = vmul.f32 %v18081_v31, %v17425_v23 }
 0xc7e   : > { %v15602_v3 = vpack.i.bf16 %v3375_v62, %v3374_v30  ;;  %v15617_v61 = vpack.i.bf16 %v3391_v58, %v3390_v8  ;;  %v3394_v8 = vmul.f32 %v18081_v31, %v20882_v13  ;;  %v3395_v58 = vmul.f32 %v18078_v51, %v20883_v10 }
 0xc80   : > { %15588 = vrot.lane.b32.xlu0 %v15587_v16, %s16609_s15  ;;  %15583 = vrot.lane.b32.xlu1 %v15582_v24, %s16609_s15  ;;  %v3392_v16 = vmul.f32 %v18081_v31, %v17452_v53  ;;  %v3393_v24 = vmul.f32 %v18078_v51, %v20881_v35 }
 0xc84   : > { %15598 = vrot.lane.b32.xlu0 %v15597_v60, %s16609_s15  ;;  %15593 = vrot.lane.b32.xlu1 %v15592_v63, %s16609_s15  ;;  %v3378_v60 = vmul.f32 %v18066_v18, %v20882_v13 }
 0xc86   : > { %v15622_v57 = vpack.i.bf16 %v3379_v27, %v3378_v60 }
 0xc88   : > { %15608 = vrot.lane.b32.xlu0 %v15607_v14, %s16609_s15  ;;  %15603 = vrot.lane.b32.xlu1 %v15602_v3, %s16609_s15  ;;  %v15627_v14 = vpack.i.bf16 %v3393_v24, %v3392_v16  ;;  %v15637_v16 = vpack.i.bf16 %v3395_v58, %v3394_v8 }
 0xc8b   : > { %v4045_v63 = vpop.xlane.xlu1 %4044 }
 0xc8c   : > { %v4059_v37 = vsub.f32 %v18310_v34, %v4045_v63  ;;  %v4043_v30 = vpop.xlane.xlu0 %4042  ;;  %15618 = vrot.lane.b32.xlu0 %v15617_v61, %s16609_s15  ;;  %15613 = vrot.lane.b32.xlu1 %v15612_v33, %s16609_s15  ;;  %v3381_v34 = vmul.f32 %v18063_v29, %v20885_v36  ;;  %v3397_v33 = vmul.f32 %v18078_v51, %v20885_v36 }
 0xc8d   : > { %v4058_v62 = vsub.f32 %v18313_v5, %v4043_v30  ;;  %v3396_v5 = vmul.f32 %v18081_v31, %v20884_v32 }
 0xc8e   : > { %v4068_v3 = vmul.f32 1.442695, %v4059_v37  ;;  %v15632_v24 = vpack.i.bf16 %v3381_v34, %v3380_v6 }
 0xc8f   : > { %v4066_v61 = vmul.f32 1.442695, %v4058_v62  ;;  %v15642_v18 = vpack.i.bf16 %v3397_v33, %v3396_v5 }
 0xc90   : > { %15628 = vrot.lane.b32.xlu0 %v15627_v14, %s16609_s15  ;;  %15623 = vrot.lane.b32.xlu1 %v15622_v57, %s16609_s15 }
 0xc91   : > { %16351 = vpow2.f32 %v4066_v61 }
 0xc92   : > { %16353 = vpow2.f32 %v4068_v3 }
 0xc94   : > { %v4047_v60 = vpop.xlane.xlu0 %4046  ;;  %15638 = vrot.lane.b32.xlu0 %v15637_v16, %s16609_s15  ;;  %15633 = vrot.lane.b32.xlu1 %v15632_v24, %s16609_s15 }
 0xc95   : > { %v4060_v29 = vsub.f32 %v18318_v17, %v4047_v60 }
 0xc97   : > { %v4070_v27 = vmul.f32 1.442695, %v4060_v29 }
 0xc98   : > { %v4049_v63 = vpop.xlane.xlu0 %4048  ;;  %15643 = vrot.lane.b32.xlu1 %v15642_v18, %s16609_s15 }
 0xc99   : > { %16355 = vpow2.f32 %v4070_v27  ;;  %v4061_v31 = vsub.f32 %v18316_v45, %v4049_v63 }
 0xc9b   : > { %v18498_v37 = vpop.eup %16351  ;;  %v4072_v30 = vmul.f32 1.442695, %v4061_v31 }
 0xc9c   : > { %v18500_v62 = vpop.eup %16353  ;;  %12351 = vmatprep.mubr.f32.mxu0 %v18498_v37 }
 0xc9d   : > { %16357 = vpow2.f32 %v4072_v30  ;;  %12352 = vmatmul.mubr.f32.vlgmr.msra.gmra.mrb[44].mxu0 %v18500_v62 }
 0xca3   : > { %v18504_v51 = vpop.eup %16355 }
 0xca4   : > { %12354 = vmatprep.mubr.f32.mxu0 %v18504_v51 }
 0xca7   : > { %v18507_v17 = vpop.eup %16357 }
 0xca8   : > { %12355 = vmatmul.mubr.f32.gmra.mrb[46].mxu0 %v18507_v17 }
 0xccb   : > { %v4053_v14 = vpop.xlane.xlu0 %4052 }
 0xccc   : > { %v4063_v45 = vsub.f32 %v18322_v59, %v4053_v14  ;;  %v4051_v8 = vpop.xlane.xlu1 %4050 }
 0xccd   : > { %v4062_v58 = vsub.f32 %v18325_v52, %v4051_v8 }
 0xcce   : > { %v4076_v3 = vmul.f32 1.442695, %v4063_v45 }
 0xccf   : > { %v4074_v57 = vmul.f32 1.442695, %v4062_v58 }
 0xcd1   : > { %16359 = vpow2.f32 %v4074_v57 }
 0xcd2   : > { %16361 = vpow2.f32 %v4076_v3 }
 0xcd3   : > { %v4057_v6 = vpop.xlane.xlu0 %4056 }
 0xcd4   : > { %v4065_v34 = vsub.f32 %v18328_v11, %v4057_v6  ;;  %v4055_v61 = vpop.xlane.xlu1 %4054 }
 0xcd5   : > { %v4064_v5 = vsub.f32 %v18330_v20, %v4055_v61 }
 0xcd6   : > { %v4080_v16 = vmul.f32 1.442695, %v4065_v34 }
 0xcd7   : > { %v4078_v24 = vmul.f32 1.442695, %v4064_v5  ;;  %v15494_v33 = vpop.permute.xlu0 %15493 }
 0xcd8   : > { %v15496_v60 = vunpack.i.h.bf16 %v15494_v33  ;;  %v15489_v29 = vpop.permute.xlu1 %15488  ;;  %v15495_v59 = vunpack.i.l.bf16 %v15494_v33 }
 0xcd9   : > { %16363 = vpow2.f32 %v4078_v24  ;;  %v15491_v18 = vunpack.i.h.bf16 %v15489_v29  ;;  %v15490_v27 = vunpack.i.l.bf16 %v15489_v29 }
 0xcda   : > { %16365 = vpow2.f32 %v4080_v16  ;;  %v14023_v58 = vpack.c.bf16 %v15496_v60, %v15495_v59 }
 0xcdb   : > { %v18514_v52 = vpop.eup %16359  ;;  %v15509_v63 = vpop.permute.xlu0 %15508  ;;  %v14019_v31 = vpack.c.bf16 %v15491_v18, %v15490_v27 }
 0xcdc   : > { %v18516_v30 = vpop.eup %16361  ;;  %v15511_v11 = vunpack.i.h.bf16 %v15509_v63  ;;  %v15510_v14 = vunpack.i.l.bf16 %v15509_v63  ;;  %12357 = vmatprep.mubr.f32.mxu0 %v18514_v52  ;;  %v15499_v20 = vpop.permute.xlu1 %15498 }
 0xcdd   : > { %v15501_v45 = vunpack.i.h.bf16 %v15499_v20  ;;  %v15500_v8 = vunpack.i.l.bf16 %v15499_v20  ;;  %12358 = vmatmul.mubr.f32.gmra.mrb[48].mxu0 %v18516_v30  ;;  %14020 = vmatprep.subr.bf16.mxu1 %v14019_v31 }
 0xcde   : > { %14022 = vmatpush3.bf16.msra.mxu1 %v14019_v31  ;;  %v14055_v34 = vpack.c.bf16 %v15511_v11, %v15510_v14 }
 0xcdf   : > { %v15519_v3 = vpop.permute.xlu0 %15518  ;;  %14024 = vmatprep.subr.bf16.mxu1 %v14023_v58  ;;  %v14051_v57 = vpack.c.bf16 %v15501_v45, %v15500_v8 }
 0xce0   : > { %v15504_v6 = vpop.permute.xlu1 %15503  ;;  %v15521_v61 = vunpack.i.h.bf16 %v15519_v3  ;;  %v15520_v5 = vunpack.i.l.bf16 %v15519_v3 }
 0xce1   : > { %v15506_v16 = vunpack.i.h.bf16 %v15504_v6  ;;  %v15505_v24 = vunpack.i.l.bf16 %v15504_v6  ;;  %14052 = vmatprep.subr.bf16.mxu0 %v14051_v57 }
 0xce2   : > { %14026 = vmatpush3.bf16.msra.mxu1 %v14023_v58  ;;  %14054 = vmatpush3.bf16.msra.mxu0 %v14051_v57  ;;  %v14059_v14 = vpack.c.bf16 %v15521_v61, %v15520_v5 }
 0xce3   : > { %v18520_v33 = vpop.eup %16363  ;;  %v15529_v29 = vpop.permute.xlu0 %15528  ;;  %14056 = vmatprep.subr.bf16.mxu0 %v14055_v34  ;;  %v14027_v18 = vpack.c.bf16 %v15506_v16, %v15505_v24 }
 0xce4   : > { %v18522_v27 = vpop.eup %16365  ;;  %v15531_v60 = vunpack.i.h.bf16 %v15529_v29  ;;  %v15530_v59 = vunpack.i.l.bf16 %v15529_v29  ;;  %12360 = vmatprep.mubr.f32.mxu0 %v18520_v33  ;;  %v15514_v63 = vpop.permute.xlu1 %15513 }
 0xce5   : > { %v15516_v31 = vunpack.i.h.bf16 %v15514_v63  ;;  %v15515_v11 = vunpack.i.l.bf16 %v15514_v63  ;;  %12361 = vmatmul.mubr.f32.gmra.mrb[50].mxu0 %v18522_v27  ;;  %14028 = vmatprep.subr.bf16.mxu1 %v14027_v18 }
 0xce6   : > { %14030 = vmatpush3.bf16.msra.mxu1 %v14027_v18  ;;  %14058 = vmatpush3.bf16.msra.mxu0 %v14055_v34  ;;  %v14063_v58 = vpack.c.bf16 %v15531_v60, %v15530_v59 }
 0xce7   : > { %v15539_v20 = vpop.permute.xlu0 %15538  ;;  %14060 = vmatprep.subr.bf16.mxu0 %v14059_v14  ;;  %v14031_v45 = vpack.c.bf16 %v15516_v31, %v15515_v11 }
 0xce8   : > { %v15524_v8 = vpop.permute.xlu1 %15523  ;;  %v15541_v3 = vunpack.i.h.bf16 %v15539_v20  ;;  %v15540_v57 = vunpack.i.l.bf16 %v15539_v20 }
 0xce9   : > { %v15526_v6 = vunpack.i.h.bf16 %v15524_v8  ;;  %v15525_v16 = vunpack.i.l.bf16 %v15524_v8  ;;  %14032 = vmatprep.subr.bf16.mxu1 %v14031_v45 }
 0xcea   : > { %14034 = vmatpush3.bf16.msra.mxu1 %v14031_v45  ;;  %14062 = vmatpush3.bf16.msra.mxu0 %v14059_v14  ;;  %v14067_v18 = vpack.c.bf16 %v15541_v3, %v15540_v57 }
 0xceb   : > { %v15549_v24 = vpop.permute.xlu0 %15548  ;;  %14064 = vmatprep.subr.bf16.mxu0 %v14063_v58  ;;  %v14035_v29 = vpack.c.bf16 %v15526_v6, %v15525_v16 }
 0xcec   : > { %v15551_v63 = vunpack.i.h.bf16 %v15549_v24  ;;  %v15550_v36 = vunpack.i.l.bf16 %v15549_v24  ;;  %v15534_v61 = vpop.permute.xlu1 %15533 }
 0xced   : > { %v15536_v5 = vunpack.i.h.bf16 %v15534_v61  ;;  %v15535_v34 = vunpack.i.l.bf16 %v15534_v61  ;;  %14036 = vmatprep.subr.bf16.mxu1 %v14035_v29 }
 0xcee   : > { %14038 = vmatpush3.bf16.msra.mxu1 %v14035_v29  ;;  %14066 = vmatpush3.bf16.msra.mxu0 %v14063_v58  ;;  %v14071_v11 = vpack.c.bf16 %v15551_v63, %v15550_v36 }
 0xcef   : > { %v15559_v60 = vpop.permute.xlu0 %15558  ;;  %14068 = vmatprep.subr.bf16.mxu0 %v14067_v18  ;;  %v14039_v59 = vpack.c.bf16 %v15536_v5, %v15535_v34 }
 0xcf0   : > { %v15544_v31 = vpop.permute.xlu1 %15543  ;;  %v15561_v20 = vunpack.i.h.bf16 %v15559_v60  ;;  %v15560_v45 = vunpack.i.l.bf16 %v15559_v60 }
 0xcf1   : > { %v15546_v14 = vunpack.i.h.bf16 %v15544_v31  ;;  %v15545_v8 = vunpack.i.l.bf16 %v15544_v31  ;;  %14040 = vmatprep.subr.bf16.mxu1 %v14039_v59 }
 0xcf2   : > { %14042 = vmatpush3.bf16.msra.mxu1 %v14039_v59  ;;  %14070 = vmatpush3.bf16.msra.mxu0 %v14067_v18  ;;  %v14075_v29 = vpack.c.bf16 %v15561_v20, %v15560_v45 }
 0xcf3   : > { %v15569_v6 = vpop.permute.xlu0 %15568  ;;  %14072 = vmatprep.subr.bf16.mxu0 %v14071_v11  ;;  %v14043_v16 = vpack.c.bf16 %v15546_v14, %v15545_v8 }
 0xcf4   : > { %v15571_v24 = vunpack.i.h.bf16 %v15569_v6  ;;  %v15570_v61 = vunpack.i.l.bf16 %v15569_v6  ;;  %v15554_v3 = vpop.permute.xlu1 %15553 }
 0xcf5   : > { %v15556_v57 = vunpack.i.h.bf16 %v15554_v3  ;;  %v15555_v58 = vunpack.i.l.bf16 %v15554_v3  ;;  %14044 = vmatprep.subr.bf16.mxu1 %v14043_v16 }
 0xcf6   : > { %14046 = vmatpush3.bf16.msra.mxu1 %v14043_v16  ;;  %14074 = vmatpush3.bf16.msra.mxu0 %v14071_v11  ;;  %v14083_v34 = vpack.c.bf16 %v15571_v24, %v15570_v61 }
 0xcf7   : > { %v15579_v36 = vpop.permute.xlu0 %15578  ;;  %14076 = vmatprep.subr.bf16.mxu0 %v14075_v29  ;;  %v14047_v63 = vpack.c.bf16 %v15556_v57, %v15555_v58 }
 0xcf8   : > { %v15564_v5 = vpop.permute.xlu1 %15563  ;;  %v15581_v60 = vunpack.i.h.bf16 %v15579_v36  ;;  %v15580_v59 = vunpack.i.l.bf16 %v15579_v36 }
 0xcf9   : > { %v15566_v18 = vunpack.i.h.bf16 %v15564_v5  ;;  %v15565_v31 = vunpack.i.l.bf16 %v15564_v5  ;;  %14048 = vmatprep.subr.bf16.mxu1 %v14047_v63 }
 0xcfa   : > { %14050 = vmatpush3.bf16.msra.mxu1 %v14047_v63  ;;  %14078 = vmatpush3.bf16.msra.mxu0 %v14075_v29  ;;  %v14115_v8 = vpack.c.bf16 %v15581_v60, %v15580_v59 }
 0xcfb   : > { %14084 = vmatprep.subr.bf16.mxu1 %v14083_v34  ;;  %v14079_v14 = vpack.c.bf16 %v15566_v18, %v15565_v31  ;;  %v15589_v24 = vpop.permute.xlu0 %15588 }
 0xcfc   : > { %v15574_v20 = vpop.permute.xlu1 %15573 }
 0xcfd   : > { %14080 = vmatprep.subr.bf16.mxu0 %v14079_v14  ;;  %v15576_v58 = vunpack.i.h.bf16 %v15574_v20  ;;  %v15575_v36 = vunpack.i.l.bf16 %v15574_v20 }
 0xcfe   : > { %14082 = vmatpush3.bf16.msra.mxu0 %v14079_v14 }
 0xcff   : > { %14116 = vmatprep.subr.bf16.mxu0 %v14115_v8  ;;  %v15599_v59 = vpop.permute.xlu0 %15598  ;;  %v14087_v14 = vpack.c.bf16 %v15576_v58, %v15575_v36 }
 0xd00   : > { %v15584_v6 = vpop.permute.xlu1 %15583 }
 0xd01   : > { %v15586_v18 = vunpack.i.h.bf16 %v15584_v6  ;;  %v15585_v31 = vunpack.i.l.bf16 %v15584_v6 }
 0xd03   : > { %v14091_v32 = vpack.c.bf16 %v15586_v18, %v15585_v31 }
 0xd04   : > { %v15594_v16 = vpop.permute.xlu1 %15593 }
 0xd08   : > { %v15604_v60 = vpop.permute.xlu1 %15603 }
 0xd0c   : > { %v15614_v20 = vpop.permute.xlu1 %15613 }
 0xd0d   : > { %v15616_v31 = vunpack.i.h.bf16 %v15614_v20 }
 0xd10   : > { %v15624_v36 = vpop.permute.xlu1 %15623 }
 0xd70   : > { %v12353_v11 = vpop.f32.mrb[44].mxu0 }
 0xd71   : > { %16367 = vrcp.f32 %v12353_v11  ;;  %v4148_v45 = vpop.f32.mrb[45].mxu0  ;;  %v15596_v11 = vunpack.i.h.bf16 %v15594_v16 }
 0xd72   : > { %16369 = vrcp.f32 %v4148_v45  ;;  %v15595_v45 = vunpack.i.l.bf16 %v15594_v16  ;;  %v15600_v16 = vunpack.i.l.bf16 %v15599_v59 }
 0xd74   : > { %v14095_v10 = vpack.c.bf16 %v15596_v11, %v15595_v45 }
 0xd7b   : > { %v16368_v61 = vpop.eup %16367  ;;  %v12356_v3 = vpop.f32.mrb[46].mxu0 }
 0xd7c   : > { %v16370_v57 = vpop.eup %16369  ;;  %16371 = vrcp.f32 %v12356_v3  ;;  %v4158_v29 = vpop.f32.mrb[47].mxu0  ;;  %v4196_v5 = vmul.f32 %v16368_v61, %v18500_v62  ;;  %v15590_v62 = vunpack.i.l.bf16 %v15589_v24  ;;  %v15606_v61 = vunpack.i.h.bf16 %v15604_v60 }
 0xd7d   : > { %16373 = vrcp.f32 %v4158_v29  ;;  %v4195_v63 = vmul.f32 %v16370_v57, %v18498_v37  ;;  %v15609_v29 = vpop.permute.xlu0 %15608  ;;  %v15591_v57 = vunpack.i.h.bf16 %v15589_v24 }
 0xd7f   : > { %12395 = vmatprep.mubr.f32.mxu1 %v4195_v63  ;;  %v15605_v63 = vunpack.i.l.bf16 %v15604_v60  ;;  %v15611_v60 = vunpack.i.h.bf16 %v15609_v29 }
 0xd80   : > { %12396 = vmatmul.mubr.f32.vlgmr.msra.gmra.mrb[36].mxu1 %v4196_v5  ;;  %v14119_v5 = vpack.c.bf16 %v15591_v57, %v15590_v62 }
 0xd81   : > { %14086 = vmatpush3.bf16.msra.mxu1 %v14083_v34  ;;  %v15601_v34 = vunpack.i.h.bf16 %v15599_v59  ;;  %v15619_v18 = vpop.permute.xlu0 %15618  ;;  %v14099_v24 = vpack.c.bf16 %v15606_v61, %v15605_v63 }
 0xd82   : > { %14088 = vmatprep.subr.bf16.mxu1 %v14087_v14  ;;  %v15620_v57 = vunpack.i.l.bf16 %v15619_v18 }
 0xd83   : > { %v14123_v11 = vpack.c.bf16 %v15601_v34, %v15600_v16 }
 0xd85   : > { %14090 = vmatpush3.bf16.msra.mxu1 %v14087_v14  ;;  %v15615_v14 = vunpack.i.l.bf16 %v15614_v20  ;;  %v15629_v59 = vpop.permute.xlu0 %15628 }
 0xd86   : > { %v16372_v3 = vpop.eup %16371  ;;  %14092 = vmatprep.subr.bf16.mxu1 %v14091_v32  ;;  %v15630_v61 = vunpack.i.l.bf16 %v15629_v59 }
 0xd87   : > { %v16374_v37 = vpop.eup %16373  ;;  %v4198_v58 = vmul.f32 %v16372_v3, %v18507_v17  ;;  %v15626_v17 = vunpack.i.h.bf16 %v15624_v36  ;;  %v14103_v45 = vpack.c.bf16 %v15616_v31, %v15615_v14  ;;  %v15634_v3 = vpop.permute.xlu1 %15633 }
 0xd88   : > { %v4197_v6 = vmul.f32 %v16374_v37, %v18504_v51  ;;  %v15610_v51 = vunpack.i.l.bf16 %v15609_v29  ;;  %v15621_v37 = vunpack.i.h.bf16 %v15619_v18  ;;  %v15635_v62 = vunpack.i.l.bf16 %v15634_v3 }
 0xd89   : > { %14094 = vmatpush3.bf16.msra.mxu1 %v14091_v32  ;;  %v15625_v32 = vunpack.i.l.bf16 %v15624_v36  ;;  %v15631_v29 = vunpack.i.h.bf16 %v15629_v59  ;;  %v15639_v34 = vpop.permute.xlu0 %15638 }
 0xd8a   : > { %14096 = vmatprep.subr.bf16.mxu1 %v14095_v10  ;;  %12430 = vmatprep.mubr.f32.mxu0 %v4197_v6  ;;  %v14127_v20 = vpack.c.bf16 %v15611_v60, %v15610_v51  ;;  %v14131_v63 = vpack.c.bf16 %v15621_v37, %v15620_v57  ;;  %v10441_v6 = vld [vmem:[%s20751_s4 + $0x20] sm:$0xff]  ;;  %v15640_v18 = vunpack.i.l.bf16 %v15639_v34  ;;  %v10443_v37 = vld [vmem:[%s20751_s4 + $0x30] sm:$0xff]  ;;  %v10444_v57 = vld [vmem:[%s20751_s4 + $0x38] sm:$0xff] }
 0xd8b   : > { %12431 = vmatmul.mubr.f32.vlgmr.msra.gmra.mrb[52].mxu0 %v4198_v58  ;;  %v10442_v58 = vld [vmem:[%s20751_s4 + $0x28] sm:$0xff]  ;;  %v14135_v31 = vpack.c.bf16 %v15631_v29, %v15630_v61  ;;  %v15644_v14 = vpop.permute.xlu1 %15643 }
 0xd8c   : > { %14118 = vmatpush3.bf16.msra.mxu0 %v14115_v8  ;;  %v15636_v8 = vunpack.i.h.bf16 %v15634_v3  ;;  %v14147_v36 = vpack.c.bf16 %v10442_v58, %v10441_v6  ;;  %v15645_v60 = vunpack.i.l.bf16 %v15644_v14 }
 0xd8d   : > { %14098 = vmatpush3.bf16.msra.mxu1 %v14095_v10  ;;  %14120 = vmatprep.subr.bf16.mxu0 %v14119_v5  ;;  %v14107_v10 = vpack.c.bf16 %v15626_v17, %v15625_v32 }
 0xd8e   : > { %14100 = vmatprep.subr.bf16.mxu1 %v14099_v24  ;;  %v14111_v16 = vpack.c.bf16 %v15636_v8, %v15635_v62 }
 0xd90   : > { %14122 = vmatpush3.bf16.msra.mxu0 %v14119_v5  ;;  %v15641_v5 = vunpack.i.h.bf16 %v15639_v34 }
 0xd91   : > { %14102 = vmatpush3.bf16.msra.mxu1 %v14099_v24  ;;  %14124 = vmatprep.subr.bf16.mxu0 %v14123_v11  ;;  %v15646_v24 = vunpack.i.h.bf16 %v15644_v14 }
 0xd92   : > { %14104 = vmatprep.subr.bf16.mxu1 %v14103_v45  ;;  %v14139_v51 = vpack.c.bf16 %v15641_v5, %v15640_v18  ;;  %v10542_v5 = vld [vmem:[%s20752_s5 + $0x1] ss:$0 sm:$0xff] }
 0xd94   : > { %14126 = vmatpush3.bf16.msra.mxu0 %v14123_v11  ;;  %v14143_v11 = vpack.c.bf16 %v15646_v24, %v15645_v60 }
 0xd95   : > { %14106 = vmatpush3.bf16.msra.mxu1 %v14103_v45  ;;  %14128 = vmatprep.subr.bf16.mxu0 %v14127_v20 }
 0xd96   : > { %14108 = vmatprep.subr.bf16.mxu1 %v14107_v10 }
 0xd98   : > { %14130 = vmatpush3.bf16.msra.mxu0 %v14127_v20 }
 0xd99   : > { %14110 = vmatpush3.bf16.msra.mxu1 %v14107_v10  ;;  %14132 = vmatprep.subr.bf16.mxu0 %v14131_v63  ;;  %v14151_v10 = vpack.c.bf16 %v10444_v57, %v10443_v37 }
 0xd9a   : > { %14112 = vmatprep.subr.bf16.mxu1 %v14111_v16 }
 0xd9c   : > { %14134 = vmatpush3.bf16.msra.mxu0 %v14131_v63 }
 0xd9d   : > { %14114 = vmatpush3.bf16.msra.mxu1 %v14111_v16  ;;  %14136 = vmatprep.subr.bf16.mxu0 %v14135_v31 }
 0xd9e   : > { %14148 = vmatprep.subr.bf16.mxu1 %v14147_v36 }
 0xda0   : > { %14138 = vmatpush3.bf16.msra.mxu0 %v14135_v31 }
 0xda1   : > { %14140 = vmatprep.subr.bf16.mxu0 %v14139_v51 }
 0xda4   : > { %14142 = vmatpush3.bf16.msra.mxu0 %v14139_v51 }
 0xda5   : > { %14144 = vmatprep.subr.bf16.mxu0 %v14143_v11 }
 0xda8   : > { %14146 = vmatpush3.bf16.msra.mxu0 %v14143_v11 }
 0xdb0   : > { %v12359_v17 = vpop.f32.mrb[48].mxu0 }
 0xdb1   : > { %16375 = vrcp.f32 %v12359_v17  ;;  %v4168_v32 = vpop.f32.mrb[49].mxu0 }
 0xdb2   : > { %16377 = vrcp.f32 %v4168_v32 }
 0xdb8   : > { %v12362_v45 = vpop.f32.mrb[50].mxu0 }
 0xdb9   : > { %16379 = vrcp.f32 %v12362_v45  ;;  %v4178_v3 = vpop.f32.mrb[51].mxu0 }
 0xdba   : > { %16381 = vrcp.f32 %v4178_v3 }
 0xdbb   : > { %v16376_v59 = vpop.eup %16375 }
 0xdbc   : > { %v16378_v20 = vpop.eup %16377  ;;  %v4200_v62 = vmul.f32 %v16376_v59, %v18516_v30 }
 0xdbd   : > { %v4199_v8 = vmul.f32 %v16378_v20, %v18514_v52 }
 0xdbf   : > { %12465 = vmatprep.mubr.f32.mxu1 %v4199_v8 }
 0xdc0   : > { %12466 = vmatmul.mubr.f32.vlgmr.msra.gmra.mrb[38].mxu1 %v4200_v62 }
 0xdc1   : > { %14150 = vmatpush3.bf16.msra.mxu1 %v14147_v36 }
 0xdc2   : > { %14152 = vmatprep.subr.bf16.mxu1 %v14151_v10 }
 0xdc3   : > { %v16380_v29 = vpop.eup %16379 }
 0xdc4   : > { %v16382_v61 = vpop.eup %16381  ;;  %v4202_v6 = vmul.f32 %v16380_v29, %v18522_v27 }
 0xdc5   : > { %v4201_v63 = vmul.f32 %v16382_v61, %v18520_v33  ;;  %14154 = vmatpush3.bf16.msra.mxu1 %v14151_v10 }
 0xdc7   : > { %12500 = vmatprep.mubr.f32.mxu0 %v4201_v63  ;;  %v10446_v63 = vld [vmem:[%s20753_s6 + $0x20] sm:$0xff] }
 0xdc8   : > { %12501 = vmatmul.mubr.f32.vlgmr.msra.gmra.mrb[54].mxu0 %v4202_v6  ;;  %v10447_v6 = vld [vmem:[%s20753_s6 + $0x28] sm:$0xff] }
 0xe53   : > { %v12397_v58 = vpop.f32.mrb[36].mxu1 }
 0xe54   : > { %v4333_v34 = vpop.f32.mrb[37].mxu1 }
 0xe55   : > { %12511 = vmatprep.mubr.msk.f32.mxu1 %vm651_vm2, %v4333_v34  ;;  %v14155_v34 = vpack.c.bf16 %v10447_v6, %v10446_v63 }
 0xe56   : > { %12512 = vmatmul.mubr.msk.f32.vlgmr.msra.gmra.mrb[40].mxu1 %vm651_vm2, %v12397_v58  ;;  %v10448_v58 = vld [vmem:[%s20753_s6 + $0x30] sm:$0xff] }
 0xe57   : > { %14156 = vmatprep.subr.bf16.mxu1 %v14155_v34 }
 0xe58   : > { %14158 = vmatpush3.bf16.msra.mxu1 %v14155_v34 }
 0xe5e   : > { %v12432_v52 = vpop.f32.mrb[52].mxu0 }
 0xe5f   : > { %v4472_v30 = vpop.f32.mrb[53].mxu0 }
 0xe60   : > { %12514 = vmatprep.mubr.msk.f32.mxu1 %vm651_vm2, %v4472_v30 }
 0xe61   : > { %12515 = vmatmul.mubr.msk.f32.gmra.mrb[42].mxu1 %vm651_vm2, %v12432_v52  ;;  %v10449_v52 = vld [vmem:[%s20753_s6 + $0x38] sm:$0xff] }
 0xe62   : > { %v14159_v30 = vpack.c.bf16 %v10449_v52, %v10448_v58 }
 0xe64   : > { %14160 = vmatprep.subr.bf16.mxu1 %v14159_v30 }
 0xe65   : > { %14162 = vmatpush3.bf16.msra.mxu1 %v14159_v30 }
 0xe93   : > { %v12467_v16 = vpop.f32.mrb[38].mxu1 }
 0xe94   : > { %v4611_v36 = vpop.f32.mrb[39].mxu1 }
 0xe95   : > { %12517 = vmatprep.mubr.msk.f32.mxu1 %vm651_vm2, %v4611_v36 }
 0xe96   : > { %12518 = vmatmul.mubr.msk.f32.gmra.mrb[44].mxu1 %vm651_vm2, %v12467_v16 }
 0xe9b   : > { %v12502_v33 = vpop.f32.mrb[54].mxu0 }
 0xe9c   : > { %v4750_v27 = vpop.f32.mrb[55].mxu0 }
 0xe9d   : > { %12520 = vmatprep.mubr.msk.f32.mxu1 %vm651_vm2, %v4750_v27 }
 0xe9e   : > { %12521 = vmatmul.mubr.msk.f32.gmra.mrb[46].mxu1 %vm651_vm2, %v12502_v33 }
 0xf29   : > { %v12513_v18 = vpop.f32.mrb[40].mxu1 }
 0xf2a   : > { %v4861_v31 = vadd.f32 %v12513_v18, %v10542_v5  ;;  %v4855_v14 = vpop.f32.mrb[41].mxu1 }
 0xf2b   : > { %v4856_v24 = vadd.f32 %v10542_v5, %v4855_v14 }
 0xf2c   : > { %v18558_v60 = vadd.f32 %v4861_v31, %v17914_v46 }
 0xf2d   : > { %v18561_v51 = vadd.f32 %v4856_v24, %v17910_v0 }
 0xf2e   : > { %v4905_v11 = vsel %vm651_vm2, %v18558_v60, 0.0  ;;  %v4935_v32 = vmul.f32 %v18558_v60, %v18558_v60 }
 0xf2f   : > { %4906 = vadd.xlane.f32.xlu1 %v4905_v11  ;;  %v4902_v17 = vsel %vm651_vm2, %v18561_v51, 0.0  ;;  %v4934_v46 = vmul.f32 %v18561_v51, %v18561_v51 }
 0xf30   : > { %4903 = vadd.xlane.f32.xlu0 %v4902_v17  ;;  %v4945_v45 = vsel %vm651_vm2, %v4935_v32, 0.0 }
 0xf31   : > { %v4942_v20 = vsel %vm651_vm2, %v4934_v46, 0.0 }
 0xf34   : > { %4946 = vadd.xlane.f32.xlu0 %v4945_v45  ;;  %v12516_v3 = vpop.f32.mrb[42].mxu1 }
 0xf35   : > { %v4871_v0 = vadd.f32 %v12516_v3, %v10542_v5  ;;  %v4865_v59 = vpop.f32.mrb[43].mxu1 }
 0xf36   : > { %v4866_v37 = vadd.f32 %v10542_v5, %v4865_v59 }
 0xf37   : > { %v18573_v57 = vadd.f32 %v4871_v0, %v17927_v2 }
 0xf38   : > { %v18577_v8 = vadd.f32 %v4866_v37, %v17924_v28  ;;  %4943 = vadd.xlane.f32.xlu0 %v4942_v20 }
 0xf39   : > { %v4911_v29 = vsel %vm651_vm2, %v18573_v57, 0.0  ;;  %v4937_v2 = vmul.f32 %v18573_v57, %v18573_v57 }
 0xf3a   : > { %v4908_v62 = vsel %vm651_vm2, %v18577_v8, 0.0  ;;  %v4936_v10 = vmul.f32 %v18577_v8, %v18577_v8 }
 0xf3b   : > { %4909 = vadd.xlane.f32.xlu1 %v4908_v62  ;;  %v4951_v28 = vsel %vm651_vm2, %v4937_v2, 0.0 }
 0xf3c   : > { %4912 = vadd.xlane.f32.xlu0 %v4911_v29  ;;  %v4948_v61 = vsel %vm651_vm2, %v4936_v10, 0.0  ;;  %v10451_v10 = vld [vmem:[%s20755_s8 + $0x40] sm:$0xff]  ;;  %v10452_v29 = vld [vmem:[%s20755_s8 + $0x48] sm:$0xff] }
 0xf3d   : > { %v14163_v2 = vpack.c.bf16 %v10452_v29, %v10451_v10 }
 0xf3f   : > { %4949 = vadd.xlane.f32.xlu1 %v4948_v61  ;;  %14164 = vmatprep.subr.bf16.mxu1 %v14163_v2 }
 0xf40   : > { %4952 = vadd.xlane.f32.xlu0 %v4951_v28 }
 0xf69   : > { %v12519_v16 = vpop.f32.mrb[44].mxu1 }
 0xf6a   : > { %v4881_v36 = vadd.f32 %v12519_v16, %v10542_v5  ;;  %v4875_v33 = vpop.f32.mrb[45].mxu1 }
 0xf6b   : > { %v4876_v27 = vadd.f32 %v10542_v5, %v4875_v33 }
 0xf6c   : > { %v18602_v18 = vadd.f32 %v4881_v36, %v17942_v1 }
 0xf6d   : > { %v18605_v31 = vadd.f32 %v4876_v27, %v17938_v55 }
 0xf6e   : > { %v4917_v14 = vsel %vm651_vm2, %v18602_v18, 0.0  ;;  %v4939_v24 = vmul.f32 %v18602_v18, %v18602_v18 }
 0xf6f   : > { %4918 = vadd.xlane.f32.xlu0 %v4917_v14  ;;  %v4914_v11 = vsel %vm651_vm2, %v18605_v31, 0.0  ;;  %v4938_v17 = vmul.f32 %v18605_v31, %v18605_v31 }
 0xf70   : > { %4915 = vadd.xlane.f32.xlu1 %v4914_v11  ;;  %v4957_v55 = vsel %vm651_vm2, %v4939_v24, 0.0 }
 0xf71   : > { %v12522_v32 = vpop.f32.mrb[46].mxu1  ;;  %v4954_v3 = vsel %vm651_vm2, %v4938_v17, 0.0 }
 0xf72   : > { %v4891_v1 = vadd.f32 %v12522_v32, %v10542_v5  ;;  %v4885_v45 = vpop.f32.mrb[47].mxu1 }
 0xf73   : > { %v4886_v46 = vadd.f32 %v10542_v5, %v4885_v45  ;;  %4958 = vadd.xlane.f32.xlu0 %v4957_v55 }
 0xf74   : > { %v18618_v0 = vadd.f32 %v4891_v1, %v17955_v26  ;;  %4955 = vadd.xlane.f32.xlu1 %v4954_v3 }
 0xf75   : > { %v18621_v59 = vadd.f32 %v4886_v46, %v17952_v9 }
 0xf76   : > { %v4923_v37 = vsel %vm651_vm2, %v18618_v0, 0.0  ;;  %v4941_v20 = vmul.f32 %v18618_v0, %v18618_v0 }
 0xf77   : > { %4924 = vadd.xlane.f32.xlu0 %v4923_v37  ;;  %v4920_v5 = vsel %vm651_vm2, %v18621_v59, 0.0  ;;  %v4940_v62 = vmul.f32 %v18621_v59, %v18621_v59 }
 0xf78   : > { %4921 = vadd.xlane.f32.xlu1 %v4920_v5  ;;  %v4963_v26 = vsel %vm651_vm2, %v4941_v20, 0.0 }
 0xf79   : > { %v4960_v9 = vsel %vm651_vm2, %v4940_v62, 0.0 }
 0xf7b   : > { %4964 = vadd.xlane.f32.xlu0 %v4963_v26  ;;  %v18642_v26 = vld [vmem:[%s20757_s10 + $0x4] sm:$0xf] }
 0xf7c   : > { %4961 = vadd.xlane.f32.xlu1 %v4960_v9 }
 0xfbc   : > { %v4907_v61 = vpop.xlane.xlu1 %4906 }
 0xfbd   : > { %v4904_v28 = vpop.xlane.xlu0 %4903  ;;  %v4927_v63 = vmul.f32 0.03125, %v4907_v61 }
 0xfbe   : > { %v4926_v34 = vmul.f32 0.03125, %v4904_v28  ;;  %v18647_v28 = vrot.slane %v18642_v26, %v17708_v19 }
 0xfbf   : > { %v4975_v58 = vmul.f32 %v4927_v63, %v4927_v63  ;;  %v4991_v29 = vsub.f32 %v18558_v60, %v4927_v63  ;;  %v10453_v63 = vld [vmem:[%s20755_s8 + $0x50] sm:$0xff] }
 0xfc0   : > { %v4974_v36 = vmul.f32 %v4926_v34, %v4926_v34 }
 0xfc1   : > { %v4947_v6 = vpop.xlane.xlu0 %4946 }
 0xfc2   : > { %v4967_v52 = vmul.f32 0.03125, %v4947_v6 }
 0xfc4   : > { %v4983_v30 = vsub.f32 %v4967_v52, %v4975_v58  ;;  %v4990_v58 = vsub.f32 %v18561_v51, %v4926_v34 }
 0xfc5   : > { %v4944_v16 = vpop.xlane.xlu0 %4943 }
 0xfc6   : > { %v4999_v33 = vadd.f32 1e-05, %v4983_v30  ;;  %v4966_v27 = vmul.f32 0.03125, %v4944_v16 }
 0xfc8   : > { %16383 = vrsqrt.f32 %v4999_v33  ;;  %v4982_v14 = vsub.f32 %v4966_v27, %v4974_v36  ;;  %v4910_v24 = vpop.xlane.xlu1 %4909  ;;  %v18653_v36 = vrot.slane %v18642_v26, %v17721_v12  ;;  %v10454_v33 = vld [vmem:[%s20755_s8 + $0x58] sm:$0xff] }
 0xfc9   : > { %v4928_v11 = vmul.f32 0.03125, %v4910_v24  ;;  %v4913_v17 = vpop.xlane.xlu0 %4912 }
 0xfca   : > { %v4998_v32 = vadd.f32 1e-05, %v4982_v14  ;;  %v4929_v1 = vmul.f32 0.03125, %v4913_v17  ;;  %v14167_v14 = vpack.c.bf16 %v10454_v33, %v10453_v63 }
 0xfcb   : > { %v4976_v55 = vmul.f32 %v4928_v11, %v4928_v11  ;;  %v4992_v34 = vsub.f32 %v18577_v8, %v4928_v11 }
 0xfcc   : > { %16385 = vrsqrt.f32 %v4998_v32  ;;  %v4950_v45 = vpop.xlane.xlu1 %4949  ;;  %v4977_v37 = vmul.f32 %v4929_v1, %v4929_v1  ;;  %v4993_v17 = vsub.f32 %v18573_v57, %v4929_v1  ;;  %v10455_v32 = vld [vmem:[%s20755_s8 + $0x60] sm:$0xff] }
 0xfcd   : > { %v4968_v46 = vmul.f32 0.03125, %v4950_v45  ;;  %v4953_v3 = vpop.xlane.xlu0 %4952  ;;  %v10456_v45 = vld [vmem:[%s20755_s8 + $0x68] sm:$0xff] }
 0xfce   : > { %v4969_v20 = vmul.f32 0.03125, %v4953_v3  ;;  %v14171_v1 = vpack.c.bf16 %v10456_v45, %v10455_v32 }
 0xfcf   : > { %v4984_v5 = vsub.f32 %v4968_v46, %v4976_v55 }
 0xfd0   : > { %v4985_v62 = vsub.f32 %v4969_v20, %v4977_v37 }
 0xfd1   : > { %v5000_v9 = vadd.f32 1e-05, %v4984_v5 }
 0xfd2   : > { %v16384_v10 = vpop.eup %16383  ;;  %v5001_v61 = vadd.f32 1e-05, %v4985_v62 }
 0xfd3   : > { %16387 = vrsqrt.f32 %v5000_v9  ;;  %v5015_v6 = vmul.f32 %v16384_v10, %v4991_v29 }
 0xfd4   : > { %16389 = vrsqrt.f32 %v5001_v61 }
 0xfd5   : > { %v5027_v16 = vmul.f32 %v18647_v28, %v5015_v6 }
 0xfd6   : > { %v16386_v52 = vpop.eup %16385 }
 0xfd7   : > { %v5014_v30 = vmul.f32 %v16386_v52, %v4990_v58  ;;  %v18667_v27 = vadd.f32 %v18653_v36, %v5027_v16 }
 0xfd9   : > { %v5026_v60 = vmul.f32 %v18647_v28, %v5014_v30 }
 0xfdb   : > { %v18663_v51 = vadd.f32 %v18653_v36, %v5026_v60 }
 0xfdd   : > { %v16388_v24 = vpop.eup %16387  ;;  %12531 = vmatprep.mubr.msk.f32.mxu1 %vm651_vm2, %v18663_v51 }
 0xfde   : > { %v16390_v55 = vpop.eup %16389  ;;  %12532 = vmatmul.mubr.msk.f32.vlgmr.msra.gmra.mrb[48].mxu1 %vm651_vm2, %v18667_v27  ;;  %v5016_v8 = vmul.f32 %v16388_v24, %v4992_v34 }
 0xfdf   : > { %v5017_v11 = vmul.f32 %v16390_v55, %v4993_v17  ;;  %14166 = vmatpush3.bf16.msra.mxu1 %v14163_v2 }
 0xfe0   : > { %v5028_v57 = vmul.f32 %v18647_v28, %v5016_v8  ;;  %14168 = vmatprep.subr.bf16.mxu1 %v14167_v14 }
 0xfe1   : > { %v5029_v46 = vmul.f32 %v18647_v28, %v5017_v11 }
 0xfe2   : > { %v18683_v3 = vadd.f32 %v18653_v36, %v5028_v57 }
 0xfe3   : > { %v18686_v37 = vadd.f32 %v18653_v36, %v5029_v46  ;;  %14170 = vmatpush3.bf16.msra.mxu1 %v14167_v14 }
 0xfe4   : > { %12534 = vmatprep.mubr.msk.f32.mxu1 %vm651_vm2, %v18683_v3  ;;  %14172 = vmatprep.subr.bf16.mxu1 %v14171_v1 }
 0xfe5   : > { %12535 = vmatmul.mubr.msk.f32.gmra.mrb[50].mxu1 %vm651_vm2, %v18686_v37 }
 0xfe7   : > { %14174 = vmatpush3.bf16.msra.mxu1 %v14171_v1 }
 0xffc   : > { %v4919_v2 = vpop.xlane.xlu0 %4918 }
 0xffd   : > { %v4931_v20 = vmul.f32 0.03125, %v4919_v2  ;;  %v4916_v5 = vpop.xlane.xlu1 %4915 }
 0xffe   : > { %v4930_v62 = vmul.f32 0.03125, %v4916_v5 }
 0xfff   : > { %v4979_v10 = vmul.f32 %v4931_v20, %v4931_v20  ;;  %v4995_v2 = vsub.f32 %v18602_v18, %v4931_v20 }
0x1000   : > { %v4959_v9 = vpop.xlane.xlu0 %4958  ;;  %v4978_v6 = vmul.f32 %v4930_v62, %v4930_v62 }
0x1001   : > { %v4971_v29 = vmul.f32 0.03125, %v4959_v9  ;;  %v4956_v61 = vpop.xlane.xlu1 %4955  ;;  %v4994_v9 = vsub.f32 %v18605_v31, %v4930_v62 }
0x1002   : > { %v4970_v58 = vmul.f32 0.03125, %v4956_v61 }
0x1003   : > { %v4987_v52 = vsub.f32 %v4971_v29, %v4979_v10 }
0x1004   : > { %v4986_v30 = vsub.f32 %v4970_v58, %v4978_v6  ;;  %v4925_v16 = vpop.xlane.xlu0 %4924 }
0x1005   : > { %v5003_v60 = vadd.f32 1e-05, %v4987_v52  ;;  %v4933_v63 = vmul.f32 0.03125, %v4925_v16  ;;  %v4922_v33 = vpop.xlane.xlu1 %4921 }
0x1006   : > { %v5002_v34 = vadd.f32 1e-05, %v4986_v30  ;;  %v4932_v14 = vmul.f32 0.03125, %v4922_v33 }
0x1007   : > { %16391 = vrsqrt.f32 %v5003_v60  ;;  %v4981_v17 = vmul.f32 %v4933_v63, %v4933_v63  ;;  %v4997_v30 = vsub.f32 %v18618_v0, %v4933_v63 }
0x1008   : > { %16393 = vrsqrt.f32 %v5002_v34  ;;  %v4965_v24 = vpop.xlane.xlu0 %4964  ;;  %v4980_v55 = vmul.f32 %v4932_v14, %v4932_v14  ;;  %v4996_v20 = vsub.f32 %v18621_v59, %v4932_v14  ;;  %v10457_v59 = vld [vmem:[%s20755_s8 + $0x70] sm:$0xff] }
0x1009   : > { %v4973_v32 = vmul.f32 0.03125, %v4965_v24  ;;  %v4962_v45 = vpop.xlane.xlu1 %4961 }
0x100a   : > { %v4972_v8 = vmul.f32 0.03125, %v4962_v45 }
0x100b   : > { %v4989_v11 = vsub.f32 %v4973_v32, %v4981_v17 }
0x100c   : > { %v4988_v57 = vsub.f32 %v4972_v8, %v4980_v55 }
0x100d   : > { %v5005_v1 = vadd.f32 1e-05, %v4989_v11 }
0x100e   : > { %v5004_v46 = vadd.f32 1e-05, %v4988_v57 }
0x100f   : > { %16395 = vrsqrt.f32 %v5005_v1 }
0x1010   : > { %16397 = vrsqrt.f32 %v5004_v46 }
0x1011   : > { %v16392_v5 = vpop.eup %16391 }
0x1012   : > { %v16394_v10 = vpop.eup %16393  ;;  %v5019_v29 = vmul.f32 %v16392_v5, %v4995_v2 }
0x1013   : > { %v5018_v61 = vmul.f32 %v16394_v10, %v4994_v9 }
0x1014   : > { %v5031_v6 = vmul.f32 %v18647_v28, %v5019_v29 }
0x1015   : > { %v5030_v58 = vmul.f32 %v18647_v28, %v5018_v61 }
0x1016   : > { %v18701_v16 = vadd.f32 %v18653_v36, %v5031_v6 }
0x1017   : > { %v18697_v52 = vadd.f32 %v18653_v36, %v5030_v58 }
0x1019   : > { %v16396_v18 = vpop.eup %16395  ;;  %12537 = vmatprep.mubr.msk.f32.mxu1 %vm651_vm2, %v18697_v52 }
0x101a   : > { %v16398_v31 = vpop.eup %16397  ;;  %12538 = vmatmul.mubr.msk.f32.gmra.mrb[52].mxu1 %vm651_vm2, %v18701_v16  ;;  %v5021_v62 = vmul.f32 %v16396_v18, %v4997_v30 }
0x101b   : > { %v5020_v60 = vmul.f32 %v16398_v31, %v4996_v20 }
0x101c   : > { %v5033_v33 = vmul.f32 %v18647_v28, %v5021_v62 }
0x101d   : > { %v5032_v34 = vmul.f32 %v18647_v28, %v5020_v60  ;;  %v10458_v28 = vld [vmem:[%s20755_s8 + $0x78] sm:$0xff] }
0x101e   : > { %v18714_v63 = vadd.f32 %v18653_v36, %v5033_v33  ;;  %v14175_v14 = vpack.c.bf16 %v10458_v28, %v10457_v59  ;;  %v10560_v33 = vld [vmem:[%s20756_s9 + $0x1] ss:$0 sm:$0xff] }
0x101f   : > { %v18711_v0 = vadd.f32 %v18653_v36, %v5032_v34  ;;  %v10551_v36 = vld [vmem:[%s20754_s7 + $0x1] ss:$0 sm:$0xff] }
0x1020   : > { %14176 = vmatprep.subr.bf16.mxu1 %v14175_v14 }
0x1021   : > { %12540 = vmatprep.mubr.msk.f32.mxu1 %vm651_vm2, %v18711_v0  ;;  %14178 = vmatpush3.bf16.msra.mxu1 %v14175_v14 }
0x1022   : > { %12541 = vmatmul.mubr.msk.f32.gmra.mrb[54].mxu1 %vm651_vm2, %v18714_v63 }
0x10b1   : > { %v12533_v24 = vpop.f32.mrb[48].mxu1 }
0x10b2   : > { %v5148_v17 = vadd.f32 %v12533_v24, %v10551_v36  ;;  %v5142_v32 = vpop.f32.mrb[49].mxu1 }
0x10b3   : > { %v5143_v45 = vadd.f32 %v10551_v36, %v5142_v32 }
0x10b4   : > { %v5182_v8 = vmax.f32 %v5148_v17, 0.0 }
0x10b5   : > { %v5181_v55 = vmax.f32 %v5143_v45, 0.0 }
0x10b7   : > { %12559 = vmatprep.mubr.msk.f32.mxu1 %vm2819_vm4, %v5181_v55 }
0x10b8   : > { %v12536_v11 = vpop.f32.mrb[50].mxu1  ;;  %12560 = vmatmul.mubr.msk.f32.vlgmr.msra.gmra.mrb[56].mxu1 %vm2819_vm4, %v5182_v8 }
0x10b9   : > { %v5158_v57 = vadd.f32 %v12536_v11, %v10551_v36  ;;  %v5152_v1 = vpop.f32.mrb[51].mxu1 }
0x10ba   : > { %v5153_v46 = vadd.f32 %v10551_v36, %v5152_v1 }
0x10bb   : > { %v5184_v5 = vmax.f32 %v5158_v57, 0.0 }
0x10bc   : > { %v5183_v2 = vmax.f32 %v5153_v46, 0.0 }
0x10be   : > { %12562 = vmatprep.mubr.msk.f32.mxu1 %vm2819_vm4, %v5183_v2 }
0x10bf   : > { %12563 = vmatmul.mubr.msk.f32.gmra.mrb[58].mxu1 %vm2819_vm4, %v5184_v5 }
0x10ed   : > { %v12539_v9 = vpop.f32.mrb[52].mxu1 }
0x10ee   : > { %v5168_v10 = vadd.f32 %v12539_v9, %v10551_v36  ;;  %v5162_v29 = vpop.f32.mrb[53].mxu1 }
0x10ef   : > { %v5163_v61 = vadd.f32 %v10551_v36, %v5162_v29 }
0x10f0   : > { %v5186_v58 = vmax.f32 %v5168_v10, 0.0 }
0x10f1   : > { %v5185_v6 = vmax.f32 %v5163_v61, 0.0  ;;  %v10569_v61 = vld [vmem:[%s20749_s2 + $0x40] sm:$0xff] }
0x10f3   : > { %12565 = vmatprep.mubr.msk.f32.mxu1 %vm2819_vm4, %v5185_v6  ;;  %v10570_v6 = vld [vmem:[%s20749_s2 + $0x48] sm:$0xff] }
0x10f4   : > { %12566 = vmatmul.mubr.msk.f32.gmra.mrb[60].mxu1 %vm2819_vm4, %v5186_v58  ;;  %v10571_v58 = vld [vmem:[%s20749_s2 + $0x50] sm:$0xff] }
0x10f5   : > { %v12542_v30 = vpop.f32.mrb[54].mxu1 }
0x10f6   : > { %v5178_v18 = vadd.f32 %v12542_v30, %v10551_v36  ;;  %v5172_v20 = vpop.f32.mrb[55].mxu1  ;;  %v14179_v30 = vpack.c.bf16 %v10570_v6, %v10569_v61 }
0x10f7   : > { %v5173_v31 = vadd.f32 %v10551_v36, %v5172_v20 }
0x10f8   : > { %v5188_v60 = vmax.f32 %v5178_v18, 0.0  ;;  %v10572_v18 = vld [vmem:[%s20749_s2 + $0x58] sm:$0xff]  ;;  %14180 = vmatprep.subr.bf16.mxu0 %v14179_v30 }
0x10f9   : > { %v5187_v62 = vmax.f32 %v5173_v31, 0.0  ;;  %v14183_v20 = vpack.c.bf16 %v10572_v18, %v10571_v58  ;;  %14182 = vmatpush3.bf16.msra.mxu0 %v14179_v30 }
0x10fb   : > { %12568 = vmatprep.mubr.msk.f32.mxu1 %vm2819_vm4, %v5187_v62  ;;  %14184 = vmatprep.subr.bf16.mxu0 %v14183_v20 }
0x10fc   : > { %12569 = vmatmul.mubr.msk.f32.gmra.mrb[62].mxu1 %vm2819_vm4, %v5188_v60 }
0x10fd   : > { %14186 = vmatpush3.bf16.msra.mxu0 %v14183_v20 }
0x118b   : > { %v12561_v34 = vpop.f32.mrb[56].mxu1 }
0x118c   : > { %v5291_v59 = vadd.f32 %v12561_v34, %v10560_v33  ;;  %v5285_v28 = vpop.f32.mrb[57].mxu1 }
0x118d   : > { %v5286_v14 = vadd.f32 %v10560_v33, %v5285_v28 }
0x118e   : > { %v18741_v24 = vadd.f32 %v5291_v59, %v18667_v27 }
0x118f   : > { %v18744_v17 = vadd.f32 %v5286_v14, %v18663_v51 }
0x1190   : > { %v5335_v36 = vsel %vm651_vm2, %v18741_v24, 0.0  ;;  %v5365_v32 = vmul.f32 %v18741_v24, %v18741_v24 }
0x1191   : > { %5336 = vadd.xlane.f32.xlu0 %v5335_v36  ;;  %v5332_v45 = vsel %vm651_vm2, %v18744_v17, 0.0  ;;  %v5364_v55 = vmul.f32 %v18744_v17, %v18744_v17 }
0x1192   : > { %v12564_v8 = vpop.f32.mrb[58].mxu1  ;;  %5333 = vadd.xlane.f32.xlu1 %v5332_v45  ;;  %v5375_v51 = vsel %vm651_vm2, %v5365_v32, 0.0 }
0x1193   : > { %v5301_v27 = vadd.f32 %v12564_v8, %v10560_v33  ;;  %v5295_v11 = vpop.f32.mrb[59].mxu1  ;;  %v5372_v46 = vsel %vm651_vm2, %v5364_v55, 0.0 }
0x1194   : > { %v5296_v57 = vadd.f32 %v10560_v33, %v5295_v11 }
0x1195   : > { %v18756_v1 = vadd.f32 %v5301_v27, %v18686_v37  ;;  %5376 = vadd.xlane.f32.xlu0 %v5375_v51 }
0x1196   : > { %v18760_v2 = vadd.f32 %v5296_v57, %v18683_v3  ;;  %5373 = vadd.xlane.f32.xlu1 %v5372_v46 }
0x1197   : > { %v5341_v5 = vsel %vm651_vm2, %v18756_v1, 0.0  ;;  %v5367_v10 = vmul.f32 %v18756_v1, %v18756_v1 }
0x1198   : > { %v5338_v9 = vsel %vm651_vm2, %v18760_v2, 0.0  ;;  %v5366_v37 = vmul.f32 %v18760_v2, %v18760_v2 }
0x1199   : > { %5342 = vadd.xlane.f32.xlu0 %v5341_v5  ;;  %v5381_v29 = vsel %vm651_vm2, %v5367_v10, 0.0 }
0x119a   : > { %5339 = vadd.xlane.f32.xlu1 %v5338_v9  ;;  %v5378_v3 = vsel %vm651_vm2, %v5366_v37, 0.0 }
0x119d   : > { %5382 = vadd.xlane.f32.xlu0 %v5381_v29 }
0x119e   : > { %5379 = vadd.xlane.f32.xlu1 %v5378_v3 }
0x11c7   : > { %v12567_v31 = vpop.f32.mrb[60].mxu1 }
0x11c8   : > { %v5311_v62 = vadd.f32 %v12567_v31, %v10560_v33  ;;  %v5305_v60 = vpop.f32.mrb[61].mxu1 }
0x11c9   : > { %v5306_v34 = vadd.f32 %v10560_v33, %v5305_v60 }
0x11ca   : > { %v18785_v59 = vadd.f32 %v5311_v62, %v18701_v16 }
0x11cb   : > { %v18788_v28 = vadd.f32 %v5306_v34, %v18697_v52 }
0x11cc   : > { %v5347_v14 = vsel %vm651_vm2, %v18785_v59, 0.0  ;;  %v5369_v36 = vmul.f32 %v18785_v59, %v18785_v59 }
0x11cd   : > { %5348 = vadd.xlane.f32.xlu0 %v5347_v14  ;;  %v5344_v32 = vsel %vm651_vm2, %v18788_v28, 0.0  ;;  %v5368_v45 = vmul.f32 %v18788_v28, %v18788_v28 }
0x11ce   : > { %5345 = vadd.xlane.f32.xlu1 %v5344_v32  ;;  %v5387_v52 = vsel %vm651_vm2, %v5369_v36, 0.0 }
0x11cf   : > { %v12570_v55 = vpop.f32.mrb[62].mxu1  ;;  %v5384_v11 = vsel %vm651_vm2, %v5368_v45, 0.0 }
0x11d0   : > { %v5321_v16 = vadd.f32 %v12570_v55, %v10560_v33  ;;  %v5315_v8 = vpop.f32.mrb[63].mxu1 }
0x11d1   : > { %v5316_v27 = vadd.f32 %v10560_v33, %v5315_v8  ;;  %5388 = vadd.xlane.f32.xlu0 %v5387_v52 }
0x11d2   : > { %v18801_v57 = vadd.f32 %v5321_v16, %v18714_v63  ;;  %5385 = vadd.xlane.f32.xlu1 %v5384_v11 }
0x11d3   : > { %v18804_v51 = vadd.f32 %v5316_v27, %v18711_v0 }
0x11d4   : > { %v5353_v46 = vsel %vm651_vm2, %v18801_v57, 0.0  ;;  %v5371_v5 = vmul.f32 %v18801_v57, %v18801_v57 }
0x11d5   : > { %5354 = vadd.xlane.f32.xlu0 %v5353_v46  ;;  %v5350_v33 = vsel %vm651_vm2, %v18804_v51, 0.0  ;;  %v5370_v9 = vmul.f32 %v18804_v51, %v18804_v51 }
0x11d6   : > { %5351 = vadd.xlane.f32.xlu1 %v5350_v33  ;;  %v5393_v63 = vsel %vm651_vm2, %v5371_v5, 0.0 }
0x11d7   : > { %v5390_v0 = vsel %vm651_vm2, %v5370_v9, 0.0 }
0x11d9   : > { %5394 = vadd.xlane.f32.xlu0 %v5393_v63 }
0x11da   : > { %5391 = vadd.xlane.f32.xlu1 %v5390_v0  ;;  %v18819_v0 = vrot.slane %v18642_v26, %v17892_v38 }
0x121e   : > { %v5337_v10 = vpop.xlane.xlu0 %5336 }
0x121f   : > { %v5357_v37 = vmul.f32 0.03125, %v5337_v10  ;;  %v5334_v29 = vpop.xlane.xlu1 %5333 }
0x1220   : > { %v5356_v3 = vmul.f32 0.03125, %v5334_v29 }
0x1221   : > { %v5405_v6 = vmul.f32 %v5357_v37, %v5357_v37  ;;  %v5421_v63 = vsub.f32 %v18741_v24, %v5357_v37 }
0x1222   : > { %v5377_v61 = vpop.xlane.xlu0 %5376  ;;  %v5404_v18 = vmul.f32 %v5356_v3, %v5356_v3  ;;  %v5420_v29 = vsub.f32 %v18744_v17, %v5356_v3 }
0x1223   : > { %v5397_v58 = vmul.f32 0.03125, %v5377_v61  ;;  %v5374_v30 = vpop.xlane.xlu1 %5373 }
0x1224   : > { %v5396_v20 = vmul.f32 0.03125, %v5374_v30  ;;  %v18824_v30 = vrot.slane %v18642_v26, %v17895_v48 }
0x1225   : > { %v5413_v31 = vsub.f32 %v5397_v58, %v5405_v6 }
0x1226   : > { %v5412_v62 = vsub.f32 %v5396_v20, %v5404_v18  ;;  %v5343_v60 = vpop.xlane.xlu0 %5342 }
0x1227   : > { %v5429_v34 = vadd.f32 1e-05, %v5413_v31  ;;  %v5359_v14 = vmul.f32 0.03125, %v5343_v60  ;;  %v5340_v36 = vpop.xlane.xlu1 %5339 }
0x1228   : > { %v5428_v32 = vadd.f32 1e-05, %v5412_v62  ;;  %v5358_v45 = vmul.f32 0.03125, %v5340_v36 }
0x1229   : > { %16399 = vrsqrt.f32 %v5429_v34  ;;  %v5407_v16 = vmul.f32 %v5359_v14, %v5359_v14  ;;  %v5423_v37 = vsub.f32 %v18756_v1, %v5359_v14 }
0x122a   : > { %16401 = vrsqrt.f32 %v5428_v32  ;;  %v5383_v55 = vpop.xlane.xlu0 %5382  ;;  %v5406_v27 = vmul.f32 %v5358_v45, %v5358_v45  ;;  %v5422_v3 = vsub.f32 %v18760_v2, %v5358_v45 }
0x122b   : > { %v5399_v8 = vmul.f32 0.03125, %v5383_v55  ;;  %v5380_v52 = vpop.xlane.xlu1 %5379 }
0x122c   : > { %v5398_v11 = vmul.f32 0.03125, %v5380_v52 }
0x122d   : > { %v5415_v46 = vsub.f32 %v5399_v8, %v5407_v16 }
0x122e   : > { %v5414_v5 = vsub.f32 %v5398_v11, %v5406_v27 }
0x122f   : > { %v5431_v33 = vadd.f32 1e-05, %v5415_v46 }
0x1230   : > { %v5430_v9 = vadd.f32 1e-05, %v5414_v5 }
0x1231   : > { %16403 = vrsqrt.f32 %v5431_v33 }
0x1232   : > { %16405 = vrsqrt.f32 %v5430_v9 }
0x1233   : > { %v16400_v10 = vpop.eup %16399 }
0x1234   : > { %v16402_v61 = vpop.eup %16401  ;;  %v5445_v6 = vmul.f32 %v16400_v10, %v5421_v63 }
0x1235   : > { %v5444_v58 = vmul.f32 %v16402_v61, %v5420_v29 }
0x1236   : > { %v5457_v18 = vmul.f32 %v18819_v0, %v5445_v6 }
0x1237   : > { %v5456_v20 = vmul.f32 %v18819_v0, %v5444_v58 }
0x1238   : > { %v18833_v31 = vadd.f32 %v18824_v30, %v5457_v18 }
0x1239   : > { %v18829_v24 = vadd.f32 %v18824_v30, %v5456_v20 }
0x123b   : > { %v16404_v17 = vpop.eup %16403  ;;  %12579 = vmatprep.mubr.msk.f32.mxu0 %vm651_vm2, %v18829_v24 }
0x123c   : > { %v16406_v26 = vpop.eup %16405  ;;  %12580 = vmatmul.mubr.msk.f32.vlgmr.msra.gmra.mrb[56].mxu0 %vm651_vm2, %v18833_v31  ;;  %v5447_v62 = vmul.f32 %v16404_v17, %v5423_v37 }
0x123d   : > { %v5446_v60 = vmul.f32 %v16406_v26, %v5422_v3 }
0x123e   : > { %v5459_v34 = vmul.f32 %v18819_v0, %v5447_v62 }
0x123f   : > { %v5458_v36 = vmul.f32 %v18819_v0, %v5446_v60 }
0x1240   : > { %v18846_v14 = vadd.f32 %v18824_v30, %v5459_v34 }
0x1241   : > { %v18843_v1 = vadd.f32 %v18824_v30, %v5458_v36 }
0x1243   : > { %12582 = vmatprep.mubr.msk.f32.mxu0 %vm651_vm2, %v18843_v1 }
0x1244   : > { %12583 = vmatmul.mubr.msk.f32.gmra.mrb[58].mxu0 %vm651_vm2, %v18846_v14 }
0x125a   : > { %v5349_v2 = vpop.xlane.xlu0 %5348 }
0x125b   : > { %v5361_v32 = vmul.f32 0.03125, %v5349_v2  ;;  %v5346_v45 = vpop.xlane.xlu1 %5345 }
0x125c   : > { %v5360_v55 = vmul.f32 0.03125, %v5346_v45 }
0x125d   : > { %v5409_v8 = vmul.f32 %v5361_v32, %v5361_v32  ;;  %v5425_v36 = vsub.f32 %v18785_v59, %v5361_v32 }
0x125e   : > { %v5389_v16 = vpop.xlane.xlu0 %5388  ;;  %v5408_v11 = vmul.f32 %v5360_v55, %v5360_v55  ;;  %v5424_v45 = vsub.f32 %v18788_v28, %v5360_v55 }
0x125f   : > { %v5401_v52 = vmul.f32 0.03125, %v5389_v16  ;;  %v5386_v27 = vpop.xlane.xlu1 %5385 }
0x1260   : > { %v5400_v46 = vmul.f32 0.03125, %v5386_v27 }
0x1261   : > { %v5417_v5 = vsub.f32 %v5401_v52, %v5409_v8 }
0x1262   : > { %v5416_v33 = vsub.f32 %v5400_v46, %v5408_v11  ;;  %v5355_v9 = vpop.xlane.xlu0 %5354 }
0x1263   : > { %v5433_v63 = vadd.f32 1e-05, %v5417_v5  ;;  %v5363_v10 = vmul.f32 0.03125, %v5355_v9  ;;  %v5352_v29 = vpop.xlane.xlu1 %5351 }
0x1264   : > { %v5432_v61 = vadd.f32 1e-05, %v5416_v33  ;;  %v5362_v6 = vmul.f32 0.03125, %v5352_v29 }
0x1265   : > { %16407 = vrsqrt.f32 %v5433_v63  ;;  %v5411_v18 = vmul.f32 %v5363_v10, %v5363_v10  ;;  %v5427_v5 = vsub.f32 %v18801_v57, %v5363_v10 }
0x1266   : > { %16409 = vrsqrt.f32 %v5432_v61  ;;  %v5395_v58 = vpop.xlane.xlu0 %5394  ;;  %v5410_v17 = vmul.f32 %v5362_v6, %v5362_v6  ;;  %v5426_v32 = vsub.f32 %v18804_v51, %v5362_v6  ;;  %v18883_v51 = vld [vmem:[%s20750_s3 + $0x2] ss:$0 sm:$0xff] }
0x1267   : > { %v5403_v20 = vmul.f32 0.03125, %v5395_v58  ;;  %v5392_v37 = vpop.xlane.xlu1 %5391 }
0x1268   : > { %v5402_v3 = vmul.f32 0.03125, %v5392_v37 }
0x1269   : > { %v5419_v26 = vsub.f32 %v5403_v20, %v5411_v18 }
0x126a   : > { %v5418_v62 = vsub.f32 %v5402_v3, %v5410_v17 }
0x126b   : > { %v5435_v60 = vadd.f32 1e-05, %v5419_v26 }
0x126c   : > { %v5434_v34 = vadd.f32 1e-05, %v5418_v62 }
0x126d   : > { %16411 = vrsqrt.f32 %v5435_v60 }
0x126e   : > { %16413 = vrsqrt.f32 %v5434_v34 }
0x126f   : > { %v16408_v2 = vpop.eup %16407 }
0x1270   : > { %v16410_v16 = vpop.eup %16409  ;;  %v5449_v8 = vmul.f32 %v16408_v2, %v5425_v36 }
0x1271   : > { %v5448_v52 = vmul.f32 %v16410_v16, %v5424_v45 }
0x1272   : > { %v5461_v27 = vmul.f32 %v18819_v0, %v5449_v8 }
0x1273   : > { %v5460_v11 = vmul.f32 %v18819_v0, %v5448_v52 }
0x1274   : > { %v18861_v33 = vadd.f32 %v18824_v30, %v5461_v27 }
0x1275   : > { %v18857_v46 = vadd.f32 %v18824_v30, %v5460_v11 }
0x1277   : > { %v16412_v59 = vpop.eup %16411  ;;  %12585 = vmatprep.mubr.msk.f32.mxu0 %vm651_vm2, %v18857_v46 }
0x1278   : > { %v16414_v28 = vpop.eup %16413  ;;  %12586 = vmatmul.mubr.msk.f32.gmra.mrb[60].mxu0 %vm651_vm2, %v18861_v33  ;;  %v5451_v55 = vmul.f32 %v16412_v59, %v5427_v5 }
0x1279   : > { %v5450_v9 = vmul.f32 %v16414_v28, %v5426_v32 }
0x127a   : > { %v5463_v63 = vmul.f32 %v18819_v0, %v5451_v55 }
0x127b   : > { %v5462_v29 = vmul.f32 %v18819_v0, %v5450_v9 }
0x127c   : > { %v18874_v10 = vadd.f32 %v18824_v30, %v5463_v63 }
0x127d   : > { %v18871_v57 = vadd.f32 %v18824_v30, %v5462_v29 }
0x127f   : > { %12588 = vmatprep.mubr.msk.f32.mxu0 %vm651_vm2, %v18871_v57 }
0x1280   : > { %12589 = vmatmul.mubr.msk.f32.gmra.mrb[62].mxu0 %vm651_vm2, %v18874_v10 }
0x130f   : > { %v12581_v61 = vpop.f32.mrb[56].mxu0 }
0x1310   : > { %v18886_v0 = vadd.f32 %v12581_v61, %v18883_v51  ;;  %v5606_v6 = vpop.f32.mrb[57].mxu0  ;;  %v20886_v61 = vld [vmem:[#allocation8_spill] sm:$0xff] }
0x1311   : > { %v18889_v58 = vadd.f32 %v18883_v51, %v5606_v6 }
0x1312   : > { %v5646_v30 = vmul.f32 %v18886_v0, %v16892_v42  ;;  %v5648_v17 = vmul.f32 %v18886_v0, %v16890_v41  ;;  %v5650_v52 = vmul.f32 %v18886_v0, %v16894_v43  ;;  %v5652_v28 = vmul.f32 %v18886_v0, %v16903_v47 }
0x1313   : > { %12623 = vmatprep.mubr.msk.f32.mxu0 %vm651_vm2, %v18889_v58  ;;  %v5645_v18 = vmul.f32 %v18889_v58, %v16888_v40  ;;  %v5647_v37 = vmul.f32 %v18889_v58, %v16886_v39  ;;  %v5649_v8 = vmul.f32 %v18889_v58, %v16896_v44  ;;  %v5651_v32 = vmul.f32 %v18889_v58, %v16908_v50 }
0x1314   : > { %v5653_v6 = vmul.f32 %v18889_v58, %v20886_v61 }
0x1315   : > { %v15647_v20 = vpack.i.bf16 %v5646_v30, %v5645_v18  ;;  %v15657_v34 = vpack.i.bf16 %v5648_v17, %v5647_v37  ;;  %v15667_v55 = vpack.i.bf16 %v5650_v52, %v5649_v8  ;;  %v20887_v30 = vld [vmem:[#allocation7_spill] sm:$0xff] }
0x1316   : > { %v5654_v18 = vmul.f32 %v18886_v0, %v20887_v30 }
0x1317   : > { %v12584_v3 = vpop.f32.mrb[58].mxu0  ;;  %15648 = vrot.lane.b32.xlu1 %v15647_v20, %s16608_s23  ;;  %v15677_v20 = vpack.i.bf16 %v5652_v28, %v5651_v32  ;;  %v20891_v32 = vld [vmem:[#allocation11_spill] sm:$0xff] }
0x1318   : > { %v18903_v26 = vadd.f32 %v12584_v3, %v18883_v51  ;;  %v5616_v62 = vpop.f32.mrb[59].mxu0  ;;  %v5658_v28 = vmul.f32 %v18886_v0, %v20891_v32 }
0x1319   : > { %v18906_v60 = vadd.f32 %v18883_v51, %v5616_v62  ;;  %v20888_v62 = vld [vmem:[#allocation10_spill] sm:$0xff] }
0x131a   : > { %v5662_v36 = vmul.f32 %v18903_v26, %v16892_v42  ;;  %v5664_v2 = vmul.f32 %v18903_v26, %v16890_v41  ;;  %v5666_v59 = vmul.f32 %v18903_v26, %v16894_v43  ;;  %v5668_v29 = vmul.f32 %v18903_v26, %v16903_v47 }
0x131b   : > { %12658 = vmatprep.mubr.msk.f32.mxu1 %vm651_vm2, %v18906_v60  ;;  %15658 = vrot.lane.b32.xlu1 %v15657_v34, %s16608_s23  ;;  %v5661_v45 = vmul.f32 %v18906_v60, %v16888_v40  ;;  %v5663_v16 = vmul.f32 %v18906_v60, %v16886_v39  ;;  %v5665_v5 = vmul.f32 %v18906_v60, %v16896_v44 }
0x131c   : > { %v5667_v63 = vmul.f32 %v18906_v60, %v16908_v50  ;;  %v5669_v17 = vmul.f32 %v18906_v60, %v20886_v61  ;;  %v5670_v3 = vmul.f32 %v18903_v26, %v20887_v30  ;;  %v5655_v34 = vmul.f32 %v18889_v58, %v20888_v62 }
0x131d   : > { %v15652_v27 = vpack.i.bf16 %v5662_v36, %v5661_v45  ;;  %v15662_v11 = vpack.i.bf16 %v5664_v2, %v5663_v16  ;;  %v15672_v9 = vpack.i.bf16 %v5666_v59, %v5665_v5  ;;  %v20889_v36 = vld [vmem:[#allocation9_spill] sm:$0xff]  ;;  %v15687_v45 = vpack.i.bf16 %v5654_v18, %v5653_v6 }
0x131e   : > { %v15682_v37 = vpack.i.bf16 %v5668_v29, %v5667_v63  ;;  %v5656_v2 = vmul.f32 %v18886_v0, %v20889_v36  ;;  %v15692_v16 = vpack.i.bf16 %v5670_v3, %v5669_v17  ;;  %v5671_v8 = vmul.f32 %v18906_v60, %v20888_v62  ;;  %v20892_v63 = vld [vmem:[#allocation14_spill] sm:$0xff]  ;;  %v20893_v6 = vld [vmem:[#allocation13_spill] sm:$0xff] }
0x131f   : > { %15653 = vrot.lane.b32.xlu0 %v15652_v27, %s16608_s23  ;;  %15663 = vrot.lane.b32.xlu1 %v15662_v11, %s16608_s23  ;;  %v5672_v52 = vmul.f32 %v18903_v26, %v20889_v36  ;;  %v20890_v11 = vld [vmem:[#allocation12_spill] sm:$0xff]  ;;  %v5659_v29 = vmul.f32 %v18889_v58, %v20892_v63  ;;  %v5660_v18 = vmul.f32 %v18886_v0, %v20893_v6 }
0x1320   : > { %v15697_v27 = vpack.i.bf16 %v5656_v2, %v5655_v34  ;;  %v5657_v5 = vmul.f32 %v18889_v58, %v20890_v11  ;;  %v5675_v17 = vmul.f32 %v18906_v60, %v20892_v63  ;;  %v5676_v3 = vmul.f32 %v18903_v26, %v20893_v6 }
0x1321   : > { %v15702_v59 = vpack.i.bf16 %v5672_v52, %v5671_v8  ;;  %v15717_v34 = vpack.i.bf16 %v5660_v18, %v5659_v29 }
0x1322   : > { %v15722_v2 = vpack.i.bf16 %v5676_v3, %v5675_v17 }
0x1323   : > { %15668 = vrot.lane.b32.xlu0 %v15667_v55, %s16608_s23  ;;  %15673 = vrot.lane.b32.xlu1 %v15672_v9, %s16608_s23  ;;  %v5673_v55 = vmul.f32 %v18906_v60, %v20890_v11  ;;  %v5674_v9 = vmul.f32 %v18903_v26, %v20891_v32 }
0x1327   : > { %15678 = vrot.lane.b32.xlu0 %v15677_v20, %s16608_s23  ;;  %15683 = vrot.lane.b32.xlu1 %v15682_v37, %s16608_s23  ;;  %v15707_v20 = vpack.i.bf16 %v5658_v28, %v5657_v5  ;;  %v15712_v37 = vpack.i.bf16 %v5674_v9, %v5673_v55 }
0x132b   : > { %15688 = vrot.lane.b32.xlu0 %v15687_v45, %s16608_s23  ;;  %15693 = vrot.lane.b32.xlu1 %v15692_v16, %s16608_s23 }
0x132f   : > { %15698 = vrot.lane.b32.xlu0 %v15697_v27, %s16608_s23  ;;  %15703 = vrot.lane.b32.xlu1 %v15702_v59, %s16608_s23 }
0x1333   : > { %15708 = vrot.lane.b32.xlu0 %v15707_v20, %s16608_s23  ;;  %15713 = vrot.lane.b32.xlu1 %v15712_v37, %s16608_s23 }
0x1337   : > { %15718 = vrot.lane.b32.xlu0 %v15717_v34, %s16608_s23  ;;  %15723 = vrot.lane.b32.xlu1 %v15722_v2, %s16608_s23 }
0x134b   : > { %v12587_v45 = vpop.f32.mrb[60].mxu0 }
0x134c   : > { %v18982_v16 = vadd.f32 %v12587_v45, %v18883_v51  ;;  %v5626_v8 = vpop.f32.mrb[61].mxu0 }
0x134d   : > { %v18985_v52 = vadd.f32 %v18883_v51, %v5626_v8 }
0x134e   : > { %v5678_v27 = vmul.f32 %v18982_v16, %v16892_v42  ;;  %v5680_v55 = vmul.f32 %v18982_v16, %v16890_v41  ;;  %v5682_v3 = vmul.f32 %v18982_v16, %v16894_v43 }
0x134f   : > { %v5677_v5 = vmul.f32 %v18985_v52, %v16888_v40  ;;  %v5679_v28 = vmul.f32 %v18985_v52, %v16886_v39  ;;  %v5681_v17 = vmul.f32 %v18985_v52, %v16896_v44  ;;  %v5683_v45 = vmul.f32 %v18985_v52, %v16908_v50 }
0x1351   : > { %v15727_v59 = vpack.i.bf16 %v5678_v27, %v5677_v5  ;;  %v15737_v37 = vpack.i.bf16 %v5680_v55, %v5679_v28  ;;  %v15747_v8 = vpack.i.bf16 %v5682_v3, %v5681_v17  ;;  %v5685_v28 = vmul.f32 %v18985_v52, %v20886_v61 }
0x1352   : > { %v5686_v55 = vmul.f32 %v18982_v16, %v20887_v30  ;;  %v5687_v3 = vmul.f32 %v18985_v52, %v20888_v62 }
0x1353   : > { %15728 = vrot.lane.b32.xlu0 %v15727_v59, %s16608_s23  ;;  %v12590_v9 = vpop.f32.mrb[62].mxu0 }
0x1354   : > { %v18997_v29 = vadd.f32 %v12590_v9, %v18883_v51  ;;  %v5636_v18 = vpop.f32.mrb[63].mxu0 }
0x1355   : > { %v19000_v20 = vadd.f32 %v18883_v51, %v5636_v18  ;;  %v5684_v51 = vmul.f32 %v18982_v16, %v16903_v47 }
0x1356   : > { %v5694_v34 = vmul.f32 %v18997_v29, %v16892_v42  ;;  %v5696_v59 = vmul.f32 %v18997_v29, %v16890_v41  ;;  %v5698_v17 = vmul.f32 %v18997_v29, %v16894_v43 }
0x1357   : > { %15738 = vrot.lane.b32.xlu0 %v15737_v37, %s16608_s23  ;;  %v5693_v2 = vmul.f32 %v19000_v20, %v16888_v40  ;;  %v5695_v5 = vmul.f32 %v19000_v20, %v16886_v39  ;;  %v15757_v9 = vpack.i.bf16 %v5684_v51, %v5683_v45  ;;  %v5697_v37 = vmul.f32 %v19000_v20, %v16896_v44 }
0x1358   : > { %v5699_v45 = vmul.f32 %v19000_v20, %v16908_v50  ;;  %v5700_v51 = vmul.f32 %v18997_v29, %v16903_v47 }
0x1359   : > { %v15732_v27 = vpack.i.bf16 %v5694_v34, %v5693_v2  ;;  %v15742_v18 = vpack.i.bf16 %v5696_v59, %v5695_v5  ;;  %v5688_v34 = vmul.f32 %v18982_v16, %v20889_v36  ;;  %v15767_v2 = vpack.i.bf16 %v5686_v55, %v5685_v28 }
0x135a   : > { %v5689_v5 = vmul.f32 %v18985_v52, %v20890_v11  ;;  %v15762_v59 = vpack.i.bf16 %v5700_v51, %v5699_v45  ;;  %v5701_v28 = vmul.f32 %v19000_v20, %v20886_v61  ;;  %v5702_v55 = vmul.f32 %v18997_v29, %v20887_v30 }
0x135b   : > { %15748 = vrot.lane.b32.xlu0 %v15747_v8, %s16608_s23  ;;  %15733 = vrot.lane.b32.xlu1 %v15732_v27, %s16608_s23  ;;  %v15752_v8 = vpack.i.bf16 %v5698_v17, %v5697_v37  ;;  %v15777_v27 = vpack.i.bf16 %v5688_v34, %v5687_v3  ;;  %v5692_v37 = vmul.f32 %v18982_v16, %v20893_v6 }
0x135c   : > { %v15772_v3 = vpack.i.bf16 %v5702_v55, %v5701_v28  ;;  %v5703_v34 = vmul.f32 %v19000_v20, %v20888_v62  ;;  %v5705_v51 = vmul.f32 %v19000_v20, %v20890_v11  ;;  %v5727_v11 = vmul.f32 %v18906_v60, %v17399_v25 }
0x135d   : > { %v5732_v30 = vmul.f32 %v18903_v26, %v17441_v15 }
0x135f   : > { %15758 = vrot.lane.b32.xlu0 %v15757_v9, %s16608_s23  ;;  %15743 = vrot.lane.b32.xlu1 %v15742_v18, %s16608_s23  ;;  %v5690_v9 = vmul.f32 %v18982_v16, %v20891_v32  ;;  %v5691_v18 = vmul.f32 %v18985_v52, %v20892_v63 }
0x1361   : > { %v15787_v17 = vpack.i.bf16 %v5690_v9, %v5689_v5  ;;  %v5708_v9 = vmul.f32 %v18997_v29, %v20893_v6 }
0x1363   : > { %15768 = vrot.lane.b32.xlu0 %v15767_v2, %s16608_s23  ;;  %15753 = vrot.lane.b32.xlu1 %v15752_v8, %s16608_s23  ;;  %v5704_v2 = vmul.f32 %v18997_v29, %v20889_v36  ;;  %v15797_v8 = vpack.i.bf16 %v5692_v37, %v5691_v18  ;;  %v5728_v36 = vmul.f32 %v18903_v26, %v17409_v56 }
0x1365   : > { %v15782_v45 = vpack.i.bf16 %v5704_v2, %v5703_v34 }
0x1367   : > { %15778 = vrot.lane.b32.xlu0 %v15777_v27, %s16608_s23  ;;  %15763 = vrot.lane.b32.xlu1 %v15762_v59, %s16608_s23  ;;  %v5706_v27 = vmul.f32 %v18997_v29, %v20891_v32  ;;  %v5707_v59 = vmul.f32 %v19000_v20, %v20892_v63 }
0x1369   : > { %v15792_v5 = vpack.i.bf16 %v5706_v27, %v5705_v51  ;;  %v15802_v28 = vpack.i.bf16 %v5708_v9, %v5707_v59 }
0x136b   : > { %15788 = vrot.lane.b32.xlu0 %v15787_v17, %s16608_s23  ;;  %15773 = vrot.lane.b32.xlu1 %v15772_v3, %s16608_s23 }
0x136f   : > { %15798 = vrot.lane.b32.xlu0 %v15797_v8, %s16608_s23  ;;  %15783 = vrot.lane.b32.xlu1 %v15782_v45, %s16608_s23  ;;  %v5713_v8 = vmul.f32 %v18889_v58, %v17393_v4 }
0x1373   : > { %15793 = vrot.lane.b32.xlu1 %v15792_v5, %s16608_s23 }
0x1377   : > { %15803 = vrot.lane.b32.xlu1 %v15802_v28, %s16608_s23 }
0x1389   : > { %v15649_v55 = vpop.permute.xlu1 %15648 }
0x138a   : > { %v15651_v18 = vunpack.i.h.bf16 %v15649_v55  ;;  %v15650_v37 = vunpack.i.l.bf16 %v15649_v55 }
0x138c   : > { %v14187_v17 = vpack.c.bf16 %v15651_v18, %v15650_v37 }
0x138d   : > { %v15659_v3 = vpop.permute.xlu1 %15658 }
0x138e   : > { %v15661_v34 = vunpack.i.h.bf16 %v15659_v3  ;;  %v15660_v2 = vunpack.i.l.bf16 %v15659_v3  ;;  %14189 = vmatprep.subr.msk.bf16.mxu0 %vm17113_vm3, %v14187_v17 }
0x138f   : > { %14192 = vmatpush3.bf16.xpose.msk.msra.mxu0 %vm17113_vm3, %v14187_v17 }
0x1390   : > { %v14193_v45 = vpack.c.bf16 %v15661_v34, %v15660_v2 }
0x1391   : > { %v15654_v51 = vpop.permute.xlu0 %15653  ;;  %v15664_v27 = vpop.permute.xlu1 %15663 }
0x1392   : > { %v15656_v5 = vunpack.i.h.bf16 %v15654_v51  ;;  %v15655_v59 = vunpack.i.l.bf16 %v15654_v51  ;;  %v15666_v9 = vunpack.i.h.bf16 %v15664_v27  ;;  %v15665_v28 = vunpack.i.l.bf16 %v15664_v27  ;;  %14195 = vmatprep.subr.msk.bf16.mxu0 %vm17113_vm3, %v14193_v45 }
0x1394   : > { %v14235_v55 = vpack.c.bf16 %v15656_v5, %v15655_v59  ;;  %v14241_v37 = vpack.c.bf16 %v15666_v9, %v15665_v28 }
0x1395   : > { %v15669_v18 = vpop.permute.xlu0 %15668  ;;  %v15674_v63 = vpop.permute.xlu1 %15673 }
0x1396   : > { %v15671_v3 = vunpack.i.h.bf16 %v15669_v18  ;;  %v15670_v6 = vunpack.i.l.bf16 %v15669_v18  ;;  %14237 = vmatprep.subr.msk.bf16.mxu1 %vm17113_vm3, %v14235_v55  ;;  %v15676_v2 = vunpack.i.h.bf16 %v15674_v63  ;;  %v15675_v51 = vunpack.i.l.bf16 %v15674_v63 }
0x1397   : > { %14198 = vmatpush3.bf16.xpose.msk.msra.mxu0 %vm17113_vm3, %v14193_v45  ;;  %14240 = vmatpush3.bf16.xpose.msk.msra.mxu1 %vm17113_vm3, %v14235_v55 }
0x1398   : > { %v14199_v17 = vpack.c.bf16 %v15671_v3, %v15670_v6  ;;  %14243 = vmatprep.subr.msk.bf16.mxu1 %vm17113_vm3, %v14241_v37  ;;  %v14247_v59 = vpack.c.bf16 %v15676_v2, %v15675_v51 }
0x1399   : > { %v15679_v34 = vpop.permute.xlu0 %15678  ;;  %v15684_v28 = vpop.permute.xlu1 %15683 }
0x139a   : > { %v15681_v27 = vunpack.i.h.bf16 %v15679_v34  ;;  %v15680_v5 = vunpack.i.l.bf16 %v15679_v34  ;;  %14201 = vmatprep.subr.msk.bf16.mxu0 %vm17113_vm3, %v14199_v17  ;;  %v15686_v63 = vunpack.i.h.bf16 %v15684_v28  ;;  %v15685_v6 = vunpack.i.l.bf16 %v15684_v28 }
0x139c   : > { %v14205_v9 = vpack.c.bf16 %v15681_v27, %v15680_v5  ;;  %v14253_v3 = vpack.c.bf16 %v15686_v63, %v15685_v6 }
0x139d   : > { %v15689_v18 = vpop.permute.xlu0 %15688  ;;  %v15694_v2 = vpop.permute.xlu1 %15693 }
0x139e   : > { %v15691_v45 = vunpack.i.h.bf16 %v15689_v18  ;;  %v15690_v55 = vunpack.i.l.bf16 %v15689_v18 }
0x139f   : > { %14204 = vmatpush3.bf16.xpose.msk.msra.mxu0 %vm17113_vm3, %v14199_v17  ;;  %14246 = vmatpush3.bf16.xpose.msk.msra.mxu1 %vm17113_vm3, %v14241_v37  ;;  %v15696_v37 = vunpack.i.h.bf16 %v15694_v2  ;;  %v15695_v17 = vunpack.i.l.bf16 %v15694_v2 }
0x13a0   : > { %14207 = vmatprep.subr.msk.bf16.mxu0 %vm17113_vm3, %v14205_v9  ;;  %14249 = vmatprep.subr.msk.bf16.mxu1 %vm17113_vm3, %v14247_v59  ;;  %v14211_v34 = vpack.c.bf16 %v15691_v45, %v15690_v55 }
0x13a1   : > { %v15699_v51 = vpop.permute.xlu0 %15698  ;;  %v14259_v28 = vpack.c.bf16 %v15696_v37, %v15695_v17  ;;  %v15704_v63 = vpop.permute.xlu1 %15703 }
0x13a2   : > { %v15701_v27 = vunpack.i.h.bf16 %v15699_v51  ;;  %v15700_v5 = vunpack.i.l.bf16 %v15699_v51 }
0x13a4   : > { %v14217_v18 = vpack.c.bf16 %v15701_v27, %v15700_v5 }
0x13a5   : > { %v15709_v6 = vpop.permute.xlu0 %15708  ;;  %v15714_v37 = vpop.permute.xlu1 %15713 }
0x13a6   : > { %v15711_v45 = vunpack.i.h.bf16 %v15709_v6  ;;  %v15710_v55 = vunpack.i.l.bf16 %v15709_v6 }
0x13a7   : > { %14210 = vmatpush3.bf16.xpose.msk.msra.mxu0 %vm17113_vm3, %v14205_v9  ;;  %14252 = vmatpush3.bf16.xpose.msk.msra.mxu1 %vm17113_vm3, %v14247_v59  ;;  %v15706_v59 = vunpack.i.h.bf16 %v15704_v63  ;;  %v15705_v9 = vunpack.i.l.bf16 %v15704_v63 }
0x13a8   : > { %14213 = vmatprep.subr.msk.bf16.mxu0 %vm17113_vm3, %v14211_v34  ;;  %14255 = vmatprep.subr.msk.bf16.mxu1 %vm17113_vm3, %v14253_v3  ;;  %v14223_v51 = vpack.c.bf16 %v15711_v45, %v15710_v55 }
0x13a9   : > { %v14265_v2 = vpack.c.bf16 %v15706_v59, %v15705_v9  ;;  %v15719_v17 = vpop.permute.xlu0 %15718  ;;  %v15724_v59 = vpop.permute.xlu1 %15723 }
0x13aa   : > { %v15721_v27 = vunpack.i.h.bf16 %v15719_v17  ;;  %v15720_v5 = vunpack.i.l.bf16 %v15719_v17 }
0x13ac   : > { %v14229_v6 = vpack.c.bf16 %v15721_v27, %v15720_v5 }
0x13af   : > { %14216 = vmatpush3.bf16.xpose.msk.msra.mxu0 %vm17113_vm3, %v14211_v34  ;;  %14258 = vmatpush3.bf16.xpose.msk.msra.mxu1 %vm17113_vm3, %v14253_v3  ;;  %v15716_v3 = vunpack.i.h.bf16 %v15714_v37  ;;  %v15715_v34 = vunpack.i.l.bf16 %v15714_v37 }
0x13b0   : > { %14219 = vmatprep.subr.msk.bf16.mxu0 %vm17113_vm3, %v14217_v18  ;;  %14261 = vmatprep.subr.msk.bf16.mxu1 %vm17113_vm3, %v14259_v28 }
0x13b1   : > { %v14271_v63 = vpack.c.bf16 %v15716_v3, %v15715_v34 }
0x13b7   : > { %14222 = vmatpush3.bf16.xpose.msk.msra.mxu0 %vm17113_vm3, %v14217_v18  ;;  %14264 = vmatpush3.bf16.xpose.msk.msra.mxu1 %vm17113_vm3, %v14259_v28  ;;  %v15726_v28 = vunpack.i.h.bf16 %v15724_v59  ;;  %v15725_v18 = vunpack.i.l.bf16 %v15724_v59 }
0x13b8   : > { %14225 = vmatprep.subr.msk.bf16.mxu0 %vm17113_vm3, %v14223_v51  ;;  %14267 = vmatprep.subr.msk.bf16.mxu1 %vm17113_vm3, %v14265_v2 }
0x13b9   : > { %v14277_v45 = vpack.c.bf16 %v15726_v28, %v15725_v18 }
0x13bf   : > { %14228 = vmatpush3.bf16.xpose.msk.msra.mxu0 %vm17113_vm3, %v14223_v51  ;;  %14270 = vmatpush3.bf16.xpose.msk.msra.mxu1 %vm17113_vm3, %v14265_v2 }
0x13c0   : > { %14231 = vmatprep.subr.msk.bf16.mxu0 %vm17113_vm3, %v14229_v6  ;;  %14273 = vmatprep.subr.msk.bf16.mxu1 %vm17113_vm3, %v14271_v63 }
0x13c5   : > { %v15729_v9 = vpop.permute.xlu0 %15728 }
0x13c6   : > { %v15731_v55 = vunpack.i.h.bf16 %v15729_v9  ;;  %v15730_v37 = vunpack.i.l.bf16 %v15729_v9 }
0x13c7   : > { %14234 = vmatpush3.bf16.xpose.msk.msra.mxu0 %vm17113_vm3, %v14229_v6  ;;  %14276 = vmatpush3.bf16.xpose.msk.msra.mxu1 %vm17113_vm3, %v14271_v63 }
0x13c8   : > { %v14283_v51 = vpack.c.bf16 %v15731_v55, %v15730_v37  ;;  %14279 = vmatprep.subr.msk.bf16.mxu1 %vm17113_vm3, %v14277_v45 }
0x13c9   : > { %v15739_v2 = vpop.permute.xlu0 %15738 }
0x13ca   : > { %v15741_v17 = vunpack.i.h.bf16 %v15739_v2  ;;  %v15740_v3 = vunpack.i.l.bf16 %v15739_v2  ;;  %14285 = vmatprep.subr.msk.bf16.mxu0 %vm17113_vm3, %v14283_v51 }
0x13cc   : > { %v14289_v27 = vpack.c.bf16 %v15741_v17, %v15740_v3 }
0x13cd   : > { %v15734_v34 = vpop.permute.xlu1 %15733  ;;  %v15749_v6 = vpop.permute.xlu0 %15748 }
0x13ce   : > { %v15736_v5 = vunpack.i.h.bf16 %v15734_v34  ;;  %v15735_v59 = vunpack.i.l.bf16 %v15734_v34  ;;  %12624 = vmatmul.mubr.msk.f32.vlgmr.msra.gmra.mrb[64].mxu0 %vm651_vm2, %v18886_v0  ;;  %v15751_v18 = vunpack.i.h.bf16 %v15749_v6  ;;  %v15750_v9 = vunpack.i.l.bf16 %v15749_v6 }
0x13cf   : > { %14282 = vmatpush3.bf16.xpose.msk.msra.mxu1 %vm17113_vm3, %v14277_v45  ;;  %14288 = vmatpush3.bf16.xpose.msk.msra.mxu0 %vm17113_vm3, %v14283_v51 }
0x13d0   : > { %v14331_v63 = vpack.c.bf16 %v15736_v5, %v15735_v59  ;;  %12693 = vmatprep.mubr.msk.f32.mxu0 %vm651_vm2, %v18985_v52  ;;  %14291 = vmatprep.subr.msk.bf16.mxu0 %vm17113_vm3, %v14289_v27  ;;  %v14295_v2 = vpack.c.bf16 %v15751_v18, %v15750_v9 }
0x13d1   : > { %v15744_v28 = vpop.permute.xlu1 %15743  ;;  %v15759_v45 = vpop.permute.xlu0 %15758 }
0x13d2   : > { %14333 = vmatprep.subr.msk.bf16.mxu1 %vm17113_vm3, %v14331_v63  ;;  %v15746_v55 = vunpack.i.h.bf16 %v15744_v28  ;;  %v15745_v37 = vunpack.i.l.bf16 %v15744_v28  ;;  %v15761_v3 = vunpack.i.h.bf16 %v15759_v45  ;;  %v15760_v34 = vunpack.i.l.bf16 %v15759_v45 }
0x13d4   : > { %v14337_v51 = vpack.c.bf16 %v15746_v55, %v15745_v37  ;;  %v14301_v6 = vpack.c.bf16 %v15761_v3, %v15760_v34 }
0x13d5   : > { %v15754_v17 = vpop.permute.xlu1 %15753  ;;  %v15769_v18 = vpop.permute.xlu0 %15768 }
0x13d6   : > { %12659 = vmatmul.mubr.msk.f32.vlgmr.msra.gmra.mrb[64].mxu1 %vm651_vm2, %v18903_v26  ;;  %v15756_v5 = vunpack.i.h.bf16 %v15754_v17  ;;  %v15755_v59 = vunpack.i.l.bf16 %v15754_v17  ;;  %v15770_v9 = vunpack.i.l.bf16 %v15769_v18 }
0x13d7   : > { %14294 = vmatpush3.bf16.xpose.msk.msra.mxu0 %vm17113_vm3, %v14289_v27  ;;  %14336 = vmatpush3.bf16.xpose.msk.msra.mxu1 %vm17113_vm3, %v14331_v63  ;;  %v15771_v63 = vunpack.i.h.bf16 %v15769_v18 }
0x13d8   : > { %12728 = vmatprep.mubr.msk.f32.mxu1 %vm651_vm2, %v19000_v20  ;;  %14297 = vmatprep.subr.msk.bf16.mxu0 %vm17113_vm3, %v14295_v2  ;;  %v14343_v28 = vpack.c.bf16 %v15756_v5, %v15755_v59 }
0x13d9   : > { %14339 = vmatprep.subr.msk.bf16.mxu1 %vm17113_vm3, %v14337_v51  ;;  %v15764_v27 = vpop.permute.xlu1 %15763  ;;  %v14307_v45 = vpack.c.bf16 %v15771_v63, %v15770_v9  ;;  %v15779_v3 = vpop.permute.xlu0 %15778 }
0x13da   : > { %v15766_v55 = vunpack.i.h.bf16 %v15764_v27  ;;  %v15765_v37 = vunpack.i.l.bf16 %v15764_v27 }
0x13dc   : > { %v14349_v17 = vpack.c.bf16 %v15766_v55, %v15765_v37 }
0x13dd   : > { %v15774_v34 = vpop.permute.xlu1 %15773  ;;  %v15789_v63 = vpop.permute.xlu0 %15788 }
0x13de   : > { %v15776_v5 = vunpack.i.h.bf16 %v15774_v34  ;;  %v15775_v59 = vunpack.i.l.bf16 %v15774_v34 }
0x13df   : > { %14300 = vmatpush3.bf16.xpose.msk.msra.mxu0 %vm17113_vm3, %v14295_v2  ;;  %14342 = vmatpush3.bf16.xpose.msk.msra.mxu1 %vm17113_vm3, %v14337_v51  ;;  %v15781_v2 = vunpack.i.h.bf16 %v15779_v3  ;;  %v15780_v51 = vunpack.i.l.bf16 %v15779_v3 }
0x13e0   : > { %14303 = vmatprep.subr.msk.bf16.mxu0 %vm17113_vm3, %v14301_v6  ;;  %14345 = vmatprep.subr.msk.bf16.mxu1 %vm17113_vm3, %v14343_v28  ;;  %v14355_v27 = vpack.c.bf16 %v15776_v5, %v15775_v59 }
0x13e1   : > { %v14313_v18 = vpack.c.bf16 %v15781_v2, %v15780_v51  ;;  %v15784_v9 = vpop.permute.xlu1 %15783  ;;  %v15799_v2 = vpop.permute.xlu0 %15798 }
0x13e2   : > { %v15786_v55 = vunpack.i.h.bf16 %v15784_v9  ;;  %v15785_v37 = vunpack.i.l.bf16 %v15784_v9 }
0x13e4   : > { %v14361_v34 = vpack.c.bf16 %v15786_v55, %v15785_v37  ;;  %v20895_v55 = vld [vmem:[#allocation16_spill] sm:$0xff]  ;;  %v20896_v37 = vld [vmem:[#allocation17_spill] sm:$0xff] }
0x13e5   : > { %v15794_v51 = vpop.permute.xlu1 %15793 }
0x13e6   : > { %v15796_v5 = vunpack.i.h.bf16 %v15794_v51  ;;  %v15795_v59 = vunpack.i.l.bf16 %v15794_v51  ;;  %v20900_v51 = vld [vmem:[#allocation21_spill] sm:$0xff] }
0x13e7   : > { %14306 = vmatpush3.bf16.xpose.msk.msra.mxu0 %vm17113_vm3, %v14301_v6  ;;  %14348 = vmatpush3.bf16.xpose.msk.msra.mxu1 %vm17113_vm3, %v14343_v28  ;;  %v15791_v6 = vunpack.i.h.bf16 %v15789_v63  ;;  %v15790_v28 = vunpack.i.l.bf16 %v15789_v63 }
0x13e8   : > { %14309 = vmatprep.subr.msk.bf16.mxu0 %vm17113_vm3, %v14307_v45  ;;  %14351 = vmatprep.subr.msk.bf16.mxu1 %vm17113_vm3, %v14349_v17  ;;  %v14367_v9 = vpack.c.bf16 %v15796_v5, %v15795_v59 }
0x13e9   : > { %v14319_v3 = vpack.c.bf16 %v15791_v6, %v15790_v28  ;;  %v15804_v6 = vpop.permute.xlu1 %15803 }
0x13ef   : > { %14312 = vmatpush3.bf16.xpose.msk.msra.mxu0 %vm17113_vm3, %v14307_v45  ;;  %14354 = vmatpush3.bf16.xpose.msk.msra.mxu1 %vm17113_vm3, %v14349_v17  ;;  %v15801_v45 = vunpack.i.h.bf16 %v15799_v2  ;;  %v15800_v17 = vunpack.i.l.bf16 %v15799_v2  ;;  %v20899_v2 = vld [vmem:[#allocation20_spill] sm:$0xff] }
0x13f0   : > { %14315 = vmatprep.subr.msk.bf16.mxu0 %vm17113_vm3, %v14313_v18  ;;  %14357 = vmatprep.subr.msk.bf16.mxu1 %vm17113_vm3, %v14355_v27 }
0x13f1   : > { %v14325_v63 = vpack.c.bf16 %v15801_v45, %v15800_v17  ;;  %v20901_v45 = vld [vmem:[#allocation22_spill] sm:$0xff]  ;;  %v20902_v17 = vld [vmem:[#allocation23_spill] sm:$0xff] }
0x13f7   : > { %14318 = vmatpush3.bf16.xpose.msk.msra.mxu0 %vm17113_vm3, %v14313_v18  ;;  %14360 = vmatpush3.bf16.xpose.msk.msra.mxu1 %vm17113_vm3, %v14355_v27  ;;  %v15806_v18 = vunpack.i.h.bf16 %v15804_v6  ;;  %v15805_v27 = vunpack.i.l.bf16 %v15804_v6 }
0x13f8   : > { %14321 = vmatprep.subr.msk.bf16.mxu0 %vm17113_vm3, %v14319_v3  ;;  %14363 = vmatprep.subr.msk.bf16.mxu1 %vm17113_vm3, %v14361_v34 }
0x13f9   : > { %v14373_v28 = vpack.c.bf16 %v15806_v18, %v15805_v27 }
0x13ff   : > { %14324 = vmatpush3.bf16.xpose.msk.msra.mxu0 %vm17113_vm3, %v14319_v3  ;;  %14366 = vmatpush3.bf16.xpose.msk.msra.mxu1 %vm17113_vm3, %v14361_v34  ;;  %v20897_v3 = vld [vmem:[#allocation18_spill] sm:$0xff]  ;;  %v20898_v34 = vld [vmem:[#allocation19_spill] sm:$0xff] }
0x1400   : > { %14327 = vmatprep.subr.msk.bf16.mxu0 %vm17113_vm3, %v14325_v63  ;;  %14369 = vmatprep.subr.msk.bf16.mxu1 %vm17113_vm3, %v14367_v9 }
0x1407   : > { %14330 = vmatpush3.bf16.xpose.msk.msra.mxu0 %vm17113_vm3, %v14325_v63  ;;  %14372 = vmatpush3.bf16.xpose.msk.msra.mxu1 %vm17113_vm3, %v14367_v9 }
0x1408   : > { %14375 = vmatprep.subr.msk.bf16.mxu1 %vm17113_vm3, %v14373_v28  ;;  %14380 = vmatprep.subr.bf16.mxu0 %v20895_v55 }
0x140e   : > { %12694 = vmatmul.mubr.msk.f32.vlgmr.msra.gmra.mrb[66].mxu0 %vm651_vm2, %v18982_v16 }
0x140f   : > { %14378 = vmatpush3.bf16.xpose.msk.msra.mxu1 %vm17113_vm3, %v14373_v28  ;;  %14382 = vmatpush3.bf16.msra.mxu0 %v20895_v55 }
0x1410   : > { %14384 = vmatprep.subr.bf16.mxu0 %v20896_v37 }
0x1413   : > { %14386 = vmatpush3.bf16.msra.mxu0 %v20896_v37  ;;  %v5726_v37 = vmul.f32 %v18903_v26, %v17385_v21 }
0x1414   : > { %14388 = vmatprep.subr.bf16.mxu0 %v20897_v3 }
0x1416   : > { %12729 = vmatmul.mubr.msk.f32.vlgmr.msra.gmra.mrb[66].mxu1 %vm651_vm2, %v18997_v29 }
0x1417   : > { %14390 = vmatpush3.bf16.msra.mxu0 %v20897_v3  ;;  %v5725_v3 = vmul.f32 %v18906_v60, %v17387_v22 }
0x1418   : > { %14392 = vmatprep.subr.bf16.mxu0 %v20898_v34 }
0x1419   : > { %v15817_v32 = vpack.i.bf16 %v5726_v37, %v5725_v3  ;;  %v15827_v37 = vpack.i.bf16 %v5728_v36, %v5727_v11  ;;  %v5717_v36 = vmul.f32 %v18889_v58, %v17425_v23  ;;  %v5718_v11 = vmul.f32 %v18886_v0, %v17455_v49 }
0x141b   : > { %14394 = vmatpush3.bf16.msra.mxu0 %v20898_v34 }
0x141c   : > { %14396 = vmatprep.subr.bf16.mxu0 %v20899_v2 }
0x141f   : > { %14398 = vmatpush3.bf16.msra.mxu0 %v20899_v2  ;;  %v5712_v2 = vmul.f32 %v18886_v0, %v17409_v56 }
0x1420   : > { %14400 = vmatprep.subr.bf16.mxu0 %v20900_v51 }
0x1423   : > { %14402 = vmatpush3.bf16.msra.mxu0 %v20900_v51  ;;  %v5711_v51 = vmul.f32 %v18889_v58, %v17399_v25 }
0x1424   : > { %14404 = vmatprep.subr.bf16.mxu0 %v20901_v45 }
0x1425   : > { %v15812_v55 = vpack.i.bf16 %v5712_v2, %v5711_v51  ;;  %v5730_v2 = vmul.f32 %v18903_v26, %v17428_v7  ;;  %v5715_v51 = vmul.f32 %v18889_v58, %v17404_v54 }
0x1427   : > { %14406 = vmatpush3.bf16.msra.mxu0 %v20901_v45  ;;  %v5710_v45 = vmul.f32 %v18886_v0, %v17385_v21 }
0x1428   : > { %14408 = vmatprep.subr.bf16.mxu0 %v20902_v17 }
0x142b   : > { %14410 = vmatpush3.bf16.msra.mxu0 %v20902_v17  ;;  %v5709_v17 = vmul.f32 %v18889_v58, %v17387_v22 }
0x142d   : > { %v15807_v34 = vpack.i.bf16 %v5710_v45, %v5709_v17  ;;  %v5714_v45 = vmul.f32 %v18886_v0, %v17428_v7  ;;  %v5716_v17 = vmul.f32 %v18886_v0, %v17441_v15 }
0x142f   : > { %v15822_v3 = vpack.i.bf16 %v5714_v45, %v5713_v8  ;;  %v15832_v62 = vpack.i.bf16 %v5716_v17, %v5715_v51  ;;  %v5733_v8 = vmul.f32 %v18906_v60, %v17425_v23  ;;  %v5734_v45 = vmul.f32 %v18903_v26, %v17455_v49 }
0x1430   : > { %v5736_v51 = vmul.f32 %v18903_v26, %v20881_v35 }
0x1431   : > { %v15857_v17 = vpack.i.bf16 %v5734_v45, %v5733_v8  ;;  %v20904_v8 = vld [vmem:[#allocation27_spill] sm:$0xff] }
0x1432   : > { %v5723_v45 = vmul.f32 %v18889_v58, %v20904_v8 }
0x14a1   : > { %v19229_v5 = vpop.f32.mrb[64].mxu0 }
0x14a2   : > { %6419 = vmax.xlane.f32.xlu1 %v19229_v5  ;;  %v19232_v59 = vpop.f32.mrb[65].mxu0 }
0x14a3   : > { %6417 = vmax.xlane.f32.xlu0 %v19232_v59 }
0x14a9   : > { %v19235_v63 = vpop.f32.mrb[64].mxu1 }
0x14aa   : > { %v19237_v9 = vpop.f32.mrb[65].mxu1 }
0x14ab   : > { %6421 = vmax.xlane.f32.xlu0 %v19237_v9 }
0x14af   : > { %6423 = vmax.xlane.f32.xlu0 %v19235_v63 }
0x14e1   : > { %v19241_v6 = vpop.f32.mrb[66].mxu0 }
0x14e2   : > { %6427 = vmax.xlane.f32.xlu0 %v19241_v6  ;;  %v19244_v18 = vpop.f32.mrb[67].mxu0 }
0x14e3   : > { %6425 = vmax.xlane.f32.xlu1 %v19244_v18 }
0x14e9   : > { %v19247_v27 = vpop.f32.mrb[66].mxu1 }
0x14ea   : > { %v19249_v28 = vpop.f32.mrb[67].mxu1  ;;  %6431 = vmax.xlane.f32.xlu0 %v19247_v27 }
0x14eb   : > { %6429 = vmax.xlane.f32.xlu1 %v19249_v28 }
0x14fc   : > { %15808 = vrot.lane.b32.xlu1 %v15807_v34, %s16609_s15  ;;  %v5729_v34 = vmul.f32 %v18906_v60, %v17393_v4 }
0x1500   : > { %15813 = vrot.lane.b32.xlu0 %v15812_v55, %s16609_s15  ;;  %15818 = vrot.lane.b32.xlu1 %v15817_v32, %s16609_s15  ;;  %v15837_v55 = vpack.i.bf16 %v5730_v2, %v5729_v34  ;;  %v5731_v32 = vmul.f32 %v18906_v60, %v17404_v54  ;;  %v15842_v2 = vpack.i.bf16 %v5718_v11, %v5717_v36 }
0x1502   : > { %v15847_v34 = vpack.i.bf16 %v5732_v30, %v5731_v32  ;;  %v5721_v30 = vmul.f32 %v18889_v58, %v20882_v13  ;;  %v20903_v32 = vld [vmem:[#allocation26_spill] sm:$0xff] }
0x1503   : > { %v5722_v36 = vmul.f32 %v18886_v0, %v20903_v32  ;;  %v5738_v61 = vmul.f32 %v18903_v26, %v20903_v32 }
0x1504   : > { %15828 = vrot.lane.b32.xlu0 %v15827_v37, %s16609_s15  ;;  %15823 = vrot.lane.b32.xlu1 %v15822_v3, %s16609_s15  ;;  %v5719_v37 = vmul.f32 %v18889_v58, %v17452_v53  ;;  %v5720_v3 = vmul.f32 %v18886_v0, %v20881_v35  ;;  %v5742_v58 = vmul.f32 %v18982_v16, %v17385_v21 }
0x1508   : > { %15838 = vrot.lane.b32.xlu0 %v15837_v55, %s16609_s15  ;;  %15833 = vrot.lane.b32.xlu1 %v15832_v62, %s16609_s15  ;;  %v5735_v62 = vmul.f32 %v18906_v60, %v17452_v53  ;;  %v15852_v55 = vpack.i.bf16 %v5720_v3, %v5719_v37  ;;  %v20905_v37 = vld [vmem:[#allocation28_spill] sm:$0xff] }
0x1509   : > { %v5724_v3 = vmul.f32 %v18886_v0, %v20905_v37  ;;  %v5743_v0 = vmul.f32 %v18985_v52, %v17399_v25 }
0x150a   : > { %v15867_v11 = vpack.i.bf16 %v5736_v51, %v5735_v62  ;;  %v5739_v62 = vmul.f32 %v18906_v60, %v20904_v8  ;;  %v5740_v51 = vmul.f32 %v18903_v26, %v20905_v37 }
0x150c   : > { %15848 = vrot.lane.b32.xlu0 %v15847_v34, %s16609_s15  ;;  %15843 = vrot.lane.b32.xlu1 %v15842_v2, %s16609_s15  ;;  %v5737_v34 = vmul.f32 %v18906_v60, %v20882_v13  ;;  %v15862_v2 = vpack.i.bf16 %v5722_v36, %v5721_v30  ;;  %v5741_v30 = vmul.f32 %v18985_v52, %v17387_v22 }
0x150d   : > { %v5744_v60 = vmul.f32 %v18982_v16, %v17409_v56  ;;  %v15882_v26 = vpack.i.bf16 %v5740_v51, %v5739_v62  ;;  %v5760_v62 = vmul.f32 %v18997_v29, %v17409_v56  ;;  %v5746_v51 = vmul.f32 %v18982_v16, %v17428_v7 }
0x150e   : > { %v15887_v36 = vpack.i.bf16 %v5742_v58, %v5741_v30 }
0x1510   : > { %15858 = vrot.lane.b32.xlu0 %v15857_v17, %s16609_s15  ;;  %15853 = vrot.lane.b32.xlu1 %v15852_v55, %s16609_s15  ;;  %v15877_v17 = vpack.i.bf16 %v5738_v61, %v5737_v34  ;;  %v15872_v55 = vpack.i.bf16 %v5724_v3, %v5723_v45  ;;  %v5757_v61 = vmul.f32 %v19000_v20, %v17387_v22 }
0x1511   : > { %v15892_v34 = vpack.i.bf16 %v5744_v60, %v5743_v0  ;;  %v5759_v3 = vmul.f32 %v19000_v20, %v17399_v25  ;;  %v5747_v0 = vmul.f32 %v18985_v52, %v17404_v54  ;;  %v5748_v60 = vmul.f32 %v18982_v16, %v17441_v15 }
0x1513   : > { %v15907_v30 = vpack.i.bf16 %v5760_v62, %v5759_v3  ;;  %v5766_v3 = vmul.f32 %v18997_v29, %v17455_v49 }
0x1514   : > { %15868 = vrot.lane.b32.xlu0 %v15867_v11, %s16609_s15  ;;  %15863 = vrot.lane.b32.xlu1 %v15862_v2, %s16609_s15  ;;  %v5758_v11 = vmul.f32 %v18997_v29, %v17385_v21  ;;  %v5745_v2 = vmul.f32 %v18985_v52, %v17393_v4 }
0x1516   : > { %v15897_v45 = vpack.i.bf16 %v5758_v11, %v5757_v61  ;;  %v15902_v58 = vpack.i.bf16 %v5746_v51, %v5745_v2  ;;  %v15912_v61 = vpack.i.bf16 %v5748_v60, %v5747_v0  ;;  %v5764_v11 = vmul.f32 %v18997_v29, %v17441_v15 }
0x1517   : > { %v5750_v2 = vmul.f32 %v18982_v16, %v17455_v49 }
0x1518   : > { %15878 = vrot.lane.b32.xlu0 %v15877_v17, %s16609_s15  ;;  %15873 = vrot.lane.b32.xlu1 %v15872_v55, %s16609_s15  ;;  %v5761_v17 = vmul.f32 %v19000_v20, %v17393_v4  ;;  %v5762_v55 = vmul.f32 %v18997_v29, %v17428_v7 }
0x151c   : > { %15888 = vrot.lane.b32.xlu0 %v15887_v36, %s16609_s15  ;;  %15883 = vrot.lane.b32.xlu1 %v15882_v26, %s16609_s15  ;;  %v15917_v36 = vpack.i.bf16 %v5762_v55, %v5761_v17  ;;  %v5763_v26 = vmul.f32 %v19000_v20, %v17404_v54  ;;  %v5751_v17 = vmul.f32 %v18985_v52, %v17452_v53 }
0x151d   : > { %v5752_v55 = vmul.f32 %v18982_v16, %v20881_v35 }
0x151e   : > { %v15927_v62 = vpack.i.bf16 %v5764_v11, %v5763_v26  ;;  %v5754_v26 = vmul.f32 %v18982_v16, %v20903_v32 }
0x151f   : > { %v15932_v60 = vpack.i.bf16 %v5752_v55, %v5751_v17  ;;  %v5755_v55 = vmul.f32 %v18985_v52, %v20904_v8 }
0x1520   : > { %15898 = vrot.lane.b32.xlu0 %v15897_v45, %s16609_s15  ;;  %15893 = vrot.lane.b32.xlu1 %v15892_v34, %s16609_s15  ;;  %v5749_v34 = vmul.f32 %v18985_v52, %v17425_v23  ;;  %v5765_v45 = vmul.f32 %v19000_v20, %v17425_v23 }
0x1522   : > { %v15922_v51 = vpack.i.bf16 %v5750_v2, %v5749_v34  ;;  %v15937_v0 = vpack.i.bf16 %v5766_v3, %v5765_v45  ;;  %v5769_v45 = vmul.f32 %v19000_v20, %v20882_v13  ;;  %v5770_v3 = vmul.f32 %v18997_v29, %v20903_v32 }
0x1524   : > { %15908 = vrot.lane.b32.xlu0 %v15907_v30, %s16609_s15  ;;  %15903 = vrot.lane.b32.xlu1 %v15902_v58, %s16609_s15  ;;  %v5767_v30 = vmul.f32 %v19000_v20, %v17452_v53  ;;  %v5768_v58 = vmul.f32 %v18997_v29, %v20881_v35 }
0x1528   : > { %15918 = vrot.lane.b32.xlu0 %v15917_v36, %s16609_s15  ;;  %15913 = vrot.lane.b32.xlu1 %v15912_v61, %s16609_s15  ;;  %v5753_v36 = vmul.f32 %v18985_v52, %v20882_v13 }
0x152a   : > { %v15942_v17 = vpack.i.bf16 %v5754_v26, %v5753_v36 }
0x152c   : > { %15928 = vrot.lane.b32.xlu0 %v15927_v62, %s16609_s15  ;;  %15923 = vrot.lane.b32.xlu1 %v15922_v51, %s16609_s15  ;;  %v15947_v62 = vpack.i.bf16 %v5768_v58, %v5767_v30  ;;  %v15957_v30 = vpack.i.bf16 %v5770_v3, %v5769_v45 }
0x152f   : > { %v6420_v61 = vpop.xlane.xlu1 %6419 }
0x1530   : > { %v6434_v11 = vsub.f32 %v19229_v5, %v6420_v61  ;;  %v6418_v34 = vpop.xlane.xlu0 %6417  ;;  %15938 = vrot.lane.b32.xlu0 %v15937_v0, %s16609_s15  ;;  %15933 = vrot.lane.b32.xlu1 %v15932_v60, %s16609_s15  ;;  %v5756_v5 = vmul.f32 %v18982_v16, %v20905_v37  ;;  %v5772_v60 = vmul.f32 %v18997_v29, %v20905_v37 }
0x1531   : > { %v6433_v2 = vsub.f32 %v19232_v59, %v6418_v34  ;;  %v5771_v59 = vmul.f32 %v19000_v20, %v20904_v8 }
0x1532   : > { %v6443_v51 = vmul.f32 1.442695, %v6434_v11  ;;  %v15952_v58 = vpack.i.bf16 %v5756_v5, %v5755_v55 }
0x1533   : > { %v6441_v0 = vmul.f32 1.442695, %v6433_v2  ;;  %v15962_v52 = vpack.i.bf16 %v5772_v60, %v5771_v59 }
0x1534   : > { %15948 = vrot.lane.b32.xlu0 %v15947_v62, %s16609_s15  ;;  %15943 = vrot.lane.b32.xlu1 %v15942_v17, %s16609_s15 }
0x1535   : > { %16415 = vpow2.f32 %v6441_v0 }
0x1536   : > { %16417 = vpow2.f32 %v6443_v51 }
0x1538   : > { %v6422_v36 = vpop.xlane.xlu0 %6421  ;;  %15958 = vrot.lane.b32.xlu0 %v15957_v30, %s16609_s15  ;;  %15953 = vrot.lane.b32.xlu1 %v15952_v58, %s16609_s15 }
0x1539   : > { %v6435_v16 = vsub.f32 %v19237_v9, %v6422_v36 }
0x153b   : > { %v6445_v26 = vmul.f32 1.442695, %v6435_v16 }
0x153c   : > { %v6424_v61 = vpop.xlane.xlu0 %6423  ;;  %15963 = vrot.lane.b32.xlu1 %v15962_v52, %s16609_s15 }
0x153d   : > { %16419 = vpow2.f32 %v6445_v26  ;;  %v6436_v20 = vsub.f32 %v19235_v63, %v6424_v61 }
0x153f   : > { %v19417_v11 = vpop.eup %16415  ;;  %v6447_v34 = vmul.f32 1.442695, %v6436_v20 }
0x1540   : > { %v19419_v2 = vpop.eup %16417  ;;  %12763 = vmatprep.mubr.f32.mxu0 %v19417_v11 }
0x1541   : > { %16421 = vpow2.f32 %v6447_v34  ;;  %12764 = vmatmul.mubr.f32.vlgmr.msra.gmra.mrb[68].mxu0 %v19419_v2 }
0x1547   : > { %v19423_v29 = vpop.eup %16419 }
0x1548   : > { %12766 = vmatprep.mubr.f32.mxu0 %v19423_v29 }
0x154b   : > { %v19426_v9 = vpop.eup %16421 }
0x154c   : > { %12767 = vmatmul.mubr.f32.gmra.mrb[70].mxu0 %v19426_v9 }
0x156f   : > { %v6428_v62 = vpop.xlane.xlu0 %6427 }
0x1570   : > { %v6438_v63 = vsub.f32 %v19241_v6, %v6428_v62  ;;  %v6426_v45 = vpop.xlane.xlu1 %6425 }
0x1571   : > { %v6437_v3 = vsub.f32 %v19244_v18, %v6426_v45 }
0x1572   : > { %v6451_v51 = vmul.f32 1.442695, %v6438_v63 }
0x1573   : > { %v6449_v17 = vmul.f32 1.442695, %v6437_v3 }
0x1575   : > { %16423 = vpow2.f32 %v6449_v17 }
0x1576   : > { %16425 = vpow2.f32 %v6451_v51 }
0x1577   : > { %v6432_v55 = vpop.xlane.xlu0 %6431 }
0x1578   : > { %v6440_v5 = vsub.f32 %v19247_v27, %v6432_v55  ;;  %v6430_v0 = vpop.xlane.xlu1 %6429 }
0x1579   : > { %v6439_v59 = vsub.f32 %v19249_v28, %v6430_v0 }
0x157a   : > { %v6455_v30 = vmul.f32 1.442695, %v6440_v5 }
0x157b   : > { %v6453_v58 = vmul.f32 1.442695, %v6439_v59  ;;  %v15814_v60 = vpop.permute.xlu0 %15813 }
0x157c   : > { %v15816_v36 = vunpack.i.h.bf16 %v15814_v60  ;;  %v15809_v16 = vpop.permute.xlu1 %15808  ;;  %v15815_v6 = vunpack.i.l.bf16 %v15814_v60 }
0x157d   : > { %16427 = vpow2.f32 %v6453_v58  ;;  %v15811_v52 = vunpack.i.h.bf16 %v15809_v16  ;;  %v15810_v26 = vunpack.i.l.bf16 %v15809_v16 }
0x157e   : > { %16429 = vpow2.f32 %v6455_v30  ;;  %v14415_v3 = vpack.c.bf16 %v15816_v36, %v15815_v6 }
0x157f   : > { %v19433_v18 = vpop.eup %16423  ;;  %v15829_v61 = vpop.permute.xlu0 %15828  ;;  %v14411_v20 = vpack.c.bf16 %v15811_v52, %v15810_v26 }
0x1580   : > { %v19435_v34 = vpop.eup %16425  ;;  %v15831_v27 = vunpack.i.h.bf16 %v15829_v61  ;;  %v15830_v62 = vunpack.i.l.bf16 %v15829_v61  ;;  %12769 = vmatprep.mubr.f32.mxu0 %v19433_v18  ;;  %v15819_v28 = vpop.permute.xlu1 %15818 }
0x1581   : > { %v15821_v63 = vunpack.i.h.bf16 %v15819_v28  ;;  %v15820_v45 = vunpack.i.l.bf16 %v15819_v28  ;;  %12770 = vmatmul.mubr.f32.gmra.mrb[72].mxu0 %v19435_v34  ;;  %14412 = vmatprep.subr.bf16.mxu1 %v14411_v20 }
0x1582   : > { %14414 = vmatpush3.bf16.msra.mxu1 %v14411_v20  ;;  %v14447_v5 = vpack.c.bf16 %v15831_v27, %v15830_v62 }
0x1583   : > { %v15839_v51 = vpop.permute.xlu0 %15838  ;;  %14416 = vmatprep.subr.bf16.mxu1 %v14415_v3  ;;  %v14443_v17 = vpack.c.bf16 %v15821_v63, %v15820_v45 }
0x1584   : > { %v15824_v55 = vpop.permute.xlu1 %15823  ;;  %v15841_v0 = vunpack.i.h.bf16 %v15839_v51  ;;  %v15840_v59 = vunpack.i.l.bf16 %v15839_v51 }
0x1585   : > { %v15826_v30 = vunpack.i.h.bf16 %v15824_v55  ;;  %v15825_v58 = vunpack.i.l.bf16 %v15824_v55  ;;  %14444 = vmatprep.subr.bf16.mxu0 %v14443_v17 }
0x1586   : > { %14418 = vmatpush3.bf16.msra.mxu1 %v14415_v3  ;;  %14446 = vmatpush3.bf16.msra.mxu0 %v14443_v17  ;;  %v14451_v62 = vpack.c.bf16 %v15841_v0, %v15840_v59 }
0x1587   : > { %v19439_v60 = vpop.eup %16427  ;;  %v15849_v16 = vpop.permute.xlu0 %15848  ;;  %14448 = vmatprep.subr.bf16.mxu0 %v14447_v5  ;;  %v14419_v52 = vpack.c.bf16 %v15826_v30, %v15825_v58 }
0x1588   : > { %v19441_v26 = vpop.eup %16429  ;;  %v15851_v36 = vunpack.i.h.bf16 %v15849_v16  ;;  %v15850_v6 = vunpack.i.l.bf16 %v15849_v16  ;;  %12772 = vmatprep.mubr.f32.mxu0 %v19439_v60  ;;  %v15834_v61 = vpop.permute.xlu1 %15833 }
0x1589   : > { %v15836_v20 = vunpack.i.h.bf16 %v15834_v61  ;;  %v15835_v27 = vunpack.i.l.bf16 %v15834_v61  ;;  %12773 = vmatmul.mubr.f32.gmra.mrb[74].mxu0 %v19441_v26  ;;  %14420 = vmatprep.subr.bf16.mxu1 %v14419_v52 }
0x158a   : > { %14422 = vmatpush3.bf16.msra.mxu1 %v14419_v52  ;;  %14450 = vmatpush3.bf16.msra.mxu0 %v14447_v5  ;;  %v14455_v3 = vpack.c.bf16 %v15851_v36, %v15850_v6 }
0x158b   : > { %v15859_v28 = vpop.permute.xlu0 %15858  ;;  %14452 = vmatprep.subr.bf16.mxu0 %v14451_v62  ;;  %v14423_v63 = vpack.c.bf16 %v15836_v20, %v15835_v27 }
0x158c   : > { %v15844_v45 = vpop.permute.xlu1 %15843  ;;  %v15861_v51 = vunpack.i.h.bf16 %v15859_v28  ;;  %v15860_v17 = vunpack.i.l.bf16 %v15859_v28 }
0x158d   : > { %v15846_v55 = vunpack.i.h.bf16 %v15844_v45  ;;  %v15845_v30 = vunpack.i.l.bf16 %v15844_v45  ;;  %14424 = vmatprep.subr.bf16.mxu1 %v14423_v63 }
0x158e   : > { %14426 = vmatpush3.bf16.msra.mxu1 %v14423_v63  ;;  %14454 = vmatpush3.bf16.msra.mxu0 %v14451_v62  ;;  %v14459_v52 = vpack.c.bf16 %v15861_v51, %v15860_v17 }
0x158f   : > { %v15869_v58 = vpop.permute.xlu0 %15868  ;;  %14456 = vmatprep.subr.bf16.mxu0 %v14455_v3  ;;  %v14427_v16 = vpack.c.bf16 %v15846_v55, %v15845_v30 }
0x1590   : > { %v15871_v61 = vunpack.i.h.bf16 %v15869_v58  ;;  %v15870_v37 = vunpack.i.l.bf16 %v15869_v58  ;;  %v15854_v0 = vpop.permute.xlu1 %15853 }
0x1591   : > { %v15856_v59 = vunpack.i.h.bf16 %v15854_v0  ;;  %v15855_v5 = vunpack.i.l.bf16 %v15854_v0  ;;  %14428 = vmatprep.subr.bf16.mxu1 %v14427_v16 }
0x1592   : > { %14430 = vmatpush3.bf16.msra.mxu1 %v14427_v16  ;;  %14458 = vmatpush3.bf16.msra.mxu0 %v14455_v3  ;;  %v14463_v27 = vpack.c.bf16 %v15871_v61, %v15870_v37 }
0x1593   : > { %v15879_v36 = vpop.permute.xlu0 %15878  ;;  %14460 = vmatprep.subr.bf16.mxu0 %v14459_v52  ;;  %v14431_v6 = vpack.c.bf16 %v15856_v59, %v15855_v5 }
0x1594   : > { %v15864_v20 = vpop.permute.xlu1 %15863  ;;  %v15881_v28 = vunpack.i.h.bf16 %v15879_v36  ;;  %v15880_v63 = vunpack.i.l.bf16 %v15879_v36 }
0x1595   : > { %v15866_v62 = vunpack.i.h.bf16 %v15864_v20  ;;  %v15865_v45 = vunpack.i.l.bf16 %v15864_v20  ;;  %14432 = vmatprep.subr.bf16.mxu1 %v14431_v6 }
0x1596   : > { %14434 = vmatpush3.bf16.msra.mxu1 %v14431_v6  ;;  %14462 = vmatpush3.bf16.msra.mxu0 %v14459_v52  ;;  %v14467_v16 = vpack.c.bf16 %v15881_v28, %v15880_v63 }
0x1597   : > { %v15889_v55 = vpop.permute.xlu0 %15888  ;;  %14464 = vmatprep.subr.bf16.mxu0 %v14463_v27  ;;  %v14435_v30 = vpack.c.bf16 %v15866_v62, %v15865_v45 }
0x1598   : > { %v15891_v58 = vunpack.i.h.bf16 %v15889_v55  ;;  %v15890_v0 = vunpack.i.l.bf16 %v15889_v55  ;;  %v15874_v51 = vpop.permute.xlu1 %15873 }
0x1599   : > { %v15876_v17 = vunpack.i.h.bf16 %v15874_v51  ;;  %v15875_v3 = vunpack.i.l.bf16 %v15874_v51  ;;  %14436 = vmatprep.subr.bf16.mxu1 %v14435_v30 }
0x159a   : > { %14438 = vmatpush3.bf16.msra.mxu1 %v14435_v30  ;;  %14466 = vmatpush3.bf16.msra.mxu0 %v14463_v27  ;;  %v14475_v5 = vpack.c.bf16 %v15891_v58, %v15890_v0 }
0x159b   : > { %v15899_v37 = vpop.permute.xlu0 %15898  ;;  %14468 = vmatprep.subr.bf16.mxu0 %v14467_v16  ;;  %v14439_v61 = vpack.c.bf16 %v15876_v17, %v15875_v3 }
0x159c   : > { %v15884_v59 = vpop.permute.xlu1 %15883  ;;  %v15901_v36 = vunpack.i.h.bf16 %v15899_v37  ;;  %v15900_v6 = vunpack.i.l.bf16 %v15899_v37 }
0x159d   : > { %v15886_v52 = vunpack.i.h.bf16 %v15884_v59  ;;  %v15885_v20 = vunpack.i.l.bf16 %v15884_v59  ;;  %14440 = vmatprep.subr.bf16.mxu1 %v14439_v61 }
0x159e   : > { %14442 = vmatpush3.bf16.msra.mxu1 %v14439_v61  ;;  %14470 = vmatpush3.bf16.msra.mxu0 %v14467_v16  ;;  %v14507_v45 = vpack.c.bf16 %v15901_v36, %v15900_v6 }
0x159f   : > { %14476 = vmatprep.subr.bf16.mxu1 %v14475_v5  ;;  %v14471_v62 = vpack.c.bf16 %v15886_v52, %v15885_v20  ;;  %v15909_v58 = vpop.permute.xlu0 %15908 }
0x15a0   : > { %v15894_v28 = vpop.permute.xlu1 %15893 }
0x15a1   : > { %14472 = vmatprep.subr.bf16.mxu0 %v14471_v62  ;;  %v15896_v3 = vunpack.i.h.bf16 %v15894_v28  ;;  %v15895_v37 = vunpack.i.l.bf16 %v15894_v28 }
0x15a2   : > { %14474 = vmatpush3.bf16.msra.mxu0 %v14471_v62 }
0x15a3   : > { %14508 = vmatprep.subr.bf16.mxu0 %v14507_v45  ;;  %v15919_v6 = vpop.permute.xlu0 %15918  ;;  %v14479_v62 = vpack.c.bf16 %v15896_v3, %v15895_v37 }
0x15a4   : > { %v15904_v55 = vpop.permute.xlu1 %15903 }
0x15a5   : > { %v15906_v52 = vunpack.i.h.bf16 %v15904_v55  ;;  %v15905_v20 = vunpack.i.l.bf16 %v15904_v55 }
0x15a7   : > { %v14483_v8 = vpack.c.bf16 %v15906_v52, %v15905_v20 }
0x15a8   : > { %v15914_v30 = vpop.permute.xlu1 %15913 }
0x15ac   : > { %v15924_v36 = vpop.permute.xlu1 %15923 }
0x15b0   : > { %v15934_v28 = vpop.permute.xlu1 %15933 }
0x15b1   : > { %v15936_v20 = vunpack.i.h.bf16 %v15934_v28 }
0x15b4   : > { %v15944_v37 = vpop.permute.xlu1 %15943 }
0x1614   : > { %v12765_v27 = vpop.f32.mrb[68].mxu0 }
0x1615   : > { %16431 = vrcp.f32 %v12765_v27  ;;  %v6523_v63 = vpop.f32.mrb[69].mxu0  ;;  %v15916_v27 = vunpack.i.h.bf16 %v15914_v30 }
0x1616   : > { %16433 = vrcp.f32 %v6523_v63  ;;  %v15915_v63 = vunpack.i.l.bf16 %v15914_v30  ;;  %v15920_v30 = vunpack.i.l.bf16 %v15919_v6 }
0x1618   : > { %v14487_v32 = vpack.c.bf16 %v15916_v27, %v15915_v63 }
0x161f   : > { %v16432_v0 = vpop.eup %16431  ;;  %v12768_v51 = vpop.f32.mrb[70].mxu0 }
0x1620   : > { %v16434_v17 = vpop.eup %16433  ;;  %16435 = vrcp.f32 %v12768_v51  ;;  %v6533_v16 = vpop.f32.mrb[71].mxu0  ;;  %v6571_v59 = vmul.f32 %v16432_v0, %v19419_v2  ;;  %v15910_v2 = vunpack.i.l.bf16 %v15909_v58  ;;  %v15926_v0 = vunpack.i.h.bf16 %v15924_v36 }
0x1621   : > { %16437 = vrcp.f32 %v6533_v16  ;;  %v6570_v61 = vmul.f32 %v16434_v17, %v19417_v11  ;;  %v15929_v16 = vpop.permute.xlu0 %15928  ;;  %v15911_v17 = vunpack.i.h.bf16 %v15909_v58 }
0x1623   : > { %12807 = vmatprep.mubr.f32.mxu1 %v6570_v61  ;;  %v15925_v61 = vunpack.i.l.bf16 %v15924_v36  ;;  %v15931_v36 = vunpack.i.h.bf16 %v15929_v16 }
0x1624   : > { %12808 = vmatmul.mubr.f32.vlgmr.msra.gmra.mrb[68].mxu1 %v6571_v59  ;;  %v14511_v59 = vpack.c.bf16 %v15911_v17, %v15910_v2 }
0x1625   : > { %14478 = vmatpush3.bf16.msra.mxu1 %v14475_v5  ;;  %v15921_v5 = vunpack.i.h.bf16 %v15919_v6  ;;  %v15939_v52 = vpop.permute.xlu0 %15938  ;;  %v14491_v58 = vpack.c.bf16 %v15926_v0, %v15925_v61 }
0x1626   : > { %14480 = vmatprep.subr.bf16.mxu1 %v14479_v62  ;;  %v15940_v17 = vunpack.i.l.bf16 %v15939_v52 }
0x1627   : > { %v14515_v27 = vpack.c.bf16 %v15921_v5, %v15920_v30 }
0x1629   : > { %14482 = vmatpush3.bf16.msra.mxu1 %v14479_v62  ;;  %v15935_v62 = vunpack.i.l.bf16 %v15934_v28  ;;  %v15949_v6 = vpop.permute.xlu0 %15948 }
0x162a   : > { %v16436_v51 = vpop.eup %16435  ;;  %14484 = vmatprep.subr.bf16.mxu1 %v14483_v8  ;;  %v15950_v0 = vunpack.i.l.bf16 %v15949_v6 }
0x162b   : > { %v16438_v11 = vpop.eup %16437  ;;  %v6573_v3 = vmul.f32 %v16436_v51, %v19426_v9  ;;  %v15946_v9 = vunpack.i.h.bf16 %v15944_v37  ;;  %v14495_v63 = vpack.c.bf16 %v15936_v20, %v15935_v62  ;;  %v15954_v51 = vpop.permute.xlu1 %15953 }
0x162c   : > { %v6572_v55 = vmul.f32 %v16438_v11, %v19423_v29  ;;  %v15930_v29 = vunpack.i.l.bf16 %v15929_v16  ;;  %v15941_v11 = vunpack.i.h.bf16 %v15939_v52  ;;  %v15955_v2 = vunpack.i.l.bf16 %v15954_v51 }
0x162d   : > { %14486 = vmatpush3.bf16.msra.mxu1 %v14483_v8  ;;  %v15945_v8 = vunpack.i.l.bf16 %v15944_v37  ;;  %v15951_v16 = vunpack.i.h.bf16 %v15949_v6  ;;  %v15959_v5 = vpop.permute.xlu0 %15958 }
0x162e   : > { %14488 = vmatprep.subr.bf16.mxu1 %v14487_v32  ;;  %12842 = vmatprep.mubr.f32.mxu0 %v6572_v55  ;;  %v14519_v28 = vpack.c.bf16 %v15931_v36, %v15930_v29  ;;  %v14523_v61 = vpack.c.bf16 %v15941_v11, %v15940_v17  ;;  %v10574_v55 = vld [vmem:[%s20751_s4 + $0x40] sm:$0xff]  ;;  %v15960_v52 = vunpack.i.l.bf16 %v15959_v5  ;;  %v10576_v11 = vld [vmem:[%s20751_s4 + $0x50] sm:$0xff]  ;;  %v10577_v17 = vld [vmem:[%s20751_s4 + $0x58] sm:$0xff] }
0x162f   : > { %12843 = vmatmul.mubr.f32.vlgmr.msra.gmra.mrb[76].mxu0 %v6573_v3  ;;  %v10575_v3 = vld [vmem:[%s20751_s4 + $0x48] sm:$0xff]  ;;  %v14527_v20 = vpack.c.bf16 %v15951_v16, %v15950_v0  ;;  %v15964_v62 = vpop.permute.xlu1 %15963 }
0x1630   : > { %14510 = vmatpush3.bf16.msra.mxu0 %v14507_v45  ;;  %v15956_v45 = vunpack.i.h.bf16 %v15954_v51  ;;  %v14539_v37 = vpack.c.bf16 %v10575_v3, %v10574_v55  ;;  %v15965_v36 = vunpack.i.l.bf16 %v15964_v62 }
0x1631   : > { %14490 = vmatpush3.bf16.msra.mxu1 %v14487_v32  ;;  %14512 = vmatprep.subr.bf16.mxu0 %v14511_v59  ;;  %v14499_v32 = vpack.c.bf16 %v15946_v9, %v15945_v8 }
0x1632   : > { %14492 = vmatprep.subr.bf16.mxu1 %v14491_v58  ;;  %v14503_v30 = vpack.c.bf16 %v15956_v45, %v15955_v2 }
0x1634   : > { %14514 = vmatpush3.bf16.msra.mxu0 %v14511_v59  ;;  %v15961_v59 = vunpack.i.h.bf16 %v15959_v5 }
0x1635   : > { %14494 = vmatpush3.bf16.msra.mxu1 %v14491_v58  ;;  %14516 = vmatprep.subr.bf16.mxu0 %v14515_v27  ;;  %v15966_v58 = vunpack.i.h.bf16 %v15964_v62 }
0x1636   : > { %14496 = vmatprep.subr.bf16.mxu1 %v14495_v63  ;;  %v14531_v29 = vpack.c.bf16 %v15961_v59, %v15960_v52  ;;  %v10675_v59 = vld [vmem:[%s20752_s5 + $0x2] ss:$0 sm:$0xff] }
0x1638   : > { %14518 = vmatpush3.bf16.msra.mxu0 %v14515_v27  ;;  %v14535_v27 = vpack.c.bf16 %v15966_v58, %v15965_v36 }
0x1639   : > { %14498 = vmatpush3.bf16.msra.mxu1 %v14495_v63  ;;  %14520 = vmatprep.subr.bf16.mxu0 %v14519_v28 }
0x163a   : > { %14500 = vmatprep.subr.bf16.mxu1 %v14499_v32 }
0x163c   : > { %14522 = vmatpush3.bf16.msra.mxu0 %v14519_v28 }
0x163d   : > { %14502 = vmatpush3.bf16.msra.mxu1 %v14499_v32  ;;  %14524 = vmatprep.subr.bf16.mxu0 %v14523_v61  ;;  %v14543_v32 = vpack.c.bf16 %v10577_v17, %v10576_v11 }
0x163e   : > { %14504 = vmatprep.subr.bf16.mxu1 %v14503_v30 }
0x1640   : > { %14526 = vmatpush3.bf16.msra.mxu0 %v14523_v61 }
0x1641   : > { %14506 = vmatpush3.bf16.msra.mxu1 %v14503_v30  ;;  %14528 = vmatprep.subr.bf16.mxu0 %v14527_v20 }
0x1642   : > { %14540 = vmatprep.subr.bf16.mxu1 %v14539_v37 }
0x1644   : > { %14530 = vmatpush3.bf16.msra.mxu0 %v14527_v20 }
0x1645   : > { %14532 = vmatprep.subr.bf16.mxu0 %v14531_v29 }
0x1648   : > { %14534 = vmatpush3.bf16.msra.mxu0 %v14531_v29 }
0x1649   : > { %14536 = vmatprep.subr.bf16.mxu0 %v14535_v27 }
0x164c   : > { %14538 = vmatpush3.bf16.msra.mxu0 %v14535_v27 }
0x1654   : > { %v12771_v9 = vpop.f32.mrb[72].mxu0 }
0x1655   : > { %16439 = vrcp.f32 %v12771_v9  ;;  %v6543_v8 = vpop.f32.mrb[73].mxu0 }
0x1656   : > { %16441 = vrcp.f32 %v6543_v8 }
0x165c   : > { %v12774_v63 = vpop.f32.mrb[74].mxu0 }
0x165d   : > { %16443 = vrcp.f32 %v12774_v63  ;;  %v6553_v51 = vpop.f32.mrb[75].mxu0 }
0x165e   : > { %16445 = vrcp.f32 %v6553_v51 }
0x165f   : > { %v16440_v6 = vpop.eup %16439 }
0x1660   : > { %v16442_v28 = vpop.eup %16441  ;;  %v6575_v2 = vmul.f32 %v16440_v6, %v19435_v34 }
0x1661   : > { %v6574_v45 = vmul.f32 %v16442_v28, %v19433_v18 }
0x1663   : > { %12877 = vmatprep.mubr.f32.mxu1 %v6574_v45 }
0x1664   : > { %12878 = vmatmul.mubr.f32.vlgmr.msra.gmra.mrb[70].mxu1 %v6575_v2 }
0x1665   : > { %14542 = vmatpush3.bf16.msra.mxu1 %v14539_v37 }
0x1666   : > { %14544 = vmatprep.subr.bf16.mxu1 %v14543_v32 }
0x1667   : > { %v16444_v16 = vpop.eup %16443 }
0x1668   : > { %v16446_v0 = vpop.eup %16445  ;;  %v6577_v55 = vmul.f32 %v16444_v16, %v19441_v26 }
0x1669   : > { %v6576_v61 = vmul.f32 %v16446_v0, %v19439_v60  ;;  %14546 = vmatpush3.bf16.msra.mxu1 %v14543_v32 }
0x166b   : > { %12912 = vmatprep.mubr.f32.mxu0 %v6576_v61  ;;  %v10579_v61 = vld [vmem:[%s20753_s6 + $0x40] sm:$0xff] }
0x166c   : > { %12913 = vmatmul.mubr.f32.vlgmr.msra.gmra.mrb[78].mxu0 %v6577_v55  ;;  %v10580_v55 = vld [vmem:[%s20753_s6 + $0x48] sm:$0xff] }
0x16f7   : > { %v12809_v3 = vpop.f32.mrb[68].mxu1 }
0x16f8   : > { %v6708_v5 = vpop.f32.mrb[69].mxu1 }
0x16f9   : > { %12923 = vmatprep.mubr.msk.f32.mxu1 %vm651_vm2, %v6708_v5  ;;  %v14547_v5 = vpack.c.bf16 %v10580_v55, %v10579_v61 }
0x16fa   : > { %12924 = vmatmul.mubr.msk.f32.vlgmr.msra.gmra.mrb[72].mxu1 %vm651_vm2, %v12809_v3  ;;  %v10581_v3 = vld [vmem:[%s20753_s6 + $0x50] sm:$0xff] }
0x16fb   : > { %14548 = vmatprep.subr.bf16.mxu1 %v14547_v5 }
0x16fc   : > { %14550 = vmatpush3.bf16.msra.mxu1 %v14547_v5 }
0x1702   : > { %v12844_v18 = vpop.f32.mrb[76].mxu0 }
0x1703   : > { %v6847_v34 = vpop.f32.mrb[77].mxu0 }
0x1704   : > { %12926 = vmatprep.mubr.msk.f32.mxu1 %vm651_vm2, %v6847_v34 }
0x1705   : > { %12927 = vmatmul.mubr.msk.f32.gmra.mrb[74].mxu1 %vm651_vm2, %v12844_v18  ;;  %v10582_v18 = vld [vmem:[%s20753_s6 + $0x58] sm:$0xff] }
0x1706   : > { %v14551_v34 = vpack.c.bf16 %v10582_v18, %v10581_v3 }
0x1708   : > { %14552 = vmatprep.subr.bf16.mxu1 %v14551_v34 }
0x1709   : > { %14554 = vmatpush3.bf16.msra.mxu1 %v14551_v34 }
0x1737   : > { %v12879_v30 = vpop.f32.mrb[70].mxu1 }
0x1738   : > { %v6986_v37 = vpop.f32.mrb[71].mxu1 }
0x1739   : > { %12929 = vmatprep.mubr.msk.f32.mxu1 %vm651_vm2, %v6986_v37 }
0x173a   : > { %12930 = vmatmul.mubr.msk.f32.gmra.mrb[76].mxu1 %vm651_vm2, %v12879_v30 }
0x173f   : > { %v12914_v60 = vpop.f32.mrb[78].mxu0 }
0x1740   : > { %v7125_v26 = vpop.f32.mrb[79].mxu0 }
0x1741   : > { %12932 = vmatprep.mubr.msk.f32.mxu1 %vm651_vm2, %v7125_v26 }
0x1742   : > { %12933 = vmatmul.mubr.msk.f32.gmra.mrb[78].mxu1 %vm651_vm2, %v12914_v60 }
0x17cd   : > { %v12925_v52 = vpop.f32.mrb[72].mxu1 }
0x17ce   : > { %v7236_v20 = vadd.f32 %v12925_v52, %v10675_v59  ;;  %v7230_v62 = vpop.f32.mrb[73].mxu1 }
0x17cf   : > { %v7231_v58 = vadd.f32 %v10675_v59, %v7230_v62 }
0x17d0   : > { %v19477_v36 = vadd.f32 %v7236_v20, %v18833_v31 }
0x17d1   : > { %v19480_v29 = vadd.f32 %v7231_v58, %v18829_v24 }
0x17d2   : > { %v7280_v27 = vsel %vm651_vm2, %v19477_v36, 0.0  ;;  %v7310_v8 = vmul.f32 %v19477_v36, %v19477_v36 }
0x17d3   : > { %7281 = vadd.xlane.f32.xlu1 %v7280_v27  ;;  %v7277_v9 = vsel %vm651_vm2, %v19480_v29, 0.0  ;;  %v7309_v31 = vmul.f32 %v19480_v29, %v19480_v29 }
0x17d4   : > { %7278 = vadd.xlane.f32.xlu0 %v7277_v9  ;;  %v7320_v63 = vsel %vm651_vm2, %v7310_v8, 0.0 }
0x17d5   : > { %v7317_v28 = vsel %vm651_vm2, %v7309_v31, 0.0 }
0x17d8   : > { %7321 = vadd.xlane.f32.xlu0 %v7320_v63  ;;  %v12928_v51 = vpop.f32.mrb[74].mxu1 }
0x17d9   : > { %v7246_v24 = vadd.f32 %v12928_v51, %v10675_v59  ;;  %v7240_v6 = vpop.f32.mrb[75].mxu1 }
0x17da   : > { %v7241_v11 = vadd.f32 %v10675_v59, %v7240_v6 }
0x17db   : > { %v19492_v17 = vadd.f32 %v7246_v24, %v18846_v14 }
0x17dc   : > { %v19496_v45 = vadd.f32 %v7241_v11, %v18843_v1  ;;  %7318 = vadd.xlane.f32.xlu0 %v7317_v28 }
0x17dd   : > { %v7286_v16 = vsel %vm651_vm2, %v19492_v17, 0.0  ;;  %v7312_v14 = vmul.f32 %v19492_v17, %v19492_v17 }
0x17de   : > { %v7283_v2 = vsel %vm651_vm2, %v19496_v45, 0.0  ;;  %v7311_v32 = vmul.f32 %v19496_v45, %v19496_v45 }
0x17df   : > { %7284 = vadd.xlane.f32.xlu1 %v7283_v2  ;;  %v7326_v1 = vsel %vm651_vm2, %v7312_v14, 0.0 }
0x17e0   : > { %7287 = vadd.xlane.f32.xlu0 %v7286_v16  ;;  %v7323_v0 = vsel %vm651_vm2, %v7311_v32, 0.0  ;;  %v10584_v32 = vld [vmem:[%s20755_s8 + $0x80] sm:$0xff]  ;;  %v10585_v16 = vld [vmem:[%s20755_s8 + $0x88] sm:$0xff] }
0x17e1   : > { %v14555_v14 = vpack.c.bf16 %v10585_v16, %v10584_v32 }
0x17e3   : > { %7324 = vadd.xlane.f32.xlu1 %v7323_v0  ;;  %14556 = vmatprep.subr.bf16.mxu1 %v14555_v14 }
0x17e4   : > { %7327 = vadd.xlane.f32.xlu0 %v7326_v1 }
0x180d   : > { %v12931_v30 = vpop.f32.mrb[76].mxu1 }
0x180e   : > { %v7256_v37 = vadd.f32 %v12931_v30, %v10675_v59  ;;  %v7250_v60 = vpop.f32.mrb[77].mxu1 }
0x180f   : > { %v7251_v26 = vadd.f32 %v10675_v59, %v7250_v60 }
0x1810   : > { %v19521_v52 = vadd.f32 %v7256_v37, %v18861_v33 }
0x1811   : > { %v19524_v20 = vadd.f32 %v7251_v26, %v18857_v46 }
0x1812   : > { %v7292_v62 = vsel %vm651_vm2, %v19521_v52, 0.0  ;;  %v7314_v58 = vmul.f32 %v19521_v52, %v19521_v52 }
0x1813   : > { %7293 = vadd.xlane.f32.xlu0 %v7292_v62  ;;  %v7289_v27 = vsel %vm651_vm2, %v19524_v20, 0.0  ;;  %v7313_v9 = vmul.f32 %v19524_v20, %v19524_v20 }
0x1814   : > { %7290 = vadd.xlane.f32.xlu1 %v7289_v27  ;;  %v7332_v46 = vsel %vm651_vm2, %v7314_v58, 0.0 }
0x1815   : > { %v12934_v8 = vpop.f32.mrb[78].mxu1  ;;  %v7329_v51 = vsel %vm651_vm2, %v7313_v9, 0.0 }
0x1816   : > { %v7266_v33 = vadd.f32 %v12934_v8, %v10675_v59  ;;  %v7260_v63 = vpop.f32.mrb[79].mxu1 }
0x1817   : > { %v7261_v31 = vadd.f32 %v10675_v59, %v7260_v63  ;;  %7333 = vadd.xlane.f32.xlu0 %v7332_v46 }
0x1818   : > { %v19537_v24 = vadd.f32 %v7266_v33, %v18874_v10  ;;  %7330 = vadd.xlane.f32.xlu1 %v7329_v51 }
0x1819   : > { %v19540_v6 = vadd.f32 %v7261_v31, %v18871_v57 }
0x181a   : > { %v7298_v11 = vsel %vm651_vm2, %v19537_v24, 0.0  ;;  %v7316_v28 = vmul.f32 %v19537_v24, %v19537_v24 }
0x181b   : > { %7299 = vadd.xlane.f32.xlu0 %v7298_v11  ;;  %v7295_v59 = vsel %vm651_vm2, %v19540_v6, 0.0  ;;  %v7315_v2 = vmul.f32 %v19540_v6, %v19540_v6 }
0x181c   : > { %7296 = vadd.xlane.f32.xlu1 %v7295_v59  ;;  %v7338_v10 = vsel %vm651_vm2, %v7316_v28, 0.0 }
0x181d   : > { %v7335_v57 = vsel %vm651_vm2, %v7315_v2, 0.0 }
0x181f   : > { %7339 = vadd.xlane.f32.xlu0 %v7338_v10  ;;  %v19561_v10 = vld [vmem:[%s20757_s10 + $0x8] sm:$0xf] }
0x1820   : > { %7336 = vadd.xlane.f32.xlu1 %v7335_v57 }
0x1860   : > { %v7282_v0 = vpop.xlane.xlu1 %7281 }
0x1861   : > { %v7279_v1 = vpop.xlane.xlu0 %7278  ;;  %v7302_v61 = vmul.f32 0.03125, %v7282_v0 }
0x1862   : > { %v7301_v5 = vmul.f32 0.03125, %v7279_v1  ;;  %v19566_v1 = vrot.slane %v19561_v10, %v17708_v19 }
0x1863   : > { %v7350_v3 = vmul.f32 %v7302_v61, %v7302_v61  ;;  %v7366_v16 = vsub.f32 %v19477_v36, %v7302_v61  ;;  %v10586_v61 = vld [vmem:[%s20755_s8 + $0x90] sm:$0xff] }
0x1864   : > { %v7349_v37 = vmul.f32 %v7301_v5, %v7301_v5 }
0x1865   : > { %v7322_v55 = vpop.xlane.xlu0 %7321 }
0x1866   : > { %v7342_v18 = vmul.f32 0.03125, %v7322_v55 }
0x1868   : > { %v7358_v34 = vsub.f32 %v7342_v18, %v7350_v3  ;;  %v7365_v3 = vsub.f32 %v19480_v29, %v7301_v5 }
0x1869   : > { %v7319_v30 = vpop.xlane.xlu0 %7318 }
0x186a   : > { %v7374_v60 = vadd.f32 1e-05, %v7358_v34  ;;  %v7341_v26 = vmul.f32 0.03125, %v7319_v30 }
0x186c   : > { %16447 = vrsqrt.f32 %v7374_v60  ;;  %v7357_v62 = vsub.f32 %v7341_v26, %v7349_v37  ;;  %v7285_v58 = vpop.xlane.xlu1 %7284  ;;  %v19572_v37 = vrot.slane %v19561_v10, %v17721_v12  ;;  %v10587_v60 = vld [vmem:[%s20755_s8 + $0x98] sm:$0xff] }
0x186d   : > { %v7303_v27 = vmul.f32 0.03125, %v7285_v58  ;;  %v7288_v9 = vpop.xlane.xlu0 %7287 }
0x186e   : > { %v7373_v8 = vadd.f32 1e-05, %v7357_v62  ;;  %v7304_v33 = vmul.f32 0.03125, %v7288_v9  ;;  %v14559_v62 = vpack.c.bf16 %v10587_v60, %v10586_v61 }
0x186f   : > { %v7351_v46 = vmul.f32 %v7303_v27, %v7303_v27  ;;  %v7367_v5 = vsub.f32 %v19496_v45, %v7303_v27 }
0x1870   : > { %16449 = vrsqrt.f32 %v7373_v8  ;;  %v7325_v63 = vpop.xlane.xlu1 %7324  ;;  %v7352_v11 = vmul.f32 %v7304_v33, %v7304_v33  ;;  %v7368_v9 = vsub.f32 %v19492_v17, %v7304_v33  ;;  %v10588_v8 = vld [vmem:[%s20755_s8 + $0xa0] sm:$0xff] }
0x1871   : > { %v7343_v31 = vmul.f32 0.03125, %v7325_v63  ;;  %v7328_v51 = vpop.xlane.xlu0 %7327  ;;  %v10589_v63 = vld [vmem:[%s20755_s8 + $0xa8] sm:$0xff] }
0x1872   : > { %v7344_v28 = vmul.f32 0.03125, %v7328_v51  ;;  %v14563_v33 = vpack.c.bf16 %v10589_v63, %v10588_v8 }
0x1873   : > { %v7359_v59 = vsub.f32 %v7343_v31, %v7351_v46 }
0x1874   : > { %v7360_v2 = vsub.f32 %v7344_v28, %v7352_v11 }
0x1875   : > { %v7375_v57 = vadd.f32 1e-05, %v7359_v59 }
0x1876   : > { %v16448_v32 = vpop.eup %16447  ;;  %v7376_v0 = vadd.f32 1e-05, %v7360_v2 }
0x1877   : > { %16451 = vrsqrt.f32 %v7375_v57  ;;  %v7390_v55 = vmul.f32 %v16448_v32, %v7366_v16 }
0x1878   : > { %16453 = vrsqrt.f32 %v7376_v0 }
0x1879   : > { %v7402_v30 = vmul.f32 %v19566_v1, %v7390_v55 }
0x187a   : > { %v16450_v18 = vpop.eup %16449 }
0x187b   : > { %v7389_v34 = vmul.f32 %v16450_v18, %v7365_v3  ;;  %v19586_v26 = vadd.f32 %v19572_v37, %v7402_v30 }
0x187d   : > { %v7401_v36 = vmul.f32 %v19566_v1, %v7389_v34 }
0x187f   : > { %v19582_v29 = vadd.f32 %v19572_v37, %v7401_v36 }
0x1881   : > { %v16452_v58 = vpop.eup %16451  ;;  %12943 = vmatprep.mubr.msk.f32.mxu1 %vm651_vm2, %v19582_v29 }
0x1882   : > { %v16454_v46 = vpop.eup %16453  ;;  %12944 = vmatmul.mubr.msk.f32.vlgmr.msra.gmra.mrb[80].mxu1 %vm651_vm2, %v19586_v26  ;;  %v7391_v45 = vmul.f32 %v16452_v58, %v7367_v5 }
0x1883   : > { %v7392_v27 = vmul.f32 %v16454_v46, %v7368_v9  ;;  %14558 = vmatpush3.bf16.msra.mxu1 %v14555_v14 }
0x1884   : > { %v7403_v17 = vmul.f32 %v19566_v1, %v7391_v45  ;;  %14560 = vmatprep.subr.bf16.mxu1 %v14559_v62 }
0x1885   : > { %v7404_v31 = vmul.f32 %v19566_v1, %v7392_v27 }
0x1886   : > { %v19602_v51 = vadd.f32 %v19572_v37, %v7403_v17 }
0x1887   : > { %v19605_v11 = vadd.f32 %v19572_v37, %v7404_v31  ;;  %14562 = vmatpush3.bf16.msra.mxu1 %v14559_v62 }
0x1888   : > { %12946 = vmatprep.mubr.msk.f32.mxu1 %vm651_vm2, %v19602_v51  ;;  %14564 = vmatprep.subr.bf16.mxu1 %v14563_v33 }
0x1889   : > { %12947 = vmatmul.mubr.msk.f32.gmra.mrb[82].mxu1 %vm651_vm2, %v19605_v11 }
0x188b   : > { %14566 = vmatpush3.bf16.msra.mxu1 %v14563_v33 }
0x18a0   : > { %v7294_v14 = vpop.xlane.xlu0 %7293 }
0x18a1   : > { %v7306_v28 = vmul.f32 0.03125, %v7294_v14  ;;  %v7291_v59 = vpop.xlane.xlu1 %7290 }
0x18a2   : > { %v7305_v2 = vmul.f32 0.03125, %v7291_v59 }
0x18a3   : > { %v7354_v32 = vmul.f32 %v7306_v28, %v7306_v28  ;;  %v7370_v14 = vsub.f32 %v19521_v52, %v7306_v28 }
0x18a4   : > { %v7334_v57 = vpop.xlane.xlu0 %7333  ;;  %v7353_v55 = vmul.f32 %v7305_v2, %v7305_v2 }
0x18a5   : > { %v7346_v16 = vmul.f32 0.03125, %v7334_v57  ;;  %v7331_v0 = vpop.xlane.xlu1 %7330  ;;  %v7369_v57 = vsub.f32 %v19524_v20, %v7305_v2 }
0x18a6   : > { %v7345_v3 = vmul.f32 0.03125, %v7331_v0 }
0x18a7   : > { %v7362_v18 = vsub.f32 %v7346_v16, %v7354_v32 }
0x18a8   : > { %v7361_v34 = vsub.f32 %v7345_v3, %v7353_v55  ;;  %v7300_v30 = vpop.xlane.xlu0 %7299 }
0x18a9   : > { %v7378_v36 = vadd.f32 1e-05, %v7362_v18  ;;  %v7308_v61 = vmul.f32 0.03125, %v7300_v30  ;;  %v7297_v60 = vpop.xlane.xlu1 %7296 }
0x18aa   : > { %v7377_v5 = vadd.f32 1e-05, %v7361_v34  ;;  %v7307_v62 = vmul.f32 0.03125, %v7297_v60 }
0x18ab   : > { %16455 = vrsqrt.f32 %v7378_v36  ;;  %v7356_v9 = vmul.f32 %v7308_v61, %v7308_v61  ;;  %v7372_v34 = vsub.f32 %v19537_v24, %v7308_v61 }
0x18ac   : > { %16457 = vrsqrt.f32 %v7377_v5  ;;  %v7340_v58 = vpop.xlane.xlu0 %7339  ;;  %v7355_v46 = vmul.f32 %v7307_v62, %v7307_v62  ;;  %v7371_v28 = vsub.f32 %v19540_v6, %v7307_v62  ;;  %v10590_v6 = vld [vmem:[%s20755_s8 + $0xb0] sm:$0xff] }
0x18ad   : > { %v7348_v8 = vmul.f32 0.03125, %v7340_v58  ;;  %v7337_v63 = vpop.xlane.xlu1 %7336 }
0x18ae   : > { %v7347_v45 = vmul.f32 0.03125, %v7337_v63 }
0x18af   : > { %v7364_v27 = vsub.f32 %v7348_v8, %v7356_v9 }
0x18b0   : > { %v7363_v17 = vsub.f32 %v7347_v45, %v7355_v46 }
0x18b1   : > { %v7380_v33 = vadd.f32 1e-05, %v7364_v27 }
0x18b2   : > { %v7379_v31 = vadd.f32 1e-05, %v7363_v17 }
0x18b3   : > { %16459 = vrsqrt.f32 %v7380_v33 }
0x18b4   : > { %16461 = vrsqrt.f32 %v7379_v31 }
0x18b5   : > { %v16456_v59 = vpop.eup %16455 }
0x18b6   : > { %v16458_v32 = vpop.eup %16457  ;;  %v7394_v16 = vmul.f32 %v16456_v59, %v7370_v14 }
0x18b7   : > { %v7393_v0 = vmul.f32 %v16458_v32, %v7369_v57 }
0x18b8   : > { %v7406_v55 = vmul.f32 %v19566_v1, %v7394_v16 }
0x18b9   : > { %v7405_v3 = vmul.f32 %v19566_v1, %v7393_v0 }
0x18ba   : > { %v19620_v30 = vadd.f32 %v19572_v37, %v7406_v55 }
0x18bb   : > { %v19616_v18 = vadd.f32 %v19572_v37, %v7405_v3 }
0x18bd   : > { %v16460_v52 = vpop.eup %16459  ;;  %12949 = vmatprep.mubr.msk.f32.mxu1 %vm651_vm2, %v19616_v18 }
0x18be   : > { %v16462_v20 = vpop.eup %16461  ;;  %12950 = vmatmul.mubr.msk.f32.gmra.mrb[84].mxu1 %vm651_vm2, %v19620_v30  ;;  %v7396_v2 = vmul.f32 %v16460_v52, %v7372_v34 }
0x18bf   : > { %v7395_v36 = vmul.f32 %v16462_v20, %v7371_v28 }
0x18c0   : > { %v7408_v60 = vmul.f32 %v19566_v1, %v7396_v2 }
0x18c1   : > { %v7407_v5 = vmul.f32 %v19566_v1, %v7395_v36  ;;  %v10591_v1 = vld [vmem:[%s20755_s8 + $0xb8] sm:$0xff] }
0x18c2   : > { %v19633_v61 = vadd.f32 %v19572_v37, %v7408_v60  ;;  %v14567_v62 = vpack.c.bf16 %v10591_v1, %v10590_v6  ;;  %v10693_v60 = vld [vmem:[%s20756_s9 + $0x2] ss:$0 sm:$0xff] }
0x18c3   : > { %v19630_v24 = vadd.f32 %v19572_v37, %v7407_v5  ;;  %v10684_v37 = vld [vmem:[%s20754_s7 + $0x2] ss:$0 sm:$0xff] }
0x18c4   : > { %14568 = vmatprep.subr.bf16.mxu1 %v14567_v62 }
0x18c5   : > { %12952 = vmatprep.mubr.msk.f32.mxu1 %vm651_vm2, %v19630_v24  ;;  %14570 = vmatpush3.bf16.msra.mxu1 %v14567_v62 }
0x18c6   : > { %12953 = vmatmul.mubr.msk.f32.gmra.mrb[86].mxu1 %vm651_vm2, %v19633_v61 }
0x1955   : > { %v12945_v58 = vpop.f32.mrb[80].mxu1 }
0x1956   : > { %v7523_v9 = vadd.f32 %v12945_v58, %v10684_v37  ;;  %v7517_v8 = vpop.f32.mrb[81].mxu1 }
0x1957   : > { %v7518_v63 = vadd.f32 %v10684_v37, %v7517_v8 }
0x1958   : > { %v7557_v45 = vmax.f32 %v7523_v9, 0.0 }
0x1959   : > { %v7556_v46 = vmax.f32 %v7518_v63, 0.0 }
0x195b   : > { %12971 = vmatprep.mubr.msk.f32.mxu1 %vm2819_vm4, %v7556_v46 }
0x195c   : > { %v12948_v27 = vpop.f32.mrb[82].mxu1  ;;  %12972 = vmatmul.mubr.msk.f32.vlgmr.msra.gmra.mrb[88].mxu1 %vm2819_vm4, %v7557_v45 }
0x195d   : > { %v7533_v17 = vadd.f32 %v12948_v27, %v10684_v37  ;;  %v7527_v33 = vpop.f32.mrb[83].mxu1 }
0x195e   : > { %v7528_v31 = vadd.f32 %v10684_v37, %v7527_v33 }
0x195f   : > { %v7559_v59 = vmax.f32 %v7533_v17, 0.0 }
0x1960   : > { %v7558_v14 = vmax.f32 %v7528_v31, 0.0 }
0x1962   : > { %12974 = vmatprep.mubr.msk.f32.mxu1 %vm2819_vm4, %v7558_v14 }
0x1963   : > { %12975 = vmatmul.mubr.msk.f32.gmra.mrb[90].mxu1 %vm2819_vm4, %v7559_v59 }
0x1991   : > { %v12951_v57 = vpop.f32.mrb[84].mxu1 }
0x1992   : > { %v7543_v32 = vadd.f32 %v12951_v57, %v10684_v37  ;;  %v7537_v16 = vpop.f32.mrb[85].mxu1 }
0x1993   : > { %v7538_v0 = vadd.f32 %v10684_v37, %v7537_v16 }
0x1994   : > { %v7561_v3 = vmax.f32 %v7543_v32, 0.0 }
0x1995   : > { %v7560_v55 = vmax.f32 %v7538_v0, 0.0  ;;  %v10702_v0 = vld [vmem:[%s20749_s2 + $0x60] sm:$0xff] }
0x1997   : > { %12977 = vmatprep.mubr.msk.f32.mxu1 %vm2819_vm4, %v7560_v55  ;;  %v10703_v55 = vld [vmem:[%s20749_s2 + $0x68] sm:$0xff] }
0x1998   : > { %12978 = vmatmul.mubr.msk.f32.gmra.mrb[92].mxu1 %vm2819_vm4, %v7561_v3  ;;  %v10704_v3 = vld [vmem:[%s20749_s2 + $0x70] sm:$0xff] }
0x1999   : > { %v12954_v34 = vpop.f32.mrb[86].mxu1 }
0x199a   : > { %v7553_v52 = vadd.f32 %v12954_v34, %v10684_v37  ;;  %v7547_v28 = vpop.f32.mrb[87].mxu1  ;;  %v14571_v34 = vpack.c.bf16 %v10703_v55, %v10702_v0 }
0x199b   : > { %v7548_v20 = vadd.f32 %v10684_v37, %v7547_v28 }
0x199c   : > { %v7563_v36 = vmax.f32 %v7553_v52, 0.0  ;;  %v10705_v52 = vld [vmem:[%s20749_s2 + $0x78] sm:$0xff]  ;;  %14572 = vmatprep.subr.bf16.mxu0 %v14571_v34 }
0x199d   : > { %v7562_v2 = vmax.f32 %v7548_v20, 0.0  ;;  %v14575_v28 = vpack.c.bf16 %v10705_v52, %v10704_v3  ;;  %14574 = vmatpush3.bf16.msra.mxu0 %v14571_v34 }
0x199f   : > { %12980 = vmatprep.mubr.msk.f32.mxu1 %vm2819_vm4, %v7562_v2  ;;  %14576 = vmatprep.subr.bf16.mxu0 %v14575_v28 }
0x19a0   : > { %12981 = vmatmul.mubr.msk.f32.gmra.mrb[94].mxu1 %vm2819_vm4, %v7563_v36 }
0x19a1   : > { %14578 = vmatpush3.bf16.msra.mxu0 %v14575_v28 }
0x1a2f   : > { %v12973_v5 = vpop.f32.mrb[88].mxu1 }
0x1a30   : > { %v7666_v6 = vadd.f32 %v12973_v5, %v10693_v60  ;;  %v7660_v1 = vpop.f32.mrb[89].mxu1 }
0x1a31   : > { %v7661_v62 = vadd.f32 %v10693_v60, %v7660_v1 }
0x1a32   : > { %v19660_v58 = vadd.f32 %v7666_v6, %v19586_v26 }
0x1a33   : > { %v19663_v9 = vadd.f32 %v7661_v62, %v19582_v29 }
0x1a34   : > { %v7710_v37 = vsel %vm651_vm2, %v19660_v58, 0.0  ;;  %v7740_v8 = vmul.f32 %v19660_v58, %v19660_v58 }
0x1a35   : > { %7711 = vadd.xlane.f32.xlu0 %v7710_v37  ;;  %v7707_v63 = vsel %vm651_vm2, %v19663_v9, 0.0  ;;  %v7739_v46 = vmul.f32 %v19663_v9, %v19663_v9 }
0x1a36   : > { %v12976_v45 = vpop.f32.mrb[90].mxu1  ;;  %7708 = vadd.xlane.f32.xlu1 %v7707_v63  ;;  %v7750_v29 = vsel %vm651_vm2, %v7740_v8, 0.0 }
0x1a37   : > { %v7676_v26 = vadd.f32 %v12976_v45, %v10693_v60  ;;  %v7670_v27 = vpop.f32.mrb[91].mxu1  ;;  %v7747_v31 = vsel %vm651_vm2, %v7739_v46, 0.0 }
0x1a38   : > { %v7671_v17 = vadd.f32 %v10693_v60, %v7670_v27 }
0x1a39   : > { %v19675_v33 = vadd.f32 %v7676_v26, %v19605_v11  ;;  %7751 = vadd.xlane.f32.xlu0 %v7750_v29 }
0x1a3a   : > { %v19679_v14 = vadd.f32 %v7671_v17, %v19602_v51  ;;  %7748 = vadd.xlane.f32.xlu1 %v7747_v31 }
0x1a3b   : > { %v7716_v59 = vsel %vm651_vm2, %v19675_v33, 0.0  ;;  %v7742_v32 = vmul.f32 %v19675_v33, %v19675_v33 }
0x1a3c   : > { %v7713_v57 = vsel %vm651_vm2, %v19679_v14, 0.0  ;;  %v7741_v11 = vmul.f32 %v19679_v14, %v19679_v14 }
0x1a3d   : > { %7717 = vadd.xlane.f32.xlu0 %v7716_v59  ;;  %v7756_v16 = vsel %vm651_vm2, %v7742_v32, 0.0 }
0x1a3e   : > { %7714 = vadd.xlane.f32.xlu1 %v7713_v57  ;;  %v7753_v51 = vsel %vm651_vm2, %v7741_v11, 0.0 }
0x1a41   : > { %7757 = vadd.xlane.f32.xlu0 %v7756_v16 }
0x1a42   : > { %7754 = vadd.xlane.f32.xlu1 %v7753_v51 }
0x1a6b   : > { %v12979_v20 = vpop.f32.mrb[92].mxu1 }
0x1a6c   : > { %v7686_v2 = vadd.f32 %v12979_v20, %v10693_v60  ;;  %v7680_v36 = vpop.f32.mrb[93].mxu1 }
0x1a6d   : > { %v7681_v5 = vadd.f32 %v10693_v60, %v7680_v36 }
0x1a6e   : > { %v19704_v6 = vadd.f32 %v7686_v2, %v19620_v30 }
0x1a6f   : > { %v19707_v1 = vadd.f32 %v7681_v5, %v19616_v18 }
0x1a70   : > { %v7722_v62 = vsel %vm651_vm2, %v19704_v6, 0.0  ;;  %v7744_v37 = vmul.f32 %v19704_v6, %v19704_v6 }
0x1a71   : > { %7723 = vadd.xlane.f32.xlu0 %v7722_v62  ;;  %v7719_v8 = vsel %vm651_vm2, %v19707_v1, 0.0  ;;  %v7743_v63 = vmul.f32 %v19707_v1, %v19707_v1 }
0x1a72   : > { %7720 = vadd.xlane.f32.xlu1 %v7719_v8  ;;  %v7762_v18 = vsel %vm651_vm2, %v7744_v37, 0.0 }
0x1a73   : > { %v12982_v46 = vpop.f32.mrb[94].mxu1  ;;  %v7759_v27 = vsel %vm651_vm2, %v7743_v63, 0.0 }
0x1a74   : > { %v7696_v30 = vadd.f32 %v12982_v46, %v10693_v60  ;;  %v7690_v45 = vpop.f32.mrb[95].mxu1 }
0x1a75   : > { %v7691_v26 = vadd.f32 %v10693_v60, %v7690_v45  ;;  %7763 = vadd.xlane.f32.xlu0 %v7762_v18 }
0x1a76   : > { %v19720_v17 = vadd.f32 %v7696_v30, %v19633_v61  ;;  %7760 = vadd.xlane.f32.xlu1 %v7759_v27 }
0x1a77   : > { %v19723_v29 = vadd.f32 %v7691_v26, %v19630_v24 }
0x1a78   : > { %v7728_v31 = vsel %vm651_vm2, %v19720_v17, 0.0  ;;  %v7746_v59 = vmul.f32 %v19720_v17, %v19720_v17 }
0x1a79   : > { %7729 = vadd.xlane.f32.xlu0 %v7728_v31  ;;  %v7725_v60 = vsel %vm651_vm2, %v19723_v29, 0.0  ;;  %v7745_v57 = vmul.f32 %v19723_v29, %v19723_v29 }
0x1a7a   : > { %7726 = vadd.xlane.f32.xlu1 %v7725_v60  ;;  %v7768_v61 = vsel %vm651_vm2, %v7746_v59, 0.0 }
0x1a7b   : > { %v7765_v24 = vsel %vm651_vm2, %v7745_v57, 0.0 }
0x1a7d   : > { %7769 = vadd.xlane.f32.xlu0 %v7768_v61 }
0x1a7e   : > { %7766 = vadd.xlane.f32.xlu1 %v7765_v24  ;;  %v19738_v24 = vrot.slane %v19561_v10, %v17892_v38 }
0x1ac2   : > { %v7712_v32 = vpop.xlane.xlu0 %7711 }
0x1ac3   : > { %v7732_v11 = vmul.f32 0.03125, %v7712_v32  ;;  %v7709_v16 = vpop.xlane.xlu1 %7708 }
0x1ac4   : > { %v7731_v51 = vmul.f32 0.03125, %v7709_v16 }
0x1ac5   : > { %v7780_v55 = vmul.f32 %v7732_v11, %v7732_v11  ;;  %v7796_v61 = vsub.f32 %v19660_v58, %v7732_v11 }
0x1ac6   : > { %v7752_v0 = vpop.xlane.xlu0 %7751  ;;  %v7779_v52 = vmul.f32 %v7731_v51, %v7731_v51  ;;  %v7795_v16 = vsub.f32 %v19663_v9, %v7731_v51 }
0x1ac7   : > { %v7772_v3 = vmul.f32 0.03125, %v7752_v0  ;;  %v7749_v34 = vpop.xlane.xlu1 %7748 }
0x1ac8   : > { %v7771_v28 = vmul.f32 0.03125, %v7749_v34  ;;  %v19743_v34 = vrot.slane %v19561_v10, %v17895_v48 }
0x1ac9   : > { %v7788_v20 = vsub.f32 %v7772_v3, %v7780_v55 }
0x1aca   : > { %v7787_v2 = vsub.f32 %v7771_v28, %v7779_v52  ;;  %v7718_v36 = vpop.xlane.xlu0 %7717 }
0x1acb   : > { %v7804_v5 = vadd.f32 1e-05, %v7788_v20  ;;  %v7734_v62 = vmul.f32 0.03125, %v7718_v36  ;;  %v7715_v37 = vpop.xlane.xlu1 %7714 }
0x1acc   : > { %v7803_v8 = vadd.f32 1e-05, %v7787_v2  ;;  %v7733_v63 = vmul.f32 0.03125, %v7715_v37 }
0x1acd   : > { %16463 = vrsqrt.f32 %v7804_v5  ;;  %v7782_v30 = vmul.f32 %v7734_v62, %v7734_v62  ;;  %v7798_v11 = vsub.f32 %v19675_v33, %v7734_v62 }
0x1ace   : > { %16465 = vrsqrt.f32 %v7803_v8  ;;  %v7758_v46 = vpop.xlane.xlu0 %7757  ;;  %v7781_v26 = vmul.f32 %v7733_v63, %v7733_v63  ;;  %v7797_v51 = vsub.f32 %v19679_v14, %v7733_v63 }
0x1acf   : > { %v7774_v45 = vmul.f32 0.03125, %v7758_v46  ;;  %v7755_v18 = vpop.xlane.xlu1 %7754 }
0x1ad0   : > { %v7773_v27 = vmul.f32 0.03125, %v7755_v18 }
0x1ad1   : > { %v7790_v31 = vsub.f32 %v7774_v45, %v7782_v30 }
0x1ad2   : > { %v7789_v59 = vsub.f32 %v7773_v27, %v7781_v26 }
0x1ad3   : > { %v7806_v60 = vadd.f32 1e-05, %v7790_v31 }
0x1ad4   : > { %v7805_v57 = vadd.f32 1e-05, %v7789_v59 }
0x1ad5   : > { %16467 = vrsqrt.f32 %v7806_v60 }
0x1ad6   : > { %16469 = vrsqrt.f32 %v7805_v57 }
0x1ad7   : > { %v16464_v32 = vpop.eup %16463 }
0x1ad8   : > { %v16466_v0 = vpop.eup %16465  ;;  %v7820_v55 = vmul.f32 %v16464_v32, %v7796_v61 }
0x1ad9   : > { %v7819_v3 = vmul.f32 %v16466_v0, %v7795_v16 }
0x1ada   : > { %v7832_v52 = vmul.f32 %v19738_v24, %v7820_v55 }
0x1adb   : > { %v7831_v28 = vmul.f32 %v19738_v24, %v7819_v3 }
0x1adc   : > { %v19752_v20 = vadd.f32 %v19743_v34, %v7832_v52 }
0x1add   : > { %v19748_v58 = vadd.f32 %v19743_v34, %v7831_v28 }
0x1adf   : > { %v16468_v9 = vpop.eup %16467  ;;  %12991 = vmatprep.mubr.msk.f32.mxu0 %vm651_vm2, %v19748_v58 }
0x1ae0   : > { %v16470_v10 = vpop.eup %16469  ;;  %12992 = vmatmul.mubr.msk.f32.vlgmr.msra.gmra.mrb[80].mxu0 %vm651_vm2, %v19752_v20  ;;  %v7822_v2 = vmul.f32 %v16468_v9, %v7798_v11 }
0x1ae1   : > { %v7821_v36 = vmul.f32 %v16470_v10, %v7797_v51 }
0x1ae2   : > { %v7834_v5 = vmul.f32 %v19738_v24, %v7822_v2 }
0x1ae3   : > { %v7833_v37 = vmul.f32 %v19738_v24, %v7821_v36 }
0x1ae4   : > { %v19765_v62 = vadd.f32 %v19743_v34, %v7834_v5 }
0x1ae5   : > { %v19762_v33 = vadd.f32 %v19743_v34, %v7833_v37 }
0x1ae7   : > { %12994 = vmatprep.mubr.msk.f32.mxu0 %vm651_vm2, %v19762_v33 }
0x1ae8   : > { %12995 = vmatmul.mubr.msk.f32.gmra.mrb[82].mxu0 %vm651_vm2, %v19765_v62 }
0x1afe   : > { %v7724_v14 = vpop.xlane.xlu0 %7723 }
0x1aff   : > { %v7736_v8 = vmul.f32 0.03125, %v7724_v14  ;;  %v7721_v63 = vpop.xlane.xlu1 %7720 }
0x1b00   : > { %v7735_v46 = vmul.f32 0.03125, %v7721_v63 }
0x1b01   : > { %v7784_v45 = vmul.f32 %v7736_v8, %v7736_v8  ;;  %v7800_v37 = vsub.f32 %v19704_v6, %v7736_v8 }
0x1b02   : > { %v7764_v30 = vpop.xlane.xlu0 %7763  ;;  %v7783_v27 = vmul.f32 %v7735_v46, %v7735_v46  ;;  %v7799_v63 = vsub.f32 %v19707_v1, %v7735_v46 }
0x1b03   : > { %v7776_v18 = vmul.f32 0.03125, %v7764_v30  ;;  %v7761_v26 = vpop.xlane.xlu1 %7760 }
0x1b04   : > { %v7775_v31 = vmul.f32 0.03125, %v7761_v26 }
0x1b05   : > { %v7792_v59 = vsub.f32 %v7776_v18, %v7784_v45 }
0x1b06   : > { %v7791_v60 = vsub.f32 %v7775_v31, %v7783_v27  ;;  %v7730_v57 = vpop.xlane.xlu0 %7729 }
0x1b07   : > { %v7808_v61 = vadd.f32 1e-05, %v7792_v59  ;;  %v7738_v32 = vmul.f32 0.03125, %v7730_v57  ;;  %v7727_v16 = vpop.xlane.xlu1 %7726 }
0x1b08   : > { %v7807_v0 = vadd.f32 1e-05, %v7791_v60  ;;  %v7737_v55 = vmul.f32 0.03125, %v7727_v16 }
0x1b09   : > { %16471 = vrsqrt.f32 %v7808_v61  ;;  %v7786_v52 = vmul.f32 %v7738_v32, %v7738_v32  ;;  %v7802_v59 = vsub.f32 %v19720_v17, %v7738_v32 }
0x1b0a   : > { %16473 = vrsqrt.f32 %v7807_v0  ;;  %v7770_v3 = vpop.xlane.xlu0 %7769  ;;  %v7785_v9 = vmul.f32 %v7737_v55, %v7737_v55  ;;  %v7801_v8 = vsub.f32 %v19723_v29, %v7737_v55  ;;  %v19802_v29 = vld [vmem:[%s20750_s3 + $0x3] ss:$0 sm:$0xff] }
0x1b0b   : > { %v7778_v28 = vmul.f32 0.03125, %v7770_v3  ;;  %v7767_v11 = vpop.xlane.xlu1 %7766 }
0x1b0c   : > { %v7777_v51 = vmul.f32 0.03125, %v7767_v11 }
0x1b0d   : > { %v7794_v10 = vsub.f32 %v7778_v28, %v7786_v52 }
0x1b0e   : > { %v7793_v2 = vsub.f32 %v7777_v51, %v7785_v9 }
0x1b0f   : > { %v7810_v36 = vadd.f32 1e-05, %v7794_v10 }
0x1b10   : > { %v7809_v5 = vadd.f32 1e-05, %v7793_v2 }
0x1b11   : > { %16475 = vrsqrt.f32 %v7810_v36 }
0x1b12   : > { %16477 = vrsqrt.f32 %v7809_v5 }
0x1b13   : > { %v16472_v14 = vpop.eup %16471 }
0x1b14   : > { %v16474_v30 = vpop.eup %16473  ;;  %v7824_v45 = vmul.f32 %v16472_v14, %v7800_v37 }
0x1b15   : > { %v7823_v18 = vmul.f32 %v16474_v30, %v7799_v63 }
0x1b16   : > { %v7836_v26 = vmul.f32 %v19738_v24, %v7824_v45 }
0x1b17   : > { %v7835_v27 = vmul.f32 %v19738_v24, %v7823_v18 }
0x1b18   : > { %v19780_v60 = vadd.f32 %v19743_v34, %v7836_v26 }
0x1b19   : > { %v19776_v31 = vadd.f32 %v19743_v34, %v7835_v27 }
0x1b1b   : > { %v16476_v6 = vpop.eup %16475  ;;  %12997 = vmatprep.mubr.msk.f32.mxu0 %vm651_vm2, %v19776_v31 }
0x1b1c   : > { %v16478_v1 = vpop.eup %16477  ;;  %12998 = vmatmul.mubr.msk.f32.gmra.mrb[84].mxu0 %vm651_vm2, %v19780_v60  ;;  %v7826_v46 = vmul.f32 %v16476_v6, %v7802_v59 }
0x1b1d   : > { %v7825_v57 = vmul.f32 %v16478_v1, %v7801_v8 }
0x1b1e   : > { %v7838_v61 = vmul.f32 %v19738_v24, %v7826_v46 }
0x1b1f   : > { %v7837_v16 = vmul.f32 %v19738_v24, %v7825_v57 }
0x1b20   : > { %v19793_v32 = vadd.f32 %v19743_v34, %v7838_v61 }
0x1b21   : > { %v19790_v17 = vadd.f32 %v19743_v34, %v7837_v16 }
0x1b23   : > { %13000 = vmatprep.mubr.msk.f32.mxu0 %vm651_vm2, %v19790_v17 }
0x1b24   : > { %13001 = vmatmul.mubr.msk.f32.gmra.mrb[86].mxu0 %vm651_vm2, %v19793_v32 }
0x1bb3   : > { %v12993_v0 = vpop.f32.mrb[80].mxu0 }
0x1bb4   : > { %v19805_v24 = vadd.f32 %v12993_v0, %v19802_v29  ;;  %v7981_v55 = vpop.f32.mrb[81].mxu0  ;;  %v20906_v0 = vld [vmem:[#allocation8_spill] sm:$0xff] }
0x1bb5   : > { %v19808_v3 = vadd.f32 %v19802_v29, %v7981_v55 }
0x1bb6   : > { %v8021_v34 = vmul.f32 %v19805_v24, %v16892_v42  ;;  %v8023_v9 = vmul.f32 %v19805_v24, %v16890_v41  ;;  %v8025_v18 = vmul.f32 %v19805_v24, %v16894_v43  ;;  %v8027_v1 = vmul.f32 %v19805_v24, %v16903_v47 }
0x1bb7   : > { %13035 = vmatprep.mubr.msk.f32.mxu0 %vm651_vm2, %v19808_v3  ;;  %v8020_v52 = vmul.f32 %v19808_v3, %v16888_v40  ;;  %v8022_v11 = vmul.f32 %v19808_v3, %v16886_v39  ;;  %v8024_v45 = vmul.f32 %v19808_v3, %v16896_v44  ;;  %v8026_v8 = vmul.f32 %v19808_v3, %v16908_v50 }
0x1bb8   : > { %v8028_v55 = vmul.f32 %v19808_v3, %v20906_v0 }
0x1bb9   : > { %v15967_v28 = vpack.i.bf16 %v8021_v34, %v8020_v52  ;;  %v15977_v5 = vpack.i.bf16 %v8023_v9, %v8022_v11  ;;  %v15987_v46 = vpack.i.bf16 %v8025_v18, %v8024_v45  ;;  %v20907_v34 = vld [vmem:[#allocation7_spill] sm:$0xff] }
0x1bba   : > { %v8029_v52 = vmul.f32 %v19805_v24, %v20907_v34 }
0x1bbb   : > { %v12996_v51 = vpop.f32.mrb[82].mxu0  ;;  %15968 = vrot.lane.b32.xlu1 %v15967_v28, %s16608_s23  ;;  %v15997_v28 = vpack.i.bf16 %v8027_v1, %v8026_v8  ;;  %v20911_v8 = vld [vmem:[#allocation11_spill] sm:$0xff] }
0x1bbc   : > { %v19822_v10 = vadd.f32 %v12996_v51, %v19802_v29  ;;  %v7991_v2 = vpop.f32.mrb[83].mxu0  ;;  %v8033_v1 = vmul.f32 %v19805_v24, %v20911_v8 }
0x1bbd   : > { %v19825_v36 = vadd.f32 %v19802_v29, %v7991_v2  ;;  %v20908_v2 = vld [vmem:[#allocation10_spill] sm:$0xff] }
0x1bbe   : > { %v8037_v37 = vmul.f32 %v19822_v10, %v16892_v42  ;;  %v8039_v14 = vmul.f32 %v19822_v10, %v16890_v41  ;;  %v8041_v6 = vmul.f32 %v19822_v10, %v16894_v43  ;;  %v8043_v16 = vmul.f32 %v19822_v10, %v16903_v47 }
0x1bbf   : > { %13070 = vmatprep.mubr.msk.f32.mxu1 %vm651_vm2, %v19825_v36  ;;  %15978 = vrot.lane.b32.xlu1 %v15977_v5, %s16608_s23  ;;  %v8036_v63 = vmul.f32 %v19825_v36, %v16888_v40  ;;  %v8038_v30 = vmul.f32 %v19825_v36, %v16886_v39  ;;  %v8040_v59 = vmul.f32 %v19825_v36, %v16896_v44 }
0x1bc0   : > { %v8042_v61 = vmul.f32 %v19825_v36, %v16908_v50  ;;  %v8044_v9 = vmul.f32 %v19825_v36, %v20906_v0  ;;  %v8045_v51 = vmul.f32 %v19822_v10, %v20907_v34  ;;  %v8030_v5 = vmul.f32 %v19808_v3, %v20908_v2 }
0x1bc1   : > { %v15972_v26 = vpack.i.bf16 %v8037_v37, %v8036_v63  ;;  %v15982_v27 = vpack.i.bf16 %v8039_v14, %v8038_v30  ;;  %v15992_v57 = vpack.i.bf16 %v8041_v6, %v8040_v59  ;;  %v20909_v37 = vld [vmem:[#allocation9_spill] sm:$0xff]  ;;  %v16007_v63 = vpack.i.bf16 %v8029_v52, %v8028_v55 }
0x1bc2   : > { %v16002_v11 = vpack.i.bf16 %v8043_v16, %v8042_v61  ;;  %v8031_v14 = vmul.f32 %v19805_v24, %v20909_v37  ;;  %v16012_v30 = vpack.i.bf16 %v8045_v51, %v8044_v9  ;;  %v8046_v45 = vmul.f32 %v19825_v36, %v20908_v2  ;;  %v20912_v61 = vld [vmem:[#allocation14_spill] sm:$0xff]  ;;  %v20913_v55 = vld [vmem:[#allocation13_spill] sm:$0xff] }
0x1bc3   : > { %15973 = vrot.lane.b32.xlu0 %v15972_v26, %s16608_s23  ;;  %15983 = vrot.lane.b32.xlu1 %v15982_v27, %s16608_s23  ;;  %v8047_v18 = vmul.f32 %v19822_v10, %v20909_v37  ;;  %v20910_v27 = vld [vmem:[#allocation12_spill] sm:$0xff]  ;;  %v8034_v16 = vmul.f32 %v19808_v3, %v20912_v61  ;;  %v8035_v52 = vmul.f32 %v19805_v24, %v20913_v55 }
0x1bc4   : > { %v16017_v26 = vpack.i.bf16 %v8031_v14, %v8030_v5  ;;  %v8032_v59 = vmul.f32 %v19808_v3, %v20910_v27  ;;  %v8050_v9 = vmul.f32 %v19825_v36, %v20912_v61  ;;  %v8051_v51 = vmul.f32 %v19822_v10, %v20913_v55 }
0x1bc5   : > { %v16022_v6 = vpack.i.bf16 %v8047_v18, %v8046_v45  ;;  %v16037_v5 = vpack.i.bf16 %v8035_v52, %v8034_v16 }
0x1bc6   : > { %v16042_v14 = vpack.i.bf16 %v8051_v51, %v8050_v9 }
0x1bc7   : > { %15988 = vrot.lane.b32.xlu0 %v15987_v46, %s16608_s23  ;;  %15993 = vrot.lane.b32.xlu1 %v15992_v57, %s16608_s23  ;;  %v8048_v46 = vmul.f32 %v19825_v36, %v20910_v27  ;;  %v8049_v57 = vmul.f32 %v19822_v10, %v20911_v8 }
0x1bcb   : > { %15998 = vrot.lane.b32.xlu0 %v15997_v28, %s16608_s23  ;;  %16003 = vrot.lane.b32.xlu1 %v16002_v11, %s16608_s23  ;;  %v16027_v28 = vpack.i.bf16 %v8033_v1, %v8032_v59  ;;  %v16032_v11 = vpack.i.bf16 %v8049_v57, %v8048_v46 }
0x1bcf   : > { %16008 = vrot.lane.b32.xlu0 %v16007_v63, %s16608_s23  ;;  %16013 = vrot.lane.b32.xlu1 %v16012_v30, %s16608_s23 }
0x1bd3   : > { %16018 = vrot.lane.b32.xlu0 %v16017_v26, %s16608_s23  ;;  %16023 = vrot.lane.b32.xlu1 %v16022_v6, %s16608_s23 }
0x1bd7   : > { %16028 = vrot.lane.b32.xlu0 %v16027_v28, %s16608_s23  ;;  %16033 = vrot.lane.b32.xlu1 %v16032_v11, %s16608_s23 }
0x1bdb   : > { %16038 = vrot.lane.b32.xlu0 %v16037_v5, %s16608_s23  ;;  %16043 = vrot.lane.b32.xlu1 %v16042_v14, %s16608_s23 }
0x1bef   : > { %v12999_v63 = vpop.f32.mrb[84].mxu0 }
0x1bf0   : > { %v19901_v30 = vadd.f32 %v12999_v63, %v19802_v29  ;;  %v8001_v45 = vpop.f32.mrb[85].mxu0 }
0x1bf1   : > { %v19904_v18 = vadd.f32 %v19802_v29, %v8001_v45 }
0x1bf2   : > { %v8053_v26 = vmul.f32 %v19901_v30, %v16892_v42  ;;  %v8055_v46 = vmul.f32 %v19901_v30, %v16890_v41  ;;  %v8057_v51 = vmul.f32 %v19901_v30, %v16894_v43 }
0x1bf3   : > { %v8052_v59 = vmul.f32 %v19904_v18, %v16888_v40  ;;  %v8054_v1 = vmul.f32 %v19904_v18, %v16886_v39  ;;  %v8056_v9 = vmul.f32 %v19904_v18, %v16896_v44  ;;  %v8058_v63 = vmul.f32 %v19904_v18, %v16908_v50 }
0x1bf5   : > { %v16047_v6 = vpack.i.bf16 %v8053_v26, %v8052_v59  ;;  %v16057_v11 = vpack.i.bf16 %v8055_v46, %v8054_v1  ;;  %v16067_v45 = vpack.i.bf16 %v8057_v51, %v8056_v9 }
0x1bf7   : > { %16048 = vrot.lane.b32.xlu0 %v16047_v6, %s16608_s23  ;;  %v13002_v57 = vpop.f32.mrb[86].mxu0 }
0x1bf8   : > { %v19916_v16 = vadd.f32 %v13002_v57, %v19802_v29  ;;  %v8011_v52 = vpop.f32.mrb[87].mxu0 }
0x1bf9   : > { %v19919_v28 = vadd.f32 %v19802_v29, %v8011_v52  ;;  %v8059_v29 = vmul.f32 %v19901_v30, %v16903_v47  ;;  %v8063_v52 = vmul.f32 %v19901_v30, %v20909_v37 }
0x1bfa   : > { %v8069_v5 = vmul.f32 %v19916_v16, %v16892_v42  ;;  %v8071_v6 = vmul.f32 %v19916_v16, %v16890_v41  ;;  %v8061_v42 = vmul.f32 %v19901_v30, %v20907_v34  ;;  %v8062_v41 = vmul.f32 %v19904_v18, %v20908_v2 }
0x1bfb   : > { %16058 = vrot.lane.b32.xlu0 %v16057_v11, %s16608_s23  ;;  %v8068_v14 = vmul.f32 %v19919_v28, %v16888_v40  ;;  %v8070_v59 = vmul.f32 %v19919_v28, %v16886_v39  ;;  %v8060_v40 = vmul.f32 %v19904_v18, %v20906_v0  ;;  %v16077_v1 = vpack.i.bf16 %v8059_v29, %v8058_v63 }
0x1bfc   : > { %v8072_v57 = vmul.f32 %v19919_v28, %v16896_v44  ;;  %v8073_v39 = vmul.f32 %v19916_v16, %v16894_v43  ;;  %v8074_v51 = vmul.f32 %v19919_v28, %v16908_v50  ;;  %v8075_v44 = vmul.f32 %v19916_v16, %v16903_v47 }
0x1bfd   : > { %v16052_v26 = vpack.i.bf16 %v8069_v5, %v8068_v14  ;;  %v16062_v46 = vpack.i.bf16 %v8071_v6, %v8070_v59  ;;  %v16087_v11 = vpack.i.bf16 %v8061_v42, %v8060_v40  ;;  %v16097_v43 = vpack.i.bf16 %v8063_v52, %v8062_v41 }
0x1bfe   : > { %v16072_v9 = vpack.i.bf16 %v8073_v39, %v8072_v57  ;;  %v8064_v5 = vmul.f32 %v19904_v18, %v20910_v27  ;;  %v16082_v14 = vpack.i.bf16 %v8075_v44, %v8074_v51  ;;  %v8065_v63 = vmul.f32 %v19901_v30, %v20911_v8  ;;  %v20920_v51 = vld [vmem:[#allocation21_spill] sm:$0xff] }
0x1bff   : > { %16068 = vrot.lane.b32.xlu0 %v16067_v45, %s16608_s23  ;;  %16053 = vrot.lane.b32.xlu1 %v16052_v26, %s16608_s23  ;;  %v8076_v29 = vmul.f32 %v19919_v28, %v20906_v0  ;;  %v8077_v50 = vmul.f32 %v19916_v16, %v20907_v34  ;;  %v8066_v47 = vmul.f32 %v19904_v18, %v20912_v61 }
0x1c00   : > { %v8067_v45 = vmul.f32 %v19901_v30, %v20913_v55  ;;  %v16107_v26 = vpack.i.bf16 %v8065_v63, %v8064_v5  ;;  %v8078_v6 = vmul.f32 %v19919_v28, %v20908_v2  ;;  %v8079_v0 = vmul.f32 %v19916_v16, %v20909_v37 }
0x1c01   : > { %v16092_v59 = vpack.i.bf16 %v8077_v50, %v8076_v29  ;;  %v8080_v42 = vmul.f32 %v19919_v28, %v20910_v27  ;;  %v8082_v37 = vmul.f32 %v19919_v28, %v20912_v61 }
0x1c02   : > { %v16117_v34 = vpack.i.bf16 %v8067_v45, %v8066_v47  ;;  %v16102_v40 = vpack.i.bf16 %v8079_v0, %v8078_v6 }
0x1c03   : > { %16078 = vrot.lane.b32.xlu0 %v16077_v1, %s16608_s23  ;;  %16063 = vrot.lane.b32.xlu1 %v16062_v46, %s16608_s23  ;;  %v8081_v1 = vmul.f32 %v19916_v16, %v20911_v8  ;;  %v8083_v46 = vmul.f32 %v19916_v16, %v20913_v55 }
0x1c05   : > { %v16112_v2 = vpack.i.bf16 %v8081_v1, %v8080_v42  ;;  %v16122_v57 = vpack.i.bf16 %v8083_v46, %v8082_v37 }
0x1c07   : > { %16088 = vrot.lane.b32.xlu0 %v16087_v11, %s16608_s23  ;;  %16073 = vrot.lane.b32.xlu1 %v16072_v9, %s16608_s23 }
0x1c0b   : > { %16098 = vrot.lane.b32.xlu0 %v16097_v43, %s16608_s23  ;;  %16083 = vrot.lane.b32.xlu1 %v16082_v14, %s16608_s23 }
0x1c0f   : > { %16108 = vrot.lane.b32.xlu0 %v16107_v26, %s16608_s23  ;;  %16093 = vrot.lane.b32.xlu1 %v16092_v59, %s16608_s23 }
0x1c13   : > { %16118 = vrot.lane.b32.xlu0 %v16117_v34, %s16608_s23  ;;  %16103 = vrot.lane.b32.xlu1 %v16102_v40, %s16608_s23 }
0x1c17   : > { %16113 = vrot.lane.b32.xlu1 %v16112_v2, %s16608_s23 }
0x1c1b   : > { %16123 = vrot.lane.b32.xlu1 %v16122_v57, %s16608_s23  ;;  %s434_s23 = sand.u32 1, %s16597_s26  }
0x1c1c   : > { %s20706_s29 = scalar_lea.sflag [#allocation3], %s434_s23 }
0x1c2d   : > { %v15969_v27 = vpop.permute.xlu1 %15968 }
0x1c2e   : > { %v15971_v39 = vunpack.i.h.bf16 %v15969_v27  ;;  %v15970_v41 = vunpack.i.l.bf16 %v15969_v27 }
0x1c30   : > { %v14579_v8 = vpack.c.bf16 %v15971_v39, %v15970_v41 }
0x1c31   : > { %v15979_v52 = vpop.permute.xlu1 %15978 }
0x1c32   : > { %v15981_v11 = vunpack.i.h.bf16 %v15979_v52  ;;  %v15980_v9 = vunpack.i.l.bf16 %v15979_v52  ;;  %14581 = vmatprep.subr.msk.bf16.mxu0 %vm17113_vm3, %v14579_v8 }
0x1c33   : > { %14584 = vmatpush3.bf16.xpose.msk.msra.mxu0 %vm17113_vm3, %v14579_v8 }
0x1c34   : > { %v14585_v61 = vpack.c.bf16 %v15981_v11, %v15980_v9 }
0x1c35   : > { %v15974_v55 = vpop.permute.xlu0 %15973  ;;  %v15984_v44 = vpop.permute.xlu1 %15983 }
0x1c36   : > { %v15976_v43 = vunpack.i.h.bf16 %v15974_v55  ;;  %v15975_v5 = vunpack.i.l.bf16 %v15974_v55  ;;  %v15986_v14 = vunpack.i.h.bf16 %v15984_v44  ;;  %v15985_v63 = vunpack.i.l.bf16 %v15984_v44  ;;  %14587 = vmatprep.subr.msk.bf16.mxu0 %vm17113_vm3, %v14585_v61 }
0x1c38   : > { %v14627_v29 = vpack.c.bf16 %v15976_v43, %v15975_v5  ;;  %v14633_v47 = vpack.c.bf16 %v15986_v14, %v15985_v63 }
0x1c39   : > { %v15989_v50 = vpop.permute.xlu0 %15988  ;;  %v15994_v59 = vpop.permute.xlu1 %15993 }
0x1c3a   : > { %v15991_v45 = vunpack.i.h.bf16 %v15989_v50  ;;  %v15990_v26 = vunpack.i.l.bf16 %v15989_v50  ;;  %14629 = vmatprep.subr.msk.bf16.mxu1 %vm17113_vm3, %v14627_v29  ;;  %v15996_v34 = vunpack.i.h.bf16 %v15994_v59  ;;  %v15995_v40 = vunpack.i.l.bf16 %v15994_v59 }
0x1c3b   : > { %14590 = vmatpush3.bf16.xpose.msk.msra.mxu0 %vm17113_vm3, %v14585_v61  ;;  %14632 = vmatpush3.bf16.xpose.msk.msra.mxu1 %vm17113_vm3, %v14627_v29 }
0x1c3c   : > { %v14591_v6 = vpack.c.bf16 %v15991_v45, %v15990_v26  ;;  %14635 = vmatprep.subr.msk.bf16.mxu1 %vm17113_vm3, %v14633_v47  ;;  %v14639_v2 = vpack.c.bf16 %v15996_v34, %v15995_v40 }
0x1c3d   : > { %v15999_v0 = vpop.permute.xlu0 %15998  ;;  %v16004_v46 = vpop.permute.xlu1 %16003 }
0x1c3e   : > { %v16001_v42 = vunpack.i.h.bf16 %v15999_v0  ;;  %v16000_v1 = vunpack.i.l.bf16 %v15999_v0  ;;  %14593 = vmatprep.subr.msk.bf16.mxu0 %vm17113_vm3, %v14591_v6  ;;  %v16006_v27 = vunpack.i.h.bf16 %v16004_v46  ;;  %v16005_v39 = vunpack.i.l.bf16 %v16004_v46 }
0x1c40   : > { %v14597_v37 = vpack.c.bf16 %v16001_v42, %v16000_v1  ;;  %v14645_v52 = vpack.c.bf16 %v16006_v27, %v16005_v39 }
0x1c41   : > { %v16009_v57 = vpop.permute.xlu0 %16008  ;;  %v16014_v9 = vpop.permute.xlu1 %16013 }
0x1c42   : > { %v16011_v41 = vunpack.i.h.bf16 %v16009_v57  ;;  %v16010_v8 = vunpack.i.l.bf16 %v16009_v57  ;;  %v16016_v55 = vunpack.i.h.bf16 %v16014_v9  ;;  %v16015_v44 = vunpack.i.l.bf16 %v16014_v9 }
0x1c43   : > { %14596 = vmatpush3.bf16.xpose.msk.msra.mxu0 %vm17113_vm3, %v14591_v6  ;;  %14638 = vmatpush3.bf16.xpose.msk.msra.mxu1 %vm17113_vm3, %v14633_v47 }
0x1c44   : > { %14599 = vmatprep.subr.msk.bf16.mxu0 %vm17113_vm3, %v14597_v37  ;;  %14641 = vmatprep.subr.msk.bf16.mxu1 %vm17113_vm3, %v14639_v2  ;;  %v14603_v11 = vpack.c.bf16 %v16011_v41, %v16010_v8  ;;  %v14651_v14 = vpack.c.bf16 %v16016_v55, %v16015_v44 }
0x1c45   : > { %v16019_v61 = vpop.permute.xlu0 %16018  ;;  %v16024_v29 = vpop.permute.xlu1 %16023 }
0x1c46   : > { %v16021_v43 = vunpack.i.h.bf16 %v16019_v61  ;;  %v16020_v5 = vunpack.i.l.bf16 %v16019_v61  ;;  %v16026_v47 = vunpack.i.h.bf16 %v16024_v29  ;;  %v16025_v45 = vunpack.i.l.bf16 %v16024_v29 }
0x1c48   : > { %v14609_v63 = vpack.c.bf16 %v16021_v43, %v16020_v5  ;;  %v14657_v6 = vpack.c.bf16 %v16026_v47, %v16025_v45 }
0x1c49   : > { %v16029_v50 = vpop.permute.xlu0 %16028  ;;  %v16034_v34 = vpop.permute.xlu1 %16033 }
0x1c4a   : > { %v16031_v26 = vunpack.i.h.bf16 %v16029_v50  ;;  %v16030_v59 = vunpack.i.l.bf16 %v16029_v50  ;;  %v16036_v42 = vunpack.i.h.bf16 %v16034_v34  ;;  %v16035_v1 = vunpack.i.l.bf16 %v16034_v34 }
0x1c4b   : > { %14602 = vmatpush3.bf16.xpose.msk.msra.mxu0 %vm17113_vm3, %v14597_v37  ;;  %14644 = vmatpush3.bf16.xpose.msk.msra.mxu1 %vm17113_vm3, %v14639_v2 }
0x1c4c   : > { %14605 = vmatprep.subr.msk.bf16.mxu0 %vm17113_vm3, %v14603_v11  ;;  %14647 = vmatprep.subr.msk.bf16.mxu1 %vm17113_vm3, %v14645_v52  ;;  %v14615_v0 = vpack.c.bf16 %v16031_v26, %v16030_v59  ;;  %v14663_v46 = vpack.c.bf16 %v16036_v42, %v16035_v1 }
0x1c4d   : > { %v16039_v40 = vpop.permute.xlu0 %16038  ;;  %v16044_v27 = vpop.permute.xlu1 %16043 }
0x1c4e   : > { %v16041_v2 = vunpack.i.h.bf16 %v16039_v40  ;;  %v16040_v37 = vunpack.i.l.bf16 %v16039_v40  ;;  %v16046_v39 = vunpack.i.h.bf16 %v16044_v27  ;;  %v16045_v41 = vunpack.i.l.bf16 %v16044_v27 }
0x1c50   : > { %v14621_v57 = vpack.c.bf16 %v16041_v2, %v16040_v37 }
0x1c53   : > { %14608 = vmatpush3.bf16.xpose.msk.msra.mxu0 %vm17113_vm3, %v14603_v11  ;;  %14650 = vmatpush3.bf16.xpose.msk.msra.mxu1 %vm17113_vm3, %v14645_v52  ;;  %v14669_v52 = vpack.c.bf16 %v16046_v39, %v16045_v41 }
0x1c54   : > { %14611 = vmatprep.subr.msk.bf16.mxu0 %vm17113_vm3, %v14609_v63  ;;  %14653 = vmatprep.subr.msk.bf16.mxu1 %vm17113_vm3, %v14651_v14 }
0x1c5b   : > { %14614 = vmatpush3.bf16.xpose.msk.msra.mxu0 %vm17113_vm3, %v14609_v63  ;;  %14656 = vmatpush3.bf16.xpose.msk.msra.mxu1 %vm17113_vm3, %v14651_v14 }
0x1c5c   : > { %14617 = vmatprep.subr.msk.bf16.mxu0 %vm17113_vm3, %v14615_v0  ;;  %14659 = vmatprep.subr.msk.bf16.mxu1 %vm17113_vm3, %v14657_v6 }
0x1c63   : > { %14620 = vmatpush3.bf16.xpose.msk.msra.mxu0 %vm17113_vm3, %v14615_v0  ;;  %14662 = vmatpush3.bf16.xpose.msk.msra.mxu1 %vm17113_vm3, %v14657_v6 }
0x1c64   : > { %14623 = vmatprep.subr.msk.bf16.mxu0 %vm17113_vm3, %v14621_v57  ;;  %14665 = vmatprep.subr.msk.bf16.mxu1 %vm17113_vm3, %v14663_v46 }
0x1c69   : > { %v16049_v8 = vpop.permute.xlu0 %16048 }
0x1c6a   : > { %v16051_v11 = vunpack.i.h.bf16 %v16049_v8  ;;  %v16050_v9 = vunpack.i.l.bf16 %v16049_v8 }
0x1c6b   : > { %14626 = vmatpush3.bf16.xpose.msk.msra.mxu0 %vm17113_vm3, %v14621_v57  ;;  %14668 = vmatpush3.bf16.xpose.msk.msra.mxu1 %vm17113_vm3, %v14663_v46 }
0x1c6c   : > { %v14675_v61 = vpack.c.bf16 %v16051_v11, %v16050_v9  ;;  %14671 = vmatprep.subr.msk.bf16.mxu1 %vm17113_vm3, %v14669_v52 }
0x1c6d   : > { %v16059_v55 = vpop.permute.xlu0 %16058 }
0x1c6e   : > { %v16061_v44 = vunpack.i.h.bf16 %v16059_v55  ;;  %v16060_v43 = vunpack.i.l.bf16 %v16059_v55  ;;  %14677 = vmatprep.subr.msk.bf16.mxu0 %vm17113_vm3, %v14675_v61 }
0x1c70   : > { %v14681_v14 = vpack.c.bf16 %v16061_v44, %v16060_v43 }
0x1c71   : > { %v16054_v5 = vpop.permute.xlu1 %16053  ;;  %v16069_v50 = vpop.permute.xlu0 %16068 }
0x1c72   : > { %v16056_v63 = vunpack.i.h.bf16 %v16054_v5  ;;  %v16055_v29 = vunpack.i.l.bf16 %v16054_v5  ;;  %13036 = vmatmul.mubr.msk.f32.vlgmr.msra.gmra.mrb[88].mxu0 %vm651_vm2, %v19805_v24  ;;  %v16071_v26 = vunpack.i.h.bf16 %v16069_v50  ;;  %v16070_v59 = vunpack.i.l.bf16 %v16069_v50 }
0x1c73   : > { %14674 = vmatpush3.bf16.xpose.msk.msra.mxu1 %vm17113_vm3, %v14669_v52  ;;  %14680 = vmatpush3.bf16.xpose.msk.msra.mxu0 %vm17113_vm3, %v14675_v61 }
0x1c74   : > { %v14723_v47 = vpack.c.bf16 %v16056_v63, %v16055_v29  ;;  %13105 = vmatprep.mubr.msk.f32.mxu0 %vm651_vm2, %v19904_v18  ;;  %14683 = vmatprep.subr.msk.bf16.mxu0 %vm17113_vm3, %v14681_v14  ;;  %v14687_v34 = vpack.c.bf16 %v16071_v26, %v16070_v59 }
0x1c75   : > { %v16064_v45 = vpop.permute.xlu1 %16063  ;;  %v16079_v40 = vpop.permute.xlu0 %16078 }
0x1c76   : > { %14725 = vmatprep.subr.msk.bf16.mxu1 %vm17113_vm3, %v14723_v47  ;;  %v16066_v6 = vunpack.i.h.bf16 %v16064_v45  ;;  %v16065_v0 = vunpack.i.l.bf16 %v16064_v45  ;;  %v16081_v2 = vunpack.i.h.bf16 %v16079_v40  ;;  %v16080_v37 = vunpack.i.l.bf16 %v16079_v40 }
0x1c78   : > { %v14729_v42 = vpack.c.bf16 %v16066_v6, %v16065_v0  ;;  %v14693_v27 = vpack.c.bf16 %v16081_v2, %v16080_v37 }
0x1c79   : > { %v16074_v1 = vpop.permute.xlu1 %16073  ;;  %v16089_v41 = vpop.permute.xlu0 %16088 }
0x1c7a   : > { %13071 = vmatmul.mubr.msk.f32.vlgmr.msra.gmra.mrb[96].mxu1 %vm651_vm2, %v19822_v10  ;;  %v16076_v46 = vunpack.i.h.bf16 %v16074_v1  ;;  %v16075_v57 = vunpack.i.l.bf16 %v16074_v1  ;;  %v16091_v52 = vunpack.i.h.bf16 %v16089_v41  ;;  %v16090_v11 = vunpack.i.l.bf16 %v16089_v41 }
0x1c7b   : > { %14686 = vmatpush3.bf16.xpose.msk.msra.mxu0 %vm17113_vm3, %v14681_v14  ;;  %14728 = vmatpush3.bf16.xpose.msk.msra.mxu1 %vm17113_vm3, %v14723_v47 }
0x1c7c   : > { %13140 = vmatprep.mubr.msk.f32.mxu1 %vm651_vm2, %v19919_v28  ;;  %14689 = vmatprep.subr.msk.bf16.mxu0 %vm17113_vm3, %v14687_v34  ;;  %v14735_v39 = vpack.c.bf16 %v16076_v46, %v16075_v57  ;;  %v14699_v55 = vpack.c.bf16 %v16091_v52, %v16090_v11 }
0x1c7d   : > { %14731 = vmatprep.subr.msk.bf16.mxu1 %vm17113_vm3, %v14729_v42  ;;  %v16084_v8 = vpop.permute.xlu1 %16083  ;;  %v16099_v43 = vpop.permute.xlu0 %16098 }
0x1c7e   : > { %v16086_v9 = vunpack.i.h.bf16 %v16084_v8  ;;  %v16085_v61 = vunpack.i.l.bf16 %v16084_v8  ;;  %v16101_v14 = vunpack.i.h.bf16 %v16099_v43  ;;  %v16100_v63 = vunpack.i.l.bf16 %v16099_v43  ;;  %v20917_v43 = vld [vmem:[#allocation18_spill] sm:$0xff] }
0x1c80   : > { %v14741_v44 = vpack.c.bf16 %v16086_v9, %v16085_v61  ;;  %v14705_v47 = vpack.c.bf16 %v16101_v14, %v16100_v63  ;;  %v20919_v14 = vld [vmem:[#allocation20_spill] sm:$0xff]  ;;  %v20921_v63 = vld [vmem:[#allocation22_spill] sm:$0xff] }
0x1c81   : > { %v16094_v5 = vpop.permute.xlu1 %16093  ;;  %v16109_v26 = vpop.permute.xlu0 %16108 }
0x1c82   : > { %v16096_v29 = vunpack.i.h.bf16 %v16094_v5  ;;  %v16095_v50 = vunpack.i.l.bf16 %v16094_v5  ;;  %v16111_v6 = vunpack.i.h.bf16 %v16109_v26  ;;  %v16110_v0 = vunpack.i.l.bf16 %v16109_v26  ;;  %v20918_v5 = vld [vmem:[#allocation19_spill] sm:$0xff] }
0x1c83   : > { %14692 = vmatpush3.bf16.xpose.msk.msra.mxu0 %vm17113_vm3, %v14687_v34  ;;  %14734 = vmatpush3.bf16.xpose.msk.msra.mxu1 %vm17113_vm3, %v14729_v42 }
0x1c84   : > { %14695 = vmatprep.subr.msk.bf16.mxu0 %vm17113_vm3, %v14693_v27  ;;  %14737 = vmatprep.subr.msk.bf16.mxu1 %vm17113_vm3, %v14735_v39  ;;  %v14747_v45 = vpack.c.bf16 %v16096_v29, %v16095_v50  ;;  %v14711_v42 = vpack.c.bf16 %v16111_v6, %v16110_v0  ;;  %v20922_v29 = vld [vmem:[#allocation23_spill] sm:$0xff] }
0x1c85   : > { %v16104_v59 = vpop.permute.xlu1 %16103  ;;  %v16119_v2 = vpop.permute.xlu0 %16118 }
0x1c86   : > { %v16106_v34 = vunpack.i.h.bf16 %v16104_v59  ;;  %v16105_v40 = vunpack.i.l.bf16 %v16104_v59  ;;  %v16121_v46 = vunpack.i.h.bf16 %v16119_v2  ;;  %v16120_v57 = vunpack.i.l.bf16 %v16119_v2 }
0x1c87   : > { %v8087_v2 = vmul.f32 %v19805_v24, %v17409_v56 }
0x1c88   : > { %v14753_v1 = vpack.c.bf16 %v16106_v34, %v16105_v40  ;;  %v14717_v41 = vpack.c.bf16 %v16121_v46, %v16120_v57  ;;  %v8084_v40 = vmul.f32 %v19808_v3, %v17387_v22  ;;  %v8100_v46 = vmul.f32 %v19825_v36, %v17387_v22 }
0x1c89   : > { %v16114_v37 = vpop.permute.xlu1 %16113  ;;  %v8101_v57 = vmul.f32 %v19822_v10, %v17385_v21 }
0x1c8b   : > { %14698 = vmatpush3.bf16.xpose.msk.msra.mxu0 %vm17113_vm3, %v14693_v27  ;;  %14740 = vmatpush3.bf16.xpose.msk.msra.mxu1 %vm17113_vm3, %v14735_v39  ;;  %v16116_v27 = vunpack.i.h.bf16 %v16114_v37  ;;  %v16115_v39 = vunpack.i.l.bf16 %v16114_v37 }
0x1c8c   : > { %14701 = vmatprep.subr.msk.bf16.mxu0 %vm17113_vm3, %v14699_v55  ;;  %14743 = vmatprep.subr.msk.bf16.mxu1 %vm17113_vm3, %v14741_v44 }
0x1c8d   : > { %v14759_v8 = vpack.c.bf16 %v16116_v27, %v16115_v39  ;;  %v16124_v52 = vpop.permute.xlu1 %16123  ;;  %v8088_v39 = vmul.f32 %v19808_v3, %v17393_v4 }
0x1c8e   : > { %v16126_v11 = vunpack.i.h.bf16 %v16124_v52  ;;  %v16125_v9 = vunpack.i.l.bf16 %v16124_v52  ;;  %v8103_v52 = vmul.f32 %v19822_v10, %v17409_v56 }
0x1c90   : > { %v14765_v61 = vpack.c.bf16 %v16126_v11, %v16125_v9  ;;  %v8089_v11 = vmul.f32 %v19805_v24, %v17428_v7  ;;  %v8104_v9 = vmul.f32 %v19825_v36, %v17393_v4 }
0x1c93   : > { %14704 = vmatpush3.bf16.xpose.msk.msra.mxu0 %vm17113_vm3, %v14699_v55  ;;  %14746 = vmatpush3.bf16.xpose.msk.msra.mxu1 %vm17113_vm3, %v14741_v44  ;;  %v20915_v55 = vld [vmem:[#allocation16_spill] sm:$0xff]  ;;  %v20916_v44 = vld [vmem:[#allocation17_spill] sm:$0xff] }
0x1c94   : > { %14707 = vmatprep.subr.msk.bf16.mxu0 %vm17113_vm3, %v14705_v47  ;;  %14749 = vmatprep.subr.msk.bf16.mxu1 %vm17113_vm3, %v14747_v45 }
0x1c9b   : > { %14710 = vmatpush3.bf16.xpose.msk.msra.mxu0 %vm17113_vm3, %v14705_v47  ;;  %14752 = vmatpush3.bf16.xpose.msk.msra.mxu1 %vm17113_vm3, %v14747_v45 }
0x1c9c   : > { %14713 = vmatprep.subr.msk.bf16.mxu0 %vm17113_vm3, %v14711_v42  ;;  %14755 = vmatprep.subr.msk.bf16.mxu1 %vm17113_vm3, %v14753_v1 }
0x1ca3   : > { %14716 = vmatpush3.bf16.xpose.msk.msra.mxu0 %vm17113_vm3, %v14711_v42  ;;  %14758 = vmatpush3.bf16.xpose.msk.msra.mxu1 %vm17113_vm3, %v14753_v1  ;;  %v8085_v42 = vmul.f32 %v19805_v24, %v17385_v21  ;;  %v8086_v1 = vmul.f32 %v19808_v3, %v17399_v25 }
0x1ca4   : > { %14719 = vmatprep.subr.msk.bf16.mxu0 %vm17113_vm3, %v14717_v41  ;;  %14761 = vmatprep.subr.msk.bf16.mxu1 %vm17113_vm3, %v14759_v8 }
0x1ca5   : > { %v16127_v37 = vpack.i.bf16 %v8085_v42, %v8084_v40  ;;  %v16132_v27 = vpack.i.bf16 %v8087_v2, %v8086_v1  ;;  %v8092_v40 = vmul.f32 %v19808_v3, %v17425_v23  ;;  %v8093_v42 = vmul.f32 %v19805_v24, %v17455_v49 }
0x1ca6   : > { %v8108_v1 = vmul.f32 %v19825_v36, %v17425_v23  ;;  %v8109_v2 = vmul.f32 %v19822_v10, %v17455_v49 }
0x1cab   : > { %14722 = vmatpush3.bf16.xpose.msk.msra.mxu0 %vm17113_vm3, %v14717_v41  ;;  %14764 = vmatpush3.bf16.xpose.msk.msra.mxu1 %vm17113_vm3, %v14759_v8  ;;  %v16137_v41 = vpack.i.bf16 %v8101_v57, %v8100_v46  ;;  %v8102_v8 = vmul.f32 %v19825_v36, %v17399_v25  ;;  %v16162_v46 = vpack.i.bf16 %v8093_v42, %v8092_v40 }
0x1cac   : > { %14767 = vmatprep.subr.msk.bf16.mxu1 %vm17113_vm3, %v14765_v61  ;;  %14772 = vmatprep.subr.bf16.mxu0 %v20915_v55  ;;  %v8094_v57 = vmul.f32 %v19808_v3, %v17452_v53 }
0x1cb2   : > { %13106 = vmatmul.mubr.msk.f32.vlgmr.msra.gmra.mrb[90].mxu0 %vm651_vm2, %v19901_v30 }
0x1cb3   : > { %14770 = vmatpush3.bf16.xpose.msk.msra.mxu1 %vm17113_vm3, %v14765_v61  ;;  %14774 = vmatpush3.bf16.msra.mxu0 %v20915_v55  ;;  %v8105_v61 = vmul.f32 %v19822_v10, %v17428_v7  ;;  %v16147_v55 = vpack.i.bf16 %v8103_v52, %v8102_v8  ;;  %v16177_v8 = vpack.i.bf16 %v8109_v2, %v8108_v1 }
0x1cb4   : > { %14776 = vmatprep.subr.bf16.mxu0 %v20916_v44 }
0x1cb7   : > { %14778 = vmatpush3.bf16.msra.mxu0 %v20916_v44  ;;  %v16142_v44 = vpack.i.bf16 %v8089_v11, %v8088_v39  ;;  %v8110_v39 = vmul.f32 %v19825_v36, %v17452_v53  ;;  %v8096_v11 = vmul.f32 %v19808_v3, %v20882_v13 }
0x1cb8   : > { %14780 = vmatprep.subr.bf16.mxu0 %v20917_v43 }
0x1cba   : > { %13141 = vmatmul.mubr.msk.f32.vlgmr.msra.gmra.mrb[98].mxu1 %vm651_vm2, %v19916_v16 }
0x1cbb   : > { %14782 = vmatpush3.bf16.msra.mxu0 %v20917_v43  ;;  %v8090_v43 = vmul.f32 %v19808_v3, %v17404_v54 }
0x1cbc   : > { %14784 = vmatprep.subr.bf16.mxu0 %v20918_v5 }
0x1cbf   : > { %14786 = vmatpush3.bf16.msra.mxu0 %v20918_v5  ;;  %v8091_v5 = vmul.f32 %v19805_v24, %v17441_v15 }
0x1cc0   : > { %14788 = vmatprep.subr.bf16.mxu0 %v20919_v14 }
0x1cc3   : > { %14790 = vmatpush3.bf16.msra.mxu0 %v20919_v14  ;;  %v16157_v14 = vpack.i.bf16 %v8105_v61, %v8104_v9  ;;  %v20923_v9 = vld [vmem:[#allocation26_spill] sm:$0xff] }
0x1cc4   : > { %14792 = vmatprep.subr.bf16.mxu0 %v20920_v51  ;;  %v8097_v61 = vmul.f32 %v19805_v24, %v20923_v9 }
0x1cc7   : > { %14794 = vmatpush3.bf16.msra.mxu0 %v20920_v51  ;;  %v8106_v51 = vmul.f32 %v19825_v36, %v17404_v54 }
0x1cc8   : > { %14796 = vmatprep.subr.bf16.mxu0 %v20921_v63 }
0x1ccb   : > { %14798 = vmatpush3.bf16.msra.mxu0 %v20921_v63  ;;  %v16152_v63 = vpack.i.bf16 %v8091_v5, %v8090_v43  ;;  %v16182_v43 = vpack.i.bf16 %v8097_v61, %v8096_v11  ;;  %v8113_v5 = vmul.f32 %v19822_v10, %v20923_v9  ;;  %v8135_v11 = vmul.f32 %v19916_v16, %v17409_v56 }
0x1ccc   : > { %14800 = vmatprep.subr.bf16.mxu0 %v20922_v29  ;;  %v8137_v61 = vmul.f32 %v19916_v16, %v17428_v7 }
0x1ccf   : > { %14802 = vmatpush3.bf16.msra.mxu0 %v20922_v29  ;;  %v8107_v29 = vmul.f32 %v19822_v10, %v17441_v15 }
0x1d45   : > { %v20148_v50 = vpop.f32.mrb[88].mxu0 }
0x1d46   : > { %8794 = vmax.xlane.f32.xlu1 %v20148_v50  ;;  %v20151_v47 = vpop.f32.mrb[89].mxu0 }
0x1d47   : > { %8792 = vmax.xlane.f32.xlu0 %v20151_v47 }
0x1d4d   : > { %v20154_v45 = vpop.f32.mrb[96].mxu1 }
0x1d4e   : > { %v20156_v26 = vpop.f32.mrb[97].mxu1 }
0x1d4f   : > { %8796 = vmax.xlane.f32.xlu0 %v20156_v26 }
0x1d53   : > { %8798 = vmax.xlane.f32.xlu0 %v20154_v45 }
0x1d85   : > { %v20160_v59 = vpop.f32.mrb[90].mxu0 }
0x1d86   : > { %8802 = vmax.xlane.f32.xlu0 %v20160_v59  ;;  %v20163_v6 = vpop.f32.mrb[91].mxu0 }
0x1d87   : > { %8800 = vmax.xlane.f32.xlu1 %v20163_v6 }
0x1d8d   : > { %v20166_v0 = vpop.f32.mrb[98].mxu1 }
0x1d8e   : > { %v20168_v34 = vpop.f32.mrb[99].mxu1  ;;  %8806 = vmax.xlane.f32.xlu0 %v20166_v0 }
0x1d8f   : > { %8804 = vmax.xlane.f32.xlu1 %v20168_v34 }
0x1da0   : > { %16128 = vrot.lane.b32.xlu1 %v16127_v37, %s16609_s15  ;;  %v16167_v37 = vpack.i.bf16 %v8107_v29, %v8106_v51 }
0x1da4   : > { %16133 = vrot.lane.b32.xlu0 %v16132_v27, %s16609_s15  ;;  %16138 = vrot.lane.b32.xlu1 %v16137_v41, %s16609_s15  ;;  %v8095_v27 = vmul.f32 %v19805_v24, %v20881_v35  ;;  %v8111_v41 = vmul.f32 %v19822_v10, %v20881_v35 }
0x1da6   : > { %v16172_v52 = vpack.i.bf16 %v8095_v27, %v8094_v57  ;;  %v8132_v57 = vmul.f32 %v19919_v28, %v17387_v22  ;;  %v8133_v27 = vmul.f32 %v19916_v16, %v17385_v21 }
0x1da8   : > { %16148 = vrot.lane.b32.xlu0 %v16147_v55, %s16609_s15  ;;  %16143 = vrot.lane.b32.xlu1 %v16142_v44, %s16609_s15  ;;  %v16187_v55 = vpack.i.bf16 %v8111_v41, %v8110_v39  ;;  %v8112_v44 = vmul.f32 %v19825_v36, %v20882_v13  ;;  %v8120_v41 = vmul.f32 %v19904_v18, %v17393_v4 }
0x1daa   : > { %v16197_v1 = vpack.i.bf16 %v8113_v5, %v8112_v44  ;;  %v8138_v5 = vmul.f32 %v19919_v28, %v17404_v54 }
0x1dac   : > { %16158 = vrot.lane.b32.xlu0 %v16157_v14, %s16609_s15  ;;  %16153 = vrot.lane.b32.xlu1 %v16152_v63, %s16609_s15  ;;  %v20924_v14 = vld [vmem:[#allocation27_spill] sm:$0xff]  ;;  %v20925_v63 = vld [vmem:[#allocation28_spill] sm:$0xff] }
0x1dad   : > { %v8098_v51 = vmul.f32 %v19808_v3, %v20924_v14  ;;  %v8099_v29 = vmul.f32 %v19805_v24, %v20925_v63  ;;  %v8114_v40 = vmul.f32 %v19825_v36, %v20924_v14  ;;  %v8115_v42 = vmul.f32 %v19822_v10, %v20925_v63 }
0x1dae   : > { %v8117_v3 = vmul.f32 %v19901_v30, %v17385_v21  ;;  %v8118_v24 = vmul.f32 %v19904_v18, %v17399_v25  ;;  %v8119_v36 = vmul.f32 %v19901_v30, %v17409_v56  ;;  %v8136_v21 = vmul.f32 %v19919_v28, %v17393_v4 }
0x1daf   : > { %v16192_v2 = vpack.i.bf16 %v8099_v29, %v8098_v51  ;;  %v16202_v10 = vpack.i.bf16 %v8115_v42, %v8114_v40  ;;  %v8123_v56 = vmul.f32 %v19901_v30, %v17441_v15  ;;  %v8124_v51 = vmul.f32 %v19904_v18, %v17425_v23 }
0x1db0   : > { %16168 = vrot.lane.b32.xlu0 %v16167_v37, %s16609_s15  ;;  %16163 = vrot.lane.b32.xlu1 %v16162_v46, %s16609_s15  ;;  %v8116_v37 = vmul.f32 %v19904_v18, %v17387_v22  ;;  %v16212_v39 = vpack.i.bf16 %v8119_v36, %v8118_v24  ;;  %v8121_v22 = vmul.f32 %v19901_v30, %v17428_v7 }
0x1db1   : > { %v8139_v7 = vmul.f32 %v19916_v16, %v17441_v15  ;;  %v8125_v29 = vmul.f32 %v19901_v30, %v17455_v49  ;;  %v8140_v40 = vmul.f32 %v19919_v28, %v17425_v23  ;;  %v8126_v15 = vmul.f32 %v19904_v18, %v17452_v53 }
0x1db2   : > { %v16207_v46 = vpack.i.bf16 %v8117_v3, %v8116_v37  ;;  %v16222_v44 = vpack.i.bf16 %v8121_v22, %v8120_v41  ;;  %v8142_v37 = vmul.f32 %v19919_v28, %v17452_v53  ;;  %v8143_v23 = vmul.f32 %v19916_v16, %v20881_v35 }
0x1db3   : > { %v16247_v42 = vpack.i.bf16 %v8139_v7, %v8138_v5  ;;  %v8128_v24 = vmul.f32 %v19904_v18, %v20882_v13  ;;  %v8129_v36 = vmul.f32 %v19901_v30, %v20923_v9  ;;  %v8147_v22 = vmul.f32 %v19916_v16, %v20925_v63 }
0x1db4   : > { %16178 = vrot.lane.b32.xlu0 %v16177_v8, %s16609_s15  ;;  %16173 = vrot.lane.b32.xlu1 %v16172_v52, %s16609_s15  ;;  %v16217_v8 = vpack.i.bf16 %v8133_v27, %v8132_v57  ;;  %v8134_v52 = vmul.f32 %v19919_v28, %v17399_v25  ;;  %v8122_v25 = vmul.f32 %v19904_v18, %v17404_v54 }
0x1db5   : > { %v8141_v54 = vmul.f32 %v19916_v16, %v17455_v49  ;;  %v16267_v27 = vpack.i.bf16 %v8143_v23, %v8142_v37 }
0x1db6   : > { %v16232_v4 = vpack.i.bf16 %v8123_v56, %v8122_v25 }
0x1db7   : > { %v16257_v3 = vpack.i.bf16 %v8141_v54, %v8140_v40 }
0x1db8   : > { %16188 = vrot.lane.b32.xlu0 %v16187_v55, %s16609_s15  ;;  %16183 = vrot.lane.b32.xlu1 %v16182_v43, %s16609_s15  ;;  %v16227_v55 = vpack.i.bf16 %v8135_v11, %v8134_v52  ;;  %v16237_v43 = vpack.i.bf16 %v8137_v61, %v8136_v21  ;;  %v8130_v52 = vmul.f32 %v19904_v18, %v20924_v14 }
0x1dbc   : > { %16198 = vrot.lane.b32.xlu0 %v16197_v1, %s16609_s15  ;;  %16193 = vrot.lane.b32.xlu1 %v16192_v2, %s16609_s15  ;;  %v16242_v1 = vpack.i.bf16 %v8125_v29, %v8124_v51  ;;  %v8127_v2 = vmul.f32 %v19901_v30, %v20881_v35  ;;  %v8144_v35 = vmul.f32 %v19919_v28, %v20882_v13 }
0x1dbd   : > { %v8146_v13 = vmul.f32 %v19919_v28, %v20924_v14 }
0x1dbe   : > { %v16252_v49 = vpack.i.bf16 %v8127_v2, %v8126_v15 }
0x1dbf   : > { %v16282_v18 = vpack.i.bf16 %v8147_v22, %v8146_v13 }
0x1dc0   : > { %16208 = vrot.lane.b32.xlu0 %v16207_v46, %s16609_s15  ;;  %16203 = vrot.lane.b32.xlu1 %v16202_v10, %s16609_s15 }
0x1dc4   : > { %16218 = vrot.lane.b32.xlu0 %v16217_v8, %s16609_s15  ;;  %16213 = vrot.lane.b32.xlu1 %v16212_v39, %s16609_s15  ;;  %v8145_v39 = vmul.f32 %v19916_v16, %v20923_v9  ;;  %v16262_v8 = vpack.i.bf16 %v8129_v36, %v8128_v24 }
0x1dc8   : > { %16228 = vrot.lane.b32.xlu0 %v16227_v55, %s16609_s15  ;;  %16223 = vrot.lane.b32.xlu1 %v16222_v44, %s16609_s15 }
0x1dcc   : > { %16238 = vrot.lane.b32.xlu0 %v16237_v43, %s16609_s15  ;;  %16233 = vrot.lane.b32.xlu1 %v16232_v4, %s16609_s15 }
0x1dd0   : > { %16248 = vrot.lane.b32.xlu0 %v16247_v42, %s16609_s15  ;;  %16243 = vrot.lane.b32.xlu1 %v16242_v1, %s16609_s15 }
0x1dd3   : > { %v8795_v46 = vpop.xlane.xlu1 %8794 }
0x1dd4   : > { %v8809_v10 = vsub.f32 %v20148_v50, %v8795_v46  ;;  %v8793_v57 = vpop.xlane.xlu0 %8792  ;;  %16258 = vrot.lane.b32.xlu0 %v16257_v3, %s16609_s15  ;;  %16253 = vrot.lane.b32.xlu1 %v16252_v49, %s16609_s15  ;;  %v8131_v50 = vmul.f32 %v19901_v30, %v20925_v63 }
0x1dd5   : > { %v8808_v53 = vsub.f32 %v20151_v47, %v8793_v57  ;;  %v16277_v47 = vpack.i.bf16 %v8145_v39, %v8144_v35 }
0x1dd6   : > { %v8818_v41 = vmul.f32 1.442695, %v8809_v10  ;;  %v16272_v9 = vpack.i.bf16 %v8131_v50, %v8130_v52 }
0x1dd7   : > { %v8816_v11 = vmul.f32 1.442695, %v8808_v53 }
0x1dd8   : > { %16268 = vrot.lane.b32.xlu0 %v16267_v27, %s16609_s15  ;;  %16263 = vrot.lane.b32.xlu1 %v16262_v8, %s16609_s15 }
0x1dd9   : > { %16479 = vpow2.f32 %v8816_v11 }
0x1dda   : > { %16481 = vpow2.f32 %v8818_v41 }
0x1ddc   : > { %v8797_v21 = vpop.xlane.xlu0 %8796  ;;  %16278 = vrot.lane.b32.xlu0 %v16277_v47, %s16609_s15  ;;  %16273 = vrot.lane.b32.xlu1 %v16272_v9, %s16609_s15 }
0x1ddd   : > { %v8810_v30 = vsub.f32 %v20156_v26, %v8797_v21 }
0x1ddf   : > { %v8820_v61 = vmul.f32 1.442695, %v8810_v30 }
0x1de0   : > { %v8799_v55 = vpop.xlane.xlu0 %8798  ;;  %16283 = vrot.lane.b32.xlu1 %v16282_v18, %s16609_s15  ;;  %s10315_s15 = sshll.u32 %s434_s23, 6 }
0x1de1   : > { %16483 = vpow2.f32 %v8820_v61  ;;  %v8811_v28 = vsub.f32 %v20154_v45, %v8799_v55  ;;  %s20659_s17 = scalar_lea.vmem [#allocation2], %s10315_s15  ;;  %s16547_s15 = sshll.u32 %s16610_s27, 4  ;;  %s16548_s15 = int_to_ptr.vmem [resolvable:$false] %s16547_s15 }
0x1de2   : > { %s10249_s20 = sshll.u32 %s20659_s17, 4  ;;  %s16549_s22 = scalar_lea.vmem %s16548_s15, 2048  ;;  %s20697_s20 = int_to_ptr.vmem [resolvable:$true] %s10249_s20 }
0x1de3   : > { %v20336_v14 = vpop.eup %16479  ;;  %v8822_v44 = vmul.f32 1.442695, %v8811_v28  ;;  %s16543_s30 = scalar_lea.vmem %s20697_s20, 1024  ;;  %p16550_p0 = scmp.lt.s32.totalorder %s20697_s20, %s16548_s15 }
0x1de4   : > { %v20338_v25 = vpop.eup %16481  ;;  %13175 = vmatprep.mubr.f32.mxu0 %v20336_v14  ;;  %p16544_p11 = scmp.ne.s32.totalorder %s20697_s20, %s16543_s30  ;;  %p16551_p1 = scmp.lt.s32.totalorder %s16549_s22, %s16543_s30 }
0x1de5   : > { %16485 = vpow2.f32 %v8822_v44  ;;  %13176 = vmatmul.mubr.f32.vlgmr.msra.gmra.mrb[92].mxu0 %v20338_v25 }
0x1de6   : > { %p16545_p12 = pnand %p16544_p11, %p16721_p5  ;;  %p16552_p2 = por %p16551_p1, %p16550_p0 }
0x1de8   : > { %p16546_p13 = pneg %p16545_p12 }
0x1dea   : > { %p16553_p3 = pnand %p16552_p2, %p16546_p13 }
0x1deb   : > { %v20342_v16 = vpop.eup %16483 }
0x1dec   : > { %13178 = vmatprep.mubr.f32.mxu0 %v20342_v16 }
0x1def   : > { %v20345_v26 = vpop.eup %16485 }
0x1df0   : > { %13179 = vmatmul.mubr.f32.gmra.mrb[94].mxu0 %v20345_v26 }
0x1e13   : > { %v8803_v63 = vpop.xlane.xlu0 %8802 }
0x1e14   : > { %v8813_v45 = vsub.f32 %v20160_v59, %v8803_v63  ;;  %v8801_v56 = vpop.xlane.xlu1 %8800 }
0x1e15   : > { %v8812_v43 = vsub.f32 %v20163_v6, %v8801_v56 }
0x1e16   : > { %v8826_v5 = vmul.f32 1.442695, %v8813_v45 }
0x1e17   : > { %v8824_v4 = vmul.f32 1.442695, %v8812_v43 }
0x1e19   : > { %16487 = vpow2.f32 %v8824_v4 }
0x1e1a   : > { %16489 = vpow2.f32 %v8826_v5 }
0x1e1b   : > { %v8807_v7 = vpop.xlane.xlu0 %8806 }
0x1e1c   : > { %v8815_v51 = vsub.f32 %v20166_v0, %v8807_v7  ;;  %v8805_v29 = vpop.xlane.xlu1 %8804 }
0x1e1d   : > { %v8814_v40 = vsub.f32 %v20168_v34, %v8805_v29 }
0x1e1e   : > { %v8830_v54 = vmul.f32 1.442695, %v8815_v51 }
0x1e1f   : > { %v8828_v42 = vmul.f32 1.442695, %v8814_v40  ;;  %v16134_v1 = vpop.permute.xlu0 %16133 }
0x1e20   : > { %v16136_v15 = vunpack.i.h.bf16 %v16134_v1  ;;  %v16129_v2 = vpop.permute.xlu1 %16128  ;;  %v16135_v59 = vunpack.i.l.bf16 %v16134_v1 }
0x1e21   : > { %16491 = vpow2.f32 %v8828_v42  ;;  %v16131_v37 = vunpack.i.h.bf16 %v16129_v2  ;;  %v16130_v23 = vunpack.i.l.bf16 %v16129_v2 }
0x1e22   : > { %16493 = vpow2.f32 %v8830_v54  ;;  %v14807_v46 = vpack.c.bf16 %v16136_v15, %v16135_v59 }
0x1e23   : > { %v20352_v6 = vpop.eup %16487  ;;  %v14803_v3 = vpack.c.bf16 %v16131_v37, %v16130_v23  ;;  %v16149_v49 = vpop.permute.xlu0 %16148 }
0x1e24   : > { %v20354_v24 = vpop.eup %16489  ;;  %v16151_v0 = vunpack.i.h.bf16 %v16149_v49  ;;  %v16150_v36 = vunpack.i.l.bf16 %v16149_v49  ;;  %13181 = vmatprep.mubr.f32.mxu0 %v20352_v6  ;;  %v16139_v34 = vpop.permute.xlu1 %16138 }
0x1e25   : > { %v16141_v10 = vunpack.i.h.bf16 %v16139_v34  ;;  %v16140_v57 = vunpack.i.l.bf16 %v16139_v34  ;;  %13182 = vmatmul.mubr.f32.gmra.mrb[96].mxu0 %v20354_v24  ;;  %14804 = vmatprep.subr.bf16.mxu1 %v14803_v3 }
0x1e26   : > { %14806 = vmatpush3.bf16.msra.mxu1 %v14803_v3  ;;  %v14839_v35 = vpack.c.bf16 %v16151_v0, %v16150_v36 }
0x1e27   : > { %v14835_v53 = vpack.c.bf16 %v16141_v10, %v16140_v57  ;;  %v16159_v27 = vpop.permute.xlu0 %16158  ;;  %14808 = vmatprep.subr.bf16.mxu1 %v14807_v46 }
0x1e28   : > { %v16144_v39 = vpop.permute.xlu1 %16143  ;;  %v16161_v41 = vunpack.i.h.bf16 %v16159_v27  ;;  %v16160_v8 = vunpack.i.l.bf16 %v16159_v27 }
0x1e29   : > { %v16146_v52 = vunpack.i.h.bf16 %v16144_v39  ;;  %v16145_v50 = vunpack.i.l.bf16 %v16144_v39  ;;  %14836 = vmatprep.subr.bf16.mxu0 %v14835_v53 }
0x1e2a   : > { %14810 = vmatpush3.bf16.msra.mxu1 %v14807_v46  ;;  %14838 = vmatpush3.bf16.msra.mxu0 %v14835_v53  ;;  %v14843_v18 = vpack.c.bf16 %v16161_v41, %v16160_v8 }
0x1e2b   : > { %v20358_v11 = vpop.eup %16491  ;;  %v14811_v13 = vpack.c.bf16 %v16146_v52, %v16145_v50  ;;  %v16169_v47 = vpop.permute.xlu0 %16168  ;;  %14840 = vmatprep.subr.bf16.mxu0 %v14839_v35 }
0x1e2c   : > { %v20360_v9 = vpop.eup %16493  ;;  %v16171_v22 = vunpack.i.h.bf16 %v16169_v47  ;;  %v16170_v21 = vunpack.i.l.bf16 %v16169_v47  ;;  %13184 = vmatprep.mubr.f32.mxu0 %v20358_v11  ;;  %v16154_v30 = vpop.permute.xlu1 %16153 }
0x1e2d   : > { %v16156_v61 = vunpack.i.h.bf16 %v16154_v30  ;;  %v16155_v55 = vunpack.i.l.bf16 %v16154_v30  ;;  %13185 = vmatmul.mubr.f32.gmra.mrb[98].mxu0 %v20360_v9  ;;  %14812 = vmatprep.subr.bf16.mxu1 %v14811_v13 }
0x1e2e   : > { %14814 = vmatpush3.bf16.msra.mxu1 %v14811_v13  ;;  %14842 = vmatpush3.bf16.msra.mxu0 %v14839_v35  ;;  %v14847_v63 = vpack.c.bf16 %v16171_v22, %v16170_v21 }
0x1e2f   : > { %v14815_v28 = vpack.c.bf16 %v16156_v61, %v16155_v55  ;;  %v16179_v44 = vpop.permute.xlu0 %16178  ;;  %14844 = vmatprep.subr.bf16.mxu0 %v14843_v18 }
0x1e30   : > { %v16164_v45 = vpop.permute.xlu1 %16163  ;;  %v16181_v56 = vunpack.i.h.bf16 %v16179_v44  ;;  %v16180_v43 = vunpack.i.l.bf16 %v16179_v44 }
0x1e31   : > { %v16166_v5 = vunpack.i.h.bf16 %v16164_v45  ;;  %v16165_v4 = vunpack.i.l.bf16 %v16164_v45  ;;  %14816 = vmatprep.subr.bf16.mxu1 %v14815_v28 }
0x1e32   : > { %14818 = vmatpush3.bf16.msra.mxu1 %v14815_v28  ;;  %14846 = vmatpush3.bf16.msra.mxu0 %v14843_v18  ;;  %v14851_v42 = vpack.c.bf16 %v16181_v56, %v16180_v43 }
0x1e33   : > { %v14819_v7 = vpack.c.bf16 %v16166_v5, %v16165_v4  ;;  %v16189_v51 = vpop.permute.xlu0 %16188  ;;  %14848 = vmatprep.subr.bf16.mxu0 %v14847_v63 }
0x1e34   : > { %v16191_v29 = vunpack.i.h.bf16 %v16189_v51  ;;  %v16190_v40 = vunpack.i.l.bf16 %v16189_v51  ;;  %v16174_v54 = vpop.permute.xlu1 %16173 }
0x1e35   : > { %v16176_v1 = vunpack.i.h.bf16 %v16174_v54  ;;  %v16175_v15 = vunpack.i.l.bf16 %v16174_v54  ;;  %14820 = vmatprep.subr.bf16.mxu1 %v14819_v7 }
0x1e36   : > { %14822 = vmatpush3.bf16.msra.mxu1 %v14819_v7  ;;  %14850 = vmatpush3.bf16.msra.mxu0 %v14847_v63  ;;  %v14855_v37 = vpack.c.bf16 %v16191_v29, %v16190_v40 }
0x1e37   : > { %v14823_v2 = vpack.c.bf16 %v16176_v1, %v16175_v15  ;;  %v16199_v59 = vpop.permute.xlu0 %16198  ;;  %14852 = vmatprep.subr.bf16.mxu0 %v14851_v42 }
0x1e38   : > { %v16184_v23 = vpop.permute.xlu1 %16183  ;;  %v16201_v3 = vunpack.i.h.bf16 %v16199_v59  ;;  %v16200_v49 = vunpack.i.l.bf16 %v16199_v59 }
0x1e39   : > { %v16186_v0 = vunpack.i.h.bf16 %v16184_v23  ;;  %v16185_v36 = vunpack.i.l.bf16 %v16184_v23  ;;  %14824 = vmatprep.subr.bf16.mxu1 %v14823_v2 }
0x1e3a   : > { %14826 = vmatpush3.bf16.msra.mxu1 %v14823_v2  ;;  %14854 = vmatpush3.bf16.msra.mxu0 %v14851_v42  ;;  %v14859_v27 = vpack.c.bf16 %v16201_v3, %v16200_v49 }
0x1e3b   : > { %v14827_v34 = vpack.c.bf16 %v16186_v0, %v16185_v36  ;;  %v16209_v46 = vpop.permute.xlu0 %16208  ;;  %14856 = vmatprep.subr.bf16.mxu0 %v14855_v37 }
0x1e3c   : > { %v16211_v10 = vunpack.i.h.bf16 %v16209_v46  ;;  %v16210_v57 = vunpack.i.l.bf16 %v16209_v46  ;;  %v16194_v53 = vpop.permute.xlu1 %16193 }
0x1e3d   : > { %v16196_v35 = vunpack.i.h.bf16 %v16194_v53  ;;  %v16195_v39 = vunpack.i.l.bf16 %v16194_v53  ;;  %14828 = vmatprep.subr.bf16.mxu1 %v14827_v34 }
0x1e3e   : > { %14830 = vmatpush3.bf16.msra.mxu1 %v14827_v34  ;;  %14858 = vmatpush3.bf16.msra.mxu0 %v14855_v37  ;;  %v14867_v52 = vpack.c.bf16 %v16211_v10, %v16210_v57 }
0x1e3f   : > { %v14831_v41 = vpack.c.bf16 %v16196_v35, %v16195_v39  ;;  %v16219_v8 = vpop.permute.xlu0 %16218  ;;  %14860 = vmatprep.subr.bf16.mxu0 %v14859_v27 }
0x1e40   : > { %v16204_v50 = vpop.permute.xlu1 %16203  ;;  %v16221_v13 = vunpack.i.h.bf16 %v16219_v8  ;;  %v16220_v47 = vunpack.i.l.bf16 %v16219_v8 }
0x1e41   : > { %v16206_v22 = vunpack.i.h.bf16 %v16204_v50  ;;  %v16205_v21 = vunpack.i.l.bf16 %v16204_v50  ;;  %14832 = vmatprep.subr.bf16.mxu1 %v14831_v41 }
0x1e42   : > { %14834 = vmatpush3.bf16.msra.mxu1 %v14831_v41  ;;  %14862 = vmatpush3.bf16.msra.mxu0 %v14859_v27  ;;  %v14899_v18 = vpack.c.bf16 %v16221_v13, %v16220_v47 }
0x1e43   : > { %v14863_v30 = vpack.c.bf16 %v16206_v22, %v16205_v21  ;;  %14868 = vmatprep.subr.bf16.mxu1 %v14867_v52  ;;  %v16229_v45 = vpop.permute.xlu0 %16228 }
0x1e44   : > { %v16214_v61 = vpop.permute.xlu1 %16213  ;;  %v16231_v36 = vunpack.i.h.bf16 %v16229_v45 }
0x1e45   : > { %14864 = vmatprep.subr.bf16.mxu0 %v14863_v30  ;;  %v16216_v4 = vunpack.i.h.bf16 %v16214_v61  ;;  %v16215_v7 = vunpack.i.l.bf16 %v16214_v61 }
0x1e46   : > { %14866 = vmatpush3.bf16.msra.mxu0 %v14863_v30 }
0x1e47   : > { %14900 = vmatprep.subr.bf16.mxu0 %v14899_v18  ;;  %v14871_v42 = vpack.c.bf16 %v16216_v4, %v16215_v7  ;;  %v16239_v1 = vpop.permute.xlu0 %16238  ;;  %v10707_v7 = vld [vmem:[%s20751_s4 + $0x60] sm:$0xff] }
0x1e48   : > { %v16224_v44 = vpop.permute.xlu1 %16223  ;;  %v16241_v35 = vunpack.i.h.bf16 %v16239_v1  ;;  %v16240_v39 = vunpack.i.l.bf16 %v16239_v1 }
0x1e49   : > { %v16226_v15 = vunpack.i.h.bf16 %v16224_v44  ;;  %v16225_v2 = vunpack.i.l.bf16 %v16224_v44 }
0x1e4a   : > { %v14907_v47 = vpack.c.bf16 %v16241_v35, %v16240_v39 }
0x1e4b   : > { %v14875_v59 = vpack.c.bf16 %v16226_v15, %v16225_v2  ;;  %v16249_v0 = vpop.permute.xlu0 %16248 }
0x1e4c   : > { %v16234_v63 = vpop.permute.xlu1 %16233  ;;  %v16250_v22 = vunpack.i.l.bf16 %v16249_v0 }
0x1e4d   : > { %v16236_v37 = vunpack.i.h.bf16 %v16234_v63  ;;  %v16235_v23 = vunpack.i.l.bf16 %v16234_v63 }
0x1e4f   : > { %v14879_v34 = vpack.c.bf16 %v16236_v37, %v16235_v23  ;;  %v16259_v8 = vpop.permute.xlu0 %16258 }
0x1e50   : > { %v16244_v54 = vpop.permute.xlu1 %16243  ;;  %v16261_v44 = vunpack.i.h.bf16 %v16259_v8  ;;  %v16260_v63 = vunpack.i.l.bf16 %v16259_v8 }
0x1e51   : > { %v16246_v46 = vunpack.i.h.bf16 %v16244_v54  ;;  %v16245_v10 = vunpack.i.l.bf16 %v16244_v54 }
0x1e54   : > { %v16254_v3 = vpop.permute.xlu1 %16253 }
0x1e55   : > { %v16256_v50 = vunpack.i.h.bf16 %v16254_v3  ;;  %v16255_v13 = vunpack.i.l.bf16 %v16254_v3 }
0x1e58   : > { %v16264_v41 = vpop.permute.xlu1 %16263 }
0x1e59   : > { %v16266_v21 = vunpack.i.h.bf16 %v16264_v41  ;;  %v16265_v30 = vunpack.i.l.bf16 %v16264_v41 }
0x1e5c   : > { %v16274_v61 = vpop.permute.xlu1 %16273 }
0x1e60   : > { %v16284_v2 = vpop.permute.xlu1 %16283 }
0x1e61   : > { %v16286_v37 = vunpack.i.h.bf16 %v16284_v2  ;;  %v16285_v23 = vunpack.i.l.bf16 %v16284_v2 }
0x1e63   : > { %v14927_v3 = vpack.c.bf16 %v16286_v37, %v16285_v23 }
0x1eb8   : > { %v13177_v55 = vpop.f32.mrb[92].mxu0 }
0x1eb9   : > { %16495 = vrcp.f32 %v13177_v55  ;;  %v8898_v28 = vpop.f32.mrb[93].mxu0  ;;  %v16269_v55 = vpop.permute.xlu0 %16268 }
0x1eba   : > { %16497 = vrcp.f32 %v8898_v28  ;;  %v16270_v4 = vunpack.i.l.bf16 %v16269_v55 }
0x1ec3   : > { %v16496_v56 = vpop.eup %16495  ;;  %v13180_v43 = vpop.f32.mrb[94].mxu0 }
0x1ec4   : > { %v16498_v5 = vpop.eup %16497  ;;  %16499 = vrcp.f32 %v13180_v43  ;;  %v8908_v51 = vpop.f32.mrb[95].mxu0  ;;  %v8946_v40 = vmul.f32 %v16496_v56, %v20338_v25  ;;  %v16230_v25 = vunpack.i.l.bf16 %v16229_v45  ;;  %v14891_v45 = vpack.c.bf16 %v16266_v21, %v16265_v30 }
0x1ec5   : > { %16501 = vrcp.f32 %v8908_v51  ;;  %v8945_v29 = vmul.f32 %v16498_v5, %v20336_v14  ;;  %v16275_v56 = vunpack.i.l.bf16 %v16274_v61  ;;  %v14915_v43 = vpack.c.bf16 %v16261_v44, %v16260_v63  ;;  %v10708_v51 = vld [vmem:[%s20751_s4 + $0x68] sm:$0xff] }
0x1ec6   : > { %v14903_v27 = vpack.c.bf16 %v16231_v36, %v16230_v25  ;;  %v16271_v5 = vunpack.i.h.bf16 %v16269_v55  ;;  %v14931_v54 = vpack.c.bf16 %v10708_v51, %v10707_v7 }
0x1ec7   : > { %13219 = vmatprep.mubr.f32.mxu1 %v8945_v29  ;;  %v16279_v29 = vpop.permute.xlu0 %16278 }
0x1ec8   : > { %13220 = vmatmul.mubr.f32.vlgmr.msra.gmra.mrb[100].mxu1 %v8946_v40  ;;  %v16281_v1 = vunpack.i.h.bf16 %v16279_v29  ;;  %v16280_v15 = vunpack.i.l.bf16 %v16279_v29 }
0x1ec9   : > { %14870 = vmatpush3.bf16.msra.mxu1 %v14867_v52  ;;  %v14883_v52 = vpack.c.bf16 %v16246_v46, %v16245_v10  ;;  %v10710_v46 = vld [vmem:[%s20751_s4 + $0x78] sm:$0xff] }
0x1eca   : > { %14872 = vmatprep.subr.bf16.mxu1 %v14871_v42 }
0x1ecd   : > { %14874 = vmatpush3.bf16.msra.mxu1 %v14871_v42  ;;  %v14919_v42 = vpack.c.bf16 %v16271_v5, %v16270_v4 }
0x1ece   : > { %v16500_v49 = vpop.eup %16499  ;;  %14876 = vmatprep.subr.bf16.mxu1 %v14875_v59 }
0x1ecf   : > { %v16502_v14 = vpop.eup %16501  ;;  %v8948_v53 = vmul.f32 %v16500_v49, %v20345_v26  ;;  %v14887_v26 = vpack.c.bf16 %v16256_v50, %v16255_v13 }
0x1ed0   : > { %v8947_v57 = vmul.f32 %v16502_v14, %v20342_v16  ;;  %v16251_v16 = vunpack.i.h.bf16 %v16249_v0 }
0x1ed1   : > { %14878 = vmatpush3.bf16.msra.mxu1 %v14875_v59  ;;  %v14923_v59 = vpack.c.bf16 %v16281_v1, %v16280_v15  ;;  %v10713_v1 = vld [vmem:[%s20753_s6 + $0x68] sm:$0xff]  ;;  %v10714_v15 = vld [vmem:[%s20753_s6 + $0x70] sm:$0xff] }
0x1ed2   : > { %14880 = vmatprep.subr.bf16.mxu1 %v14879_v34  ;;  %13254 = vmatprep.mubr.f32.mxu0 %v8947_v57  ;;  %v14911_v28 = vpack.c.bf16 %v16251_v16, %v16250_v22  ;;  %v10808_v16 = vld [vmem:[%s20752_s5 + $0x3] ss:$0 sm:$0xff] }
0x1ed3   : > { %13255 = vmatmul.mubr.f32.vlgmr.msra.gmra.mrb[100].mxu0 %v8948_v53 }
0x1ed4   : > { %14902 = vmatpush3.bf16.msra.mxu0 %v14899_v18  ;;  %v16276_v18 = vunpack.i.h.bf16 %v16274_v61 }
0x1ed5   : > { %14882 = vmatpush3.bf16.msra.mxu1 %v14879_v34  ;;  %14904 = vmatprep.subr.bf16.mxu0 %v14903_v27  ;;  %v10709_v34 = vld [vmem:[%s20751_s4 + $0x70] sm:$0xff] }
0x1ed6   : > { %14884 = vmatprep.subr.bf16.mxu1 %v14883_v52  ;;  %v14895_v40 = vpack.c.bf16 %v16276_v18, %v16275_v56 }
0x1ed8   : > { %14906 = vmatpush3.bf16.msra.mxu0 %v14903_v27  ;;  %v14935_v27 = vpack.c.bf16 %v10710_v46, %v10709_v34 }
0x1ed9   : > { %14886 = vmatpush3.bf16.msra.mxu1 %v14883_v52  ;;  %14908 = vmatprep.subr.bf16.mxu0 %v14907_v47 }
0x1eda   : > { %14888 = vmatprep.subr.bf16.mxu1 %v14887_v26 }
0x1edc   : > { %14910 = vmatpush3.bf16.msra.mxu0 %v14907_v47 }
0x1edd   : > { %14890 = vmatpush3.bf16.msra.mxu1 %v14887_v26  ;;  %14912 = vmatprep.subr.bf16.mxu0 %v14911_v28 }
0x1ede   : > { %14892 = vmatprep.subr.bf16.mxu1 %v14891_v45 }
0x1ee0   : > { %14914 = vmatpush3.bf16.msra.mxu0 %v14911_v28 }
0x1ee1   : > { %14894 = vmatpush3.bf16.msra.mxu1 %v14891_v45  ;;  %14916 = vmatprep.subr.bf16.mxu0 %v14915_v43 }
0x1ee2   : > { %14896 = vmatprep.subr.bf16.mxu1 %v14895_v40 }
0x1ee4   : > { %14918 = vmatpush3.bf16.msra.mxu0 %v14915_v43 }
0x1ee5   : > { %14898 = vmatpush3.bf16.msra.mxu1 %v14895_v40  ;;  %14920 = vmatprep.subr.bf16.mxu0 %v14919_v42 }
0x1ee6   : > { %14932 = vmatprep.subr.bf16.mxu1 %v14931_v54 }
0x1ee8   : > { %14922 = vmatpush3.bf16.msra.mxu0 %v14919_v42  ;;  %v10712_v42 = vld [vmem:[%s20753_s6 + $0x60] sm:$0xff] }
0x1ee9   : > { %14924 = vmatprep.subr.bf16.mxu0 %v14923_v59  ;;  %v14939_v2 = vpack.c.bf16 %v10713_v1, %v10712_v42 }
0x1eec   : > { %14926 = vmatpush3.bf16.msra.mxu0 %v14923_v59  ;;  %v10715_v59 = vld [vmem:[%s20753_s6 + $0x78] sm:$0xff] }
0x1eed   : > { %14928 = vmatprep.subr.bf16.mxu0 %v14927_v3  ;;  %v14943_v37 = vpack.c.bf16 %v10715_v59, %v10714_v15 }
0x1ef0   : > { %14930 = vmatpush3.bf16.msra.mxu0 %v14927_v3 }
0x1ef8   : > { %v13183_v49 = vpop.f32.mrb[96].mxu0 }
0x1ef9   : > { %16503 = vrcp.f32 %v13183_v49  ;;  %v8918_v0 = vpop.f32.mrb[97].mxu0 }
0x1efa   : > { %16505 = vrcp.f32 %v8918_v0 }
0x1f00   : > { %v13186_v14 = vpop.f32.mrb[98].mxu0 }
0x1f01   : > { %16507 = vrcp.f32 %v13186_v14  ;;  %v8928_v36 = vpop.f32.mrb[99].mxu0 }
0x1f02   : > { %16509 = vrcp.f32 %v8928_v36 }
0x1f03   : > { %v16504_v25 = vpop.eup %16503 }
0x1f04   : > { %v16506_v10 = vpop.eup %16505  ;;  %v8950_v53 = vmul.f32 %v16504_v25, %v20354_v24 }
0x1f05   : > { %v8949_v57 = vmul.f32 %v16506_v10, %v20352_v6 }
0x1f07   : > { %13289 = vmatprep.mubr.f32.mxu1 %v8949_v57 }
0x1f08   : > { %13290 = vmatmul.mubr.f32.vlgmr.msra.gmra.mrb[102].mxu1 %v8950_v53 }
0x1f09   : > { %14934 = vmatpush3.bf16.msra.mxu1 %v14931_v54 }
0x1f0a   : > { %14936 = vmatprep.subr.bf16.mxu1 %v14935_v27 }
0x1f0b   : > { %v16508_v35 = vpop.eup %16507 }
0x1f0c   : > { %v16510_v39 = vpop.eup %16509  ;;  %v8952_v8 = vmul.f32 %v16508_v35, %v20360_v9 }
0x1f0d   : > { %v8951_v41 = vmul.f32 %v16510_v39, %v20358_v11  ;;  %14938 = vmatpush3.bf16.msra.mxu1 %v14935_v27 }
0x1f0e   : > { %14940 = vmatprep.subr.bf16.mxu1 %v14939_v2 }
0x1f0f   : > { %13324 = vmatprep.mubr.f32.mxu0 %v8951_v41 }
0x1f10   : > { %13325 = vmatmul.mubr.f32.vlgmr.msra.gmra.mrb[102].mxu0 %v8952_v8 }
0x1f9b   : > { %v13221_v52 = vpop.f32.mrb[100].mxu1 }
0x1f9c   : > { %v9083_v50 = vpop.f32.mrb[101].mxu1 }
0x1f9d   : > { %13335 = vmatprep.mubr.msk.f32.mxu1 %vm651_vm2, %v9083_v50 }
0x1f9e   : > { %13336 = vmatmul.mubr.msk.f32.vlgmr.msra.gmra.mrb[104].mxu1 %vm651_vm2, %v13221_v52 }
0x1f9f   : > { %14942 = vmatpush3.bf16.msra.mxu1 %v14939_v2  ;;  %v20480_v2 = vld [vmem:[%s20757_s10 + $0xc] sm:$0xf] }
0x1fa0   : > { %14944 = vmatprep.subr.bf16.mxu1 %v14943_v37 }
0x1fa3   : > { %14946 = vmatpush3.bf16.msra.mxu1 %v14943_v37 }
0x1fa6   : > { %v13256_v6 = vpop.f32.mrb[100].mxu0 }
0x1fa7   : > { %v9222_v24 = vpop.f32.mrb[101].mxu0 }
0x1fa8   : > { %13338 = vmatprep.mubr.msk.f32.mxu1 %vm651_vm2, %v9222_v24  ;;  %v10717_v24 = vld [vmem:[%s20755_s8 + $0xc0] sm:$0xff] }
0x1fa9   : > { %13339 = vmatmul.mubr.msk.f32.gmra.mrb[106].mxu1 %vm651_vm2, %v13256_v6 }
0x1fdb   : > { %v13291_v13 = vpop.f32.mrb[102].mxu1 }
0x1fdc   : > { %v9361_v47 = vpop.f32.mrb[103].mxu1 }
0x1fdd   : > { %13341 = vmatprep.mubr.msk.f32.mxu1 %vm651_vm2, %v9361_v47 }
0x1fde   : > { %13342 = vmatmul.mubr.msk.f32.gmra.mrb[108].mxu1 %vm651_vm2, %v13291_v13  ;;  %v10718_v13 = vld [vmem:[%s20755_s8 + $0xc8] sm:$0xff] }
0x1fdf   : > { %v14947_v47 = vpack.c.bf16 %v10718_v13, %v10717_v24 }
0x1fe1   : > { %14948 = vmatprep.subr.bf16.mxu1 %v14947_v47 }
0x1fe3   : > { %v13326_v11 = vpop.f32.mrb[102].mxu0 }
0x1fe4   : > { %v9500_v9 = vpop.f32.mrb[103].mxu0 }
0x1fe5   : > { %13344 = vmatprep.mubr.msk.f32.mxu1 %vm651_vm2, %v9500_v9 }
0x1fe6   : > { %13345 = vmatmul.mubr.msk.f32.gmra.mrb[110].mxu1 %vm651_vm2, %v13326_v11 }
0x2071   : > { %v13337_v22 = vpop.f32.mrb[104].mxu1 }
0x2072   : > { %v9611_v26 = vadd.f32 %v13337_v22, %v10808_v16  ;;  %v9605_v21 = vpop.f32.mrb[105].mxu1 }
0x2073   : > { %v9606_v30 = vadd.f32 %v10808_v16, %v9605_v21 }
0x2074   : > { %v20396_v61 = vadd.f32 %v9611_v26, %v19752_v20 }
0x2075   : > { %v20399_v55 = vadd.f32 %v9606_v30, %v19748_v58 }
0x2076   : > { %v9655_v28 = vsel %vm651_vm2, %v20396_v61, 0.0  ;;  %v9685_v63 = vmul.f32 %v20396_v61, %v20396_v61 }
0x2077   : > { %9656 = vadd.xlane.f32.xlu1 %v9655_v28  ;;  %v9652_v44 = vsel %vm651_vm2, %v20399_v55, 0.0  ;;  %v9684_v20 = vmul.f32 %v20399_v55, %v20399_v55 }
0x2078   : > { %9653 = vadd.xlane.f32.xlu0 %v9652_v44  ;;  %v9695_v45 = vsel %vm651_vm2, %v9685_v63, 0.0 }
0x2079   : > { %v9692_v4 = vsel %vm651_vm2, %v9684_v20, 0.0 }
0x207c   : > { %9696 = vadd.xlane.f32.xlu0 %v9695_v45  ;;  %v13340_v18 = vpop.f32.mrb[106].mxu1 }
0x207d   : > { %v9621_v58 = vadd.f32 %v13340_v18, %v10808_v16  ;;  %v9615_v56 = vpop.f32.mrb[107].mxu1 }
0x207e   : > { %v9616_v43 = vadd.f32 %v10808_v16, %v9615_v56 }
0x207f   : > { %v20411_v5 = vadd.f32 %v9621_v58, %v19765_v62 }
0x2080   : > { %v20415_v7 = vadd.f32 %v9616_v43, %v19762_v33  ;;  %9693 = vadd.xlane.f32.xlu0 %v9692_v4 }
0x2081   : > { %v9661_v40 = vsel %vm651_vm2, %v20411_v5, 0.0  ;;  %v9687_v62 = vmul.f32 %v20411_v5, %v20411_v5 }
0x2082   : > { %v9658_v51 = vsel %vm651_vm2, %v20415_v7, 0.0  ;;  %v9686_v29 = vmul.f32 %v20415_v7, %v20415_v7 }
0x2083   : > { %9659 = vadd.xlane.f32.xlu1 %v9658_v51  ;;  %v9701_v33 = vsel %vm651_vm2, %v9687_v62, 0.0 }
0x2084   : > { %9662 = vadd.xlane.f32.xlu0 %v9661_v40  ;;  %v9698_v54 = vsel %vm651_vm2, %v9686_v29, 0.0 }
0x2087   : > { %9699 = vadd.xlane.f32.xlu1 %v9698_v54 }
0x2088   : > { %9702 = vadd.xlane.f32.xlu0 %v9701_v33 }
0x20b1   : > { %v13343_v23 = vpop.f32.mrb[108].mxu1 }
0x20b2   : > { %v9631_v3 = vadd.f32 %v13343_v23, %v10808_v16  ;;  %v9625_v49 = vpop.f32.mrb[109].mxu1 }
0x20b3   : > { %v9626_v0 = vadd.f32 %v10808_v16, %v9625_v49  ;;  %v20485_v49 = vrot.slane %v20480_v2, %v17708_v19  ;;  %v10720_v19 = vld [vmem:[%s20755_s8 + $0xd8] sm:$0xff] }
0x20b4   : > { %v20440_v14 = vadd.f32 %v9631_v3, %v19780_v60 }
0x20b5   : > { %v20443_v36 = vadd.f32 %v9626_v0, %v19776_v31 }
0x20b6   : > { %v9667_v25 = vsel %vm651_vm2, %v20440_v14, 0.0  ;;  %v9689_v34 = vmul.f32 %v20440_v14, %v20440_v14 }
0x20b7   : > { %9668 = vadd.xlane.f32.xlu0 %v9667_v25  ;;  %v9664_v46 = vsel %vm651_vm2, %v20443_v36, 0.0  ;;  %v9688_v10 = vmul.f32 %v20443_v36, %v20443_v36 }
0x20b8   : > { %9665 = vadd.xlane.f32.xlu1 %v9664_v46  ;;  %v9707_v31 = vsel %vm651_vm2, %v9689_v34, 0.0 }
0x20b9   : > { %v13346_v57 = vpop.f32.mrb[110].mxu1  ;;  %v9704_v35 = vsel %vm651_vm2, %v9688_v10, 0.0 }
0x20ba   : > { %v9641_v60 = vadd.f32 %v13346_v57, %v10808_v16  ;;  %v9635_v53 = vpop.f32.mrb[111].mxu1  ;;  %v20491_v57 = vrot.slane %v20480_v2, %v17721_v12 }
0x20bb   : > { %v9636_v27 = vadd.f32 %v10808_v16, %v9635_v53  ;;  %9708 = vadd.xlane.f32.xlu0 %v9707_v31 }
0x20bc   : > { %v20456_v39 = vadd.f32 %v9641_v60, %v19793_v32  ;;  %9705 = vadd.xlane.f32.xlu1 %v9704_v35  ;;  %v10719_v60 = vld [vmem:[%s20755_s8 + $0xd0] sm:$0xff] }
0x20bd   : > { %v20459_v41 = vadd.f32 %v9636_v27, %v19790_v17  ;;  %v14951_v12 = vpack.c.bf16 %v10720_v19, %v10719_v60 }
0x20be   : > { %v9673_v8 = vsel %vm651_vm2, %v20456_v39, 0.0  ;;  %v9691_v52 = vmul.f32 %v20456_v39, %v20456_v39 }
0x20bf   : > { %9674 = vadd.xlane.f32.xlu0 %v9673_v8  ;;  %v9670_v50 = vsel %vm651_vm2, %v20459_v41, 0.0  ;;  %v9690_v6 = vmul.f32 %v20459_v41, %v20459_v41  ;;  %v10721_v8 = vld [vmem:[%s20755_s8 + $0xe0] sm:$0xff] }
0x20c0   : > { %9671 = vadd.xlane.f32.xlu1 %v9670_v50  ;;  %v9713_v32 = vsel %vm651_vm2, %v9691_v52, 0.0  ;;  %v10722_v52 = vld [vmem:[%s20755_s8 + $0xe8] sm:$0xff] }
0x20c1   : > { %v9710_v17 = vsel %vm651_vm2, %v9690_v6, 0.0 }
0x20c3   : > { %9714 = vadd.xlane.f32.xlu0 %v9713_v32  ;;  %v14955_v32 = vpack.c.bf16 %v10722_v52, %v10721_v8 }
0x20c4   : > { %9711 = vadd.xlane.f32.xlu1 %v9710_v17 }
0x2104   : > { %v9657_v11 = vpop.xlane.xlu1 %9656 }
0x2105   : > { %v9654_v9 = vpop.xlane.xlu0 %9653  ;;  %v9677_v16 = vmul.f32 0.03125, %v9657_v11 }
0x2106   : > { %v9676_v21 = vmul.f32 0.03125, %v9654_v9 }
0x2107   : > { %v9725_v26 = vmul.f32 %v9677_v16, %v9677_v16  ;;  %v9741_v23 = vsub.f32 %v20396_v61, %v9677_v16 }
0x2108   : > { %v9724_v63 = vmul.f32 %v9676_v21, %v9676_v21  ;;  %v9740_v25 = vsub.f32 %v20399_v55, %v9676_v21 }
0x2109   : > { %v9697_v22 = vpop.xlane.xlu0 %9696 }
0x210a   : > { %v9717_v30 = vmul.f32 0.03125, %v9697_v22 }
0x210c   : > { %v9733_v28 = vsub.f32 %v9717_v30, %v9725_v26 }
0x210d   : > { %v9694_v44 = vpop.xlane.xlu0 %9693 }
0x210e   : > { %v9749_v45 = vadd.f32 1e-05, %v9733_v28  ;;  %v9716_v20 = vmul.f32 0.03125, %v9694_v44 }
0x2110   : > { %16511 = vrsqrt.f32 %v9749_v45  ;;  %v9732_v18 = vsub.f32 %v9716_v20, %v9724_v63  ;;  %v9660_v58 = vpop.xlane.xlu1 %9659 }
0x2111   : > { %v9678_v56 = vmul.f32 0.03125, %v9660_v58  ;;  %v9663_v43 = vpop.xlane.xlu0 %9662 }
0x2112   : > { %v9748_v4 = vadd.f32 1e-05, %v9732_v18  ;;  %v9679_v51 = vmul.f32 0.03125, %v9663_v43 }
0x2113   : > { %v9726_v40 = vmul.f32 %v9678_v56, %v9678_v56  ;;  %v9742_v53 = vsub.f32 %v20415_v7, %v9678_v56 }
0x2114   : > { %16513 = vrsqrt.f32 %v9748_v4  ;;  %v9700_v29 = vpop.xlane.xlu1 %9699  ;;  %v9727_v33 = vmul.f32 %v9679_v51, %v9679_v51  ;;  %v9743_v35 = vsub.f32 %v20411_v5, %v9679_v51 }
0x2115   : > { %v9718_v62 = vmul.f32 0.03125, %v9700_v29  ;;  %v9703_v54 = vpop.xlane.xlu0 %9702 }
0x2116   : > { %v9719_v42 = vmul.f32 0.03125, %v9703_v54 }
0x2117   : > { %v9734_v1 = vsub.f32 %v9718_v62, %v9726_v40 }
0x2118   : > { %v9735_v15 = vsub.f32 %v9719_v42, %v9727_v33 }
0x2119   : > { %v9750_v59 = vadd.f32 1e-05, %v9734_v1 }
0x211a   : > { %v16512_v37 = vpop.eup %16511  ;;  %v9751_v3 = vadd.f32 1e-05, %v9735_v15 }
0x211b   : > { %16515 = vrsqrt.f32 %v9750_v59  ;;  %v9765_v0 = vmul.f32 %v16512_v37, %v9741_v23 }
0x211c   : > { %16517 = vrsqrt.f32 %v9751_v3 }
0x211d   : > { %v9777_v10 = vmul.f32 %v20485_v49, %v9765_v0 }
0x211e   : > { %v16514_v34 = vpop.eup %16513 }
0x211f   : > { %v9764_v46 = vmul.f32 %v16514_v34, %v9740_v25  ;;  %v20505_v31 = vadd.f32 %v20491_v57, %v9777_v10 }
0x2121   : > { %v9776_v61 = vmul.f32 %v20485_v49, %v9764_v46 }
0x2123   : > { %v20501_v55 = vadd.f32 %v20491_v57, %v9776_v61 }
0x2125   : > { %v16516_v27 = vpop.eup %16515  ;;  %13355 = vmatprep.mubr.msk.f32.mxu1 %vm651_vm2, %v20501_v55 }
0x2126   : > { %v16518_v50 = vpop.eup %16517  ;;  %13356 = vmatmul.mubr.msk.f32.vlgmr.msra.gmra.mrb[112].mxu1 %vm651_vm2, %v20505_v31  ;;  %v9766_v7 = vmul.f32 %v16516_v27, %v9742_v53 }
0x2127   : > { %v9767_v6 = vmul.f32 %v16518_v50, %v9743_v35  ;;  %14950 = vmatpush3.bf16.msra.mxu1 %v14947_v47 }
0x2128   : > { %v9778_v5 = vmul.f32 %v20485_v49, %v9766_v7  ;;  %14952 = vmatprep.subr.bf16.mxu1 %v14951_v12 }
0x2129   : > { %v9779_v17 = vmul.f32 %v20485_v49, %v9767_v6 }
0x212a   : > { %v20521_v24 = vadd.f32 %v20491_v57, %v9778_v5 }
0x212b   : > { %v20524_v13 = vadd.f32 %v20491_v57, %v9779_v17  ;;  %14954 = vmatpush3.bf16.msra.mxu1 %v14951_v12 }
0x212c   : > { %13358 = vmatprep.mubr.msk.f32.mxu1 %vm651_vm2, %v20521_v24  ;;  %14956 = vmatprep.subr.bf16.mxu1 %v14955_v32 }
0x212d   : > { %13359 = vmatmul.mubr.msk.f32.gmra.mrb[114].mxu1 %vm651_vm2, %v20524_v13 }
0x212f   : > { %14958 = vmatpush3.bf16.msra.mxu1 %v14955_v32 }
0x2144   : > { %v9669_v47 = vpop.xlane.xlu0 %9668 }
0x2145   : > { %v9681_v11 = vmul.f32 0.03125, %v9669_v47  ;;  %v9666_v9 = vpop.xlane.xlu1 %9665 }
0x2146   : > { %v9680_v16 = vmul.f32 0.03125, %v9666_v9 }
0x2147   : > { %v9729_v26 = vmul.f32 %v9681_v11, %v9681_v11  ;;  %v9745_v37 = vsub.f32 %v20440_v14, %v9681_v11 }
0x2148   : > { %v9709_v22 = vpop.xlane.xlu0 %9708  ;;  %v9728_v28 = vmul.f32 %v9680_v16, %v9680_v16  ;;  %v9744_v3 = vsub.f32 %v20443_v36, %v9680_v16 }
0x2149   : > { %v9721_v21 = vmul.f32 0.03125, %v9709_v22  ;;  %v9706_v30 = vpop.xlane.xlu1 %9705 }
0x214a   : > { %v9720_v44 = vmul.f32 0.03125, %v9706_v30 }
0x214b   : > { %v9737_v63 = vsub.f32 %v9721_v21, %v9729_v26 }
0x214c   : > { %v9736_v45 = vsub.f32 %v9720_v44, %v9728_v28  ;;  %v9675_v20 = vpop.xlane.xlu0 %9674 }
0x214d   : > { %v9753_v18 = vadd.f32 1e-05, %v9737_v63  ;;  %v9683_v58 = vmul.f32 0.03125, %v9675_v20  ;;  %v9672_v56 = vpop.xlane.xlu1 %9671 }
0x214e   : > { %v9752_v43 = vadd.f32 1e-05, %v9736_v45  ;;  %v9682_v4 = vmul.f32 0.03125, %v9672_v56 }
0x214f   : > { %16519 = vrsqrt.f32 %v9753_v18  ;;  %v9731_v29 = vmul.f32 %v9683_v58, %v9683_v58  ;;  %v9747_v60 = vsub.f32 %v20456_v39, %v9683_v58 }
0x2150   : > { %16521 = vrsqrt.f32 %v9752_v43  ;;  %v9715_v51 = vpop.xlane.xlu0 %9714  ;;  %v9730_v54 = vmul.f32 %v9682_v4, %v9682_v4  ;;  %v9746_v53 = vsub.f32 %v20459_v41, %v9682_v4  ;;  %v10723_v41 = vld [vmem:[%s20755_s8 + $0xf0] sm:$0xff] }
0x2151   : > { %v9723_v40 = vmul.f32 0.03125, %v9715_v51  ;;  %v9712_v62 = vpop.xlane.xlu1 %9711 }
0x2152   : > { %v9722_v33 = vmul.f32 0.03125, %v9712_v62 }
0x2153   : > { %v9739_v42 = vsub.f32 %v9723_v40, %v9731_v29  ;;  %v10826_v29 = vld [vmem:[%s20756_s9 + $0x3] ss:$0 sm:$0xff] }
0x2154   : > { %v9738_v1 = vsub.f32 %v9722_v33, %v9730_v54 }
0x2155   : > { %v9755_v15 = vadd.f32 1e-05, %v9739_v42 }
0x2156   : > { %v9754_v59 = vadd.f32 1e-05, %v9738_v1 }
0x2157   : > { %16523 = vrsqrt.f32 %v9755_v15 }
0x2158   : > { %16525 = vrsqrt.f32 %v9754_v59 }
0x2159   : > { %v16520_v23 = vpop.eup %16519 }
0x215a   : > { %v16522_v0 = vpop.eup %16521  ;;  %v9769_v25 = vmul.f32 %v16520_v23, %v9745_v37 }
0x215b   : > { %v9768_v34 = vmul.f32 %v16522_v0, %v9744_v3 }
0x215c   : > { %v9781_v46 = vmul.f32 %v20485_v49, %v9769_v25 }
0x215d   : > { %v9780_v10 = vmul.f32 %v20485_v49, %v9768_v34 }
0x215e   : > { %v20539_v19 = vadd.f32 %v20491_v57, %v9781_v46 }
0x215f   : > { %v20535_v61 = vadd.f32 %v20491_v57, %v9780_v10 }
0x2161   : > { %v16524_v14 = vpop.eup %16523  ;;  %13361 = vmatprep.mubr.msk.f32.mxu1 %vm651_vm2, %v20535_v61 }
0x2162   : > { %v16526_v36 = vpop.eup %16525  ;;  %13362 = vmatmul.mubr.msk.f32.gmra.mrb[116].mxu1 %vm651_vm2, %v20539_v19  ;;  %v9771_v12 = vmul.f32 %v16524_v14, %v9747_v60 }
0x2163   : > { %v9770_v27 = vmul.f32 %v16526_v36, %v9746_v53 }
0x2164   : > { %v9783_v35 = vmul.f32 %v20485_v49, %v9771_v12 }
0x2165   : > { %v9782_v8 = vmul.f32 %v20485_v49, %v9770_v27  ;;  %v10724_v49 = vld [vmem:[%s20755_s8 + $0xf8] sm:$0xff] }
0x2166   : > { %v20552_v52 = vadd.f32 %v20491_v57, %v9783_v35  ;;  %v14959_v50 = vpack.c.bf16 %v10724_v49, %v10723_v41 }
0x2167   : > { %v20549_v39 = vadd.f32 %v20491_v57, %v9782_v8  ;;  %v10817_v57 = vld [vmem:[%s20754_s7 + $0x3] ss:$0 sm:$0xff] }
0x2168   : > { %14960 = vmatprep.subr.bf16.mxu1 %v14959_v50 }
0x2169   : > { %13364 = vmatprep.mubr.msk.f32.mxu1 %vm651_vm2, %v20549_v39  ;;  %14962 = vmatpush3.bf16.msra.mxu1 %v14959_v50 }
0x216a   : > { %13365 = vmatmul.mubr.msk.f32.gmra.mrb[118].mxu1 %vm651_vm2, %v20552_v52 }
0x21f9   : > { %v13357_v7 = vpop.f32.mrb[112].mxu1 }
0x21fa   : > { %v9898_v6 = vadd.f32 %v13357_v7, %v10817_v57  ;;  %v9892_v5 = vpop.f32.mrb[113].mxu1 }
0x21fb   : > { %v9893_v32 = vadd.f32 %v10817_v57, %v9892_v5 }
0x21fc   : > { %v9932_v47 = vmax.f32 %v9898_v6, 0.0 }
0x21fd   : > { %v9931_v17 = vmax.f32 %v9893_v32, 0.0 }
0x21ff   : > { %13383 = vmatprep.mubr.msk.f32.mxu1 %vm2819_vm4, %v9931_v17 }
0x2200   : > { %v13360_v11 = vpop.f32.mrb[114].mxu1  ;;  %13384 = vmatmul.mubr.msk.f32.vlgmr.msra.gmra.mrb[120].mxu1 %vm2819_vm4, %v9932_v47 }
0x2201   : > { %v9908_v9 = vadd.f32 %v13360_v11, %v10817_v57  ;;  %v9902_v16 = vpop.f32.mrb[115].mxu1 }
0x2202   : > { %v9903_v22 = vadd.f32 %v10817_v57, %v9902_v16 }
0x2203   : > { %v9934_v21 = vmax.f32 %v9908_v9, 0.0 }
0x2204   : > { %v9933_v26 = vmax.f32 %v9903_v22, 0.0 }
0x2206   : > { %13386 = vmatprep.mubr.msk.f32.mxu1 %vm2819_vm4, %v9933_v26 }
0x2207   : > { %13387 = vmatmul.mubr.msk.f32.gmra.mrb[122].mxu1 %vm2819_vm4, %v9934_v21 }
0x2235   : > { %v13363_v30 = vpop.f32.mrb[116].mxu1 }
0x2236   : > { %v9918_v28 = vadd.f32 %v13363_v30, %v10817_v57  ;;  %v9912_v44 = vpop.f32.mrb[117].mxu1 }
0x2237   : > { %v9913_v63 = vadd.f32 %v10817_v57, %v9912_v44 }
0x2238   : > { %v9936_v20 = vmax.f32 %v9918_v28, 0.0 }
0x2239   : > { %v9935_v45 = vmax.f32 %v9913_v63, 0.0 }
0x223b   : > { %13389 = vmatprep.mubr.msk.f32.mxu1 %vm2819_vm4, %v9935_v45 }
0x223c   : > { %13390 = vmatmul.mubr.msk.f32.gmra.mrb[124].mxu1 %vm2819_vm4, %v9936_v20 }
0x223d   : > { %v13366_v18 = vpop.f32.mrb[118].mxu1 }
0x223e   : > { %v9928_v58 = vadd.f32 %v13366_v18, %v10817_v57  ;;  %v9922_v56 = vpop.f32.mrb[119].mxu1 }
0x223f   : > { %v9923_v43 = vadd.f32 %v10817_v57, %v9922_v56 }
0x2240   : > { %v9938_v51 = vmax.f32 %v9928_v58, 0.0 }
0x2241   : > { %v9937_v4 = vmax.f32 %v9923_v43, 0.0 }
0x2243   : > { %13392 = vmatprep.mubr.msk.f32.mxu1 %vm2819_vm4, %v9937_v4 }
0x2244   : > { %13393 = vmatmul.mubr.msk.f32.gmra.mrb[126].mxu1 %vm2819_vm4, %v9938_v51 }
0x22d3   : > { %v13385_v40 = vpop.f32.mrb[120].mxu1 }
0x22d4   : > { %v10041_v62 = vadd.f32 %v13385_v40, %v10826_v29  ;;  %v10035_v54 = vpop.f32.mrb[121].mxu1 }
0x22d5   : > { %v10036_v33 = vadd.f32 %v10826_v29, %v10035_v54 }
0x22d6   : > { %v20579_v42 = vadd.f32 %v10041_v62, %v20505_v31 }
0x22d7   : > { %v20582_v1 = vadd.f32 %v10036_v33, %v20501_v55 }
0x22d8   : > { %v10085_v15 = vsel %vm651_vm2, %v20579_v42, 0.0  ;;  %v10115_v59 = vmul.f32 %v20579_v42, %v20579_v42 }
0x22d9   : > { %10086 = vadd.xlane.f32.xlu0 %v10085_v15  ;;  %v10082_v37 = vsel %vm651_vm2, %v20582_v1, 0.0  ;;  %v10114_v23 = vmul.f32 %v20582_v1, %v20582_v1 }
0x22da   : > { %v13388_v3 = vpop.f32.mrb[122].mxu1  ;;  %10083 = vadd.xlane.f32.xlu1 %v10082_v37  ;;  %v10125_v55 = vsel %vm651_vm2, %v10115_v59, 0.0 }
0x22db   : > { %v10051_v31 = vadd.f32 %v13388_v3, %v10826_v29  ;;  %v10045_v0 = vpop.f32.mrb[123].mxu1  ;;  %v10122_v46 = vsel %vm651_vm2, %v10114_v23, 0.0 }
0x22dc   : > { %v10046_v25 = vadd.f32 %v10826_v29, %v10045_v0 }
0x22dd   : > { %v20594_v34 = vadd.f32 %v10051_v31, %v20524_v13  ;;  %10126 = vadd.xlane.f32.xlu0 %v10125_v55 }
0x22de   : > { %v20598_v10 = vadd.f32 %v10046_v25, %v20521_v24  ;;  %10123 = vadd.xlane.f32.xlu1 %v10122_v46 }
0x22df   : > { %v10091_v60 = vsel %vm651_vm2, %v20594_v34, 0.0  ;;  %v10117_v53 = vmul.f32 %v20594_v34, %v20594_v34 }
0x22e0   : > { %v10088_v14 = vsel %vm651_vm2, %v20598_v10, 0.0  ;;  %v10116_v13 = vmul.f32 %v20598_v10, %v20598_v10 }
0x22e1   : > { %10092 = vadd.xlane.f32.xlu0 %v10091_v60  ;;  %v10131_v36 = vsel %vm651_vm2, %v10117_v53, 0.0  ;;  %v20646_v53 = vrot.slane %v20480_v2, %v17892_v38 }
0x22e2   : > { %10089 = vadd.xlane.f32.xlu1 %v10088_v14  ;;  %v10128_v24 = vsel %vm651_vm2, %v10116_v13, 0.0 }
0x22e5   : > { %10132 = vadd.xlane.f32.xlu0 %v10131_v36 }
0x22e6   : > { %10129 = vadd.xlane.f32.xlu1 %v10128_v24 }
0x230f   : > { %v13391_v12 = vpop.f32.mrb[124].mxu1 }
0x2310   : > { %v10061_v27 = vadd.f32 %v13391_v12, %v10826_v29  ;;  %v10055_v35 = vpop.f32.mrb[125].mxu1  ;;  %v20651_v12 = vrot.slane %v20480_v2, %v17895_v48 }
0x2311   : > { %v10056_v8 = vadd.f32 %v10826_v29, %v10055_v35 }
0x2312   : > { %v20611_v41 = vadd.f32 %v10061_v27, %v20539_v19 }
0x2313   : > { %v20614_v49 = vadd.f32 %v10056_v8, %v20535_v61 }
0x2314   : > { %v10097_v50 = vsel %vm651_vm2, %v20611_v41, 0.0  ;;  %v10119_v57 = vmul.f32 %v20611_v41, %v20611_v41 }
0x2315   : > { %10098 = vadd.xlane.f32.xlu0 %v10097_v50  ;;  %v10094_v7 = vsel %vm651_vm2, %v20614_v49, 0.0  ;;  %v10118_v6 = vmul.f32 %v20614_v49, %v20614_v49 }
0x2316   : > { %10095 = vadd.xlane.f32.xlu1 %v10094_v7  ;;  %v10137_v61 = vsel %vm651_vm2, %v10119_v57, 0.0 }
0x2317   : > { %v13394_v5 = vpop.f32.mrb[126].mxu1  ;;  %v10134_v47 = vsel %vm651_vm2, %v10118_v6, 0.0 }
0x2318   : > { %v10071_v19 = vadd.f32 %v13394_v5, %v10826_v29  ;;  %v10065_v32 = vpop.f32.mrb[127].mxu1 }
0x2319   : > { %v10066_v17 = vadd.f32 %v10826_v29, %v10065_v32  ;;  %10138 = vadd.xlane.f32.xlu0 %v10137_v61 }
0x231a   : > { %v20627_v11 = vadd.f32 %v10071_v19, %v20552_v52  ;;  %10135 = vadd.xlane.f32.xlu1 %v10134_v47 }
0x231b   : > { %v20630_v9 = vadd.f32 %v10066_v17, %v20549_v39 }
0x231c   : > { %v10103_v16 = vsel %vm651_vm2, %v20627_v11, 0.0  ;;  %v10121_v22 = vmul.f32 %v20627_v11, %v20627_v11 }
0x231d   : > { %10104 = vadd.xlane.f32.xlu0 %v10103_v16  ;;  %v10100_v26 = vsel %vm651_vm2, %v20630_v9, 0.0  ;;  %v10120_v21 = vmul.f32 %v20630_v9, %v20630_v9 }
0x231e   : > { %10101 = vadd.xlane.f32.xlu1 %v10100_v26  ;;  %v10143_v52 = vsel %vm651_vm2, %v10121_v22, 0.0 }
0x231f   : > { %v10140_v39 = vsel %vm651_vm2, %v10120_v21, 0.0 }
0x2321   : > { %10144 = vadd.xlane.f32.xlu0 %v10143_v52 }
0x2322   : > { %10141 = vadd.xlane.f32.xlu1 %v10140_v39 }
0x2366   : > { %v10087_v30 = vpop.xlane.xlu0 %10086 }
0x2367   : > { %v10107_v28 = vmul.f32 0.03125, %v10087_v30  ;;  %v10084_v44 = vpop.xlane.xlu1 %10083 }
0x2368   : > { %v10106_v63 = vmul.f32 0.03125, %v10084_v44 }
0x2369   : > { %v10155_v20 = vmul.f32 %v10107_v28, %v10107_v28  ;;  %v10171_v14 = vsub.f32 %v20579_v42, %v10107_v28 }
0x236a   : > { %v10127_v45 = vpop.xlane.xlu0 %10126  ;;  %v10154_v56 = vmul.f32 %v10106_v63, %v10106_v63  ;;  %v10170_v36 = vsub.f32 %v20582_v1, %v10106_v63 }
0x236b   : > { %v10147_v18 = vmul.f32 0.03125, %v10127_v45  ;;  %v10124_v58 = vpop.xlane.xlu1 %10123 }
0x236c   : > { %v10146_v43 = vmul.f32 0.03125, %v10124_v58 }
0x236d   : > { %v10163_v4 = vsub.f32 %v10147_v18, %v10155_v20 }
0x236e   : > { %v10162_v51 = vsub.f32 %v10146_v43, %v10154_v56  ;;  %v10093_v29 = vpop.xlane.xlu0 %10092 }
0x236f   : > { %v10179_v40 = vadd.f32 1e-05, %v10163_v4  ;;  %v10109_v62 = vmul.f32 0.03125, %v10093_v29  ;;  %v10090_v54 = vpop.xlane.xlu1 %10089 }
0x2370   : > { %v10178_v33 = vadd.f32 1e-05, %v10162_v51  ;;  %v10108_v15 = vmul.f32 0.03125, %v10090_v54 }
0x2371   : > { %16527 = vrsqrt.f32 %v10179_v40  ;;  %v10157_v37 = vmul.f32 %v10109_v62, %v10109_v62  ;;  %v10173_v48 = vsub.f32 %v20594_v34, %v10109_v62 }
0x2372   : > { %16529 = vrsqrt.f32 %v10178_v33  ;;  %v10133_v59 = vpop.xlane.xlu0 %10132  ;;  %v10156_v31 = vmul.f32 %v10108_v15, %v10108_v15  ;;  %v10172_v1 = vsub.f32 %v20598_v10, %v10108_v15 }
0x2373   : > { %v10149_v23 = vmul.f32 0.03125, %v10133_v59  ;;  %v10130_v3 = vpop.xlane.xlu1 %10129 }
0x2374   : > { %v10148_v0 = vmul.f32 0.03125, %v10130_v3 }
0x2375   : > { %v10165_v25 = vsub.f32 %v10149_v23, %v10157_v37 }
0x2376   : > { %v10164_v55 = vsub.f32 %v10148_v0, %v10156_v31 }
0x2377   : > { %v10181_v46 = vadd.f32 1e-05, %v10165_v25 }
0x2378   : > { %v10180_v60 = vadd.f32 1e-05, %v10164_v55 }
0x2379   : > { %16531 = vrsqrt.f32 %v10181_v46 }
0x237a   : > { %16533 = vrsqrt.f32 %v10180_v60 }
0x237b   : > { %v16528_v13 = vpop.eup %16527 }
0x237c   : > { %v16530_v24 = vpop.eup %16529  ;;  %v10195_v27 = vmul.f32 %v16528_v13, %v10171_v14 }
0x237d   : > { %v10194_v35 = vmul.f32 %v16530_v24, %v10170_v36 }
0x237e   : > { %v10207_v8 = vmul.f32 %v20646_v53, %v10195_v27 }
0x237f   : > { %v10206_v42 = vmul.f32 %v20646_v53, %v10194_v35 }
0x2380   : > { %v10219_v38 = vadd.f32 %v20651_v12, %v10207_v8 }
0x2381   : > { %v10218_v50 = vadd.f32 %v20651_v12, %v10206_v42 }
0x2382   : > { %10227 = vst.msk [vmem:[%s20659_s17 + $0x8] sm:$0xff] %vm651_vm2, %v10219_v38 }
0x2383   : > { %v16532_v2 = vpop.eup %16531  ;;  %10226 = vst.msk [vmem:[%s20659_s17] sm:$0xff] %vm651_vm2, %v10218_v50 }
0x2384   : > { %v16534_v57 = vpop.eup %16533  ;;  %v10197_v7 = vmul.f32 %v16532_v2, %v10173_v48 }
0x2385   : > { %v10196_v6 = vmul.f32 %v16534_v57, %v10172_v1 }
0x2386   : > { %v10209_v5 = vmul.f32 %v20646_v53, %v10197_v7 }
0x2387   : > { %v10208_v19 = vmul.f32 %v20646_v53, %v10196_v6 }
0x2388   : > { %v10221_v32 = vadd.f32 %v20651_v12, %v10209_v5 }
0x2389   : > { %v10220_v61 = vadd.f32 %v20651_v12, %v10208_v19 }
0x238a   : > { %10229 = vst.msk [vmem:[%s20659_s17 + $0x18] sm:$0xff] %vm651_vm2, %v10221_v32 }
0x238b   : > { %10228 = vst.msk [vmem:[%s20659_s17 + $0x10] sm:$0xff] %vm651_vm2, %v10220_v61 }
0x23a2   : > { %v10099_v34 = vpop.xlane.xlu0 %10098 }
0x23a3   : > { %v10111_v17 = vmul.f32 0.03125, %v10099_v34  ;;  %v10096_v47 = vpop.xlane.xlu1 %10095 }
0x23a4   : > { %v10110_v16 = vmul.f32 0.03125, %v10096_v47 }
0x23a5   : > { %v10159_v22 = vmul.f32 %v10111_v17, %v10111_v17  ;;  %v10175_v59 = vsub.f32 %v20611_v41, %v10111_v17 }
0x23a6   : > { %v10139_v10 = vpop.xlane.xlu0 %10138  ;;  %v10158_v52 = vmul.f32 %v10110_v16, %v10110_v16  ;;  %v10174_v23 = vsub.f32 %v20614_v49, %v10110_v16 }
0x23a7   : > { %v10151_v26 = vmul.f32 0.03125, %v10139_v10  ;;  %v10136_v21 = vpop.xlane.xlu1 %10135 }
0x23a8   : > { %v10150_v39 = vmul.f32 0.03125, %v10136_v21 }
0x23a9   : > { %v10167_v30 = vsub.f32 %v10151_v26, %v10159_v22 }
0x23aa   : > { %v10166_v28 = vsub.f32 %v10150_v39, %v10158_v52  ;;  %v10105_v44 = vpop.xlane.xlu0 %10104 }
0x23ab   : > { %v10183_v63 = vadd.f32 1e-05, %v10167_v30  ;;  %v10113_v45 = vmul.f32 0.03125, %v10105_v44  ;;  %v10102_v20 = vpop.xlane.xlu1 %10101 }
0x23ac   : > { %v10182_v18 = vadd.f32 1e-05, %v10166_v28  ;;  %v10112_v58 = vmul.f32 0.03125, %v10102_v20 }
0x23ad   : > { %16535 = vrsqrt.f32 %v10183_v63  ;;  %v10161_v43 = vmul.f32 %v10113_v45, %v10113_v45  ;;  %v10177_v41 = vsub.f32 %v20627_v11, %v10113_v45 }
0x23ae   : > { %16537 = vrsqrt.f32 %v10182_v18  ;;  %v10145_v56 = vpop.xlane.xlu0 %10144  ;;  %v10160_v29 = vmul.f32 %v10112_v58, %v10112_v58  ;;  %v10176_v14 = vsub.f32 %v20630_v9, %v10112_v58 }
0x23af   : > { %v10153_v4 = vmul.f32 0.03125, %v10145_v56  ;;  %v10142_v51 = vpop.xlane.xlu1 %10141 }
0x23b0   : > { %v10152_v40 = vmul.f32 0.03125, %v10142_v51 }
0x23b1   : > { %v10169_v62 = vsub.f32 %v10153_v4, %v10161_v43 }
0x23b2   : > { %v10168_v54 = vsub.f32 %v10152_v40, %v10160_v29 }
0x23b3   : > { %v10185_v33 = vadd.f32 1e-05, %v10169_v62 }
0x23b4   : > { %v10184_v15 = vadd.f32 1e-05, %v10168_v54 }
0x23b5   : > { %16539 = vrsqrt.f32 %v10185_v33 }
0x23b6   : > { %16541 = vrsqrt.f32 %v10184_v15 }
0x23b7   : > { %v16536_v37 = vpop.eup %16535 }
0x23b8   : > { %v16538_v3 = vpop.eup %16537  ;;  %v10199_v31 = vmul.f32 %v16536_v37, %v10175_v59 }
0x23b9   : > { %v10198_v0 = vmul.f32 %v16538_v3, %v10174_v23 }
0x23ba   : > { %v10211_v25 = vmul.f32 %v20646_v53, %v10199_v31 }
0x23bb   : > { %v10210_v55 = vmul.f32 %v20646_v53, %v10198_v0 }
0x23bc   : > { %v10223_v46 = vadd.f32 %v20651_v12, %v10211_v25 }
0x23bd   : > { %v10222_v60 = vadd.f32 %v20651_v12, %v10210_v55 }
0x23be   : > { %10231 = vst.msk [vmem:[%s20659_s17 + $0x28] sm:$0xff] %vm651_vm2, %v10223_v46 }
0x23bf   : > { %v16540_v49 = vpop.eup %16539  ;;  %10230 = vst.msk [vmem:[%s20659_s17 + $0x20] sm:$0xff] %vm651_vm2, %v10222_v60 }
0x23c0   : > { %v16542_v13 = vpop.eup %16541  ;;  %v10201_v36 = vmul.f32 %v16540_v49, %v10177_v41 }
0x23c1   : > { %v10200_v24 = vmul.f32 %v16542_v13, %v10176_v14 }
0x23c2   : > { %v10213_v27 = vmul.f32 %v20646_v53, %v10201_v36 }
0x23c3   : > { %v10212_v35 = vmul.f32 %v20646_v53, %v10200_v24 }
0x23c4   : > { %v10225_v8 = vadd.f32 %v20651_v12, %v10213_v27 }
0x23c5   : > { %v10224_v11 = vadd.f32 %v20651_v12, %v10212_v35 }
0x23c6   : > { %10233 = vst.msk [vmem:[%s20659_s17 + $0x38] sm:$0xff] %vm651_vm2, %v10225_v8 }
0x23c7   : > { %10232 = vst.msk [vmem:[%s20659_s17 + $0x30] sm:$0xff] %vm651_vm2, %v10224_v11 }
0x23c8   : > { %16556 = shalt.err (!%p16553_p3)
}
0x23c9   : > { %s16557_s23 = scalar_lea.hbm %s20695_s24, 1024  ;;  %s16561_s21 = scalar_lea.hbm %s20760_s13, 2048 }
0x23ca   : > { %p16558_p4 = scmp.ne.s32.totalorder %s20695_s24, %s16557_s23  ;;  %p16562_p9 = scmp.lt.u32.totalorder %s20695_s24, %s20760_s13 }
0x23cb   : > { %p16563_p10 = scmp.lt.u32.totalorder %s16561_s21, %s16557_s23  ;;  %p16565_p12 = scmp.lt.u32.totalorder %s16557_s23, %s20695_s24 }
0x23cc   : > { %p16559_p7 = pnand %p16558_p4, %p16721_p5 }
0x23cd   : > { %p16564_p11 = por %p16563_p10, %p16562_p9 }
0x23ce   : > { %p16560_p8 = pneg %p16559_p7 }
0x23cf   : > { %p16566_p13 = por %p16565_p12, %p16564_p11 }
0x23d1   : > { %p16567_p0 = pnand %p16566_p13, %p16560_p8 }
0x23d3   : > { %16570 = shalt.err (!%p16567_p0)
}
0x23d4   : > { %s16611_s30 = smov 128   ;;  %s16612_s22 = smov 8  }
0x23d5   : > { %14963 = dma.vmem_to_hbm [thread:$0]  (%p16721_p5), %s20697_s20, 1024, %s20695_s24, %s20706_s29, %s16611_s30, %s16611_s30, %s16612_s22  }
0x23d6 PF: > { %p14969_p1 = scmp.ge.s32.totalorder %s16605_s28, 2  ;;  %s10264_s17 = sand.u32 1, %s16593_s25  }
0x23d7   : > { %s10265_s23 = scalar_lea.sflag [#allocation3], %s10264_s17 }
0x23d8   : > { %p14966_p2 = pnand %p14969_p1, %p16725_p6 }
0x23da   : > { %16588 = dma.done.wait (!%p14966_p2), %s10265_s23, 1024  }
0x23db   : > { %16590 = vsyncadd (!%p14966_p2), %s10265_s23, 4294966272  ;;  %s20926_s16 = sld [smem:[#allocation5_spill]]  ;;  %s20927_s27 = sld [smem:[#allocation6_spill]] }
0x23dc   : > { %p23_p3 = scmp.ge.s32.totalorder %s16708_s14, 4   ;;  %s20928_s25 = smov %s16597_s26 }
0x23dd   : > { %s20930_s28 = smov %s16708_s14 }
0x23de   :  { %25 = sbr.rel (!%p23_p3) target bundleno = 3 (0x3), region = 134 }
0x23e1   : > { %s20929_s26 = smov %s20926_s16 }
0x23e5   :  { %10270 = vsyncpa [#allocation3], 1 }
0x23e6   :  { %10272 = vsyncpa [#allocation3 + $0x1], 1 }

</bundles_post_ra>
